<compile_context>
chip_gen: v5e
topology: v5e:2x2
jax: 0.10.0
libtpu: 0.0.40
codegen_flags: <defaults>
</compile_context>

<pallas_src>
import functools

import jax
import jax.numpy as jnp
from jax.experimental import pallas as pl
from jax.experimental.pallas import tpu as pltpu

# ---------------------------------------------------------------------------
# Model dimensions (synthetic embedding net)
# ---------------------------------------------------------------------------
N_BATCH = 2
C_IN = 4
H_IN, W_IN = 16, 16

C1 = 8                                  # conv1 output channels
C2 = 16                                 # conv2 output channels
FC1_DIM = 32
EMB_DIM = 16

H1P, W1P = H_IN + 2, W_IN + 2           # zero-padded conv1 input
H2, W2 = H_IN // 2, W_IN // 2           # after pool1 (8 x 8)
H2P, W2P = H2 + 2, W2 + 2               # zero-padded conv2 input
H3, W3 = H2 // 2, W2 // 2               # after pool2 (4 x 4)
N_SPATIAL = H3 * W3                     # 16 spatial positions feeding fc1
FLAT_DIM = N_SPATIAL * C2               # 256


# ---------------------------------------------------------------------------
# Fused embedding-net kernel
# ---------------------------------------------------------------------------
def _embedding_kernel(
    xp_ref,                    # [N*H1P*W1P + 2*W1P + 2, C_IN]  padded flat NHWC input
    wc1_ref, bc1_ref,          # [9*C_IN, C1], [1, C1]
    wc2_ref, bc2_ref,          # [9*C1, C2],  [1, C2]
    wf1_ref, bf1_ref,          # [FLAT_DIM, FC1_DIM] (NHWC flatten order), [1, FC1_DIM]
    wf2_ref, bf2_ref,          # [FC1_DIM, EMB_DIM], [1, EMB_DIM]
    o_ref,                     # [N, EMB_DIM]
    c1_ref,                    # scratch [N*H1P*W1P, C1]            conv1 out (padded coords)
    a2_ref,                    # scratch [N*H2P*W2P + 2*W2P + 2, C1] padded conv2 input
    c2_ref,                    # scratch [N*H2P*W2P, C2]            conv2 out (padded coords)
    p2_ref,                    # scratch [N*N_SPATIAL, C2]          pool2 out (NHWC rows)
    *, n_batch):
    f32 = jnp.float32

    # ---- conv1: 3x3 pad=1 as 9 shifted matmuls on the MXU, + bias + ReLU ----
    r1 = n_batch * H1P * W1P
    acc = None
    for di in range(3):
        for dj in range(3):
            k = di * 3 + dj
            sh = di * W1P + dj
            part = jnp.dot(xp_ref[sh:sh + r1, :],
                           wc1_ref[k * C_IN:(k + 1) * C_IN, :],
                           preferred_element_type=f32)
            acc = part if acc is None else acc + part
    c1_ref[...] = jnp.maximum(acc + bc1_ref[...], 0.0)

    # ---- pool1: 2x2 max, scattered straight into the zero-padded conv2 input ----
    a2_ref[...] = jnp.zeros_like(a2_ref)
    for b in range(n_batch):
        for i in range(H2):
            blk = None
            for dh in range(2):
                for dw in range(2):
                    src = b * H1P * W1P + (2 * i + dh) * W1P + dw
                    v = c1_ref[pl.ds(src, W2, 2), :]      # rows 2j+dw, j = 0..W2-1
                    blk = v if blk is None else jnp.maximum(blk, v)
            dst = b * H2P * W2P + (i + 1) * W2P + 1
            a2_ref[dst:dst + W2, :] = blk

    # ---- conv2: 3x3 pad=1, same 9-matmul accumulation ----
    r2 = n_batch * H2P * W2P
    acc = None
    for di in range(3):
        for dj in range(3):
            k = di * 3 + dj
            sh = di * W2P + dj
            part = jnp.dot(a2_ref[sh:sh + r2, :],
                           wc2_ref[k * C1:(k + 1) * C1, :],
                           preferred_element_type=f32)
            acc = part if acc is None else acc + part
    c2_ref[...] = jnp.maximum(acc + bc2_ref[...], 0.0)

    # ---- pool2: 2x2 max -> row (n*16 + i*W3 + j) of p2_ref (NHWC flatten order) ----
    for b in range(n_batch):
        for i in range(H3):
            blk = None
            for dh in range(2):
                for dw in range(2):
                    src = b * H2P * W2P + (2 * i + dh) * W2P + dw
                    v = c2_ref[pl.ds(src, W3, 2), :]
                    blk = v if blk is None else jnp.maximum(blk, v)
            dst = b * N_SPATIAL + i * W3
            p2_ref[dst:dst + W3, :] = blk

    # ---- fc1: consumes NHWC flatten order via per-spatial-position matmuls ----
    acc = None
    for s in range(N_SPATIAL):
        part = jnp.dot(p2_ref[pl.ds(s, n_batch, N_SPATIAL), :],   # [n, C2] at spatial pos s
                       wf1_ref[s * C2:(s + 1) * C2, :],
                       preferred_element_type=f32)
        acc = part if acc is None else acc + part
    h1 = jnp.maximum(acc + bf1_ref[...], 0.0)                      # [n, FC1_DIM]

    # ---- fc2 -> embedding (only HBM store of the whole net) ----
    out = jnp.dot(h1, wf2_ref[...], preferred_element_type=f32) + bf2_ref[...]
    o_ref[...] = out.astype(o_ref.dtype)


def _full_spec(shape):
    ndim = len(shape)
    return pl.BlockSpec(shape, lambda *_: (0,) * ndim)


def embedding_net_forward(params, x_nchw):
    n, c, h, w = x_nchw.shape
    assert (c, h, w) == (C_IN, H_IN, W_IN)

    # One-shot XLA prep: NCHW -> zero-padded flat NHWC rows (n, hp, wp), plus a
    # zero tail so the 9 shifted in-kernel views stay in bounds.
    x = jnp.transpose(x_nchw, (0, 2, 3, 1)).astype(jnp.float32)
    xpad = jnp.pad(x, ((0, 0), (1, 1), (1, 1), (0, 0)))
    xp = xpad.reshape(n * H1P * W1P, C_IN)
    xp = jnp.pad(xp, ((0, 2 * W1P + 2), (0, 0)))

    r1 = n * H1P * W1P
    r2 = n * H2P * W2P
    inputs = (xp,
              params["w_conv1"], params["b_conv1"],
              params["w_conv2"], params["b_conv2"],
              params["w_fc1"], params["b_fc1"],
              params["w_fc2"], params["b_fc2"])

    return pl.pallas_call(
        functools.partial(_embedding_kernel, n_batch=n),
        out_shape=jax.ShapeDtypeStruct((n, EMB_DIM), jnp.float32),
        grid=(1,),
        in_specs=[_full_spec(a.shape) for a in inputs],
        out_specs=_full_spec((n, EMB_DIM)),
        scratch_shapes=[
            pltpu.VMEM((r1, C1), jnp.float32),
            pltpu.VMEM((r2 + 2 * W2P + 2, C1), jnp.float32),
            pltpu.VMEM((r2, C2), jnp.float32),
            pltpu.VMEM((n * N_SPATIAL, C2), jnp.float32),
        ],
    )(*inputs)


@jax.jit
def triplet_net_forward(params, x1):
    # TripletNet.forward(x1): output1 = embedding_net(x1); return output1
    return embedding_net_forward(params, x1)


# ---------------------------------------------------------------------------
# Parameters (deterministic synthetic init, PyTorch-like uniform fan-in)
# ---------------------------------------------------------------------------
def init_params(key):
    ks = jax.random.split(key, 8)

    def u(k, shape, fan_in):
        lim = 1.0 / jnp.sqrt(jnp.float32(fan_in))
        return jax.random.uniform(k, shape, jnp.float32, -lim, lim)

    # Conv weights in im2col layout: row = (di*3+dj)*C_in + c_in.
    # fc1 weights consume the NHWC flatten order: row = (i*W3+j)*C2 + c.
    return {
        "w_conv1": u(ks[0], (9 * C_IN, C1), 9 * C_IN),
        "b_conv1": u(ks[1], (1, C1), 9 * C_IN),
        "w_conv2": u(ks[2], (9 * C1, C2), 9 * C1),
        "b_conv2": u(ks[3], (1, C2), 9 * C1),
        "w_fc1": u(ks[4], (FLAT_DIM, FC1_DIM), FLAT_DIM),
        "b_fc1": u(ks[5], (1, FC1_DIM), FLAT_DIM),
        "w_fc2": u(ks[6], (FC1_DIM, EMB_DIM), FC1_DIM),
        "b_fc2": u(ks[7], (1, EMB_DIM), FC1_DIM),
    }


# ---------------------------------------------------------------------------
# Pure-JAX reference (same weight-layout conventions) for a sanity check
# ---------------------------------------------------------------------------
def _reference_forward(params, x_nchw):
    x = jnp.transpose(x_nchw, (0, 2, 3, 1)).astype(jnp.float32)    # NHWC

    def conv3x3_relu(a, w, b):
        n, h, wd, c = a.shape
        ap = jnp.pad(a, ((0, 0), (1, 1), (1, 1), (0, 0)))
        cols = [ap[:, di:di + h, dj:dj + wd, :]
                for di in range(3) for dj in range(3)]
        p = jnp.concatenate(cols, axis=-1).reshape(n * h * wd, 9 * c)
        y = p @ w + b
        return jnp.maximum(y, 0.0).reshape(n, h, wd, -1)

    def pool2x2(a):
        n, h, wd, c = a.shape
        return a.reshape(n, h // 2, 2, wd // 2, 2, c).max(axis=(2, 4))

    y = pool2x2(conv3x3_relu(x, params["w_conv1"], params["b_conv1"]))
    y = pool2x2(conv3x3_relu(y, params["w_conv2"], params["b_conv2"]))
    flat = y.reshape(y.shape[0], -1)                               # NHWC flatten
    h1 = jnp.maximum(flat @ params["w_fc1"] + params["b_fc1"], 0.0)
    return h1 @ params["w_fc2"] + params["b_fc2"]


# ---------------------------------------------------------------------------
if __name__ == "__main__":
    key = jax.random.PRNGKey(0)
    k_param, k_x = jax.random.split(key)

    params = init_params(k_param)
    x1 = jax.random.normal(k_x, (N_BATCH, C_IN, H_IN, W_IN), jnp.float32)  # NCHW

    out = triplet_net_forward(params, x1)
    out = jax.block_until_ready(out)
    assert out.shape == (N_BATCH, EMB_DIM), out.shape

    ref = _reference_forward(params, x1)
    err = float(jnp.max(jnp.abs(out - ref)))
    assert err < 5e-2, f"mismatch vs reference: max abs err = {err}"

    print("KERNEL_OK")
</pallas_src>

<mosaic_0001>
module attributes {stable_mosaic.version = 11 : i64} {
  func.func @_embedding_kernel(%arg0: i32, %arg1: memref<686x4xf32, #tpu.memory_space<vmem>>, %arg2: memref<36x8xf32, #tpu.memory_space<vmem>>, %arg3: memref<1x8xf32, #tpu.memory_space<vmem>>, %arg4: memref<72x16xf32, #tpu.memory_space<vmem>>, %arg5: memref<1x16xf32, #tpu.memory_space<vmem>>, %arg6: memref<256x32xf32, #tpu.memory_space<vmem>>, %arg7: memref<1x32xf32, #tpu.memory_space<vmem>>, %arg8: memref<32x16xf32, #tpu.memory_space<vmem>>, %arg9: memref<1x16xf32, #tpu.memory_space<vmem>>, %arg10: memref<2x16xf32, #tpu.memory_space<vmem>>, %arg11: memref<648x8xf32, #tpu.memory_space<vmem>>, %arg12: memref<222x8xf32, #tpu.memory_space<vmem>>, %arg13: memref<200x16xf32, #tpu.memory_space<vmem>>, %arg14: memref<32x16xf32, #tpu.memory_space<vmem>>) attributes {dimension_semantics = [#tpu.dimension_semantics<arbitrary>], iteration_bounds = array<i64: 1>, scalar_prefetch = 0 : i64, scratch_operands = 4 : i64, tpu.core_type = #tpu.core_type<tc>, window_params = [{pipeline_mode = #tpu.pipeline_mode<synchronous>, transform_indices = @transform_0, window_bounds = array<i64: 686, 4>}, {pipeline_mode = #tpu.pipeline_mode<synchronous>, transform_indices = @transform_1, window_bounds = array<i64: 36, 8>}, {pipeline_mode = #tpu.pipeline_mode<synchronous>, transform_indices = @transform_2, window_bounds = array<i64: 1, 8>}, {pipeline_mode = #tpu.pipeline_mode<synchronous>, transform_indices = @transform_3, window_bounds = array<i64: 72, 16>}, {pipeline_mode = #tpu.pipeline_mode<synchronous>, transform_indices = @transform_4, window_bounds = array<i64: 1, 16>}, {pipeline_mode = #tpu.pipeline_mode<synchronous>, transform_indices = @transform_5, window_bounds = array<i64: 256, 32>}, {pipeline_mode = #tpu.pipeline_mode<synchronous>, transform_indices = @transform_6, window_bounds = array<i64: 1, 32>}, {pipeline_mode = #tpu.pipeline_mode<synchronous>, transform_indices = @transform_7, window_bounds = array<i64: 32, 16>}, {pipeline_mode = #tpu.pipeline_mode<synchronous>, transform_indices = @transform_8, window_bounds = array<i64: 1, 16>}, {pipeline_mode = #tpu.pipeline_mode<synchronous>, transform_indices = @transform_9, window_bounds = array<i64: 2, 16>}]} {
    %c0 = arith.constant 0 : index
    %c0_0 = arith.constant 0 : index
    %0 = vector.load %arg1[%c0, %c0_0] : memref<686x4xf32, #tpu.memory_space<vmem>>, vector<648x4xf32>
    %c0_1 = arith.constant 0 : index
    %c0_2 = arith.constant 0 : index
    %1 = vector.load %arg2[%c0_1, %c0_2] : memref<36x8xf32, #tpu.memory_space<vmem>>, vector<4x8xf32>
    %cst = arith.constant dense<0.000000e+00> : vector<648x8xf32>
    %2 = tpu.matmul %0, %1, %cst {dimension_numbers = #tpu.dot_dimension_numbers<[1], [0], [0], [1], [0, 0, 1, 1], [], []>} : vector<648x4xf32>, vector<4x8xf32>, vector<648x8xf32> -> vector<648x8xf32>
    %c1 = arith.constant 1 : index
    %c0_3 = arith.constant 0 : index
    %3 = vector.load %arg1[%c1, %c0_3] : memref<686x4xf32, #tpu.memory_space<vmem>>, vector<648x4xf32>
    %c4 = arith.constant 4 : index
    %c0_4 = arith.constant 0 : index
    %4 = vector.load %arg2[%c4, %c0_4] : memref<36x8xf32, #tpu.memory_space<vmem>>, vector<4x8xf32>
    %cst_5 = arith.constant dense<0.000000e+00> : vector<648x8xf32>
    %5 = tpu.matmul %3, %4, %cst_5 {dimension_numbers = #tpu.dot_dimension_numbers<[1], [0], [0], [1], [0, 0, 1, 1], [], []>} : vector<648x4xf32>, vector<4x8xf32>, vector<648x8xf32> -> vector<648x8xf32>
    %6 = arith.addf %2, %5 : vector<648x8xf32>
    %c2 = arith.constant 2 : index
    %c0_6 = arith.constant 0 : index
    %7 = vector.load %arg1[%c2, %c0_6] : memref<686x4xf32, #tpu.memory_space<vmem>>, vector<648x4xf32>
    %c8 = arith.constant 8 : index
    %c0_7 = arith.constant 0 : index
    %8 = vector.load %arg2[%c8, %c0_7] : memref<36x8xf32, #tpu.memory_space<vmem>>, vector<4x8xf32>
    %cst_8 = arith.constant dense<0.000000e+00> : vector<648x8xf32>
    %9 = tpu.matmul %7, %8, %cst_8 {dimension_numbers = #tpu.dot_dimension_numbers<[1], [0], [0], [1], [0, 0, 1, 1], [], []>} : vector<648x4xf32>, vector<4x8xf32>, vector<648x8xf32> -> vector<648x8xf32>
    %10 = arith.addf %6, %9 : vector<648x8xf32>
    %c18 = arith.constant 18 : index
    %c0_9 = arith.constant 0 : index
    %11 = vector.load %arg1[%c18, %c0_9] : memref<686x4xf32, #tpu.memory_space<vmem>>, vector<648x4xf32>
    %c12 = arith.constant 12 : index
    %c0_10 = arith.constant 0 : index
    %12 = vector.load %arg2[%c12, %c0_10] : memref<36x8xf32, #tpu.memory_space<vmem>>, vector<4x8xf32>
    %cst_11 = arith.constant dense<0.000000e+00> : vector<648x8xf32>
    %13 = tpu.matmul %11, %12, %cst_11 {dimension_numbers = #tpu.dot_dimension_numbers<[1], [0], [0], [1], [0, 0, 1, 1], [], []>} : vector<648x4xf32>, vector<4x8xf32>, vector<648x8xf32> -> vector<648x8xf32>
    %14 = arith.addf %10, %13 : vector<648x8xf32>
    %c19 = arith.constant 19 : index
    %c0_12 = arith.constant 0 : index
    %15 = vector.load %arg1[%c19, %c0_12] : memref<686x4xf32, #tpu.memory_space<vmem>>, vector<648x4xf32>
    %c16 = arith.constant 16 : index
    %c0_13 = arith.constant 0 : index
    %16 = vector.load %arg2[%c16, %c0_13] : memref<36x8xf32, #tpu.memory_space<vmem>>, vector<4x8xf32>
    %cst_14 = arith.constant dense<0.000000e+00> : vector<648x8xf32>
    %17 = tpu.matmul %15, %16, %cst_14 {dimension_numbers = #tpu.dot_dimension_numbers<[1], [0], [0], [1], [0, 0, 1, 1], [], []>} : vector<648x4xf32>, vector<4x8xf32>, vector<648x8xf32> -> vector<648x8xf32>
    %18 = arith.addf %14, %17 : vector<648x8xf32>
    %c20 = arith.constant 20 : index
    %c0_15 = arith.constant 0 : index
    %19 = vector.load %arg1[%c20, %c0_15] : memref<686x4xf32, #tpu.memory_space<vmem>>, vector<648x4xf32>
    %c20_16 = arith.constant 20 : index
    %c0_17 = arith.constant 0 : index
    %20 = vector.load %arg2[%c20_16, %c0_17] : memref<36x8xf32, #tpu.memory_space<vmem>>, vector<4x8xf32>
    %cst_18 = arith.constant dense<0.000000e+00> : vector<648x8xf32>
    %21 = tpu.matmul %19, %20, %cst_18 {dimension_numbers = #tpu.dot_dimension_numbers<[1], [0], [0], [1], [0, 0, 1, 1], [], []>} : vector<648x4xf32>, vector<4x8xf32>, vector<648x8xf32> -> vector<648x8xf32>
    %22 = arith.addf %18, %21 : vector<648x8xf32>
    %c36 = arith.constant 36 : index
    %c0_19 = arith.constant 0 : index
    %23 = vector.load %arg1[%c36, %c0_19] : memref<686x4xf32, #tpu.memory_space<vmem>>, vector<648x4xf32>
    %c24 = arith.constant 24 : index
    %c0_20 = arith.constant 0 : index
    %24 = vector.load %arg2[%c24, %c0_20] : memref<36x8xf32, #tpu.memory_space<vmem>>, vector<4x8xf32>
    %cst_21 = arith.constant dense<0.000000e+00> : vector<648x8xf32>
    %25 = tpu.matmul %23, %24, %cst_21 {dimension_numbers = #tpu.dot_dimension_numbers<[1], [0], [0], [1], [0, 0, 1, 1], [], []>} : vector<648x4xf32>, vector<4x8xf32>, vector<648x8xf32> -> vector<648x8xf32>
    %26 = arith.addf %22, %25 : vector<648x8xf32>
    %c37 = arith.constant 37 : index
    %c0_22 = arith.constant 0 : index
    %27 = vector.load %arg1[%c37, %c0_22] : memref<686x4xf32, #tpu.memory_space<vmem>>, vector<648x4xf32>
    %c28 = arith.constant 28 : index
    %c0_23 = arith.constant 0 : index
    %28 = vector.load %arg2[%c28, %c0_23] : memref<36x8xf32, #tpu.memory_space<vmem>>, vector<4x8xf32>
    %cst_24 = arith.constant dense<0.000000e+00> : vector<648x8xf32>
    %29 = tpu.matmul %27, %28, %cst_24 {dimension_numbers = #tpu.dot_dimension_numbers<[1], [0], [0], [1], [0, 0, 1, 1], [], []>} : vector<648x4xf32>, vector<4x8xf32>, vector<648x8xf32> -> vector<648x8xf32>
    %30 = arith.addf %26, %29 : vector<648x8xf32>
    %c38 = arith.constant 38 : index
    %c0_25 = arith.constant 0 : index
    %31 = vector.load %arg1[%c38, %c0_25] : memref<686x4xf32, #tpu.memory_space<vmem>>, vector<648x4xf32>
    %c32 = arith.constant 32 : index
    %c0_26 = arith.constant 0 : index
    %32 = vector.load %arg2[%c32, %c0_26] : memref<36x8xf32, #tpu.memory_space<vmem>>, vector<4x8xf32>
    %cst_27 = arith.constant dense<0.000000e+00> : vector<648x8xf32>
    %33 = tpu.matmul %31, %32, %cst_27 {dimension_numbers = #tpu.dot_dimension_numbers<[1], [0], [0], [1], [0, 0, 1, 1], [], []>} : vector<648x4xf32>, vector<4x8xf32>, vector<648x8xf32> -> vector<648x8xf32>
    %34 = arith.addf %30, %33 : vector<648x8xf32>
    %c0_28 = arith.constant 0 : index
    %c0_29 = arith.constant 0 : index
    %35 = vector.load %arg3[%c0_28, %c0_29] : memref<1x8xf32, #tpu.memory_space<vmem>>, vector<1x8xf32>
    %36 = vector.broadcast %35 : vector<1x8xf32> to vector<648x8xf32>
    %37 = arith.addf %34, %36 : vector<648x8xf32>
    %cst_30 = arith.constant 0.000000e+00 : f32
    %38 = vector.broadcast %cst_30 : f32 to vector<648x8xf32>
    %39 = arith.maximumf %37, %38 : vector<648x8xf32>
    %c0_31 = arith.constant 0 : index
    %c0_32 = arith.constant 0 : index
    %40 = vector.load %arg11[%c0_31, %c0_32] : memref<648x8xf32, #tpu.memory_space<vmem>>, vector<648x8xf32>
    tpu.vector_store %arg11[%c0_31, %c0_32], %39 {strides = array<i32>} : memref<648x8xf32, #tpu.memory_space<vmem>>, vector<648x8xf32>,
    %cst_33 = arith.constant 0.000000e+00 : f32
    %41 = vector.broadcast %cst_33 : f32 to vector<222x8xf32>
    %c0_34 = arith.constant 0 : index
    %c0_35 = arith.constant 0 : index
    %42 = vector.load %arg12[%c0_34, %c0_35] : memref<222x8xf32, #tpu.memory_space<vmem>>, vector<222x8xf32>
    tpu.vector_store %arg12[%c0_34, %c0_35], %41 {strides = array<i32>} : memref<222x8xf32, #tpu.memory_space<vmem>>, vector<222x8xf32>,
    %c0_36 = arith.constant 0 : index
    %c0_37 = arith.constant 0 : index
    %43 = tpu.strided_load %arg11[%c0_36, %c0_37] {strides = array<i32: 2, 1>} : memref<648x8xf32, #tpu.memory_space<vmem>>, vector<8x8xf32>
    %c1_38 = arith.constant 1 : index
    %c0_39 = arith.constant 0 : index
    %44 = tpu.strided_load %arg11[%c1_38, %c0_39] {strides = array<i32: 2, 1>} : memref<648x8xf32, #tpu.memory_space<vmem>>, vector<8x8xf32>
    %45 = arith.maximumf %43, %44 : vector<8x8xf32>
    %c18_40 = arith.constant 18 : index
    %c0_41 = arith.constant 0 : index
    %46 = tpu.strided_load %arg11[%c18_40, %c0_41] {strides = array<i32: 2, 1>} : memref<648x8xf32, #tpu.memory_space<vmem>>, vector<8x8xf32>
    %47 = arith.maximumf %45, %46 : vector<8x8xf32>
    %c19_42 = arith.constant 19 : index
    %c0_43 = arith.constant 0 : index
    %48 = tpu.strided_load %arg11[%c19_42, %c0_43] {strides = array<i32: 2, 1>} : memref<648x8xf32, #tpu.memory_space<vmem>>, vector<8x8xf32>
    %49 = arith.maximumf %47, %48 : vector<8x8xf32>
    %c11 = arith.constant 11 : index
    %c0_44 = arith.constant 0 : index
    %50 = vector.load %arg12[%c11, %c0_44] : memref<222x8xf32, #tpu.memory_space<vmem>>, vector<8x8xf32>
    tpu.vector_store %arg12[%c11, %c0_44], %49 {strides = array<i32>} : memref<222x8xf32, #tpu.memory_space<vmem>>, vector<8x8xf32>,
    %c36_45 = arith.constant 36 : index
    %c0_46 = arith.constant 0 : index
    %51 = tpu.strided_load %arg11[%c36_45, %c0_46] {strides = array<i32: 2, 1>} : memref<648x8xf32, #tpu.memory_space<vmem>>, vector<8x8xf32>
    %c37_47 = arith.constant 37 : index
    %c0_48 = arith.constant 0 : index
    %52 = tpu.strided_load %arg11[%c37_47, %c0_48] {strides = array<i32: 2, 1>} : memref<648x8xf32, #tpu.memory_space<vmem>>, vector<8x8xf32>
    %53 = arith.maximumf %51, %52 : vector<8x8xf32>
    %c54 = arith.constant 54 : index
    %c0_49 = arith.constant 0 : index
    %54 = tpu.strided_load %arg11[%c54, %c0_49] {strides = array<i32: 2, 1>} : memref<648x8xf32, #tpu.memory_space<vmem>>, vector<8x8xf32>
    %55 = arith.maximumf %53, %54 : vector<8x8xf32>
    %c55 = arith.constant 55 : index
    %c0_50 = arith.constant 0 : index
    %56 = tpu.strided_load %arg11[%c55, %c0_50] {strides = array<i32: 2, 1>} : memref<648x8xf32, #tpu.memory_space<vmem>>, vector<8x8xf32>
    %57 = arith.maximumf %55, %56 : vector<8x8xf32>
    %c21 = arith.constant 21 : index
    %c0_51 = arith.constant 0 : index
    %58 = vector.load %arg12[%c21, %c0_51] : memref<222x8xf32, #tpu.memory_space<vmem>>, vector<8x8xf32>
    tpu.vector_store %arg12[%c21, %c0_51], %57 {strides = array<i32>} : memref<222x8xf32, #tpu.memory_space<vmem>>, vector<8x8xf32>,
    %c72 = arith.constant 72 : index
    %c0_52 = arith.constant 0 : index
    %59 = tpu.strided_load %arg11[%c72, %c0_52] {strides = array<i32: 2, 1>} : memref<648x8xf32, #tpu.memory_space<vmem>>, vector<8x8xf32>
    %c73 = arith.constant 73 : index
    %c0_53 = arith.constant 0 : index
    %60 = tpu.strided_load %arg11[%c73, %c0_53] {strides = array<i32: 2, 1>} : memref<648x8xf32, #tpu.memory_space<vmem>>, vector<8x8xf32>
    %61 = arith.maximumf %59, %60 : vector<8x8xf32>
    %c90 = arith.constant 90 : index
    %c0_54 = arith.constant 0 : index
    %62 = tpu.strided_load %arg11[%c90, %c0_54] {strides = array<i32: 2, 1>} : memref<648x8xf32, #tpu.memory_space<vmem>>, vector<8x8xf32>
    %63 = arith.maximumf %61, %62 : vector<8x8xf32>
    %c91 = arith.constant 91 : index
    %c0_55 = arith.constant 0 : index
    %64 = tpu.strided_load %arg11[%c91, %c0_55] {strides = array<i32: 2, 1>} : memref<648x8xf32, #tpu.memory_space<vmem>>, vector<8x8xf32>
    %65 = arith.maximumf %63, %64 : vector<8x8xf32>
    %c31 = arith.constant 31 : index
    %c0_56 = arith.constant 0 : index
    %66 = vector.load %arg12[%c31, %c0_56] : memref<222x8xf32, #tpu.memory_space<vmem>>, vector<8x8xf32>
    tpu.vector_store %arg12[%c31, %c0_56], %65 {strides = array<i32>} : memref<222x8xf32, #tpu.memory_space<vmem>>, vector<8x8xf32>,
    %c108 = arith.constant 108 : index
    %c0_57 = arith.constant 0 : index
    %67 = tpu.strided_load %arg11[%c108, %c0_57] {strides = array<i32: 2, 1>} : memref<648x8xf32, #tpu.memory_space<vmem>>, vector<8x8xf32>
    %c109 = arith.constant 109 : index
    %c0_58 = arith.constant 0 : index
    %68 = tpu.strided_load %arg11[%c109, %c0_58] {strides = array<i32: 2, 1>} : memref<648x8xf32, #tpu.memory_space<vmem>>, vector<8x8xf32>
    %69 = arith.maximumf %67, %68 : vector<8x8xf32>
    %c126 = arith.constant 126 : index
    %c0_59 = arith.constant 0 : index
    %70 = tpu.strided_load %arg11[%c126, %c0_59] {strides = array<i32: 2, 1>} : memref<648x8xf32, #tpu.memory_space<vmem>>, vector<8x8xf32>
    %71 = arith.maximumf %69, %70 : vector<8x8xf32>
    %c127 = arith.constant 127 : index
    %c0_60 = arith.constant 0 : index
    %72 = tpu.strided_load %arg11[%c127, %c0_60] {strides = array<i32: 2, 1>} : memref<648x8xf32, #tpu.memory_space<vmem>>, vector<8x8xf32>
    %73 = arith.maximumf %71, %72 : vector<8x8xf32>
    %c41 = arith.constant 41 : index
    %c0_61 = arith.constant 0 : index
    %74 = vector.load %arg12[%c41, %c0_61] : memref<222x8xf32, #tpu.memory_space<vmem>>, vector<8x8xf32>
    tpu.vector_store %arg12[%c41, %c0_61], %73 {strides = array<i32>} : memref<222x8xf32, #tpu.memory_space<vmem>>, vector<8x8xf32>,
    %c144 = arith.constant 144 : index
    %c0_62 = arith.constant 0 : index
    %75 = tpu.strided_load %arg11[%c144, %c0_62] {strides = array<i32: 2, 1>} : memref<648x8xf32, #tpu.memory_space<vmem>>, vector<8x8xf32>
    %c145 = arith.constant 145 : index
    %c0_63 = arith.constant 0 : index
    %76 = tpu.strided_load %arg11[%c145, %c0_63] {strides = array<i32: 2, 1>} : memref<648x8xf32, #tpu.memory_space<vmem>>, vector<8x8xf32>
    %77 = arith.maximumf %75, %76 : vector<8x8xf32>
    %c162 = arith.constant 162 : index
    %c0_64 = arith.constant 0 : index
    %78 = tpu.strided_load %arg11[%c162, %c0_64] {strides = array<i32: 2, 1>} : memref<648x8xf32, #tpu.memory_space<vmem>>, vector<8x8xf32>
    %79 = arith.maximumf %77, %78 : vector<8x8xf32>
    %c163 = arith.constant 163 : index
    %c0_65 = arith.constant 0 : index
    %80 = tpu.strided_load %arg11[%c163, %c0_65] {strides = array<i32: 2, 1>} : memref<648x8xf32, #tpu.memory_space<vmem>>, vector<8x8xf32>
    %81 = arith.maximumf %79, %80 : vector<8x8xf32>
    %c51 = arith.constant 51 : index
    %c0_66 = arith.constant 0 : index
    %82 = vector.load %arg12[%c51, %c0_66] : memref<222x8xf32, #tpu.memory_space<vmem>>, vector<8x8xf32>
    tpu.vector_store %arg12[%c51, %c0_66], %81 {strides = array<i32>} : memref<222x8xf32, #tpu.memory_space<vmem>>, vector<8x8xf32>,
    %c180 = arith.constant 180 : index
    %c0_67 = arith.constant 0 : index
    %83 = tpu.strided_load %arg11[%c180, %c0_67] {strides = array<i32: 2, 1>} : memref<648x8xf32, #tpu.memory_space<vmem>>, vector<8x8xf32>
    %c181 = arith.constant 181 : index
    %c0_68 = arith.constant 0 : index
    %84 = tpu.strided_load %arg11[%c181, %c0_68] {strides = array<i32: 2, 1>} : memref<648x8xf32, #tpu.memory_space<vmem>>, vector<8x8xf32>
    %85 = arith.maximumf %83, %84 : vector<8x8xf32>
    %c198 = arith.constant 198 : index
    %c0_69 = arith.constant 0 : index
    %86 = tpu.strided_load %arg11[%c198, %c0_69] {strides = array<i32: 2, 1>} : memref<648x8xf32, #tpu.memory_space<vmem>>, vector<8x8xf32>
    %87 = arith.maximumf %85, %86 : vector<8x8xf32>
    %c199 = arith.constant 199 : index
    %c0_70 = arith.constant 0 : index
    %88 = tpu.strided_load %arg11[%c199, %c0_70] {strides = array<i32: 2, 1>} : memref<648x8xf32, #tpu.memory_space<vmem>>, vector<8x8xf32>
    %89 = arith.maximumf %87, %88 : vector<8x8xf32>
    %c61 = arith.constant 61 : index
    %c0_71 = arith.constant 0 : index
    %90 = vector.load %arg12[%c61, %c0_71] : memref<222x8xf32, #tpu.memory_space<vmem>>, vector<8x8xf32>
    tpu.vector_store %arg12[%c61, %c0_71], %89 {strides = array<i32>} : memref<222x8xf32, #tpu.memory_space<vmem>>, vector<8x8xf32>,
    %c216 = arith.constant 216 : index
    %c0_72 = arith.constant 0 : index
    %91 = tpu.strided_load %arg11[%c216, %c0_72] {strides = array<i32: 2, 1>} : memref<648x8xf32, #tpu.memory_space<vmem>>, vector<8x8xf32>
    %c217 = arith.constant 217 : index
    %c0_73 = arith.constant 0 : index
    %92 = tpu.strided_load %arg11[%c217, %c0_73] {strides = array<i32: 2, 1>} : memref<648x8xf32, #tpu.memory_space<vmem>>, vector<8x8xf32>
    %93 = arith.maximumf %91, %92 : vector<8x8xf32>
    %c234 = arith.constant 234 : index
    %c0_74 = arith.constant 0 : index
    %94 = tpu.strided_load %arg11[%c234, %c0_74] {strides = array<i32: 2, 1>} : memref<648x8xf32, #tpu.memory_space<vmem>>, vector<8x8xf32>
    %95 = arith.maximumf %93, %94 : vector<8x8xf32>
    %c235 = arith.constant 235 : index
    %c0_75 = arith.constant 0 : index
    %96 = tpu.strided_load %arg11[%c235, %c0_75] {strides = array<i32: 2, 1>} : memref<648x8xf32, #tpu.memory_space<vmem>>, vector<8x8xf32>
    %97 = arith.maximumf %95, %96 : vector<8x8xf32>
    %c71 = arith.constant 71 : index
    %c0_76 = arith.constant 0 : index
    %98 = vector.load %arg12[%c71, %c0_76] : memref<222x8xf32, #tpu.memory_space<vmem>>, vector<8x8xf32>
    tpu.vector_store %arg12[%c71, %c0_76], %97 {strides = array<i32>} : memref<222x8xf32, #tpu.memory_space<vmem>>, vector<8x8xf32>,
    %c252 = arith.constant 252 : index
    %c0_77 = arith.constant 0 : index
    %99 = tpu.strided_load %arg11[%c252, %c0_77] {strides = array<i32: 2, 1>} : memref<648x8xf32, #tpu.memory_space<vmem>>, vector<8x8xf32>
    %c253 = arith.constant 253 : index
    %c0_78 = arith.constant 0 : index
    %100 = tpu.strided_load %arg11[%c253, %c0_78] {strides = array<i32: 2, 1>} : memref<648x8xf32, #tpu.memory_space<vmem>>, vector<8x8xf32>
    %101 = arith.maximumf %99, %100 : vector<8x8xf32>
    %c270 = arith.constant 270 : index
    %c0_79 = arith.constant 0 : index
    %102 = tpu.strided_load %arg11[%c270, %c0_79] {strides = array<i32: 2, 1>} : memref<648x8xf32, #tpu.memory_space<vmem>>, vector<8x8xf32>
    %103 = arith.maximumf %101, %102 : vector<8x8xf32>
    %c271 = arith.constant 271 : index
    %c0_80 = arith.constant 0 : index
    %104 = tpu.strided_load %arg11[%c271, %c0_80] {strides = array<i32: 2, 1>} : memref<648x8xf32, #tpu.memory_space<vmem>>, vector<8x8xf32>
    %105 = arith.maximumf %103, %104 : vector<8x8xf32>
    %c81 = arith.constant 81 : index
    %c0_81 = arith.constant 0 : index
    %106 = vector.load %arg12[%c81, %c0_81] : memref<222x8xf32, #tpu.memory_space<vmem>>, vector<8x8xf32>
    tpu.vector_store %arg12[%c81, %c0_81], %105 {strides = array<i32>} : memref<222x8xf32, #tpu.memory_space<vmem>>, vector<8x8xf32>,
    %c324 = arith.constant 324 : index
    %c0_82 = arith.constant 0 : index
    %107 = tpu.strided_load %arg11[%c324, %c0_82] {strides = array<i32: 2, 1>} : memref<648x8xf32, #tpu.memory_space<vmem>>, vector<8x8xf32>
    %c325 = arith.constant 325 : index
    %c0_83 = arith.constant 0 : index
    %108 = tpu.strided_load %arg11[%c325, %c0_83] {strides = array<i32: 2, 1>} : memref<648x8xf32, #tpu.memory_space<vmem>>, vector<8x8xf32>
    %109 = arith.maximumf %107, %108 : vector<8x8xf32>
    %c342 = arith.constant 342 : index
    %c0_84 = arith.constant 0 : index
    %110 = tpu.strided_load %arg11[%c342, %c0_84] {strides = array<i32: 2, 1>} : memref<648x8xf32, #tpu.memory_space<vmem>>, vector<8x8xf32>
    %111 = arith.maximumf %109, %110 : vector<8x8xf32>
    %c343 = arith.constant 343 : index
    %c0_85 = arith.constant 0 : index
    %112 = tpu.strided_load %arg11[%c343, %c0_85] {strides = array<i32: 2, 1>} : memref<648x8xf32, #tpu.memory_space<vmem>>, vector<8x8xf32>
    %113 = arith.maximumf %111, %112 : vector<8x8xf32>
    %c111 = arith.constant 111 : index
    %c0_86 = arith.constant 0 : index
    %114 = vector.load %arg12[%c111, %c0_86] : memref<222x8xf32, #tpu.memory_space<vmem>>, vector<8x8xf32>
    tpu.vector_store %arg12[%c111, %c0_86], %113 {strides = array<i32>} : memref<222x8xf32, #tpu.memory_space<vmem>>, vector<8x8xf32>,
    %c360 = arith.constant 360 : index
    %c0_87 = arith.constant 0 : index
    %115 = tpu.strided_load %arg11[%c360, %c0_87] {strides = array<i32: 2, 1>} : memref<648x8xf32, #tpu.memory_space<vmem>>, vector<8x8xf32>
    %c361 = arith.constant 361 : index
    %c0_88 = arith.constant 0 : index
    %116 = tpu.strided_load %arg11[%c361, %c0_88] {strides = array<i32: 2, 1>} : memref<648x8xf32, #tpu.memory_space<vmem>>, vector<8x8xf32>
    %117 = arith.maximumf %115, %116 : vector<8x8xf32>
    %c378 = arith.constant 378 : index
    %c0_89 = arith.constant 0 : index
    %118 = tpu.strided_load %arg11[%c378, %c0_89] {strides = array<i32: 2, 1>} : memref<648x8xf32, #tpu.memory_space<vmem>>, vector<8x8xf32>
    %119 = arith.maximumf %117, %118 : vector<8x8xf32>
    %c379 = arith.constant 379 : index
    %c0_90 = arith.constant 0 : index
    %120 = tpu.strided_load %arg11[%c379, %c0_90] {strides = array<i32: 2, 1>} : memref<648x8xf32, #tpu.memory_space<vmem>>, vector<8x8xf32>
    %121 = arith.maximumf %119, %120 : vector<8x8xf32>
    %c121 = arith.constant 121 : index
    %c0_91 = arith.constant 0 : index
    %122 = vector.load %arg12[%c121, %c0_91] : memref<222x8xf32, #tpu.memory_space<vmem>>, vector<8x8xf32>
    tpu.vector_store %arg12[%c121, %c0_91], %121 {strides = array<i32>} : memref<222x8xf32, #tpu.memory_space<vmem>>, vector<8x8xf32>,
    %c396 = arith.constant 396 : index
    %c0_92 = arith.constant 0 : index
    %123 = tpu.strided_load %arg11[%c396, %c0_92] {strides = array<i32: 2, 1>} : memref<648x8xf32, #tpu.memory_space<vmem>>, vector<8x8xf32>
    %c397 = arith.constant 397 : index
    %c0_93 = arith.constant 0 : index
    %124 = tpu.strided_load %arg11[%c397, %c0_93] {strides = array<i32: 2, 1>} : memref<648x8xf32, #tpu.memory_space<vmem>>, vector<8x8xf32>
    %125 = arith.maximumf %123, %124 : vector<8x8xf32>
    %c414 = arith.constant 414 : index
    %c0_94 = arith.constant 0 : index
    %126 = tpu.strided_load %arg11[%c414, %c0_94] {strides = array<i32: 2, 1>} : memref<648x8xf32, #tpu.memory_space<vmem>>, vector<8x8xf32>
    %127 = arith.maximumf %125, %126 : vector<8x8xf32>
    %c415 = arith.constant 415 : index
    %c0_95 = arith.constant 0 : index
    %128 = tpu.strided_load %arg11[%c415, %c0_95] {strides = array<i32: 2, 1>} : memref<648x8xf32, #tpu.memory_space<vmem>>, vector<8x8xf32>
    %129 = arith.maximumf %127, %128 : vector<8x8xf32>
    %c131 = arith.constant 131 : index
    %c0_96 = arith.constant 0 : index
    %130 = vector.load %arg12[%c131, %c0_96] : memref<222x8xf32, #tpu.memory_space<vmem>>, vector<8x8xf32>
    tpu.vector_store %arg12[%c131, %c0_96], %129 {strides = array<i32>} : memref<222x8xf32, #tpu.memory_space<vmem>>, vector<8x8xf32>,
    %c432 = arith.constant 432 : index
    %c0_97 = arith.constant 0 : index
    %131 = tpu.strided_load %arg11[%c432, %c0_97] {strides = array<i32: 2, 1>} : memref<648x8xf32, #tpu.memory_space<vmem>>, vector<8x8xf32>
    %c433 = arith.constant 433 : index
    %c0_98 = arith.constant 0 : index
    %132 = tpu.strided_load %arg11[%c433, %c0_98] {strides = array<i32: 2, 1>} : memref<648x8xf32, #tpu.memory_space<vmem>>, vector<8x8xf32>
    %133 = arith.maximumf %131, %132 : vector<8x8xf32>
    %c450 = arith.constant 450 : index
    %c0_99 = arith.constant 0 : index
    %134 = tpu.strided_load %arg11[%c450, %c0_99] {strides = array<i32: 2, 1>} : memref<648x8xf32, #tpu.memory_space<vmem>>, vector<8x8xf32>
    %135 = arith.maximumf %133, %134 : vector<8x8xf32>
    %c451 = arith.constant 451 : index
    %c0_100 = arith.constant 0 : index
    %136 = tpu.strided_load %arg11[%c451, %c0_100] {strides = array<i32: 2, 1>} : memref<648x8xf32, #tpu.memory_space<vmem>>, vector<8x8xf32>
    %137 = arith.maximumf %135, %136 : vector<8x8xf32>
    %c141 = arith.constant 141 : index
    %c0_101 = arith.constant 0 : index
    %138 = vector.load %arg12[%c141, %c0_101] : memref<222x8xf32, #tpu.memory_space<vmem>>, vector<8x8xf32>
    tpu.vector_store %arg12[%c141, %c0_101], %137 {strides = array<i32>} : memref<222x8xf32, #tpu.memory_space<vmem>>, vector<8x8xf32>,
    %c468 = arith.constant 468 : index
    %c0_102 = arith.constant 0 : index
    %139 = tpu.strided_load %arg11[%c468, %c0_102] {strides = array<i32: 2, 1>} : memref<648x8xf32, #tpu.memory_space<vmem>>, vector<8x8xf32>
    %c469 = arith.constant 469 : index
    %c0_103 = arith.constant 0 : index
    %140 = tpu.strided_load %arg11[%c469, %c0_103] {strides = array<i32: 2, 1>} : memref<648x8xf32, #tpu.memory_space<vmem>>, vector<8x8xf32>
    %141 = arith.maximumf %139, %140 : vector<8x8xf32>
    %c486 = arith.constant 486 : index
    %c0_104 = arith.constant 0 : index
    %142 = tpu.strided_load %arg11[%c486, %c0_104] {strides = array<i32: 2, 1>} : memref<648x8xf32, #tpu.memory_space<vmem>>, vector<8x8xf32>
    %143 = arith.maximumf %141, %142 : vector<8x8xf32>
    %c487 = arith.constant 487 : index
    %c0_105 = arith.constant 0 : index
    %144 = tpu.strided_load %arg11[%c487, %c0_105] {strides = array<i32: 2, 1>} : memref<648x8xf32, #tpu.memory_space<vmem>>, vector<8x8xf32>
    %145 = arith.maximumf %143, %144 : vector<8x8xf32>
    %c151 = arith.constant 151 : index
    %c0_106 = arith.constant 0 : index
    %146 = vector.load %arg12[%c151, %c0_106] : memref<222x8xf32, #tpu.memory_space<vmem>>, vector<8x8xf32>
    tpu.vector_store %arg12[%c151, %c0_106], %145 {strides = array<i32>} : memref<222x8xf32, #tpu.memory_space<vmem>>, vector<8x8xf32>,
    %c504 = arith.constant 504 : index
    %c0_107 = arith.constant 0 : index
    %147 = tpu.strided_load %arg11[%c504, %c0_107] {strides = array<i32: 2, 1>} : memref<648x8xf32, #tpu.memory_space<vmem>>, vector<8x8xf32>
    %c505 = arith.constant 505 : index
    %c0_108 = arith.constant 0 : index
    %148 = tpu.strided_load %arg11[%c505, %c0_108] {strides = array<i32: 2, 1>} : memref<648x8xf32, #tpu.memory_space<vmem>>, vector<8x8xf32>
    %149 = arith.maximumf %147, %148 : vector<8x8xf32>
    %c522 = arith.constant 522 : index
    %c0_109 = arith.constant 0 : index
    %150 = tpu.strided_load %arg11[%c522, %c0_109] {strides = array<i32: 2, 1>} : memref<648x8xf32, #tpu.memory_space<vmem>>, vector<8x8xf32>
    %151 = arith.maximumf %149, %150 : vector<8x8xf32>
    %c523 = arith.constant 523 : index
    %c0_110 = arith.constant 0 : index
    %152 = tpu.strided_load %arg11[%c523, %c0_110] {strides = array<i32: 2, 1>} : memref<648x8xf32, #tpu.memory_space<vmem>>, vector<8x8xf32>
    %153 = arith.maximumf %151, %152 : vector<8x8xf32>
    %c161 = arith.constant 161 : index
    %c0_111 = arith.constant 0 : index
    %154 = vector.load %arg12[%c161, %c0_111] : memref<222x8xf32, #tpu.memory_space<vmem>>, vector<8x8xf32>
    tpu.vector_store %arg12[%c161, %c0_111], %153 {strides = array<i32>} : memref<222x8xf32, #tpu.memory_space<vmem>>, vector<8x8xf32>,
    %c540 = arith.constant 540 : index
    %c0_112 = arith.constant 0 : index
    %155 = tpu.strided_load %arg11[%c540, %c0_112] {strides = array<i32: 2, 1>} : memref<648x8xf32, #tpu.memory_space<vmem>>, vector<8x8xf32>
    %c541 = arith.constant 541 : index
    %c0_113 = arith.constant 0 : index
    %156 = tpu.strided_load %arg11[%c541, %c0_113] {strides = array<i32: 2, 1>} : memref<648x8xf32, #tpu.memory_space<vmem>>, vector<8x8xf32>
    %157 = arith.maximumf %155, %156 : vector<8x8xf32>
    %c558 = arith.constant 558 : index
    %c0_114 = arith.constant 0 : index
    %158 = tpu.strided_load %arg11[%c558, %c0_114] {strides = array<i32: 2, 1>} : memref<648x8xf32, #tpu.memory_space<vmem>>, vector<8x8xf32>
    %159 = arith.maximumf %157, %158 : vector<8x8xf32>
    %c559 = arith.constant 559 : index
    %c0_115 = arith.constant 0 : index
    %160 = tpu.strided_load %arg11[%c559, %c0_115] {strides = array<i32: 2, 1>} : memref<648x8xf32, #tpu.memory_space<vmem>>, vector<8x8xf32>
    %161 = arith.maximumf %159, %160 : vector<8x8xf32>
    %c171 = arith.constant 171 : index
    %c0_116 = arith.constant 0 : index
    %162 = vector.load %arg12[%c171, %c0_116] : memref<222x8xf32, #tpu.memory_space<vmem>>, vector<8x8xf32>
    tpu.vector_store %arg12[%c171, %c0_116], %161 {strides = array<i32>} : memref<222x8xf32, #tpu.memory_space<vmem>>, vector<8x8xf32>,
    %c576 = arith.constant 576 : index
    %c0_117 = arith.constant 0 : index
    %163 = tpu.strided_load %arg11[%c576, %c0_117] {strides = array<i32: 2, 1>} : memref<648x8xf32, #tpu.memory_space<vmem>>, vector<8x8xf32>
    %c577 = arith.constant 577 : index
    %c0_118 = arith.constant 0 : index
    %164 = tpu.strided_load %arg11[%c577, %c0_118] {strides = array<i32: 2, 1>} : memref<648x8xf32, #tpu.memory_space<vmem>>, vector<8x8xf32>
    %165 = arith.maximumf %163, %164 : vector<8x8xf32>
    %c594 = arith.constant 594 : index
    %c0_119 = arith.constant 0 : index
    %166 = tpu.strided_load %arg11[%c594, %c0_119] {strides = array<i32: 2, 1>} : memref<648x8xf32, #tpu.memory_space<vmem>>, vector<8x8xf32>
    %167 = arith.maximumf %165, %166 : vector<8x8xf32>
    %c595 = arith.constant 595 : index
    %c0_120 = arith.constant 0 : index
    %168 = tpu.strided_load %arg11[%c595, %c0_120] {strides = array<i32: 2, 1>} : memref<648x8xf32, #tpu.memory_space<vmem>>, vector<8x8xf32>
    %169 = arith.maximumf %167, %168 : vector<8x8xf32>
    %c181_121 = arith.constant 181 : index
    %c0_122 = arith.constant 0 : index
    %170 = vector.load %arg12[%c181_121, %c0_122] : memref<222x8xf32, #tpu.memory_space<vmem>>, vector<8x8xf32>
    tpu.vector_store %arg12[%c181_121, %c0_122], %169 {strides = array<i32>} : memref<222x8xf32, #tpu.memory_space<vmem>>, vector<8x8xf32>,
    %c0_123 = arith.constant 0 : index
    %c0_124 = arith.constant 0 : index
    %171 = vector.load %arg12[%c0_123, %c0_124] : memref<222x8xf32, #tpu.memory_space<vmem>>, vector<200x8xf32>
    %c0_125 = arith.constant 0 : index
    %c0_126 = arith.constant 0 : index
    %172 = vector.load %arg4[%c0_125, %c0_126] : memref<72x16xf32, #tpu.memory_space<vmem>>, vector<8x16xf32>
    %cst_127 = arith.constant dense<0.000000e+00> : vector<200x16xf32>
    %173 = tpu.matmul %171, %172, %cst_127 {dimension_numbers = #tpu.dot_dimension_numbers<[1], [0], [0], [1], [0, 0, 1, 1], [], []>} : vector<200x8xf32>, vector<8x16xf32>, vector<200x16xf32> -> vector<200x16xf32>
    %c1_128 = arith.constant 1 : index
    %c0_129 = arith.constant 0 : index
    %174 = vector.load %arg12[%c1_128, %c0_129] : memref<222x8xf32, #tpu.memory_space<vmem>>, vector<200x8xf32>
    %c8_130 = arith.constant 8 : index
    %c0_131 = arith.constant 0 : index
    %175 = vector.load %arg4[%c8_130, %c0_131] : memref<72x16xf32, #tpu.memory_space<vmem>>, vector<8x16xf32>
    %cst_132 = arith.constant dense<0.000000e+00> : vector<200x16xf32>
    %176 = tpu.matmul %174, %175, %cst_132 {dimension_numbers = #tpu.dot_dimension_numbers<[1], [0], [0], [1], [0, 0, 1, 1], [], []>} : vector<200x8xf32>, vector<8x16xf32>, vector<200x16xf32> -> vector<200x16xf32>
    %177 = arith.addf %173, %176 : vector<200x16xf32>
    %c2_133 = arith.constant 2 : index
    %c0_134 = arith.constant 0 : index
    %178 = vector.load %arg12[%c2_133, %c0_134] : memref<222x8xf32, #tpu.memory_space<vmem>>, vector<200x8xf32>
    %c16_135 = arith.constant 16 : index
    %c0_136 = arith.constant 0 : index
    %179 = vector.load %arg4[%c16_135, %c0_136] : memref<72x16xf32, #tpu.memory_space<vmem>>, vector<8x16xf32>
    %cst_137 = arith.constant dense<0.000000e+00> : vector<200x16xf32>
    %180 = tpu.matmul %178, %179, %cst_137 {dimension_numbers = #tpu.dot_dimension_numbers<[1], [0], [0], [1], [0, 0, 1, 1], [], []>} : vector<200x8xf32>, vector<8x16xf32>, vector<200x16xf32> -> vector<200x16xf32>
    %181 = arith.addf %177, %180 : vector<200x16xf32>
    %c10 = arith.constant 10 : index
    %c0_138 = arith.constant 0 : index
    %182 = vector.load %arg12[%c10, %c0_138] : memref<222x8xf32, #tpu.memory_space<vmem>>, vector<200x8xf32>
    %c24_139 = arith.constant 24 : index
    %c0_140 = arith.constant 0 : index
    %183 = vector.load %arg4[%c24_139, %c0_140] : memref<72x16xf32, #tpu.memory_space<vmem>>, vector<8x16xf32>
    %cst_141 = arith.constant dense<0.000000e+00> : vector<200x16xf32>
    %184 = tpu.matmul %182, %183, %cst_141 {dimension_numbers = #tpu.dot_dimension_numbers<[1], [0], [0], [1], [0, 0, 1, 1], [], []>} : vector<200x8xf32>, vector<8x16xf32>, vector<200x16xf32> -> vector<200x16xf32>
    %185 = arith.addf %181, %184 : vector<200x16xf32>
    %c11_142 = arith.constant 11 : index
    %c0_143 = arith.constant 0 : index
    %186 = vector.load %arg12[%c11_142, %c0_143] : memref<222x8xf32, #tpu.memory_space<vmem>>, vector<200x8xf32>
    %c32_144 = arith.constant 32 : index
    %c0_145 = arith.constant 0 : index
    %187 = vector.load %arg4[%c32_144, %c0_145] : memref<72x16xf32, #tpu.memory_space<vmem>>, vector<8x16xf32>
    %cst_146 = arith.constant dense<0.000000e+00> : vector<200x16xf32>
    %188 = tpu.matmul %186, %187, %cst_146 {dimension_numbers = #tpu.dot_dimension_numbers<[1], [0], [0], [1], [0, 0, 1, 1], [], []>} : vector<200x8xf32>, vector<8x16xf32>, vector<200x16xf32> -> vector<200x16xf32>
    %189 = arith.addf %185, %188 : vector<200x16xf32>
    %c12_147 = arith.constant 12 : index
    %c0_148 = arith.constant 0 : index
    %190 = vector.load %arg12[%c12_147, %c0_148] : memref<222x8xf32, #tpu.memory_space<vmem>>, vector<200x8xf32>
    %c40 = arith.constant 40 : index
    %c0_149 = arith.constant 0 : index
    %191 = vector.load %arg4[%c40, %c0_149] : memref<72x16xf32, #tpu.memory_space<vmem>>, vector<8x16xf32>
    %cst_150 = arith.constant dense<0.000000e+00> : vector<200x16xf32>
    %192 = tpu.matmul %190, %191, %cst_150 {dimension_numbers = #tpu.dot_dimension_numbers<[1], [0], [0], [1], [0, 0, 1, 1], [], []>} : vector<200x8xf32>, vector<8x16xf32>, vector<200x16xf32> -> vector<200x16xf32>
    %193 = arith.addf %189, %192 : vector<200x16xf32>
    %c20_151 = arith.constant 20 : index
    %c0_152 = arith.constant 0 : index
    %194 = vector.load %arg12[%c20_151, %c0_152] : memref<222x8xf32, #tpu.memory_space<vmem>>, vector<200x8xf32>
    %c48 = arith.constant 48 : index
    %c0_153 = arith.constant 0 : index
    %195 = vector.load %arg4[%c48, %c0_153] : memref<72x16xf32, #tpu.memory_space<vmem>>, vector<8x16xf32>
    %cst_154 = arith.constant dense<0.000000e+00> : vector<200x16xf32>
    %196 = tpu.matmul %194, %195, %cst_154 {dimension_numbers = #tpu.dot_dimension_numbers<[1], [0], [0], [1], [0, 0, 1, 1], [], []>} : vector<200x8xf32>, vector<8x16xf32>, vector<200x16xf32> -> vector<200x16xf32>
    %197 = arith.addf %193, %196 : vector<200x16xf32>
    %c21_155 = arith.constant 21 : index
    %c0_156 = arith.constant 0 : index
    %198 = vector.load %arg12[%c21_155, %c0_156] : memref<222x8xf32, #tpu.memory_space<vmem>>, vector<200x8xf32>
    %c56 = arith.constant 56 : index
    %c0_157 = arith.constant 0 : index
    %199 = vector.load %arg4[%c56, %c0_157] : memref<72x16xf32, #tpu.memory_space<vmem>>, vector<8x16xf32>
    %cst_158 = arith.constant dense<0.000000e+00> : vector<200x16xf32>
    %200 = tpu.matmul %198, %199, %cst_158 {dimension_numbers = #tpu.dot_dimension_numbers<[1], [0], [0], [1], [0, 0, 1, 1], [], []>} : vector<200x8xf32>, vector<8x16xf32>, vector<200x16xf32> -> vector<200x16xf32>
    %201 = arith.addf %197, %200 : vector<200x16xf32>
    %c22 = arith.constant 22 : index
    %c0_159 = arith.constant 0 : index
    %202 = vector.load %arg12[%c22, %c0_159] : memref<222x8xf32, #tpu.memory_space<vmem>>, vector<200x8xf32>
    %c64 = arith.constant 64 : index
    %c0_160 = arith.constant 0 : index
    %203 = vector.load %arg4[%c64, %c0_160] : memref<72x16xf32, #tpu.memory_space<vmem>>, vector<8x16xf32>
    %cst_161 = arith.constant dense<0.000000e+00> : vector<200x16xf32>
    %204 = tpu.matmul %202, %203, %cst_161 {dimension_numbers = #tpu.dot_dimension_numbers<[1], [0], [0], [1], [0, 0, 1, 1], [], []>} : vector<200x8xf32>, vector<8x16xf32>, vector<200x16xf32> -> vector<200x16xf32>
    %205 = arith.addf %201, %204 : vector<200x16xf32>
    %c0_162 = arith.constant 0 : index
    %c0_163 = arith.constant 0 : index
    %206 = vector.load %arg5[%c0_162, %c0_163] : memref<1x16xf32, #tpu.memory_space<vmem>>, vector<1x16xf32>
    %207 = vector.broadcast %206 : vector<1x16xf32> to vector<200x16xf32>
    %208 = arith.addf %205, %207 : vector<200x16xf32>
    %cst_164 = arith.constant 0.000000e+00 : f32
    %209 = vector.broadcast %cst_164 : f32 to vector<200x16xf32>
    %210 = arith.maximumf %208, %209 : vector<200x16xf32>
    %c0_165 = arith.constant 0 : index
    %c0_166 = arith.constant 0 : index
    %211 = vector.load %arg13[%c0_165, %c0_166] : memref<200x16xf32, #tpu.memory_space<vmem>>, vector<200x16xf32>
    tpu.vector_store %arg13[%c0_165, %c0_166], %210 {strides = array<i32>} : memref<200x16xf32, #tpu.memory_space<vmem>>, vector<200x16xf32>,
    %c0_167 = arith.constant 0 : index
    %c0_168 = arith.constant 0 : index
    %212 = tpu.strided_load %arg13[%c0_167, %c0_168] {strides = array<i32: 2, 1>} : memref<200x16xf32, #tpu.memory_space<vmem>>, vector<4x16xf32>
    %c1_169 = arith.constant 1 : index
    %c0_170 = arith.constant 0 : index
    %213 = tpu.strided_load %arg13[%c1_169, %c0_170] {strides = array<i32: 2, 1>} : memref<200x16xf32, #tpu.memory_space<vmem>>, vector<4x16xf32>
    %214 = arith.maximumf %212, %213 : vector<4x16xf32>
    %c10_171 = arith.constant 10 : index
    %c0_172 = arith.constant 0 : index
    %215 = tpu.strided_load %arg13[%c10_171, %c0_172] {strides = array<i32: 2, 1>} : memref<200x16xf32, #tpu.memory_space<vmem>>, vector<4x16xf32>
    %216 = arith.maximumf %214, %215 : vector<4x16xf32>
    %c11_173 = arith.constant 11 : index
    %c0_174 = arith.constant 0 : index
    %217 = tpu.strided_load %arg13[%c11_173, %c0_174] {strides = array<i32: 2, 1>} : memref<200x16xf32, #tpu.memory_space<vmem>>, vector<4x16xf32>
    %218 = arith.maximumf %216, %217 : vector<4x16xf32>
    %c0_175 = arith.constant 0 : index
    %c0_176 = arith.constant 0 : index
    %219 = vector.load %arg14[%c0_175, %c0_176] : memref<32x16xf32, #tpu.memory_space<vmem>>, vector<4x16xf32>
    tpu.vector_store %arg14[%c0_175, %c0_176], %218 {strides = array<i32>} : memref<32x16xf32, #tpu.memory_space<vmem>>, vector<4x16xf32>,
    %c20_177 = arith.constant 20 : index
    %c0_178 = arith.constant 0 : index
    %220 = tpu.strided_load %arg13[%c20_177, %c0_178] {strides = array<i32: 2, 1>} : memref<200x16xf32, #tpu.memory_space<vmem>>, vector<4x16xf32>
    %c21_179 = arith.constant 21 : index
    %c0_180 = arith.constant 0 : index
    %221 = tpu.strided_load %arg13[%c21_179, %c0_180] {strides = array<i32: 2, 1>} : memref<200x16xf32, #tpu.memory_space<vmem>>, vector<4x16xf32>
    %222 = arith.maximumf %220, %221 : vector<4x16xf32>
    %c30 = arith.constant 30 : index
    %c0_181 = arith.constant 0 : index
    %223 = tpu.strided_load %arg13[%c30, %c0_181] {strides = array<i32: 2, 1>} : memref<200x16xf32, #tpu.memory_space<vmem>>, vector<4x16xf32>
    %224 = arith.maximumf %222, %223 : vector<4x16xf32>
    %c31_182 = arith.constant 31 : index
    %c0_183 = arith.constant 0 : index
    %225 = tpu.strided_load %arg13[%c31_182, %c0_183] {strides = array<i32: 2, 1>} : memref<200x16xf32, #tpu.memory_space<vmem>>, vector<4x16xf32>
    %226 = arith.maximumf %224, %225 : vector<4x16xf32>
    %c4_184 = arith.constant 4 : index
    %c0_185 = arith.constant 0 : index
    %227 = vector.load %arg14[%c4_184, %c0_185] : memref<32x16xf32, #tpu.memory_space<vmem>>, vector<4x16xf32>
    tpu.vector_store %arg14[%c4_184, %c0_185], %226 {strides = array<i32>} : memref<32x16xf32, #tpu.memory_space<vmem>>, vector<4x16xf32>,
    %c40_186 = arith.constant 40 : index
    %c0_187 = arith.constant 0 : index
    %228 = tpu.strided_load %arg13[%c40_186, %c0_187] {strides = array<i32: 2, 1>} : memref<200x16xf32, #tpu.memory_space<vmem>>, vector<4x16xf32>
    %c41_188 = arith.constant 41 : index
    %c0_189 = arith.constant 0 : index
    %229 = tpu.strided_load %arg13[%c41_188, %c0_189] {strides = array<i32: 2, 1>} : memref<200x16xf32, #tpu.memory_space<vmem>>, vector<4x16xf32>
    %230 = arith.maximumf %228, %229 : vector<4x16xf32>
    %c50 = arith.constant 50 : index
    %c0_190 = arith.constant 0 : index
    %231 = tpu.strided_load %arg13[%c50, %c0_190] {strides = array<i32: 2, 1>} : memref<200x16xf32, #tpu.memory_space<vmem>>, vector<4x16xf32>
    %232 = arith.maximumf %230, %231 : vector<4x16xf32>
    %c51_191 = arith.constant 51 : index
    %c0_192 = arith.constant 0 : index
    %233 = tpu.strided_load %arg13[%c51_191, %c0_192] {strides = array<i32: 2, 1>} : memref<200x16xf32, #tpu.memory_space<vmem>>, vector<4x16xf32>
    %234 = arith.maximumf %232, %233 : vector<4x16xf32>
    %c8_193 = arith.constant 8 : index
    %c0_194 = arith.constant 0 : index
    %235 = vector.load %arg14[%c8_193, %c0_194] : memref<32x16xf32, #tpu.memory_space<vmem>>, vector<4x16xf32>
    tpu.vector_store %arg14[%c8_193, %c0_194], %234 {strides = array<i32>} : memref<32x16xf32, #tpu.memory_space<vmem>>, vector<4x16xf32>,
    %c60 = arith.constant 60 : index
    %c0_195 = arith.constant 0 : index
    %236 = tpu.strided_load %arg13[%c60, %c0_195] {strides = array<i32: 2, 1>} : memref<200x16xf32, #tpu.memory_space<vmem>>, vector<4x16xf32>
    %c61_196 = arith.constant 61 : index
    %c0_197 = arith.constant 0 : index
    %237 = tpu.strided_load %arg13[%c61_196, %c0_197] {strides = array<i32: 2, 1>} : memref<200x16xf32, #tpu.memory_space<vmem>>, vector<4x16xf32>
    %238 = arith.maximumf %236, %237 : vector<4x16xf32>
    %c70 = arith.constant 70 : index
    %c0_198 = arith.constant 0 : index
    %239 = tpu.strided_load %arg13[%c70, %c0_198] {strides = array<i32: 2, 1>} : memref<200x16xf32, #tpu.memory_space<vmem>>, vector<4x16xf32>
    %240 = arith.maximumf %238, %239 : vector<4x16xf32>
    %c71_199 = arith.constant 71 : index
    %c0_200 = arith.constant 0 : index
    %241 = tpu.strided_load %arg13[%c71_199, %c0_200] {strides = array<i32: 2, 1>} : memref<200x16xf32, #tpu.memory_space<vmem>>, vector<4x16xf32>
    %242 = arith.maximumf %240, %241 : vector<4x16xf32>
    %c12_201 = arith.constant 12 : index
    %c0_202 = arith.constant 0 : index
    %243 = vector.load %arg14[%c12_201, %c0_202] : memref<32x16xf32, #tpu.memory_space<vmem>>, vector<4x16xf32>
    tpu.vector_store %arg14[%c12_201, %c0_202], %242 {strides = array<i32>} : memref<32x16xf32, #tpu.memory_space<vmem>>, vector<4x16xf32>,
    %c100 = arith.constant 100 : index
    %c0_203 = arith.constant 0 : index
    %244 = tpu.strided_load %arg13[%c100, %c0_203] {strides = array<i32: 2, 1>} : memref<200x16xf32, #tpu.memory_space<vmem>>, vector<4x16xf32>
    %c101 = arith.constant 101 : index
    %c0_204 = arith.constant 0 : index
    %245 = tpu.strided_load %arg13[%c101, %c0_204] {strides = array<i32: 2, 1>} : memref<200x16xf32, #tpu.memory_space<vmem>>, vector<4x16xf32>
    %246 = arith.maximumf %244, %245 : vector<4x16xf32>
    %c110 = arith.constant 110 : index
    %c0_205 = arith.constant 0 : index
    %247 = tpu.strided_load %arg13[%c110, %c0_205] {strides = array<i32: 2, 1>} : memref<200x16xf32, #tpu.memory_space<vmem>>, vector<4x16xf32>
    %248 = arith.maximumf %246, %247 : vector<4x16xf32>
    %c111_206 = arith.constant 111 : index
    %c0_207 = arith.constant 0 : index
    %249 = tpu.strided_load %arg13[%c111_206, %c0_207] {strides = array<i32: 2, 1>} : memref<200x16xf32, #tpu.memory_space<vmem>>, vector<4x16xf32>
    %250 = arith.maximumf %248, %249 : vector<4x16xf32>
    %c16_208 = arith.constant 16 : index
    %c0_209 = arith.constant 0 : index
    %251 = vector.load %arg14[%c16_208, %c0_209] : memref<32x16xf32, #tpu.memory_space<vmem>>, vector<4x16xf32>
    tpu.vector_store %arg14[%c16_208, %c0_209], %250 {strides = array<i32>} : memref<32x16xf32, #tpu.memory_space<vmem>>, vector<4x16xf32>,
    %c120 = arith.constant 120 : index
    %c0_210 = arith.constant 0 : index
    %252 = tpu.strided_load %arg13[%c120, %c0_210] {strides = array<i32: 2, 1>} : memref<200x16xf32, #tpu.memory_space<vmem>>, vector<4x16xf32>
    %c121_211 = arith.constant 121 : index
    %c0_212 = arith.constant 0 : index
    %253 = tpu.strided_load %arg13[%c121_211, %c0_212] {strides = array<i32: 2, 1>} : memref<200x16xf32, #tpu.memory_space<vmem>>, vector<4x16xf32>
    %254 = arith.maximumf %252, %253 : vector<4x16xf32>
    %c130 = arith.constant 130 : index
    %c0_213 = arith.constant 0 : index
    %255 = tpu.strided_load %arg13[%c130, %c0_213] {strides = array<i32: 2, 1>} : memref<200x16xf32, #tpu.memory_space<vmem>>, vector<4x16xf32>
    %256 = arith.maximumf %254, %255 : vector<4x16xf32>
    %c131_214 = arith.constant 131 : index
    %c0_215 = arith.constant 0 : index
    %257 = tpu.strided_load %arg13[%c131_214, %c0_215] {strides = array<i32: 2, 1>} : memref<200x16xf32, #tpu.memory_space<vmem>>, vector<4x16xf32>
    %258 = arith.maximumf %256, %257 : vector<4x16xf32>
    %c20_216 = arith.constant 20 : index
    %c0_217 = arith.constant 0 : index
    %259 = vector.load %arg14[%c20_216, %c0_217] : memref<32x16xf32, #tpu.memory_space<vmem>>, vector<4x16xf32>
    tpu.vector_store %arg14[%c20_216, %c0_217], %258 {strides = array<i32>} : memref<32x16xf32, #tpu.memory_space<vmem>>, vector<4x16xf32>,
    %c140 = arith.constant 140 : index
    %c0_218 = arith.constant 0 : index
    %260 = tpu.strided_load %arg13[%c140, %c0_218] {strides = array<i32: 2, 1>} : memref<200x16xf32, #tpu.memory_space<vmem>>, vector<4x16xf32>
    %c141_219 = arith.constant 141 : index
    %c0_220 = arith.constant 0 : index
    %261 = tpu.strided_load %arg13[%c141_219, %c0_220] {strides = array<i32: 2, 1>} : memref<200x16xf32, #tpu.memory_space<vmem>>, vector<4x16xf32>
    %262 = arith.maximumf %260, %261 : vector<4x16xf32>
    %c150 = arith.constant 150 : index
    %c0_221 = arith.constant 0 : index
    %263 = tpu.strided_load %arg13[%c150, %c0_221] {strides = array<i32: 2, 1>} : memref<200x16xf32, #tpu.memory_space<vmem>>, vector<4x16xf32>
    %264 = arith.maximumf %262, %263 : vector<4x16xf32>
    %c151_222 = arith.constant 151 : index
    %c0_223 = arith.constant 0 : index
    %265 = tpu.strided_load %arg13[%c151_222, %c0_223] {strides = array<i32: 2, 1>} : memref<200x16xf32, #tpu.memory_space<vmem>>, vector<4x16xf32>
    %266 = arith.maximumf %264, %265 : vector<4x16xf32>
    %c24_224 = arith.constant 24 : index
    %c0_225 = arith.constant 0 : index
    %267 = vector.load %arg14[%c24_224, %c0_225] : memref<32x16xf32, #tpu.memory_space<vmem>>, vector<4x16xf32>
    tpu.vector_store %arg14[%c24_224, %c0_225], %266 {strides = array<i32>} : memref<32x16xf32, #tpu.memory_space<vmem>>, vector<4x16xf32>,
    %c160 = arith.constant 160 : index
    %c0_226 = arith.constant 0 : index
    %268 = tpu.strided_load %arg13[%c160, %c0_226] {strides = array<i32: 2, 1>} : memref<200x16xf32, #tpu.memory_space<vmem>>, vector<4x16xf32>
    %c161_227 = arith.constant 161 : index
    %c0_228 = arith.constant 0 : index
    %269 = tpu.strided_load %arg13[%c161_227, %c0_228] {strides = array<i32: 2, 1>} : memref<200x16xf32, #tpu.memory_space<vmem>>, vector<4x16xf32>
    %270 = arith.maximumf %268, %269 : vector<4x16xf32>
    %c170 = arith.constant 170 : index
    %c0_229 = arith.constant 0 : index
    %271 = tpu.strided_load %arg13[%c170, %c0_229] {strides = array<i32: 2, 1>} : memref<200x16xf32, #tpu.memory_space<vmem>>, vector<4x16xf32>
    %272 = arith.maximumf %270, %271 : vector<4x16xf32>
    %c171_230 = arith.constant 171 : index
    %c0_231 = arith.constant 0 : index
    %273 = tpu.strided_load %arg13[%c171_230, %c0_231] {strides = array<i32: 2, 1>} : memref<200x16xf32, #tpu.memory_space<vmem>>, vector<4x16xf32>
    %274 = arith.maximumf %272, %273 : vector<4x16xf32>
    %c28_232 = arith.constant 28 : index
    %c0_233 = arith.constant 0 : index
    %275 = vector.load %arg14[%c28_232, %c0_233] : memref<32x16xf32, #tpu.memory_space<vmem>>, vector<4x16xf32>
    tpu.vector_store %arg14[%c28_232, %c0_233], %274 {strides = array<i32>} : memref<32x16xf32, #tpu.memory_space<vmem>>, vector<4x16xf32>,
    %c0_234 = arith.constant 0 : index
    %c0_235 = arith.constant 0 : index
    %276 = tpu.strided_load %arg14[%c0_234, %c0_235] {strides = array<i32: 16, 1>} : memref<32x16xf32, #tpu.memory_space<vmem>>, vector<2x16xf32>
    %c0_236 = arith.constant 0 : index
    %c0_237 = arith.constant 0 : index
    %277 = vector.load %arg6[%c0_236, %c0_237] : memref<256x32xf32, #tpu.memory_space<vmem>>, vector<16x32xf32>
    %cst_238 = arith.constant dense<0.000000e+00> : vector<2x32xf32>
    %278 = tpu.matmul %276, %277, %cst_238 {dimension_numbers = #tpu.dot_dimension_numbers<[1], [0], [0], [1], [0, 0, 1, 1], [], []>} : vector<2x16xf32>, vector<16x32xf32>, vector<2x32xf32> -> vector<2x32xf32>
    %c1_239 = arith.constant 1 : index
    %c0_240 = arith.constant 0 : index
    %279 = tpu.strided_load %arg14[%c1_239, %c0_240] {strides = array<i32: 16, 1>} : memref<32x16xf32, #tpu.memory_space<vmem>>, vector<2x16xf32>
    %c16_241 = arith.constant 16 : index
    %c0_242 = arith.constant 0 : index
    %280 = vector.load %arg6[%c16_241, %c0_242] : memref<256x32xf32, #tpu.memory_space<vmem>>, vector<16x32xf32>
    %cst_243 = arith.constant dense<0.000000e+00> : vector<2x32xf32>
    %281 = tpu.matmul %279, %280, %cst_243 {dimension_numbers = #tpu.dot_dimension_numbers<[1], [0], [0], [1], [0, 0, 1, 1], [], []>} : vector<2x16xf32>, vector<16x32xf32>, vector<2x32xf32> -> vector<2x32xf32>
    %282 = arith.addf %278, %281 : vector<2x32xf32>
    %c2_244 = arith.constant 2 : index
    %c0_245 = arith.constant 0 : index
    %283 = tpu.strided_load %arg14[%c2_244, %c0_245] {strides = array<i32: 16, 1>} : memref<32x16xf32, #tpu.memory_space<vmem>>, vector<2x16xf32>
    %c32_246 = arith.constant 32 : index
    %c0_247 = arith.constant 0 : index
    %284 = vector.load %arg6[%c32_246, %c0_247] : memref<256x32xf32, #tpu.memory_space<vmem>>, vector<16x32xf32>
    %cst_248 = arith.constant dense<0.000000e+00> : vector<2x32xf32>
    %285 = tpu.matmul %283, %284, %cst_248 {dimension_numbers = #tpu.dot_dimension_numbers<[1], [0], [0], [1], [0, 0, 1, 1], [], []>} : vector<2x16xf32>, vector<16x32xf32>, vector<2x32xf32> -> vector<2x32xf32>
    %286 = arith.addf %282, %285 : vector<2x32xf32>
    %c3 = arith.constant 3 : index
    %c0_249 = arith.constant 0 : index
    %287 = tpu.strided_load %arg14[%c3, %c0_249] {strides = array<i32: 16, 1>} : memref<32x16xf32, #tpu.memory_space<vmem>>, vector<2x16xf32>
    %c48_250 = arith.constant 48 : index
    %c0_251 = arith.constant 0 : index
    %288 = vector.load %arg6[%c48_250, %c0_251] : memref<256x32xf32, #tpu.memory_space<vmem>>, vector<16x32xf32>
    %cst_252 = arith.constant dense<0.000000e+00> : vector<2x32xf32>
    %289 = tpu.matmul %287, %288, %cst_252 {dimension_numbers = #tpu.dot_dimension_numbers<[1], [0], [0], [1], [0, 0, 1, 1], [], []>} : vector<2x16xf32>, vector<16x32xf32>, vector<2x32xf32> -> vector<2x32xf32>
    %290 = arith.addf %286, %289 : vector<2x32xf32>
    %c4_253 = arith.constant 4 : index
    %c0_254 = arith.constant 0 : index
    %291 = tpu.strided_load %arg14[%c4_253, %c0_254] {strides = array<i32: 16, 1>} : memref<32x16xf32, #tpu.memory_space<vmem>>, vector<2x16xf32>
    %c64_255 = arith.constant 64 : index
    %c0_256 = arith.constant 0 : index
    %292 = vector.load %arg6[%c64_255, %c0_256] : memref<256x32xf32, #tpu.memory_space<vmem>>, vector<16x32xf32>
    %cst_257 = arith.constant dense<0.000000e+00> : vector<2x32xf32>
    %293 = tpu.matmul %291, %292, %cst_257 {dimension_numbers = #tpu.dot_dimension_numbers<[1], [0], [0], [1], [0, 0, 1, 1], [], []>} : vector<2x16xf32>, vector<16x32xf32>, vector<2x32xf32> -> vector<2x32xf32>
    %294 = arith.addf %290, %293 : vector<2x32xf32>
    %c5 = arith.constant 5 : index
    %c0_258 = arith.constant 0 : index
    %295 = tpu.strided_load %arg14[%c5, %c0_258] {strides = array<i32: 16, 1>} : memref<32x16xf32, #tpu.memory_space<vmem>>, vector<2x16xf32>
    %c80 = arith.constant 80 : index
    %c0_259 = arith.constant 0 : index
    %296 = vector.load %arg6[%c80, %c0_259] : memref<256x32xf32, #tpu.memory_space<vmem>>, vector<16x32xf32>
    %cst_260 = arith.constant dense<0.000000e+00> : vector<2x32xf32>
    %297 = tpu.matmul %295, %296, %cst_260 {dimension_numbers = #tpu.dot_dimension_numbers<[1], [0], [0], [1], [0, 0, 1, 1], [], []>} : vector<2x16xf32>, vector<16x32xf32>, vector<2x32xf32> -> vector<2x32xf32>
    %298 = arith.addf %294, %297 : vector<2x32xf32>
    %c6 = arith.constant 6 : index
    %c0_261 = arith.constant 0 : index
    %299 = tpu.strided_load %arg14[%c6, %c0_261] {strides = array<i32: 16, 1>} : memref<32x16xf32, #tpu.memory_space<vmem>>, vector<2x16xf32>
    %c96 = arith.constant 96 : index
    %c0_262 = arith.constant 0 : index
    %300 = vector.load %arg6[%c96, %c0_262] : memref<256x32xf32, #tpu.memory_space<vmem>>, vector<16x32xf32>
    %cst_263 = arith.constant dense<0.000000e+00> : vector<2x32xf32>
    %301 = tpu.matmul %299, %300, %cst_263 {dimension_numbers = #tpu.dot_dimension_numbers<[1], [0], [0], [1], [0, 0, 1, 1], [], []>} : vector<2x16xf32>, vector<16x32xf32>, vector<2x32xf32> -> vector<2x32xf32>
    %302 = arith.addf %298, %301 : vector<2x32xf32>
    %c7 = arith.constant 7 : index
    %c0_264 = arith.constant 0 : index
    %303 = tpu.strided_load %arg14[%c7, %c0_264] {strides = array<i32: 16, 1>} : memref<32x16xf32, #tpu.memory_space<vmem>>, vector<2x16xf32>
    %c112 = arith.constant 112 : index
    %c0_265 = arith.constant 0 : index
    %304 = vector.load %arg6[%c112, %c0_265] : memref<256x32xf32, #tpu.memory_space<vmem>>, vector<16x32xf32>
    %cst_266 = arith.constant dense<0.000000e+00> : vector<2x32xf32>
    %305 = tpu.matmul %303, %304, %cst_266 {dimension_numbers = #tpu.dot_dimension_numbers<[1], [0], [0], [1], [0, 0, 1, 1], [], []>} : vector<2x16xf32>, vector<16x32xf32>, vector<2x32xf32> -> vector<2x32xf32>
    %306 = arith.addf %302, %305 : vector<2x32xf32>
    %c8_267 = arith.constant 8 : index
    %c0_268 = arith.constant 0 : index
    %307 = tpu.strided_load %arg14[%c8_267, %c0_268] {strides = array<i32: 16, 1>} : memref<32x16xf32, #tpu.memory_space<vmem>>, vector<2x16xf32>
    %c128 = arith.constant 128 : index
    %c0_269 = arith.constant 0 : index
    %308 = vector.load %arg6[%c128, %c0_269] : memref<256x32xf32, #tpu.memory_space<vmem>>, vector<16x32xf32>
    %cst_270 = arith.constant dense<0.000000e+00> : vector<2x32xf32>
    %309 = tpu.matmul %307, %308, %cst_270 {dimension_numbers = #tpu.dot_dimension_numbers<[1], [0], [0], [1], [0, 0, 1, 1], [], []>} : vector<2x16xf32>, vector<16x32xf32>, vector<2x32xf32> -> vector<2x32xf32>
    %310 = arith.addf %306, %309 : vector<2x32xf32>
    %c9 = arith.constant 9 : index
    %c0_271 = arith.constant 0 : index
    %311 = tpu.strided_load %arg14[%c9, %c0_271] {strides = array<i32: 16, 1>} : memref<32x16xf32, #tpu.memory_space<vmem>>, vector<2x16xf32>
    %c144_272 = arith.constant 144 : index
    %c0_273 = arith.constant 0 : index
    %312 = vector.load %arg6[%c144_272, %c0_273] : memref<256x32xf32, #tpu.memory_space<vmem>>, vector<16x32xf32>
    %cst_274 = arith.constant dense<0.000000e+00> : vector<2x32xf32>
    %313 = tpu.matmul %311, %312, %cst_274 {dimension_numbers = #tpu.dot_dimension_numbers<[1], [0], [0], [1], [0, 0, 1, 1], [], []>} : vector<2x16xf32>, vector<16x32xf32>, vector<2x32xf32> -> vector<2x32xf32>
    %314 = arith.addf %310, %313 : vector<2x32xf32>
    %c10_275 = arith.constant 10 : index
    %c0_276 = arith.constant 0 : index
    %315 = tpu.strided_load %arg14[%c10_275, %c0_276] {strides = array<i32: 16, 1>} : memref<32x16xf32, #tpu.memory_space<vmem>>, vector<2x16xf32>
    %c160_277 = arith.constant 160 : index
    %c0_278 = arith.constant 0 : index
    %316 = vector.load %arg6[%c160_277, %c0_278] : memref<256x32xf32, #tpu.memory_space<vmem>>, vector<16x32xf32>
    %cst_279 = arith.constant dense<0.000000e+00> : vector<2x32xf32>
    %317 = tpu.matmul %315, %316, %cst_279 {dimension_numbers = #tpu.dot_dimension_numbers<[1], [0], [0], [1], [0, 0, 1, 1], [], []>} : vector<2x16xf32>, vector<16x32xf32>, vector<2x32xf32> -> vector<2x32xf32>
    %318 = arith.addf %314, %317 : vector<2x32xf32>
    %c11_280 = arith.constant 11 : index
    %c0_281 = arith.constant 0 : index
    %319 = tpu.strided_load %arg14[%c11_280, %c0_281] {strides = array<i32: 16, 1>} : memref<32x16xf32, #tpu.memory_space<vmem>>, vector<2x16xf32>
    %c176 = arith.constant 176 : index
    %c0_282 = arith.constant 0 : index
    %320 = vector.load %arg6[%c176, %c0_282] : memref<256x32xf32, #tpu.memory_space<vmem>>, vector<16x32xf32>
    %cst_283 = arith.constant dense<0.000000e+00> : vector<2x32xf32>
    %321 = tpu.matmul %319, %320, %cst_283 {dimension_numbers = #tpu.dot_dimension_numbers<[1], [0], [0], [1], [0, 0, 1, 1], [], []>} : vector<2x16xf32>, vector<16x32xf32>, vector<2x32xf32> -> vector<2x32xf32>
    %322 = arith.addf %318, %321 : vector<2x32xf32>
    %c12_284 = arith.constant 12 : index
    %c0_285 = arith.constant 0 : index
    %323 = tpu.strided_load %arg14[%c12_284, %c0_285] {strides = array<i32: 16, 1>} : memref<32x16xf32, #tpu.memory_space<vmem>>, vector<2x16xf32>
    %c192 = arith.constant 192 : index
    %c0_286 = arith.constant 0 : index
    %324 = vector.load %arg6[%c192, %c0_286] : memref<256x32xf32, #tpu.memory_space<vmem>>, vector<16x32xf32>
    %cst_287 = arith.constant dense<0.000000e+00> : vector<2x32xf32>
    %325 = tpu.matmul %323, %324, %cst_287 {dimension_numbers = #tpu.dot_dimension_numbers<[1], [0], [0], [1], [0, 0, 1, 1], [], []>} : vector<2x16xf32>, vector<16x32xf32>, vector<2x32xf32> -> vector<2x32xf32>
    %326 = arith.addf %322, %325 : vector<2x32xf32>
    %c13 = arith.constant 13 : index
    %c0_288 = arith.constant 0 : index
    %327 = tpu.strided_load %arg14[%c13, %c0_288] {strides = array<i32: 16, 1>} : memref<32x16xf32, #tpu.memory_space<vmem>>, vector<2x16xf32>
    %c208 = arith.constant 208 : index
    %c0_289 = arith.constant 0 : index
    %328 = vector.load %arg6[%c208, %c0_289] : memref<256x32xf32, #tpu.memory_space<vmem>>, vector<16x32xf32>
    %cst_290 = arith.constant dense<0.000000e+00> : vector<2x32xf32>
    %329 = tpu.matmul %327, %328, %cst_290 {dimension_numbers = #tpu.dot_dimension_numbers<[1], [0], [0], [1], [0, 0, 1, 1], [], []>} : vector<2x16xf32>, vector<16x32xf32>, vector<2x32xf32> -> vector<2x32xf32>
    %330 = arith.addf %326, %329 : vector<2x32xf32>
    %c14 = arith.constant 14 : index
    %c0_291 = arith.constant 0 : index
    %331 = tpu.strided_load %arg14[%c14, %c0_291] {strides = array<i32: 16, 1>} : memref<32x16xf32, #tpu.memory_space<vmem>>, vector<2x16xf32>
    %c224 = arith.constant 224 : index
    %c0_292 = arith.constant 0 : index
    %332 = vector.load %arg6[%c224, %c0_292] : memref<256x32xf32, #tpu.memory_space<vmem>>, vector<16x32xf32>
    %cst_293 = arith.constant dense<0.000000e+00> : vector<2x32xf32>
    %333 = tpu.matmul %331, %332, %cst_293 {dimension_numbers = #tpu.dot_dimension_numbers<[1], [0], [0], [1], [0, 0, 1, 1], [], []>} : vector<2x16xf32>, vector<16x32xf32>, vector<2x32xf32> -> vector<2x32xf32>
    %334 = arith.addf %330, %333 : vector<2x32xf32>
    %c15 = arith.constant 15 : index
    %c0_294 = arith.constant 0 : index
    %335 = tpu.strided_load %arg14[%c15, %c0_294] {strides = array<i32: 16, 1>} : memref<32x16xf32, #tpu.memory_space<vmem>>, vector<2x16xf32>
    %c240 = arith.constant 240 : index
    %c0_295 = arith.constant 0 : index
    %336 = vector.load %arg6[%c240, %c0_295] : memref<256x32xf32, #tpu.memory_space<vmem>>, vector<16x32xf32>
    %cst_296 = arith.constant dense<0.000000e+00> : vector<2x32xf32>
    %337 = tpu.matmul %335, %336, %cst_296 {dimension_numbers = #tpu.dot_dimension_numbers<[1], [0], [0], [1], [0, 0, 1, 1], [], []>} : vector<2x16xf32>, vector<16x32xf32>, vector<2x32xf32> -> vector<2x32xf32>
    %338 = arith.addf %334, %337 : vector<2x32xf32>
    %c0_297 = arith.constant 0 : index
    %c0_298 = arith.constant 0 : index
    %339 = vector.load %arg7[%c0_297, %c0_298] : memref<1x32xf32, #tpu.memory_space<vmem>>, vector<1x32xf32>
    %340 = vector.broadcast %339 : vector<1x32xf32> to vector<2x32xf32>
    %341 = arith.addf %338, %340 : vector<2x32xf32>
    %cst_299 = arith.constant 0.000000e+00 : f32
    %342 = vector.broadcast %cst_299 : f32 to vector<2x32xf32>
    %343 = arith.maximumf %341, %342 : vector<2x32xf32>
    %c0_300 = arith.constant 0 : index
    %c0_301 = arith.constant 0 : index
    %344 = vector.load %arg8[%c0_300, %c0_301] : memref<32x16xf32, #tpu.memory_space<vmem>>, vector<32x16xf32>
    %cst_302 = arith.constant dense<0.000000e+00> : vector<2x16xf32>
    %345 = tpu.matmul %343, %344, %cst_302 {dimension_numbers = #tpu.dot_dimension_numbers<[1], [0], [0], [1], [0, 0, 1, 1], [], []>} : vector<2x32xf32>, vector<32x16xf32>, vector<2x16xf32> -> vector<2x16xf32>
    %c0_303 = arith.constant 0 : index
    %c0_304 = arith.constant 0 : index
    %346 = vector.load %arg9[%c0_303, %c0_304] : memref<1x16xf32, #tpu.memory_space<vmem>>, vector<1x16xf32>
    %347 = vector.broadcast %346 : vector<1x16xf32> to vector<2x16xf32>
    %348 = arith.addf %345, %347 : vector<2x16xf32>
    %c0_305 = arith.constant 0 : index
    %c0_306 = arith.constant 0 : index
    %349 = vector.load %arg10[%c0_305, %c0_306] : memref<2x16xf32, #tpu.memory_space<vmem>>, vector<2x16xf32>
    tpu.vector_store %arg10[%c0_305, %c0_306], %348 {strides = array<i32>} : memref<2x16xf32, #tpu.memory_space<vmem>>, vector<2x16xf32>,
    return
  }
  func.func @transform_0(%arg0: i32) -> (i32, i32) {
    %c0_i32 = arith.constant 0 : i32
    %c0_i32_0 = arith.constant 0 : i32
    %c0_i32_1 = arith.constant 0 : i32
    return %c0_i32, %c0_i32_0 : i32, i32
  }
  func.func @transform_1(%arg0: i32) -> (i32, i32) {
    %c0_i32 = arith.constant 0 : i32
    %c0_i32_0 = arith.constant 0 : i32
    %c0_i32_1 = arith.constant 0 : i32
    return %c0_i32, %c0_i32_0 : i32, i32
  }
  func.func @transform_2(%arg0: i32) -> (i32, i32) {
    %c0_i32 = arith.constant 0 : i32
    %c0_i32_0 = arith.constant 0 : i32
    %c0_i32_1 = arith.constant 0 : i32
    return %c0_i32, %c0_i32_0 : i32, i32
  }
  func.func @transform_3(%arg0: i32) -> (i32, i32) {
    %c0_i32 = arith.constant 0 : i32
    %c0_i32_0 = arith.constant 0 : i32
    %c0_i32_1 = arith.constant 0 : i32
    return %c0_i32, %c0_i32_0 : i32, i32
  }
  func.func @transform_4(%arg0: i32) -> (i32, i32) {
    %c0_i32 = arith.constant 0 : i32
    %c0_i32_0 = arith.constant 0 : i32
    %c0_i32_1 = arith.constant 0 : i32
    return %c0_i32, %c0_i32_0 : i32, i32
  }
  func.func @transform_5(%arg0: i32) -> (i32, i32) {
    %c0_i32 = arith.constant 0 : i32
    %c0_i32_0 = arith.constant 0 : i32
    %c0_i32_1 = arith.constant 0 : i32
    return %c0_i32, %c0_i32_0 : i32, i32
  }
  func.func @transform_6(%arg0: i32) -> (i32, i32) {
    %c0_i32 = arith.constant 0 : i32
    %c0_i32_0 = arith.constant 0 : i32
    %c0_i32_1 = arith.constant 0 : i32
    return %c0_i32, %c0_i32_0 : i32, i32
  }
  func.func @transform_7(%arg0: i32) -> (i32, i32) {
    %c0_i32 = arith.constant 0 : i32
    %c0_i32_0 = arith.constant 0 : i32
    %c0_i32_1 = arith.constant 0 : i32
    return %c0_i32, %c0_i32_0 : i32, i32
  }
  func.func @transform_8(%arg0: i32) -> (i32, i32) {
    %c0_i32 = arith.constant 0 : i32
    %c0_i32_0 = arith.constant 0 : i32
    %c0_i32_1 = arith.constant 0 : i32
    return %c0_i32, %c0_i32_0 : i32, i32
  }
  func.func @transform_9(%arg0: i32) -> (i32, i32) {
    %c0_i32 = arith.constant 0 : i32
    %c0_i32_0 = arith.constant 0 : i32
    %c0_i32_1 = arith.constant 0 : i32
    return %c0_i32, %c0_i32_0 : i32, i32
  }
}

</mosaic_0001>

<bundles_post_ra>
// kernel: triplet_net_forward.1
= control target key start
LH: loop header
LB: loop body
LE: loop exit
PB: predicated region body
PF: predicated region fallthrough
CT: control target
= control target key end

     0   :  { %vm441_vm0 = vcmask 1043456   ;;  %vm197_vm1 = vcmask 31744   ;;  %s14159_s0 = inlined_call_operand.vmem [shape: f32[686,4], index: 0, kind: input, shape index: {}]   ;;  %s14160_s1 = inlined_call_operand.vmem [shape: f32[36,8], index: 1, kind: input, shape index: {}]   ;;  %s14161_s2 = inlined_call_operand.vmem [shape: f32[1,8], index: 2, kind: input, shape index: {}]   ;;  %s14162_s3 = inlined_call_operand.vmem [shape: f32[72,16], index: 3, kind: input, shape index: {}]   ;;  %s14163_s4 = inlined_call_operand.vmem [shape: f32[1,16], index: 4, kind: input, shape index: {}]   ;;  %s14164_s5 = inlined_call_operand.vmem [shape: f32[256,32], index: 5, kind: input, shape index: {}]   ;;  %s14165_s6 = inlined_call_operand.vmem [shape: f32[1,32], index: 6, kind: input, shape index: {}]   ;;  %s14166_s7 = inlined_call_operand.vmem [shape: f32[32,16], index: 7, kind: input, shape index: {}]   ;;  %s14167_s8 = inlined_call_operand.vmem [shape: f32[1,16], index: 8, kind: input, shape index: {}]   ;;  %s14168_s9 = inlined_call_operand.hbm [shape: f32[2,16], index: 9, kind: output, shape index: {}]  }
   0x1   :  { %v196_v0 = vld [vmem:[%s14160_s1 + $0x4] sm:$0xf]  ;;  %v114_v1 = vld [vmem:[%s14160_s1] sm:$0xf]  ;;  %v1292_v3 = vld [vmem:[%s14160_s1 + $0x8] sm:$0xf] }
   0x2   :  { %v115_v2 = vld [vmem:[%s14159_s0 + $0x1] sm:$0xff]  ;;  %8951 = vmatpush.msk.msra.mxu0 %vm441_vm0, %v196_v0  ;;  %9033 = vmatpush.msk.msra.mxu1 %vm441_vm0, %v114_v1  ;;  %v2630_v6 = vld [vmem:[%s14160_s1 + $0x10] sm:$0xf]  ;;  %v1961_v7 = vld [vmem:[%s14160_s1 + $0xc] sm:$0xf] }
   0x3   :  { %v33_v4 = vld [vmem:[%s14159_s0] sm:$0xff]  ;;  %9115 = vmatpush.msk.msra.mxu2 %vm441_vm0, %v1292_v3  ;;  %8952 = vmatmul.msk.f32.vlgmr.msra.gmra.mxu0 %vm197_vm1, %v115_v2  ;;  %v1880_v8 = vld [vmem:[%s14159_s0 + $0x12] sm:$0xff]  ;;  %v116_v9 = vld [vmem:[%s14159_s0 + $0x9] sm:$0xff] }
   0x4   :  { %v1211_v5 = vld [vmem:[%s14159_s0 + $0x2] sm:$0xff]  ;;  %9034 = vmatmul.msk.f32.vlgmr.msra.gmra.mxu1 %vm197_vm1, %v33_v4  ;;  %9279 = vmatpush.msk.msrb.mxu0 %vm441_vm0, %v2630_v6  ;;  %v1212_v11 = vld [vmem:[%s14159_s0 + $0xa] sm:$0xff] }
   0x5   :  { %9116 = vmatmul.msk.f32.vlgmr.msra.gmra.mxu2 %vm197_vm1, %v1211_v5  ;;  %9197 = vmatpush.msk.msra.mxu3 %vm441_vm0, %v1961_v7  ;;  %v34_v10 = vld [vmem:[%s14159_s0 + $0x8] sm:$0xff] }
   0x6   :  { %9198 = vmatmul.msk.f32.vlgmr.msra.gmra.mxu3 %vm197_vm1, %v1880_v8 }
   0x7   :  { %14 = vsyncpa [#allocation7], 0  ;;  %v1881_v12 = vld [vmem:[%s14159_s0 + $0x1a] sm:$0xff]  ;;  %v117_v13 = vld [vmem:[%s14159_s0 + $0x11] sm:$0xff]  ;;  %vm6060_vm2 = vcmask 64512   ;;  %vm8328_vm3 = vcmask 130048  }
   0x8   :  { %v35_v14 = vld [vmem:[%s14159_s0 + $0x10] sm:$0xff]  ;;  %v1882_v15 = vld [vmem:[%s14159_s0 + $0x22] sm:$0xff]  ;;  %v118_v16 = vld [vmem:[%s14159_s0 + $0x19] sm:$0xff]  ;;  %vm6169_vm4 = vcmask 62464   ;;  %vm8364_vm5 = vcmask 125952   ;;  %vm8909_vm6 = vcmask 261120  }
   0x9   :  { %v36_v17 = vld [vmem:[%s14159_s0 + $0x18] sm:$0xff]  ;;  %v1883_v18 = vld [vmem:[%s14159_s0 + $0x2a] sm:$0xff]  ;;  %v119_v19 = vld [vmem:[%s14159_s0 + $0x21] sm:$0xff]  ;;  %s8942_s22 = sshll.u32 %s14168_s9, 4  ;;  %vm8933_vm7 = vcmask 123904   ;;  %s8943_s22 = int_to_ptr.hbm [resolvable:$true] %s8942_s22 }
   0xa   :  { %v37_v20 = vld [vmem:[%s14159_s0 + $0x20] sm:$0xff]  ;;  %v1884_v21 = vld [vmem:[%s14159_s0 + $0x32] sm:$0xff]  ;;  %v120_v22 = vld [vmem:[%s14159_s0 + $0x29] sm:$0xff] }
   0xb   :  { %8953 = vmatmul.msk.f32.gmra.mxu0 %vm197_vm1, %v116_v9  ;;  %v38_v23 = vld [vmem:[%s14159_s0 + $0x28] sm:$0xff]  ;;  %v1885_v24 = vld [vmem:[%s14159_s0 + $0x3a] sm:$0xff]  ;;  %v121_v25 = vld [vmem:[%s14159_s0 + $0x31] sm:$0xff] }
   0xc   :  { %9035 = vmatmul.msk.f32.gmra.mxu1 %vm197_vm1, %v34_v10  ;;  %v39_v26 = vld [vmem:[%s14159_s0 + $0x30] sm:$0xff]  ;;  %v1886_v27 = vld [vmem:[%s14159_s0 + $0x42] sm:$0xff]  ;;  %v122_v28 = vld [vmem:[%s14159_s0 + $0x39] sm:$0xff] }
   0xd   :  { %9117 = vmatmul.msk.f32.gmra.mxu2 %vm197_vm1, %v1212_v11  ;;  %v40_v29 = vld [vmem:[%s14159_s0 + $0x38] sm:$0xff]  ;;  %v1887_v30 = vld [vmem:[%s14159_s0 + $0x4a] sm:$0xff]  ;;  %v123_v31 = vld [vmem:[%s14159_s0 + $0x41] sm:$0xff] }
   0xe   :  { %9199 = vmatmul.msk.f32.gmra.mxu3 %vm197_vm1, %v1881_v12  ;;  %v41_v32 = vld [vmem:[%s14159_s0 + $0x40] sm:$0xff]  ;;  %v1888_v33 = vld [vmem:[%s14159_s0 + $0x52] sm:$0xff]  ;;  %v124_v34 = vld [vmem:[%s14159_s0 + $0x49] sm:$0xff] }
   0xf   :  { %v42_v35 = vld [vmem:[%s14159_s0 + $0x48] sm:$0xff]  ;;  %v1889_v36 = vld [vmem:[%s14159_s0 + $0x5a] sm:$0xff]  ;;  %v125_v37 = vld [vmem:[%s14159_s0 + $0x51] sm:$0xff] }
  0x10   :  { %v43_v38 = vld [vmem:[%s14159_s0 + $0x50] sm:$0xff]  ;;  %v1890_v39 = vld [vmem:[%s14159_s0 + $0x62] sm:$0xff]  ;;  %v126_v40 = vld [vmem:[%s14159_s0 + $0x59] sm:$0xff] }
  0x11   :  { %v44_v41 = vld [vmem:[%s14159_s0 + $0x58] sm:$0xff]  ;;  %v1891_v42 = vld [vmem:[%s14159_s0 + $0x6a] sm:$0xff]  ;;  %v127_v43 = vld [vmem:[%s14159_s0 + $0x61] sm:$0xff] }
  0x12   :  { %v45_v44 = vld [vmem:[%s14159_s0 + $0x60] sm:$0xff]  ;;  %v1892_v45 = vld [vmem:[%s14159_s0 + $0x72] sm:$0xff]  ;;  %v128_v46 = vld [vmem:[%s14159_s0 + $0x69] sm:$0xff] }
  0x13   :  { %8954 = vmatmul.msk.f32.gmra.mxu0 %vm197_vm1, %v117_v13  ;;  %v46_v47 = vld [vmem:[%s14159_s0 + $0x68] sm:$0xff]  ;;  %v1893_v48 = vld [vmem:[%s14159_s0 + $0x7a] sm:$0xff]  ;;  %v129_v49 = vld [vmem:[%s14159_s0 + $0x71] sm:$0xff] }
  0x14   :  { %9036 = vmatmul.msk.f32.gmra.mxu1 %vm197_vm1, %v35_v14  ;;  %v47_v50 = vld [vmem:[%s14159_s0 + $0x70] sm:$0xff]  ;;  %v1894_v51 = vld [vmem:[%s14159_s0 + $0x82] sm:$0xff]  ;;  %v130_v52 = vld [vmem:[%s14159_s0 + $0x79] sm:$0xff] }
  0x15   :  { %9118 = vmatmul.msk.f32.gmra.mxu2 %vm197_vm1, %v1880_v8  ;;  %v48_v53 = vld [vmem:[%s14159_s0 + $0x78] sm:$0xff]  ;;  %v1895_v54 = vld [vmem:[%s14159_s0 + $0x8a] sm:$0xff]  ;;  %v131_v56 = vld [vmem:[%s14159_s0 + $0x81] sm:$0xff] }
  0x16   :  { %9200 = vmatmul.msk.f32.gmra.mxu3 %vm197_vm1, %v1882_v15  ;;  %v49_v58 = vld [vmem:[%s14159_s0 + $0x80] sm:$0xff]  ;;  %v1896_v59 = vld [vmem:[%s14159_s0 + $0x92] sm:$0xff]  ;;  %v132_v0 = vld [vmem:[%s14159_s0 + $0x89] sm:$0xff] }
  0x17   :  { %v50_v3 = vld [vmem:[%s14159_s0 + $0x88] sm:$0xff]  ;;  %v1897_v5 = vld [vmem:[%s14159_s0 + $0x9a] sm:$0xff]  ;;  %v133_v10 = vld [vmem:[%s14159_s0 + $0x91] sm:$0xff] }
  0x18   :  { %v51_v13 = vld [vmem:[%s14159_s0 + $0x90] sm:$0xff] }
  0x1b   :  { %8955 = vmatmul.msk.f32.gmra.mxu0 %vm197_vm1, %v118_v16 }
  0x1c   :  { %9037 = vmatmul.msk.f32.gmra.mxu1 %vm197_vm1, %v36_v17 }
  0x1d   :  { %9119 = vmatmul.msk.f32.gmra.mxu2 %vm197_vm1, %v1881_v12 }
  0x1e   :  { %9201 = vmatmul.msk.f32.gmra.mxu3 %vm197_vm1, %v1883_v18 }
  0x23   :  { %8956 = vmatmul.msk.f32.gmra.mxu0 %vm197_vm1, %v119_v19 }
  0x24   :  { %9038 = vmatmul.msk.f32.gmra.mxu1 %vm197_vm1, %v37_v20  ;;  %v134_v20 = vld [vmem:[%s14159_s0 + $0x99] sm:$0xff] }
  0x25   :  { %9120 = vmatmul.msk.f32.gmra.mxu2 %vm197_vm1, %v1882_v15  ;;  %v1898_v15 = vld [vmem:[%s14159_s0 + $0xa2] sm:$0xff] }
  0x26   :  { %9202 = vmatmul.msk.f32.gmra.mxu3 %vm197_vm1, %v1884_v21 }
  0x2b   :  { %8957 = vmatmul.msk.f32.gmra.mxu0 %vm197_vm1, %v120_v22 }
  0x2c   :  { %9039 = vmatmul.msk.f32.gmra.mxu1 %vm197_vm1, %v38_v23  ;;  %v52_v23 = vld [vmem:[%s14159_s0 + $0x98] sm:$0xff] }
  0x2d   :  { %9121 = vmatmul.msk.f32.gmra.mxu2 %vm197_vm1, %v1883_v18 }
  0x2e   :  { %9203 = vmatmul.msk.f32.gmra.mxu3 %vm197_vm1, %v1885_v24 }
  0x33   :  { %8958 = vmatmul.msk.f32.gmra.mxu0 %vm197_vm1, %v121_v25  ;;  %v1899_v25 = vld [vmem:[%s14159_s0 + $0xaa] sm:$0xff] }
  0x34   :  { %9040 = vmatmul.msk.f32.gmra.mxu1 %vm197_vm1, %v39_v26 }
  0x35   :  { %9122 = vmatmul.msk.f32.gmra.mxu2 %vm197_vm1, %v1884_v21 }
  0x36   :  { %9204 = vmatmul.msk.f32.gmra.mxu3 %vm197_vm1, %v1886_v27 }
  0x3b   :  { %8959 = vmatmul.msk.f32.gmra.mxu0 %vm197_vm1, %v122_v28 }
  0x3c   :  { %9041 = vmatmul.msk.f32.gmra.mxu1 %vm197_vm1, %v40_v29 }
  0x3d   :  { %9123 = vmatmul.msk.f32.gmra.mxu2 %vm197_vm1, %v1885_v24 }
  0x3e   :  { %9205 = vmatmul.msk.f32.gmra.mxu3 %vm197_vm1, %v1887_v30 }
  0x43   :  { %8960 = vmatmul.msk.f32.gmra.mxu0 %vm197_vm1, %v123_v31 }
  0x44   :  { %9042 = vmatmul.msk.f32.gmra.mxu1 %vm197_vm1, %v41_v32 }
  0x45   :  { %9124 = vmatmul.msk.f32.gmra.mxu2 %vm197_vm1, %v1886_v27 }
  0x46   :  { %9206 = vmatmul.msk.f32.gmra.mxu3 %vm197_vm1, %v1888_v33 }
  0x4b   :  { %8961 = vmatmul.msk.f32.gmra.mxu0 %vm197_vm1, %v124_v34 }
  0x4c   :  { %9043 = vmatmul.msk.f32.gmra.mxu1 %vm197_vm1, %v42_v35  ;;  %v1900_v35 = vld [vmem:[%s14159_s0 + $0xb2] sm:$0xff] }
  0x4d   :  { %9125 = vmatmul.msk.f32.gmra.mxu2 %vm197_vm1, %v1887_v30  ;;  %v135_v30 = vld [vmem:[%s14159_s0 + $0xa1] sm:$0xff] }
  0x4e   :  { %9207 = vmatmul.msk.f32.gmra.mxu3 %vm197_vm1, %v1889_v36 }
  0x53   :  { %8962 = vmatmul.msk.f32.gmra.mxu0 %vm197_vm1, %v125_v37 }
  0x54   :  { %9044 = vmatmul.msk.f32.gmra.mxu1 %vm197_vm1, %v43_v38 }
  0x55   :  { %9126 = vmatmul.msk.f32.gmra.mxu2 %vm197_vm1, %v1888_v33  ;;  %v53_v33 = vld [vmem:[%s14159_s0 + $0xa0] sm:$0xff] }
  0x56   :  { %9208 = vmatmul.msk.f32.gmra.mxu3 %vm197_vm1, %v1890_v39 }
  0x5b   :  { %8963 = vmatmul.msk.f32.gmra.mxu0 %vm197_vm1, %v126_v40  ;;  %v136_v40 = vld [vmem:[%s14159_s0 + $0xa9] sm:$0xff] }
  0x5c   :  { %9045 = vmatmul.msk.f32.gmra.mxu1 %vm197_vm1, %v44_v41 }
  0x5d   :  { %9127 = vmatmul.msk.f32.gmra.mxu2 %vm197_vm1, %v1889_v36 }
  0x5e   :  { %9209 = vmatmul.msk.f32.gmra.mxu3 %vm197_vm1, %v1891_v42 }
  0x63   :  { %8964 = vmatmul.msk.f32.gmra.mxu0 %vm197_vm1, %v127_v43  ;;  %v54_v43 = vld [vmem:[%s14159_s0 + $0xa8] sm:$0xff] }
  0x64   :  { %9046 = vmatmul.msk.f32.gmra.mxu1 %vm197_vm1, %v45_v44 }
  0x65   :  { %9128 = vmatmul.msk.f32.gmra.mxu2 %vm197_vm1, %v1890_v39 }
  0x66   :  { %9210 = vmatmul.msk.f32.gmra.mxu3 %vm197_vm1, %v1892_v45 }
  0x6b   :  { %8965 = vmatmul.msk.f32.gmra.mxu0 %vm197_vm1, %v128_v46 }
  0x6c   :  { %9047 = vmatmul.msk.f32.gmra.mxu1 %vm197_vm1, %v46_v47 }
  0x6d   :  { %9129 = vmatmul.msk.f32.gmra.mxu2 %vm197_vm1, %v1891_v42 }
  0x6e   :  { %9211 = vmatmul.msk.f32.gmra.mxu3 %vm197_vm1, %v1893_v48 }
  0x73   :  { %8966 = vmatmul.msk.f32.gmra.mxu0 %vm197_vm1, %v129_v49 }
  0x74   :  { %9048 = vmatmul.msk.f32.gmra.mxu1 %vm197_vm1, %v47_v50  ;;  %v137_v50 = vld [vmem:[%s14159_s0 + $0xb1] sm:$0xff] }
  0x75   :  { %9130 = vmatmul.msk.f32.gmra.mxu2 %vm197_vm1, %v1892_v45  ;;  %v1901_v45 = vld [vmem:[%s14159_s0 + $0xba] sm:$0xff] }
  0x76   :  { %9212 = vmatmul.msk.f32.gmra.mxu3 %vm197_vm1, %v1894_v51 }
  0x7b   :  { %8967 = vmatmul.msk.f32.gmra.mxu0 %vm197_vm1, %v130_v52 }
  0x7c   :  { %9049 = vmatmul.msk.f32.gmra.mxu1 %vm197_vm1, %v48_v53  ;;  %v55_v53 = vld [vmem:[%s14159_s0 + $0xb0] sm:$0xff] }
  0x7d   :  { %9131 = vmatmul.msk.f32.gmra.mxu2 %vm197_vm1, %v1893_v48 }
  0x7e   :  { %9213 = vmatmul.msk.f32.gmra.mxu3 %vm197_vm1, %v1895_v54 }
  0x80   :  { %v462_v55 = vpop.f32.mrf.mxu0 }
  0x81   :  { %v968_v57 = vpop.f32.mrf.mxu1 }
  0x82   :  { %v969_v60 = vadd.f32 %v968_v57, %v462_v55  ;;  %v1902_v55 = vld [vmem:[%s14159_s0 + $0xc2] sm:$0xff] }
  0x83   :  { %8968 = vmatmul.msk.f32.gmra.mxu0 %vm197_vm1, %v131_v56 }
  0x84   :  { %9050 = vmatmul.msk.f32.gmra.mxu1 %vm197_vm1, %v49_v58 }
  0x85   :  { %9132 = vmatmul.msk.f32.gmra.mxu2 %vm197_vm1, %v1894_v51 }
  0x86   :  { %9214 = vmatmul.msk.f32.gmra.mxu3 %vm197_vm1, %v1896_v59 }
  0x88   :  { %v1556_v61 = vpop.f32.mrf.mxu2  ;;  %v465_v63 = vpop.f32.mrf.mxu0 }
  0x89   :  { %v1799_v62 = vadd.f32 %v1556_v61, %v969_v60  ;;  %v971_v1 = vpop.f32.mrf.mxu1  ;;  %v2225_v2 = vpop.f32.mrf.mxu3  ;;  %v138_v60 = vld [vmem:[%s14159_s0 + $0xb9] sm:$0xff] }
  0x8a   :  { %v972_v6 = vadd.f32 %v971_v1, %v465_v63  ;;  %v56_v63 = vld [vmem:[%s14159_s0 + $0xb8] sm:$0xff]  ;;  %v1903_v1 = vld [vmem:[%s14159_s0 + $0xca] sm:$0xff] }
  0x8b   :  { %v10275_v4 = vadd.f32 %v2225_v2, %v1799_v62  ;;  %8969 = vmatmul.msk.f32.gmra.mxu0 %vm197_vm1, %v132_v0 }
  0x8c   :  { %9051 = vmatmul.msk.f32.gmra.mxu1 %vm197_vm1, %v50_v3 }
  0x8d   :  { %9133 = vmatmul.msk.f32.gmra.mxu2 %vm197_vm1, %v1895_v54 }
  0x8e   :  { %9215 = vmatmul.msk.f32.gmra.mxu3 %vm197_vm1, %v1897_v5 }
  0x90   :  { %v1559_v7 = vpop.f32.mrf.mxu2  ;;  %v468_v9 = vpop.f32.mrf.mxu0 }
  0x91   :  { %v1800_v8 = vadd.f32 %v1559_v7, %v972_v6  ;;  %v974_v11 = vpop.f32.mrf.mxu1  ;;  %v2228_v12 = vpop.f32.mrf.mxu3  ;;  %v139_v7 = vld [vmem:[%s14159_s0 + $0xc1] sm:$0xff] }
  0x92   :  { %v975_v16 = vadd.f32 %v974_v11, %v468_v9 }
  0x93   :  { %v10290_v14 = vadd.f32 %v2228_v12, %v1800_v8  ;;  %8970 = vmatmul.msk.f32.gmra.mxu0 %vm197_vm1, %v133_v10  ;;  %v57_v10 = vld [vmem:[%s14159_s0 + $0xc0] sm:$0xff]  ;;  %v1904_v12 = vld [vmem:[%s14159_s0 + $0xd2] sm:$0xff] }
  0x94   :  { %9052 = vmatmul.msk.f32.gmra.mxu1 %vm197_vm1, %v51_v13 }
  0x95   :  { %9134 = vmatmul.msk.f32.gmra.mxu2 %vm197_vm1, %v1896_v59 }
  0x96   :  { %9216 = vmatmul.msk.f32.gmra.mxu3 %vm197_vm1, %v1898_v15 }
  0x98   :  { %v1562_v17 = vpop.f32.mrf.mxu2  ;;  %v471_v19 = vpop.f32.mrf.mxu0 }
  0x99   :  { %v1801_v18 = vadd.f32 %v1562_v17, %v975_v16  ;;  %v977_v21 = vpop.f32.mrf.mxu1  ;;  %v2231_v22 = vpop.f32.mrf.mxu3 }
  0x9a   :  { %v978_v26 = vadd.f32 %v977_v21, %v471_v19  ;;  %v58_v21 = vld [vmem:[%s14159_s0 + $0xc8] sm:$0xff] }
  0x9b   :  { %v10305_v24 = vadd.f32 %v2231_v22, %v1801_v18  ;;  %8971 = vmatmul.msk.f32.gmra.mxu0 %vm197_vm1, %v134_v20  ;;  %v140_v18 = vld [vmem:[%s14159_s0 + $0xc9] sm:$0xff] }
  0x9c   :  { %9053 = vmatmul.msk.f32.gmra.mxu1 %vm197_vm1, %v52_v23  ;;  %v1905_v23 = vld [vmem:[%s14159_s0 + $0xda] sm:$0xff] }
  0x9d   :  { %9135 = vmatmul.msk.f32.gmra.mxu2 %vm197_vm1, %v1897_v5 }
  0x9e   :  { %9217 = vmatmul.msk.f32.gmra.mxu3 %vm197_vm1, %v1899_v25 }
  0xa0   :  { %v1565_v27 = vpop.f32.mrf.mxu2  ;;  %v474_v29 = vpop.f32.mrf.mxu0 }
  0xa1   :  { %v1802_v28 = vadd.f32 %v1565_v27, %v978_v26  ;;  %v980_v31 = vpop.f32.mrf.mxu1  ;;  %v2234_v32 = vpop.f32.mrf.mxu3 }
  0xa2   :  { %v981_v36 = vadd.f32 %v980_v31, %v474_v29  ;;  %v141_v29 = vld [vmem:[%s14159_s0 + $0xd1] sm:$0xff] }
  0xa3   :  { %v10320_v34 = vadd.f32 %v2234_v32, %v1802_v28  ;;  %8972 = vmatmul.msk.f32.gmra.mxu0 %vm197_vm1, %v135_v30  ;;  %v59_v32 = vld [vmem:[%s14159_s0 + $0xd0] sm:$0xff] }
  0xa4   :  { %9054 = vmatmul.msk.f32.gmra.mxu1 %vm197_vm1, %v53_v33 }
  0xa5   :  { %9136 = vmatmul.msk.f32.gmra.mxu2 %vm197_vm1, %v1898_v15 }
  0xa6   :  { %9218 = vmatmul.msk.f32.gmra.mxu3 %vm197_vm1, %v1900_v35 }
  0xa8   :  { %v1568_v37 = vpop.f32.mrf.mxu2  ;;  %v477_v39 = vpop.f32.mrf.mxu0 }
  0xa9   :  { %v1803_v38 = vadd.f32 %v1568_v37, %v981_v36  ;;  %v983_v41 = vpop.f32.mrf.mxu1  ;;  %v2237_v42 = vpop.f32.mrf.mxu3 }
  0xaa   :  { %v984_v46 = vadd.f32 %v983_v41, %v477_v39 }
  0xab   :  { %v10335_v44 = vadd.f32 %v2237_v42, %v1803_v38  ;;  %8973 = vmatmul.msk.f32.gmra.mxu0 %vm197_vm1, %v136_v40  ;;  %v142_v40 = vld [vmem:[%s14159_s0 + $0xd9] sm:$0xff] }
  0xac   :  { %9055 = vmatmul.msk.f32.gmra.mxu1 %vm197_vm1, %v54_v43  ;;  %v60_v43 = vld [vmem:[%s14159_s0 + $0xd8] sm:$0xff] }
  0xad   :  { %9137 = vmatmul.msk.f32.gmra.mxu2 %vm197_vm1, %v1899_v25 }
  0xae   :  { %9219 = vmatmul.msk.f32.gmra.mxu3 %vm197_vm1, %v1901_v45 }
  0xb0   :  { %v1571_v47 = vpop.f32.mrf.mxu2  ;;  %v480_v49 = vpop.f32.mrf.mxu0 }
  0xb1   :  { %v1804_v48 = vadd.f32 %v1571_v47, %v984_v46  ;;  %v986_v51 = vpop.f32.mrf.mxu1  ;;  %v2240_v52 = vpop.f32.mrf.mxu3  ;;  %v1907_v46 = vld [vmem:[%s14159_s0 + $0xea] sm:$0xff] }
  0xb2   :  { %v987_v56 = vadd.f32 %v986_v51, %v480_v49  ;;  %v143_v51 = vld [vmem:[%s14159_s0 + $0xe1] sm:$0xff] }
  0xb3   :  { %v10350_v54 = vadd.f32 %v2240_v52, %v1804_v48  ;;  %8974 = vmatmul.msk.f32.gmra.mxu0 %vm197_vm1, %v137_v50 }
  0xb4   :  { %9056 = vmatmul.msk.f32.gmra.mxu1 %vm197_vm1, %v55_v53 }
  0xb5   :  { %9138 = vmatmul.msk.f32.gmra.mxu2 %vm197_vm1, %v1900_v35  ;;  %v1906_v35 = vld [vmem:[%s14159_s0 + $0xe2] sm:$0xff] }
  0xb6   :  { %9220 = vmatmul.msk.f32.gmra.mxu3 %vm197_vm1, %v1902_v55 }
  0xb8   :  { %v1574_v57 = vpop.f32.mrf.mxu2  ;;  %v483_v59 = vpop.f32.mrf.mxu0 }
  0xb9   :  { %v1805_v58 = vadd.f32 %v1574_v57, %v987_v56  ;;  %v989_v61 = vpop.f32.mrf.mxu1  ;;  %v2243_v62 = vpop.f32.mrf.mxu3  ;;  %v1908_v57 = vld [vmem:[%s14159_s0 + $0xf2] sm:$0xff] }
  0xba   :  { %v990_v2 = vadd.f32 %v989_v61, %v483_v59 }
  0xbb   :  { %v10365_v0 = vadd.f32 %v2243_v62, %v1805_v58  ;;  %8975 = vmatmul.msk.f32.gmra.mxu0 %vm197_vm1, %v138_v60  ;;  %v144_v62 = vld [vmem:[%s14159_s0 + $0xe9] sm:$0xff] }
  0xbc   :  { %9057 = vmatmul.msk.f32.gmra.mxu1 %vm197_vm1, %v56_v63 }
  0xbd   :  { %9139 = vmatmul.msk.f32.gmra.mxu2 %vm197_vm1, %v1901_v45 }
  0xbe   :  { %9221 = vmatmul.msk.f32.gmra.mxu3 %vm197_vm1, %v1903_v1 }
  0xc0   :  { %v1577_v3 = vpop.f32.mrf.mxu2  ;;  %v486_v6 = vpop.f32.mrf.mxu0 }
  0xc1   :  { %v1806_v5 = vadd.f32 %v1577_v3, %v990_v2  ;;  %v992_v8 = vpop.f32.mrf.mxu1  ;;  %v2246_v9 = vpop.f32.mrf.mxu3  ;;  %v62_v2 = vld [vmem:[%s14159_s0 + $0xe8] sm:$0xff] }
  0xc2   :  { %v993_v13 = vadd.f32 %v992_v8, %v486_v6 }
  0xc3   :  { %v10380_v11 = vadd.f32 %v2246_v9, %v1806_v5  ;;  %8976 = vmatmul.msk.f32.gmra.mxu0 %vm197_vm1, %v139_v7  ;;  %v1909_v5 = vld [vmem:[%s14159_s0 + $0xfa] sm:$0xff] }
  0xc4   :  { %9058 = vmatmul.msk.f32.gmra.mxu1 %vm197_vm1, %v57_v10  ;;  %v145_v10 = vld [vmem:[%s14159_s0 + $0xf1] sm:$0xff] }
  0xc5   :  { %9140 = vmatmul.msk.f32.gmra.mxu2 %vm197_vm1, %v1902_v55  ;;  %v61_v55 = vld [vmem:[%s14159_s0 + $0xe0] sm:$0xff] }
  0xc6   :  { %9222 = vmatmul.msk.f32.gmra.mxu3 %vm197_vm1, %v1904_v12 }
  0xc8   :  { %v1580_v15 = vpop.f32.mrf.mxu2  ;;  %v489_v17 = vpop.f32.mrf.mxu0 }
  0xc9   :  { %v1807_v16 = vadd.f32 %v1580_v15, %v993_v13  ;;  %v995_v19 = vpop.f32.mrf.mxu1  ;;  %v2249_v20 = vpop.f32.mrf.mxu3  ;;  %v63_v15 = vld [vmem:[%s14159_s0 + $0xf0] sm:$0xff] }
  0xca   :  { %v996_v25 = vadd.f32 %v995_v19, %v489_v17  ;;  %v1910_v17 = vld [vmem:[%s14159_s0 + $0x102] sm:$0xff] }
  0xcb   :  { %v10395_v22 = vadd.f32 %v2249_v20, %v1807_v16  ;;  %8977 = vmatmul.msk.f32.gmra.mxu0 %vm197_vm1, %v140_v18 }
  0xcc   :  { %9059 = vmatmul.msk.f32.gmra.mxu1 %vm197_vm1, %v58_v21 }
  0xcd   :  { %9141 = vmatmul.msk.f32.gmra.mxu2 %vm197_vm1, %v1903_v1 }
  0xce   :  { %9223 = vmatmul.msk.f32.gmra.mxu3 %vm197_vm1, %v1905_v23 }
  0xd0   :  { %v1583_v26 = vpop.f32.mrf.mxu2  ;;  %v492_v28 = vpop.f32.mrf.mxu0 }
  0xd1   :  { %v1808_v27 = vadd.f32 %v1583_v26, %v996_v25  ;;  %v998_v30 = vpop.f32.mrf.mxu1  ;;  %v2252_v31 = vpop.f32.mrf.mxu3 }
  0xd2   :  { %v999_v36 = vadd.f32 %v998_v30, %v492_v28 }
  0xd3   :  { %v10410_v33 = vadd.f32 %v2252_v31, %v1808_v27  ;;  %8978 = vmatmul.msk.f32.gmra.mxu0 %vm197_vm1, %v141_v29  ;;  %v64_v27 = vld [vmem:[%s14159_s0 + $0xf8] sm:$0xff]  ;;  %v1911_v29 = vld [vmem:[%s14159_s0 + $0x10a] sm:$0xff] }
  0xd4   :  { %9060 = vmatmul.msk.f32.gmra.mxu1 %vm197_vm1, %v59_v32 }
  0xd5   :  { %9142 = vmatmul.msk.f32.gmra.mxu2 %vm197_vm1, %v1904_v12 }
  0xd6   :  { %9224 = vmatmul.msk.f32.gmra.mxu3 %vm197_vm1, %v1906_v35 }
  0xd8   :  { %v1586_v37 = vpop.f32.mrf.mxu2  ;;  %v495_v39 = vpop.f32.mrf.mxu0 }
  0xd9   :  { %v1809_v38 = vadd.f32 %v1586_v37, %v999_v36  ;;  %v1001_v41 = vpop.f32.mrf.mxu1  ;;  %v2255_v42 = vpop.f32.mrf.mxu3  ;;  %v147_v36 = vld [vmem:[%s14159_s0 + $0x101] sm:$0xff] }
  0xda   :  { %v1002_v47 = vadd.f32 %v1001_v41, %v495_v39  ;;  %v65_v39 = vld [vmem:[%s14159_s0 + $0x100] sm:$0xff]  ;;  %v1912_v41 = vld [vmem:[%s14159_s0 + $0x112] sm:$0xff] }
  0xdb   :  { %v10425_v45 = vadd.f32 %v2255_v42, %v1809_v38  ;;  %8979 = vmatmul.msk.f32.gmra.mxu0 %vm197_vm1, %v142_v40 }
  0xdc   :  { %9061 = vmatmul.msk.f32.gmra.mxu1 %vm197_vm1, %v60_v43 }
  0xdd   :  { %9143 = vmatmul.msk.f32.gmra.mxu2 %vm197_vm1, %v1905_v23  ;;  %v146_v23 = vld [vmem:[%s14159_s0 + $0xf9] sm:$0xff] }
  0xde   :  { %9225 = vmatmul.msk.f32.gmra.mxu3 %vm197_vm1, %v1907_v46 }
  0xe0   :  { %v1589_v48 = vpop.f32.mrf.mxu2  ;;  %v498_v50 = vpop.f32.mrf.mxu0 }
  0xe1   :  { %v1810_v49 = vadd.f32 %v1589_v48, %v1002_v47  ;;  %v1004_v52 = vpop.f32.mrf.mxu1  ;;  %v2258_v53 = vpop.f32.mrf.mxu3  ;;  %v148_v48 = vld [vmem:[%s14159_s0 + $0x109] sm:$0xff] }
  0xe2   :  { %v1005_v58 = vadd.f32 %v1004_v52, %v498_v50 }
  0xe3   :  { %v10440_v56 = vadd.f32 %v2258_v53, %v1810_v49  ;;  %8980 = vmatmul.msk.f32.gmra.mxu0 %vm197_vm1, %v143_v51  ;;  %v66_v51 = vld [vmem:[%s14159_s0 + $0x108] sm:$0xff]  ;;  %v1913_v53 = vld [vmem:[%s14159_s0 + $0x11a] sm:$0xff] }
  0xe4   :  { %9062 = vmatmul.msk.f32.gmra.mxu1 %vm197_vm1, %v61_v55 }
  0xe5   :  { %9144 = vmatmul.msk.f32.gmra.mxu2 %vm197_vm1, %v1906_v35 }
  0xe6   :  { %9226 = vmatmul.msk.f32.gmra.mxu3 %vm197_vm1, %v1908_v57 }
  0xe8   :  { %v1592_v59 = vpop.f32.mrf.mxu2  ;;  %v501_v61 = vpop.f32.mrf.mxu0 }
  0xe9   :  { %v1811_v60 = vadd.f32 %v1592_v59, %v1005_v58  ;;  %v1007_v63 = vpop.f32.mrf.mxu1  ;;  %v2261_v1 = vpop.f32.mrf.mxu3 }
  0xea   :  { %v1008_v6 = vadd.f32 %v1007_v63, %v501_v61  ;;  %v67_v63 = vld [vmem:[%s14159_s0 + $0x110] sm:$0xff] }
  0xeb   :  { %v10455_v3 = vadd.f32 %v2261_v1, %v1811_v60  ;;  %8981 = vmatmul.msk.f32.gmra.mxu0 %vm197_vm1, %v144_v62  ;;  %v149_v60 = vld [vmem:[%s14159_s0 + $0x111] sm:$0xff] }
  0xec   :  { %9063 = vmatmul.msk.f32.gmra.mxu1 %vm197_vm1, %v62_v2  ;;  %v1914_v2 = vld [vmem:[%s14159_s0 + $0x122] sm:$0xff] }
  0xed   :  { %9145 = vmatmul.msk.f32.gmra.mxu2 %vm197_vm1, %v1907_v46 }
  0xee   :  { %9227 = vmatmul.msk.f32.gmra.mxu3 %vm197_vm1, %v1909_v5 }
  0xf0   :  { %v1595_v7 = vpop.f32.mrf.mxu2  ;;  %v504_v9 = vpop.f32.mrf.mxu0 }
  0xf1   :  { %v1812_v8 = vadd.f32 %v1595_v7, %v1008_v6  ;;  %v1010_v12 = vpop.f32.mrf.mxu1  ;;  %v2264_v13 = vpop.f32.mrf.mxu3 }
  0xf2   :  { %v1011_v18 = vadd.f32 %v1010_v12, %v504_v9  ;;  %v150_v9 = vld [vmem:[%s14159_s0 + $0x119] sm:$0xff] }
  0xf3   :  { %v10470_v16 = vadd.f32 %v2264_v13, %v1812_v8  ;;  %8982 = vmatmul.msk.f32.gmra.mxu0 %vm197_vm1, %v145_v10  ;;  %v68_v13 = vld [vmem:[%s14159_s0 + $0x118] sm:$0xff] }
  0xf4   :  { %9064 = vmatmul.msk.f32.gmra.mxu1 %vm197_vm1, %v63_v15 }
  0xf5   :  { %9146 = vmatmul.msk.f32.gmra.mxu2 %vm197_vm1, %v1908_v57 }
  0xf6   :  { %9228 = vmatmul.msk.f32.gmra.mxu3 %vm197_vm1, %v1910_v17 }
  0xf8   :  { %v1598_v19 = vpop.f32.mrf.mxu2  ;;  %v507_v21 = vpop.f32.mrf.mxu0 }
  0xf9   :  { %v1813_v20 = vadd.f32 %v1598_v19, %v1011_v18  ;;  %v1013_v25 = vpop.f32.mrf.mxu1  ;;  %v2267_v26 = vpop.f32.mrf.mxu3 }
  0xfa   :  { %v1014_v30 = vadd.f32 %v1013_v25, %v507_v21 }
  0xfb   :  { %v10485_v28 = vadd.f32 %v2267_v26, %v1813_v20  ;;  %8983 = vmatmul.msk.f32.gmra.mxu0 %vm197_vm1, %v146_v23  ;;  %v151_v23 = vld [vmem:[%s14159_s0 + $0x121] sm:$0xff] }
  0xfc   :  { %9065 = vmatmul.msk.f32.gmra.mxu1 %vm197_vm1, %v64_v27  ;;  %v69_v27 = vld [vmem:[%s14159_s0 + $0x120] sm:$0xff] }
  0xfd   :  { %9147 = vmatmul.msk.f32.gmra.mxu2 %vm197_vm1, %v1909_v5 }
  0xfe   :  { %9229 = vmatmul.msk.f32.gmra.mxu3 %vm197_vm1, %v1911_v29 }
 0x100   :  { %v1601_v31 = vpop.f32.mrf.mxu2  ;;  %v510_v35 = vpop.f32.mrf.mxu0 }
 0x101   :  { %v1814_v32 = vadd.f32 %v1601_v31, %v1014_v30  ;;  %v1016_v37 = vpop.f32.mrf.mxu1  ;;  %v2270_v38 = vpop.f32.mrf.mxu3  ;;  %v1916_v30 = vld [vmem:[%s14159_s0 + $0x132] sm:$0xff] }
 0x102   :  { %v1017_v42 = vadd.f32 %v1016_v37, %v510_v35  ;;  %v152_v37 = vld [vmem:[%s14159_s0 + $0x129] sm:$0xff] }
 0x103   :  { %v10500_v40 = vadd.f32 %v2270_v38, %v1814_v32  ;;  %8984 = vmatmul.msk.f32.gmra.mxu0 %vm197_vm1, %v147_v36 }
 0x104   :  { %9066 = vmatmul.msk.f32.gmra.mxu1 %vm197_vm1, %v65_v39 }
 0x105   :  { %9148 = vmatmul.msk.f32.gmra.mxu2 %vm197_vm1, %v1910_v17  ;;  %v1915_v17 = vld [vmem:[%s14159_s0 + $0x12a] sm:$0xff] }
 0x106   :  { %9230 = vmatmul.msk.f32.gmra.mxu3 %vm197_vm1, %v1912_v41 }
 0x108   :  { %v1604_v43 = vpop.f32.mrf.mxu2  ;;  %v513_v47 = vpop.f32.mrf.mxu0 }
 0x109   :  { %v1815_v46 = vadd.f32 %v1604_v43, %v1017_v42  ;;  %v1019_v49 = vpop.f32.mrf.mxu1  ;;  %v2273_v50 = vpop.f32.mrf.mxu3  ;;  %v1917_v43 = vld [vmem:[%s14159_s0 + $0x13a] sm:$0xff] }
 0x10a   :  { %v1020_v55 = vadd.f32 %v1019_v49, %v513_v47 }
 0x10b   :  { %v10515_v52 = vadd.f32 %v2273_v50, %v1815_v46  ;;  %8985 = vmatmul.msk.f32.gmra.mxu0 %vm197_vm1, %v148_v48  ;;  %v153_v50 = vld [vmem:[%s14159_s0 + $0x131] sm:$0xff] }
 0x10c   :  { %9067 = vmatmul.msk.f32.gmra.mxu1 %vm197_vm1, %v66_v51 }
 0x10d   :  { %9149 = vmatmul.msk.f32.gmra.mxu2 %vm197_vm1, %v1911_v29 }
 0x10e   :  { %9231 = vmatmul.msk.f32.gmra.mxu3 %vm197_vm1, %v1913_v53 }
 0x110   :  { %v1607_v57 = vpop.f32.mrf.mxu2  ;;  %v516_v59 = vpop.f32.mrf.mxu0 }
 0x111   :  { %v1816_v58 = vadd.f32 %v1607_v57, %v1020_v55  ;;  %v1022_v61 = vpop.f32.mrf.mxu1  ;;  %v2276_v62 = vpop.f32.mrf.mxu3  ;;  %v71_v55 = vld [vmem:[%s14159_s0 + $0x130] sm:$0xff] }
 0x112   :  { %v1023_v5 = vadd.f32 %v1022_v61, %v516_v59 }
 0x113   :  { %v10530_v1 = vadd.f32 %v2276_v62, %v1816_v58  ;;  %8986 = vmatmul.msk.f32.gmra.mxu0 %vm197_vm1, %v149_v60  ;;  %v1918_v58 = vld [vmem:[%s14159_s0 + $0x142] sm:$0xff] }
 0x114   :  { %9068 = vmatmul.msk.f32.gmra.mxu1 %vm197_vm1, %v67_v63  ;;  %v154_v63 = vld [vmem:[%s14159_s0 + $0x139] sm:$0xff] }
 0x115   :  { %9150 = vmatmul.msk.f32.gmra.mxu2 %vm197_vm1, %v1912_v41  ;;  %v70_v41 = vld [vmem:[%s14159_s0 + $0x128] sm:$0xff] }
 0x116   :  { %9232 = vmatmul.msk.f32.gmra.mxu3 %vm197_vm1, %v1914_v2 }
 0x118   :  { %v1610_v6 = vpop.f32.mrf.mxu2  ;;  %v519_v8 = vpop.f32.mrf.mxu0 }
 0x119   :  { %v1817_v7 = vadd.f32 %v1610_v6, %v1023_v5  ;;  %v1025_v10 = vpop.f32.mrf.mxu1  ;;  %v2279_v12 = vpop.f32.mrf.mxu3  ;;  %v72_v6 = vld [vmem:[%s14159_s0 + $0x138] sm:$0xff] }
 0x11a   :  { %v1026_v18 = vadd.f32 %v1025_v10, %v519_v8  ;;  %v1919_v8 = vld [vmem:[%s14159_s0 + $0x14a] sm:$0xff] }
 0x11b   :  { %v10545_v15 = vadd.f32 %v2279_v12, %v1817_v7  ;;  %8987 = vmatmul.msk.f32.gmra.mxu0 %vm197_vm1, %v150_v9 }
 0x11c   :  { %9069 = vmatmul.msk.f32.gmra.mxu1 %vm197_vm1, %v68_v13 }
 0x11d   :  { %9151 = vmatmul.msk.f32.gmra.mxu2 %vm197_vm1, %v1913_v53 }
 0x11e   :  { %9233 = vmatmul.msk.f32.gmra.mxu3 %vm197_vm1, %v1915_v17 }
 0x120   :  { %v1613_v19 = vpop.f32.mrf.mxu2  ;;  %v522_v21 = vpop.f32.mrf.mxu0 }
 0x121   :  { %v1818_v20 = vadd.f32 %v1613_v19, %v1026_v18  ;;  %v1028_v25 = vpop.f32.mrf.mxu1  ;;  %v2282_v26 = vpop.f32.mrf.mxu3 }
 0x122   :  { %v1029_v31 = vadd.f32 %v1028_v25, %v522_v21 }
 0x123   :  { %v10560_v29 = vadd.f32 %v2282_v26, %v1818_v20  ;;  %8988 = vmatmul.msk.f32.gmra.mxu0 %vm197_vm1, %v151_v23  ;;  %v73_v20 = vld [vmem:[%s14159_s0 + $0x140] sm:$0xff]  ;;  %v1920_v23 = vld [vmem:[%s14159_s0 + $0x152] sm:$0xff] }
 0x124   :  { %9070 = vmatmul.msk.f32.gmra.mxu1 %vm197_vm1, %v69_v27 }
 0x125   :  { %9152 = vmatmul.msk.f32.gmra.mxu2 %vm197_vm1, %v1914_v2 }
 0x126   :  { %9234 = vmatmul.msk.f32.gmra.mxu3 %vm197_vm1, %v1916_v30 }
 0x128   :  { %v1616_v32 = vpop.f32.mrf.mxu2  ;;  %v525_v36 = vpop.f32.mrf.mxu0 }
 0x129   :  { %v1819_v35 = vadd.f32 %v1616_v32, %v1029_v31  ;;  %v1031_v38 = vpop.f32.mrf.mxu1  ;;  %v2285_v39 = vpop.f32.mrf.mxu3  ;;  %v156_v31 = vld [vmem:[%s14159_s0 + $0x149] sm:$0xff] }
 0x12a   :  { %v1032_v46 = vadd.f32 %v1031_v38, %v525_v36  ;;  %v74_v36 = vld [vmem:[%s14159_s0 + $0x148] sm:$0xff]  ;;  %v1921_v38 = vld [vmem:[%s14159_s0 + $0x15a] sm:$0xff] }
 0x12b   :  { %v10575_v42 = vadd.f32 %v2285_v39, %v1819_v35  ;;  %8989 = vmatmul.msk.f32.gmra.mxu0 %vm197_vm1, %v152_v37 }
 0x12c   :  { %9071 = vmatmul.msk.f32.gmra.mxu1 %vm197_vm1, %v70_v41 }
 0x12d   :  { %9153 = vmatmul.msk.f32.gmra.mxu2 %vm197_vm1, %v1915_v17  ;;  %v155_v17 = vld [vmem:[%s14159_s0 + $0x141] sm:$0xff] }
 0x12e   :  { %9235 = vmatmul.msk.f32.gmra.mxu3 %vm197_vm1, %v1917_v43 }
 0x130   :  { %v1619_v47 = vpop.f32.mrf.mxu2  ;;  %v528_v49 = vpop.f32.mrf.mxu0 }
 0x131   :  { %v1820_v48 = vadd.f32 %v1619_v47, %v1032_v46  ;;  %v1034_v51 = vpop.f32.mrf.mxu1  ;;  %v2288_v53 = vpop.f32.mrf.mxu3  ;;  %v157_v47 = vld [vmem:[%s14159_s0 + $0x151] sm:$0xff] }
 0x132   :  { %v1035_v59 = vadd.f32 %v1034_v51, %v528_v49 }
 0x133   :  { %v10590_v57 = vadd.f32 %v2288_v53, %v1820_v48  ;;  %8990 = vmatmul.msk.f32.gmra.mxu0 %vm197_vm1, %v153_v50  ;;  %v75_v50 = vld [vmem:[%s14159_s0 + $0x150] sm:$0xff]  ;;  %v1922_v53 = vld [vmem:[%s14159_s0 + $0x162] sm:$0xff] }
 0x134   :  { %9072 = vmatmul.msk.f32.gmra.mxu1 %vm197_vm1, %v71_v55 }
 0x135   :  { %9154 = vmatmul.msk.f32.gmra.mxu2 %vm197_vm1, %v1916_v30 }
 0x136   :  { %9236 = vmatmul.msk.f32.gmra.mxu3 %vm197_vm1, %v1918_v58 }
 0x138   :  { %v1622_v60 = vpop.f32.mrf.mxu2  ;;  %v531_v62 = vpop.f32.mrf.mxu0 }
 0x139   :  { %v1821_v61 = vadd.f32 %v1622_v60, %v1035_v59  ;;  %v1037_v2 = vpop.f32.mrf.mxu1  ;;  %v2291_v5 = vpop.f32.mrf.mxu3 }
 0x13a   :  { %v1038_v9 = vadd.f32 %v1037_v2, %v531_v62  ;;  %v76_v2 = vld [vmem:[%s14159_s0 + $0x158] sm:$0xff] }
 0x13b   :  { %v10605_v7 = vadd.f32 %v2291_v5, %v1821_v61  ;;  %8991 = vmatmul.msk.f32.gmra.mxu0 %vm197_vm1, %v154_v63  ;;  %v158_v61 = vld [vmem:[%s14159_s0 + $0x159] sm:$0xff] }
 0x13c   :  { %9073 = vmatmul.msk.f32.gmra.mxu1 %vm197_vm1, %v72_v6  ;;  %v1923_v6 = vld [vmem:[%s14159_s0 + $0x16a] sm:$0xff] }
 0x13d   :  { %9155 = vmatmul.msk.f32.gmra.mxu2 %vm197_vm1, %v1917_v43 }
 0x13e   :  { %9237 = vmatmul.msk.f32.gmra.mxu3 %vm197_vm1, %v1919_v8 }
 0x140   :  { %v1625_v10 = vpop.f32.mrf.mxu2  ;;  %v534_v13 = vpop.f32.mrf.mxu0 }
 0x141   :  { %v1822_v12 = vadd.f32 %v1625_v10, %v1038_v9  ;;  %v1040_v18 = vpop.f32.mrf.mxu1  ;;  %v2294_v19 = vpop.f32.mrf.mxu3 }
 0x142   :  { %v1041_v25 = vadd.f32 %v1040_v18, %v534_v13  ;;  %v159_v13 = vld [vmem:[%s14159_s0 + $0x161] sm:$0xff] }
 0x143   :  { %v10620_v21 = vadd.f32 %v2294_v19, %v1822_v12  ;;  %8992 = vmatmul.msk.f32.gmra.mxu0 %vm197_vm1, %v155_v17  ;;  %v77_v19 = vld [vmem:[%s14159_s0 + $0x160] sm:$0xff] }
 0x144   :  { %9074 = vmatmul.msk.f32.gmra.mxu1 %vm197_vm1, %v73_v20 }
 0x145   :  { %9156 = vmatmul.msk.f32.gmra.mxu2 %vm197_vm1, %v1918_v58 }
 0x146   :  { %9238 = vmatmul.msk.f32.gmra.mxu3 %vm197_vm1, %v1920_v23 }
 0x148   :  { %v1628_v26 = vpop.f32.mrf.mxu2  ;;  %v537_v30 = vpop.f32.mrf.mxu0 }
 0x149   :  { %v1823_v27 = vadd.f32 %v1628_v26, %v1041_v25  ;;  %v1043_v32 = vpop.f32.mrf.mxu1  ;;  %v2297_v35 = vpop.f32.mrf.mxu3 }
 0x14a   :  { %v1044_v39 = vadd.f32 %v1043_v32, %v537_v30 }
 0x14b   :  { %v10635_v37 = vadd.f32 %v2297_v35, %v1823_v27  ;;  %8993 = vmatmul.msk.f32.gmra.mxu0 %vm197_vm1, %v156_v31  ;;  %v160_v31 = vld [vmem:[%s14159_s0 + $0x169] sm:$0xff] }
 0x14c   :  { %9075 = vmatmul.msk.f32.gmra.mxu1 %vm197_vm1, %v74_v36  ;;  %v78_v36 = vld [vmem:[%s14159_s0 + $0x168] sm:$0xff] }
 0x14d   :  { %9157 = vmatmul.msk.f32.gmra.mxu2 %vm197_vm1, %v1919_v8 }
 0x14e   :  { %9239 = vmatmul.msk.f32.gmra.mxu3 %vm197_vm1, %v1921_v38 }
 0x150   :  { %v1631_v41 = vpop.f32.mrf.mxu2  ;;  %v540_v46 = vpop.f32.mrf.mxu0 }
 0x151   :  { %v1824_v43 = vadd.f32 %v1631_v41, %v1044_v39  ;;  %v1046_v48 = vpop.f32.mrf.mxu1  ;;  %v2300_v49 = vpop.f32.mrf.mxu3  ;;  %v1925_v39 = vld [vmem:[%s14159_s0 + $0x17a] sm:$0xff] }
 0x152   :  { %v1047_v55 = vadd.f32 %v1046_v48, %v540_v46  ;;  %v161_v48 = vld [vmem:[%s14159_s0 + $0x171] sm:$0xff] }
 0x153   :  { %v10650_v51 = vadd.f32 %v2300_v49, %v1824_v43  ;;  %8994 = vmatmul.msk.f32.gmra.mxu0 %vm197_vm1, %v157_v47 }
 0x154   :  { %9076 = vmatmul.msk.f32.gmra.mxu1 %vm197_vm1, %v75_v50 }
 0x155   :  { %9158 = vmatmul.msk.f32.gmra.mxu2 %vm197_vm1, %v1920_v23  ;;  %v1924_v23 = vld [vmem:[%s14159_s0 + $0x172] sm:$0xff] }
 0x156   :  { %9240 = vmatmul.msk.f32.gmra.mxu3 %vm197_vm1, %v1922_v53 }
 0x158   :  { %v1634_v58 = vpop.f32.mrf.mxu2  ;;  %v543_v60 = vpop.f32.mrf.mxu0 }
 0x159   :  { %v1825_v59 = vadd.f32 %v1634_v58, %v1047_v55  ;;  %v1049_v62 = vpop.f32.mrf.mxu1  ;;  %v2303_v63 = vpop.f32.mrf.mxu3  ;;  %v1926_v58 = vld [vmem:[%s14159_s0 + $0x182] sm:$0xff] }
 0x15a   :  { %v1050_v8 = vadd.f32 %v1049_v62, %v543_v60 }
 0x15b   :  { %v10665_v5 = vadd.f32 %v2303_v63, %v1825_v59  ;;  %8995 = vmatmul.msk.f32.gmra.mxu0 %vm197_vm1, %v158_v61  ;;  %v162_v63 = vld [vmem:[%s14159_s0 + $0x179] sm:$0xff] }
 0x15c   :  { %9077 = vmatmul.msk.f32.gmra.mxu1 %vm197_vm1, %v76_v2 }
 0x15d   :  { %9159 = vmatmul.msk.f32.gmra.mxu2 %vm197_vm1, %v1921_v38 }
 0x15e   :  { %9241 = vmatmul.msk.f32.gmra.mxu3 %vm197_vm1, %v1923_v6 }
 0x160   :  { %v1637_v9 = vpop.f32.mrf.mxu2  ;;  %v546_v12 = vpop.f32.mrf.mxu0 }
 0x161   :  { %v1826_v10 = vadd.f32 %v1637_v9, %v1050_v8  ;;  %v1052_v17 = vpop.f32.mrf.mxu1  ;;  %v2306_v18 = vpop.f32.mrf.mxu3  ;;  %v80_v8 = vld [vmem:[%s14159_s0 + $0x178] sm:$0xff] }
 0x162   :  { %v1053_v25 = vadd.f32 %v1052_v17, %v546_v12 }
 0x163   :  { %v10680_v20 = vadd.f32 %v2306_v18, %v1826_v10  ;;  %8996 = vmatmul.msk.f32.gmra.mxu0 %vm197_vm1, %v159_v13  ;;  %v1927_v10 = vld [vmem:[%s14159_s0 + $0x18a] sm:$0xff] }
 0x164   :  { %9078 = vmatmul.msk.f32.gmra.mxu1 %vm197_vm1, %v77_v19  ;;  %v163_v19 = vld [vmem:[%s14159_s0 + $0x181] sm:$0xff] }
 0x165   :  { %9160 = vmatmul.msk.f32.gmra.mxu2 %vm197_vm1, %v1922_v53  ;;  %v79_v53 = vld [vmem:[%s14159_s0 + $0x170] sm:$0xff] }
 0x166   :  { %9242 = vmatmul.msk.f32.gmra.mxu3 %vm197_vm1, %v1924_v23 }
 0x168   :  { %v1640_v26 = vpop.f32.mrf.mxu2  ;;  %v549_v30 = vpop.f32.mrf.mxu0 }
 0x169   :  { %v1827_v27 = vadd.f32 %v1640_v26, %v1053_v25  ;;  %v1055_v32 = vpop.f32.mrf.mxu1  ;;  %v2309_v35 = vpop.f32.mrf.mxu3  ;;  %v81_v26 = vld [vmem:[%s14159_s0 + $0x180] sm:$0xff] }
 0x16a   :  { %v1056_v41 = vadd.f32 %v1055_v32, %v549_v30  ;;  %v1928_v30 = vld [vmem:[%s14159_s0 + $0x192] sm:$0xff] }
 0x16b   :  { %v10695_v38 = vadd.f32 %v2309_v35, %v1827_v27  ;;  %8997 = vmatmul.msk.f32.gmra.mxu0 %vm197_vm1, %v160_v31 }
 0x16c   :  { %9079 = vmatmul.msk.f32.gmra.mxu1 %vm197_vm1, %v78_v36 }
 0x16d   :  { %9161 = vmatmul.msk.f32.gmra.mxu2 %vm197_vm1, %v1923_v6 }
 0x16e   :  { %9243 = vmatmul.msk.f32.gmra.mxu3 %vm197_vm1, %v1925_v39 }
 0x170   :  { %v1643_v43 = vpop.f32.mrf.mxu2  ;;  %v552_v47 = vpop.f32.mrf.mxu0 }
 0x171   :  { %v1828_v46 = vadd.f32 %v1643_v43, %v1056_v41  ;;  %v1058_v49 = vpop.f32.mrf.mxu1  ;;  %v2312_v50 = vpop.f32.mrf.mxu3 }
 0x172   :  { %v1059_v59 = vadd.f32 %v1058_v49, %v552_v47 }
 0x173   :  { %v10710_v55 = vadd.f32 %v2312_v50, %v1828_v46  ;;  %8998 = vmatmul.msk.f32.gmra.mxu0 %vm197_vm1, %v161_v48  ;;  %v82_v46 = vld [vmem:[%s14159_s0 + $0x188] sm:$0xff]  ;;  %v1929_v48 = vld [vmem:[%s14159_s0 + $0x19a] sm:$0xff] }
 0x174   :  { %9080 = vmatmul.msk.f32.gmra.mxu1 %vm197_vm1, %v79_v53 }
 0x175   :  { %9162 = vmatmul.msk.f32.gmra.mxu2 %vm197_vm1, %v1924_v23 }
 0x176   :  { %9244 = vmatmul.msk.f32.gmra.mxu3 %vm197_vm1, %v1926_v58 }
 0x178   :  { %v1646_v60 = vpop.f32.mrf.mxu2  ;;  %v555_v62 = vpop.f32.mrf.mxu0 }
 0x179   :  { %v1829_v61 = vadd.f32 %v1646_v60, %v1059_v59  ;;  %v1061_v2 = vpop.f32.mrf.mxu1  ;;  %v2315_v6 = vpop.f32.mrf.mxu3  ;;  %v165_v59 = vld [vmem:[%s14159_s0 + $0x191] sm:$0xff] }
 0x17a   :  { %v1062_v12 = vadd.f32 %v1061_v2, %v555_v62  ;;  %v83_v62 = vld [vmem:[%s14159_s0 + $0x190] sm:$0xff]  ;;  %v1930_v2 = vld [vmem:[%s14159_s0 + $0x1a2] sm:$0xff] }
 0x17b   :  { %v10725_v9 = vadd.f32 %v2315_v6, %v1829_v61  ;;  %8999 = vmatmul.msk.f32.gmra.mxu0 %vm197_vm1, %v162_v63 }
 0x17c   :  { %9081 = vmatmul.msk.f32.gmra.mxu1 %vm197_vm1, %v80_v8 }
 0x17d   :  { %9163 = vmatmul.msk.f32.gmra.mxu2 %vm197_vm1, %v1925_v39  ;;  %v164_v39 = vld [vmem:[%s14159_s0 + $0x189] sm:$0xff] }
 0x17e   :  { %9245 = vmatmul.msk.f32.gmra.mxu3 %vm197_vm1, %v1927_v10 }
 0x180   :  { %v1649_v13 = vpop.f32.mrf.mxu2  ;;  %v558_v18 = vpop.f32.mrf.mxu0 }
 0x181   :  { %v1830_v17 = vadd.f32 %v1649_v13, %v1062_v12  ;;  %v1064_v23 = vpop.f32.mrf.mxu1  ;;  %v2318_v25 = vpop.f32.mrf.mxu3  ;;  %v166_v13 = vld [vmem:[%s14159_s0 + $0x199] sm:$0xff] }
 0x182   :  { %v1065_v31 = vadd.f32 %v1064_v23, %v558_v18 }
 0x183   :  { %v10740_v27 = vadd.f32 %v2318_v25, %v1830_v17  ;;  %9000 = vmatmul.msk.f32.gmra.mxu0 %vm197_vm1, %v163_v19  ;;  %v84_v19 = vld [vmem:[%s14159_s0 + $0x198] sm:$0xff]  ;;  %v1931_v25 = vld [vmem:[%s14159_s0 + $0x1aa] sm:$0xff] }
 0x184   :  { %9082 = vmatmul.msk.f32.gmra.mxu1 %vm197_vm1, %v81_v26 }
 0x185   :  { %9164 = vmatmul.msk.f32.gmra.mxu2 %vm197_vm1, %v1926_v58 }
 0x186   :  { %9246 = vmatmul.msk.f32.gmra.mxu3 %vm197_vm1, %v1928_v30 }
 0x188   :  { %v1652_v32 = vpop.f32.mrf.mxu2  ;;  %v561_v36 = vpop.f32.mrf.mxu0 }
 0x189   :  { %v1831_v35 = vadd.f32 %v1652_v32, %v1065_v31  ;;  %v1067_v41 = vpop.f32.mrf.mxu1  ;;  %v2321_v43 = vpop.f32.mrf.mxu3 }
 0x18a   :  { %v1068_v49 = vadd.f32 %v1067_v41, %v561_v36  ;;  %v85_v41 = vld [vmem:[%s14159_s0 + $0x1a0] sm:$0xff] }
 0x18b   :  { %v10755_v47 = vadd.f32 %v2321_v43, %v1831_v35  ;;  %9001 = vmatmul.msk.f32.gmra.mxu0 %vm197_vm1, %v164_v39  ;;  %v167_v35 = vld [vmem:[%s14159_s0 + $0x1a1] sm:$0xff] }
 0x18c   :  { %9083 = vmatmul.msk.f32.gmra.mxu1 %vm197_vm1, %v82_v46  ;;  %v1932_v46 = vld [vmem:[%s14159_s0 + $0x1b2] sm:$0xff] }
 0x18d   :  { %9165 = vmatmul.msk.f32.gmra.mxu2 %vm197_vm1, %v1927_v10 }
 0x18e   :  { %9247 = vmatmul.msk.f32.gmra.mxu3 %vm197_vm1, %v1929_v48 }
 0x190   :  { %v1655_v50 = vpop.f32.mrf.mxu2  ;;  %v564_v58 = vpop.f32.mrf.mxu0 }
 0x191   :  { %v1832_v53 = vadd.f32 %v1655_v50, %v1068_v49  ;;  %v1070_v60 = vpop.f32.mrf.mxu1  ;;  %v2324_v61 = vpop.f32.mrf.mxu3  ;;  %v168_v50 = vld [vmem:[%s14159_s0 + $0x1a9] sm:$0xff] }
 0x192   :  { %v1071_v6 = vadd.f32 %v1070_v60, %v564_v58  ;;  %v1933_v60 = vld [vmem:[%s14159_s0 + $0x1ba] sm:$0xff] }
 0x193   :  { %v10770_v63 = vadd.f32 %v2324_v61, %v1832_v53  ;;  %9002 = vmatmul.msk.f32.gmra.mxu0 %vm197_vm1, %v165_v59  ;;  %v86_v59 = vld [vmem:[%s14159_s0 + $0x1a8] sm:$0xff] }
 0x194   :  { %9084 = vmatmul.msk.f32.gmra.mxu1 %vm197_vm1, %v83_v62 }
 0x195   :  { %9166 = vmatmul.msk.f32.gmra.mxu2 %vm197_vm1, %v1928_v30 }
 0x196   :  { %9248 = vmatmul.msk.f32.gmra.mxu3 %vm197_vm1, %v1930_v2 }
 0x198   :  { %v1658_v8 = vpop.f32.mrf.mxu2  ;;  %v567_v12 = vpop.f32.mrf.mxu0 }
 0x199   :  { %v1833_v10 = vadd.f32 %v1658_v8, %v1071_v6  ;;  %v1073_v17 = vpop.f32.mrf.mxu1  ;;  %v2327_v18 = vpop.f32.mrf.mxu3 }
 0x19a   :  { %v1074_v26 = vadd.f32 %v1073_v17, %v567_v12  ;;  %v1934_v12 = vld [vmem:[%s14159_s0 + $0x1c2] sm:$0xff] }
 0x19b   :  { %v10785_v23 = vadd.f32 %v2327_v18, %v1833_v10  ;;  %9003 = vmatmul.msk.f32.gmra.mxu0 %vm197_vm1, %v166_v13  ;;  %v87_v10 = vld [vmem:[%s14159_s0 + $0x1b0] sm:$0xff]  ;;  %v170_v18 = vld [vmem:[%s14159_s0 + $0x1b9] sm:$0xff] }
 0x19c   :  { %9085 = vmatmul.msk.f32.gmra.mxu1 %vm197_vm1, %v84_v19 }
 0x19d   :  { %9167 = vmatmul.msk.f32.gmra.mxu2 %vm197_vm1, %v1929_v48 }
 0x19e   :  { %9249 = vmatmul.msk.f32.gmra.mxu3 %vm197_vm1, %v1931_v25 }
 0x1a0   :  { %v1661_v30 = vpop.f32.mrf.mxu2  ;;  %v570_v32 = vpop.f32.mrf.mxu0 }
 0x1a1   :  { %v1834_v31 = vadd.f32 %v1661_v30, %v1074_v26  ;;  %v1076_v36 = vpop.f32.mrf.mxu1  ;;  %v2330_v39 = vpop.f32.mrf.mxu3  ;;  %v88_v26 = vld [vmem:[%s14159_s0 + $0x1b8] sm:$0xff]  ;;  %v1935_v30 = vld [vmem:[%s14159_s0 + $0x1ca] sm:$0xff] }
 0x1a3   :  { %v10800_v43 = vadd.f32 %v2330_v39, %v1834_v31  ;;  %9004 = vmatmul.msk.f32.gmra.mxu0 %vm197_vm1, %v167_v35  ;;  %v171_v35 = vld [vmem:[%s14159_s0 + $0x1c1] sm:$0xff] }
 0x1a4   :  { %9086 = vmatmul.msk.f32.gmra.mxu1 %vm197_vm1, %v85_v41  ;;  %v89_v41 = vld [vmem:[%s14159_s0 + $0x1c0] sm:$0xff] }
 0x1a5   :  { %9168 = vmatmul.msk.f32.gmra.mxu2 %vm197_vm1, %v1930_v2  ;;  %v169_v2 = vld [vmem:[%s14159_s0 + $0x1b1] sm:$0xff] }
 0x1a6   :  { %9250 = vmatmul.msk.f32.gmra.mxu3 %vm197_vm1, %v1932_v46 }
 0x1a8   :  { %v1664_v48 = vpop.f32.mrf.mxu2  ;;  %v573_v49 = vpop.f32.mrf.mxu0 }
 0x1a9   :  { %v1079_v53 = vpop.f32.mrf.mxu1  ;;  %v2333_v58 = vpop.f32.mrf.mxu3 }
 0x1aa   :  { %v172_v58 = vld [vmem:[%s14159_s0 + $0x1c9] sm:$0xff] }
 0x1ab   :  { %9005 = vmatmul.msk.f32.gmra.mxu0 %vm197_vm1, %v168_v50 }
 0x1ac   :  { %9087 = vmatmul.msk.f32.gmra.mxu1 %vm197_vm1, %v86_v59 }
 0x1ad   :  { %9169 = vmatmul.msk.f32.gmra.mxu2 %vm197_vm1, %v1931_v25 }
 0x1ae   :  { %9251 = vmatmul.msk.f32.gmra.mxu3 %vm197_vm1, %v1933_v60 }
 0x1b0   :  { %v1667_v61 = vpop.f32.mrf.mxu2  ;;  %v576_v62 = vpop.f32.mrf.mxu0 }
 0x1b1   :  { %v1082_v6 = vpop.f32.mrf.mxu1  ;;  %v2336_v8 = vpop.f32.mrf.mxu3  ;;  %v90_v61 = vld [vmem:[%s14159_s0 + $0x1c8] sm:$0xff] }
 0x1b3   :  { %9006 = vmatmul.msk.f32.gmra.mxu0 %vm197_vm1, %v169_v2  ;;  %v1937_v2 = vld [vmem:[%s14159_s0 + $0x1da] sm:$0xff] }
 0x1b4   :  { %9088 = vmatmul.msk.f32.gmra.mxu1 %vm197_vm1, %v87_v10 }
 0x1b5   :  { %9170 = vmatmul.msk.f32.gmra.mxu2 %vm197_vm1, %v1932_v46  ;;  %v1936_v46 = vld [vmem:[%s14159_s0 + $0x1d2] sm:$0xff] }
 0x1b6   :  { %9252 = vmatmul.msk.f32.gmra.mxu3 %vm197_vm1, %v1934_v12 }
 0x1b8   :  { %v1670_v13 = vpop.f32.mrf.mxu2  ;;  %v579_v17 = vpop.f32.mrf.mxu0 }
 0x1b9   :  { %v1085_v19 = vpop.f32.mrf.mxu1  ;;  %v2339_v25 = vpop.f32.mrf.mxu3  ;;  %v173_v13 = vld [vmem:[%s14159_s0 + $0x1d1] sm:$0xff] }
 0x1ba   :  { %v91_v19 = vld [vmem:[%s14159_s0 + $0x1d0] sm:$0xff] }
 0x1bb   :  { %9007 = vmatmul.msk.f32.gmra.mxu0 %vm197_vm1, %v170_v18 }
 0x1bc   :  { %9089 = vmatmul.msk.f32.gmra.mxu1 %vm197_vm1, %v88_v26  ;;  %v1938_v26 = vld [vmem:[%s14159_s0 + $0x1e2] sm:$0xff] }
 0x1bd   :  { %9171 = vmatmul.msk.f32.gmra.mxu2 %vm197_vm1, %v1933_v60 }
 0x1be   :  { %9253 = vmatmul.msk.f32.gmra.mxu3 %vm197_vm1, %v1935_v30 }
 0x1c0   :  { %v1673_v31 = vpop.f32.mrf.mxu2  ;;  %v582_v32 = vpop.f32.mrf.mxu0 }
 0x1c1   :  { %v1088_v36 = vpop.f32.mrf.mxu1  ;;  %v2342_v39 = vpop.f32.mrf.mxu3 }
 0x1c2   :  { %v1089_v48 = vadd.f32 %v1088_v36, %v582_v32  ;;  %v174_v36 = vld [vmem:[%s14159_s0 + $0x1d9] sm:$0xff] }
 0x1c3   :  { %9008 = vmatmul.msk.f32.gmra.mxu0 %vm197_vm1, %v171_v35 }
 0x1c4   :  { %9090 = vmatmul.msk.f32.gmra.mxu1 %vm197_vm1, %v89_v41 }
 0x1c5   :  { %9172 = vmatmul.msk.f32.gmra.mxu2 %vm197_vm1, %v1934_v12 }
 0x1c6   :  { %9254 = vmatmul.msk.f32.gmra.mxu3 %vm197_vm1, %v1936_v46 }
 0x1c8   :  { %v1676_v49 = vpop.f32.mrf.mxu2  ;;  %v585_v53 = vpop.f32.mrf.mxu0 }
 0x1c9   :  { %v1839_v50 = vadd.f32 %v1676_v49, %v1089_v48  ;;  %v1091_v59 = vpop.f32.mrf.mxu1  ;;  %v2345_v60 = vpop.f32.mrf.mxu3  ;;  %v92_v48 = vld [vmem:[%s14159_s0 + $0x1d8] sm:$0xff] }
 0x1ca   :  { %v1092_v6 = vadd.f32 %v1091_v59, %v585_v53 }
 0x1cb   :  { %v10867_v62 = vadd.f32 %v2345_v60, %v1839_v50  ;;  %9009 = vmatmul.msk.f32.gmra.mxu0 %vm197_vm1, %v172_v58  ;;  %v175_v60 = vld [vmem:[%s14159_s0 + $0x1e1] sm:$0xff] }
 0x1cc   :  { %9091 = vmatmul.msk.f32.gmra.mxu1 %vm197_vm1, %v90_v61 }
 0x1cd   :  { %9173 = vmatmul.msk.f32.gmra.mxu2 %vm197_vm1, %v1935_v30 }
 0x1ce   :  { %9255 = vmatmul.msk.f32.gmra.mxu3 %vm197_vm1, %v1937_v2 }
 0x1d0   :  { %v1679_v8 = vpop.f32.mrf.mxu2  ;;  %v588_v12 = vpop.f32.mrf.mxu0 }
 0x1d1   :  { %v1840_v10 = vadd.f32 %v1679_v8, %v1092_v6  ;;  %v1094_v17 = vpop.f32.mrf.mxu1  ;;  %v2348_v18 = vpop.f32.mrf.mxu3  ;;  %v93_v8 = vld [vmem:[%s14159_s0 + $0x1e0] sm:$0xff] }
 0x1d2   :  { %v1095_v30 = vadd.f32 %v1094_v17, %v588_v12 }
 0x1d3   :  { %v10882_v25 = vadd.f32 %v2348_v18, %v1840_v10  ;;  %9010 = vmatmul.msk.f32.gmra.mxu0 %vm197_vm1, %v173_v13 }
 0x1d4   :  { %9092 = vmatmul.msk.f32.gmra.mxu1 %vm197_vm1, %v91_v19  ;;  %v176_v19 = vld [vmem:[%s14159_s0 + $0x1e9] sm:$0xff] }
 0x1d5   :  { %9174 = vmatmul.msk.f32.gmra.mxu2 %vm197_vm1, %v1936_v46  ;;  %v1939_v46 = vld [vmem:[%s14159_s0 + $0x1ea] sm:$0xff] }
 0x1d6   :  { %9256 = vmatmul.msk.f32.gmra.mxu3 %vm197_vm1, %v1938_v26 }
 0x1d8   :  { %v1682_v31 = vpop.f32.mrf.mxu2  ;;  %v591_v35 = vpop.f32.mrf.mxu0 }
 0x1d9   :  { %v1841_v32 = vadd.f32 %v1682_v31, %v1095_v30  ;;  %v1097_v39 = vpop.f32.mrf.mxu1  ;;  %v2351_v41 = vpop.f32.mrf.mxu3 }
 0x1da   :  { %v1098_v50 = vadd.f32 %v1097_v39, %v591_v35 }
 0x1db   :  { %v10897_v49 = vadd.f32 %v2351_v41, %v1841_v32  ;;  %9011 = vmatmul.msk.f32.gmra.mxu0 %vm197_vm1, %v174_v36  ;;  %v94_v32 = vld [vmem:[%s14159_s0 + $0x1e8] sm:$0xff] }
 0x1dc   :  { %9093 = vmatmul.msk.f32.gmra.mxu1 %vm197_vm1, %v92_v48 }
 0x1dd   :  { %9175 = vmatmul.msk.f32.gmra.mxu2 %vm197_vm1, %v1937_v2  ;;  %v1940_v2 = vld [vmem:[%s14159_s0 + $0x1f2] sm:$0xff] }
 0x1de   :  { %9257 = vmatmul.msk.f32.gmra.mxu3 %vm197_vm1, %v1939_v46 }
 0x1e0   :  { %v1685_v53 = vpop.f32.mrf.mxu2  ;;  %v594_v59 = vpop.f32.mrf.mxu0 }
 0x1e1   :  { %v1842_v58 = vadd.f32 %v1685_v53, %v1098_v50  ;;  %v1100_v61 = vpop.f32.mrf.mxu1  ;;  %v2354_v6 = vpop.f32.mrf.mxu3  ;;  %v177_v50 = vld [vmem:[%s14159_s0 + $0x1f1] sm:$0xff] }
 0x1e2   :  { %v1101_v12 = vadd.f32 %v1100_v61, %v594_v59  ;;  %v95_v59 = vld [vmem:[%s14159_s0 + $0x1f0] sm:$0xff] }
 0x1e3   :  { %v10912_v10 = vadd.f32 %v2354_v6, %v1842_v58  ;;  %9012 = vmatmul.msk.f32.gmra.mxu0 %vm197_vm1, %v175_v60 }
 0x1e4   :  { %9094 = vmatmul.msk.f32.gmra.mxu1 %vm197_vm1, %v93_v8 }
 0x1e5   :  { %9176 = vmatmul.msk.f32.gmra.mxu2 %vm197_vm1, %v1938_v26  ;;  %v1941_v26 = vld [vmem:[%s14159_s0 + $0x1fa] sm:$0xff] }
 0x1e6   :  { %9258 = vmatmul.msk.f32.gmra.mxu3 %vm197_vm1, %v1940_v2 }
 0x1e8   :  { %v1688_v13 = vpop.f32.mrf.mxu2  ;;  %v597_v18 = vpop.f32.mrf.mxu0 }
 0x1e9   :  { %v1843_v17 = vadd.f32 %v1688_v13, %v1101_v12  ;;  %v1103_v30 = vpop.f32.mrf.mxu1  ;;  %v2357_v31 = vpop.f32.mrf.mxu3  ;;  %v178_v13 = vld [vmem:[%s14159_s0 + $0x1f9] sm:$0xff] }
 0x1ea   :  { %v1104_v36 = vadd.f32 %v1103_v30, %v597_v18 }
 0x1eb   :  { %v10927_v35 = vadd.f32 %v2357_v31, %v1843_v17  ;;  %9013 = vmatmul.msk.f32.gmra.mxu0 %vm197_vm1, %v176_v19  ;;  %v96_v19 = vld [vmem:[%s14159_s0 + $0x1f8] sm:$0xff] }
 0x1ec   :  { %9095 = vmatmul.msk.f32.gmra.mxu1 %vm197_vm1, %v94_v32 }
 0x1ed   :  { %9177 = vmatmul.msk.f32.gmra.mxu2 %vm197_vm1, %v1939_v46  ;;  %v1942_v46 = vld [vmem:[%s14159_s0 + $0x202] sm:$0xff] }
 0x1ee   :  { %9259 = vmatmul.msk.f32.gmra.mxu3 %vm197_vm1, %v1941_v26 }
 0x1f0   :  { %v1691_v39 = vpop.f32.mrf.mxu2  ;;  %v600_v48 = vpop.f32.mrf.mxu0 }
 0x1f1   :  { %v1844_v41 = vadd.f32 %v1691_v39, %v1104_v36  ;;  %v1106_v53 = vpop.f32.mrf.mxu1  ;;  %v2360_v58 = vpop.f32.mrf.mxu3 }
 0x1f2   :  { %v1107_v61 = vadd.f32 %v1106_v53, %v600_v48  ;;  %v97_v53 = vld [vmem:[%s14159_s0 + $0x200] sm:$0xff] }
 0x1f3   :  { %v10942_v60 = vadd.f32 %v2360_v58, %v1844_v41  ;;  %9014 = vmatmul.msk.f32.gmra.mxu0 %vm197_vm1, %v177_v50  ;;  %v179_v41 = vld [vmem:[%s14159_s0 + $0x201] sm:$0xff] }
 0x1f4   :  { %9096 = vmatmul.msk.f32.gmra.mxu1 %vm197_vm1, %v95_v59 }
 0x1f5   :  { %9178 = vmatmul.msk.f32.gmra.mxu2 %vm197_vm1, %v1940_v2  ;;  %v1943_v2 = vld [vmem:[%s14159_s0 + $0x20a] sm:$0xff] }
 0x1f6   :  { %9260 = vmatmul.msk.f32.gmra.mxu3 %vm197_vm1, %v1942_v46 }
 0x1f8   :  { %v1694_v6 = vpop.f32.mrf.mxu2  ;;  %v603_v12 = vpop.f32.mrf.mxu0 }
 0x1f9   :  { %v1845_v8 = vadd.f32 %v1694_v6, %v1107_v61  ;;  %v1109_v17 = vpop.f32.mrf.mxu1  ;;  %v2363_v18 = vpop.f32.mrf.mxu3 }
 0x1fa   :  { %v1110_v31 = vadd.f32 %v1109_v17, %v603_v12  ;;  %v180_v12 = vld [vmem:[%s14159_s0 + $0x209] sm:$0xff] }
 0x1fb   :  { %v10957_v30 = vadd.f32 %v2363_v18, %v1845_v8  ;;  %9015 = vmatmul.msk.f32.gmra.mxu0 %vm197_vm1, %v178_v13  ;;  %v98_v18 = vld [vmem:[%s14159_s0 + $0x208] sm:$0xff] }
 0x1fc   :  { %9097 = vmatmul.msk.f32.gmra.mxu1 %vm197_vm1, %v96_v19 }
 0x1fd   :  { %9179 = vmatmul.msk.f32.gmra.mxu2 %vm197_vm1, %v1941_v26  ;;  %v1944_v26 = vld [vmem:[%s14159_s0 + $0x212] sm:$0xff] }
 0x1fe   :  { %9261 = vmatmul.msk.f32.gmra.mxu3 %vm197_vm1, %v1943_v2 }
 0x200   :  { %v1697_v32 = vpop.f32.mrf.mxu2  ;;  %v606_v39 = vpop.f32.mrf.mxu0 }
 0x201   :  { %v1846_v36 = vadd.f32 %v1697_v32, %v1110_v31  ;;  %v1112_v48 = vpop.f32.mrf.mxu1  ;;  %v2366_v50 = vpop.f32.mrf.mxu3 }
 0x202   :  { %v1113_v59 = vadd.f32 %v1112_v48, %v606_v39 }
 0x203   :  { %v10972_v58 = vadd.f32 %v2366_v50, %v1846_v36  ;;  %9016 = vmatmul.msk.f32.gmra.mxu0 %vm197_vm1, %v179_v41  ;;  %v181_v41 = vld [vmem:[%s14159_s0 + $0x211] sm:$0xff] }
 0x204   :  { %9098 = vmatmul.msk.f32.gmra.mxu1 %vm197_vm1, %v97_v53  ;;  %v99_v53 = vld [vmem:[%s14159_s0 + $0x210] sm:$0xff] }
 0x205   :  { %9180 = vmatmul.msk.f32.gmra.mxu2 %vm197_vm1, %v1942_v46  ;;  %v1945_v46 = vld [vmem:[%s14159_s0 + $0x21a] sm:$0xff] }
 0x206   :  { %9262 = vmatmul.msk.f32.gmra.mxu3 %vm197_vm1, %v1944_v26 }
 0x208   :  { %v1700_v61 = vpop.f32.mrf.mxu2  ;;  %v609_v8 = vpop.f32.mrf.mxu0 }
 0x209   :  { %v1847_v6 = vadd.f32 %v1700_v61, %v1113_v59  ;;  %v1115_v13 = vpop.f32.mrf.mxu1  ;;  %v2369_v17 = vpop.f32.mrf.mxu3 }
 0x20a   :  { %v1116_v31 = vadd.f32 %v1115_v13, %v609_v8  ;;  %v182_v13 = vld [vmem:[%s14159_s0 + $0x219] sm:$0xff] }
 0x20b   :  { %v10987_v19 = vadd.f32 %v2369_v17, %v1847_v6  ;;  %9017 = vmatmul.msk.f32.gmra.mxu0 %vm197_vm1, %v180_v12 }
 0x20c   :  { %9099 = vmatmul.msk.f32.gmra.mxu1 %vm197_vm1, %v98_v18 }
 0x20d   :  { %9181 = vmatmul.msk.f32.gmra.mxu2 %vm197_vm1, %v1943_v2  ;;  %v1946_v2 = vld [vmem:[%s14159_s0 + $0x222] sm:$0xff] }
 0x20e   :  { %9263 = vmatmul.msk.f32.gmra.mxu3 %vm197_vm1, %v1945_v46 }
 0x210   :  { %v1703_v32 = vpop.f32.mrf.mxu2  ;;  %v612_v39 = vpop.f32.mrf.mxu0 }
 0x211   :  { %v1848_v36 = vadd.f32 %v1703_v32, %v1116_v31  ;;  %v1118_v48 = vpop.f32.mrf.mxu1  ;;  %v2372_v50 = vpop.f32.mrf.mxu3  ;;  %v100_v31 = vld [vmem:[%s14159_s0 + $0x218] sm:$0xff] }
 0x212   :  { %v1119_v61 = vadd.f32 %v1118_v48, %v612_v39 }
 0x213   :  { %v11002_v59 = vadd.f32 %v2372_v50, %v1848_v36  ;;  %9018 = vmatmul.msk.f32.gmra.mxu0 %vm197_vm1, %v181_v41  ;;  %v183_v50 = vld [vmem:[%s14159_s0 + $0x221] sm:$0xff] }
 0x214   :  { %9100 = vmatmul.msk.f32.gmra.mxu1 %vm197_vm1, %v99_v53 }
 0x215   :  { %9182 = vmatmul.msk.f32.gmra.mxu2 %vm197_vm1, %v1944_v26  ;;  %v1947_v26 = vld [vmem:[%s14159_s0 + $0x22a] sm:$0xff] }
 0x216   :  { %9264 = vmatmul.msk.f32.gmra.mxu3 %vm197_vm1, %v1946_v2 }
 0x218   :  { %v1706_v6 = vpop.f32.mrf.mxu2  ;;  %v615_v12 = vpop.f32.mrf.mxu0 }
 0x219   :  { %v1849_v8 = vadd.f32 %v1706_v6, %v1119_v61  ;;  %v1121_v17 = vpop.f32.mrf.mxu1  ;;  %v2375_v18 = vpop.f32.mrf.mxu3  ;;  %v101_v6 = vld [vmem:[%s14159_s0 + $0x220] sm:$0xff] }
 0x21a   :  { %v1122_v36 = vadd.f32 %v1121_v17, %v615_v12 }
 0x21b   :  { %v11017_v32 = vadd.f32 %v2375_v18, %v1849_v8  ;;  %9019 = vmatmul.msk.f32.gmra.mxu0 %vm197_vm1, %v182_v13 }
 0x21c   :  { %9101 = vmatmul.msk.f32.gmra.mxu1 %vm197_vm1, %v100_v31  ;;  %v184_v31 = vld [vmem:[%s14159_s0 + $0x229] sm:$0xff] }
 0x21d   :  { %9183 = vmatmul.msk.f32.gmra.mxu2 %vm197_vm1, %v1945_v46  ;;  %v1948_v46 = vld [vmem:[%s14159_s0 + $0x232] sm:$0xff] }
 0x21e   :  { %9265 = vmatmul.msk.f32.gmra.mxu3 %vm197_vm1, %v1947_v26 }
 0x220   :  { %v1709_v39 = vpop.f32.mrf.mxu2  ;;  %v618_v48 = vpop.f32.mrf.mxu0 }
 0x221   :  { %v1850_v41 = vadd.f32 %v1709_v39, %v1122_v36  ;;  %v1124_v53 = vpop.f32.mrf.mxu1  ;;  %v2378_v61 = vpop.f32.mrf.mxu3 }
 0x222   :  { %v1125_v12 = vadd.f32 %v1124_v53, %v618_v48  ;;  %v3968_v48 = vld [vmem:[%s14160_s1 + $0x18] sm:$0xf] }
 0x223   :  { %v11032_v8 = vadd.f32 %v2378_v61, %v1850_v41  ;;  %9020 = vmatmul.msk.f32.gmra.mxu0 %vm197_vm1, %v183_v50  ;;  %v102_v41 = vld [vmem:[%s14159_s0 + $0x228] sm:$0xff]  ;;  %9443 = vmatpush.msk.msrb.mxu2 %vm441_vm0, %v3968_v48  ;;  %v4637_v61 = vld [vmem:[%s14160_s1 + $0x1c] sm:$0xf] }
 0x224   :  { %9102 = vmatmul.msk.f32.gmra.mxu1 %vm197_vm1, %v101_v6  ;;  %9525 = vmatpush.msk.msrb.mxu3 %vm441_vm0, %v4637_v61 }
 0x225   :  { %9184 = vmatmul.msk.f32.gmra.mxu2 %vm197_vm1, %v1946_v2  ;;  %v1949_v2 = vld [vmem:[%s14159_s0 + $0x23a] sm:$0xff] }
 0x226   :  { %9266 = vmatmul.msk.f32.gmra.mxu3 %vm197_vm1, %v1948_v46 }
 0x228   :  { %v1712_v13 = vpop.f32.mrf.mxu2  ;;  %v621_v18 = vpop.f32.mrf.mxu0 }
 0x229   :  { %v1851_v17 = vadd.f32 %v1712_v13, %v1125_v12  ;;  %v1127_v36 = vpop.f32.mrf.mxu1  ;;  %v2381_v39 = vpop.f32.mrf.mxu3 }
 0x22a   :  { %v1128_v53 = vadd.f32 %v1127_v36, %v621_v18  ;;  %v103_v36 = vld [vmem:[%s14159_s0 + $0x230] sm:$0xff] }
 0x22b   :  { %v11047_v50 = vadd.f32 %v2381_v39, %v1851_v17  ;;  %9021 = vmatmul.msk.f32.gmra.mxu0 %vm197_vm1, %v184_v31  ;;  %v3299_v17 = vld [vmem:[%s14160_s1 + $0x14] sm:$0xf] }
 0x22c   :  { %9103 = vmatmul.msk.f32.gmra.mxu1 %vm197_vm1, %v102_v41  ;;  %v1950_v41 = vld [vmem:[%s14159_s0 + $0x242] sm:$0xff] }
 0x22d   :  { %9185 = vmatmul.msk.f32.gmra.mxu2 %vm197_vm1, %v1947_v26  ;;  %v185_v26 = vld [vmem:[%s14159_s0 + $0x231] sm:$0xff]  ;;  %9361 = vmatpush.msk.msrb.mxu1 %vm441_vm0, %v3299_v17 }
 0x22e   :  { %9267 = vmatmul.msk.f32.gmra.mxu3 %vm197_vm1, %v1949_v2 }
 0x230   :  { %v1715_v6 = vpop.f32.mrf.mxu2  ;;  %v624_v13 = vpop.f32.mrf.mxu0 }
 0x231   :  { %v1852_v12 = vadd.f32 %v1715_v6, %v1128_v53  ;;  %v1130_v18 = vpop.f32.mrf.mxu1  ;;  %v2384_v31 = vpop.f32.mrf.mxu3 }
 0x232   :  { %v1131_v48 = vadd.f32 %v1130_v18, %v624_v13 }
 0x233   :  { %v11074_v39 = vadd.f32 %v2384_v31, %v1852_v12  ;;  %9022 = vmatmul.msk.f32.gmra.mxu0 %vm197_vm1, %v185_v26  ;;  %v186_v12 = vld [vmem:[%s14159_s0 + $0x239] sm:$0xff] }
 0x234   :  { %9104 = vmatmul.msk.f32.gmra.mxu1 %vm197_vm1, %v103_v36  ;;  %v104_v31 = vld [vmem:[%s14159_s0 + $0x238] sm:$0xff] }
 0x235   :  { %14178 = vst [vmem:[#allocation9_spill] sm:$0xff] %v11074_v39  ;;  %9186 = vmatmul.msk.f32.gmra.mxu2 %vm197_vm1, %v1948_v46  ;;  %v1951_v46 = vld [vmem:[%s14159_s0 + $0x24a] sm:$0xff] }
 0x236   :  { %9268 = vmatmul.msk.f32.gmra.mxu3 %vm197_vm1, %v1950_v41 }
 0x238   :  { %v1718_v53 = vpop.f32.mrf.mxu2  ;;  %v627_v6 = vpop.f32.mrf.mxu0 }
 0x239   :  { %v1853_v61 = vadd.f32 %v1718_v53, %v1131_v48  ;;  %v1133_v17 = vpop.f32.mrf.mxu1  ;;  %v2387_v26 = vpop.f32.mrf.mxu3  ;;  %v187_v53 = vld [vmem:[%s14159_s0 + $0x241] sm:$0xff] }
 0x23a   :  { %v1134_v13 = vadd.f32 %v1133_v17, %v627_v6 }
 0x23b   :  { %v11089_v39 = vadd.f32 %v2387_v26, %v1853_v61  ;;  %9023 = vmatmul.msk.f32.gmra.mxu0 %vm197_vm1, %v186_v12  ;;  %v105_v26 = vld [vmem:[%s14159_s0 + $0x240] sm:$0xff] }
 0x23c   :  { %9105 = vmatmul.msk.f32.gmra.mxu1 %vm197_vm1, %v104_v31 }
 0x23d   :  { %14179 = vst [vmem:[#allocation10_spill] sm:$0xff] %v11089_v39  ;;  %9187 = vmatmul.msk.f32.gmra.mxu2 %vm197_vm1, %v1949_v2  ;;  %v1952_v2 = vld [vmem:[%s14159_s0 + $0x252] sm:$0xff] }
 0x23e   :  { %9269 = vmatmul.msk.f32.gmra.mxu3 %vm197_vm1, %v1951_v46 }
 0x240   :  { %v1721_v18 = vpop.f32.mrf.mxu2  ;;  %v630_v48 = vpop.f32.mrf.mxu0 }
 0x241   :  { %v1854_v36 = vadd.f32 %v1721_v18, %v1134_v13  ;;  %v1136_v61 = vpop.f32.mrf.mxu1  ;;  %v2390_v12 = vpop.f32.mrf.mxu3  ;;  %v188_v18 = vld [vmem:[%s14159_s0 + $0x249] sm:$0xff] }
 0x242   :  { %v1137_v6 = vadd.f32 %v1136_v61, %v630_v48 }
 0x243   :  { %v11104_v39 = vadd.f32 %v2390_v12, %v1854_v36  ;;  %9024 = vmatmul.msk.f32.gmra.mxu0 %vm197_vm1, %v187_v53  ;;  %v106_v12 = vld [vmem:[%s14159_s0 + $0x248] sm:$0xff] }
 0x244   :  { %9106 = vmatmul.msk.f32.gmra.mxu1 %vm197_vm1, %v105_v26 }
 0x245   :  { %14180 = vst [vmem:[#allocation11_spill] sm:$0xff] %v11104_v39  ;;  %9188 = vmatmul.msk.f32.gmra.mxu2 %vm197_vm1, %v1950_v41  ;;  %v1953_v41 = vld [vmem:[%s14159_s0 + $0x25a] sm:$0xff] }
 0x246   :  { %9270 = vmatmul.msk.f32.gmra.mxu3 %vm197_vm1, %v1952_v2 }
 0x248   :  { %v1724_v17 = vpop.f32.mrf.mxu2  ;;  %v633_v13 = vpop.f32.mrf.mxu0 }
 0x249   :  { %v1855_v31 = vadd.f32 %v1724_v17, %v1137_v6  ;;  %v1139_v36 = vpop.f32.mrf.mxu1  ;;  %v2393_v53 = vpop.f32.mrf.mxu3  ;;  %v189_v17 = vld [vmem:[%s14159_s0 + $0x251] sm:$0xff] }
 0x24a   :  { %v1140_v48 = vadd.f32 %v1139_v36, %v633_v13 }
 0x24b   :  { %v11119_v39 = vadd.f32 %v2393_v53, %v1855_v31  ;;  %9025 = vmatmul.msk.f32.gmra.mxu0 %vm197_vm1, %v188_v18  ;;  %v107_v53 = vld [vmem:[%s14159_s0 + $0x250] sm:$0xff] }
 0x24c   :  { %9107 = vmatmul.msk.f32.gmra.mxu1 %vm197_vm1, %v106_v12 }
 0x24d   :  { %14181 = vst [vmem:[#allocation12_spill] sm:$0xff] %v11119_v39  ;;  %9189 = vmatmul.msk.f32.gmra.mxu2 %vm197_vm1, %v1951_v46  ;;  %v1954_v46 = vld [vmem:[%s14159_s0 + $0x262] sm:$0xff] }
 0x24e   :  { %9271 = vmatmul.msk.f32.gmra.mxu3 %vm197_vm1, %v1953_v41 }
 0x250   :  { %v1727_v61 = vpop.f32.mrf.mxu2  ;;  %v636_v6 = vpop.f32.mrf.mxu0 }
 0x251   :  { %v1856_v26 = vadd.f32 %v1727_v61, %v1140_v48  ;;  %v1142_v31 = vpop.f32.mrf.mxu1  ;;  %v2396_v18 = vpop.f32.mrf.mxu3  ;;  %v190_v61 = vld [vmem:[%s14159_s0 + $0x259] sm:$0xff] }
 0x252   :  { %v1143_v13 = vadd.f32 %v1142_v31, %v636_v6 }
 0x253   :  { %v11134_v39 = vadd.f32 %v2396_v18, %v1856_v26  ;;  %9026 = vmatmul.msk.f32.gmra.mxu0 %vm197_vm1, %v189_v17  ;;  %v108_v18 = vld [vmem:[%s14159_s0 + $0x258] sm:$0xff] }
 0x254   :  { %9108 = vmatmul.msk.f32.gmra.mxu1 %vm197_vm1, %v107_v53 }
 0x255   :  { %14182 = vst [vmem:[#allocation13_spill] sm:$0xff] %v11134_v39  ;;  %9190 = vmatmul.msk.f32.gmra.mxu2 %vm197_vm1, %v1952_v2  ;;  %v1955_v2 = vld [vmem:[%s14159_s0 + $0x26a] sm:$0xff] }
 0x256   :  { %9272 = vmatmul.msk.f32.gmra.mxu3 %vm197_vm1, %v1954_v46 }
 0x258   :  { %v1730_v36 = vpop.f32.mrf.mxu2  ;;  %v639_v48 = vpop.f32.mrf.mxu0 }
 0x259   :  { %v1857_v12 = vadd.f32 %v1730_v36, %v1143_v13  ;;  %v1145_v26 = vpop.f32.mrf.mxu1  ;;  %v2399_v17 = vpop.f32.mrf.mxu3  ;;  %v191_v36 = vld [vmem:[%s14159_s0 + $0x261] sm:$0xff] }
 0x25a   :  { %v1146_v6 = vadd.f32 %v1145_v26, %v639_v48 }
 0x25b   :  { %v11149_v39 = vadd.f32 %v2399_v17, %v1857_v12  ;;  %9027 = vmatmul.msk.f32.gmra.mxu0 %vm197_vm1, %v190_v61  ;;  %v109_v17 = vld [vmem:[%s14159_s0 + $0x260] sm:$0xff] }
 0x25c   :  { %9109 = vmatmul.msk.f32.gmra.mxu1 %vm197_vm1, %v108_v18 }
 0x25d   :  { %14183 = vst [vmem:[#allocation14_spill] sm:$0xff] %v11149_v39  ;;  %9191 = vmatmul.msk.f32.gmra.mxu2 %vm197_vm1, %v1953_v41  ;;  %v1956_v41 = vld [vmem:[%s14159_s0 + $0x272] sm:$0xff] }
 0x25e   :  { %9273 = vmatmul.msk.f32.gmra.mxu3 %vm197_vm1, %v1955_v2 }
 0x260   :  { %v1733_v31 = vpop.f32.mrf.mxu2  ;;  %v642_v13 = vpop.f32.mrf.mxu0 }
 0x261   :  { %v1858_v53 = vadd.f32 %v1733_v31, %v1146_v6  ;;  %v1148_v12 = vpop.f32.mrf.mxu1  ;;  %v2402_v61 = vpop.f32.mrf.mxu3  ;;  %v192_v31 = vld [vmem:[%s14159_s0 + $0x269] sm:$0xff] }
 0x262   :  { %v1149_v48 = vadd.f32 %v1148_v12, %v642_v13  ;;  %v5306_v13 = vld [vmem:[%s14160_s1 + $0x20] sm:$0xf]  ;;  %s9971_s1 = smov [#allocation6]  }
 0x263   :  { %v11164_v39 = vadd.f32 %v2402_v61, %v1858_v53  ;;  %9028 = vmatmul.msk.f32.gmra.mxu0 %vm197_vm1, %v191_v36  ;;  %v110_v61 = vld [vmem:[%s14159_s0 + $0x268] sm:$0xff]  ;;  %s8940_s20 = sshll.u32 %s9971_s1, 4  ;;  %s8941_s20 = int_to_ptr.vmem [resolvable:$true] %s8940_s20 }
 0x264   :  { %9110 = vmatmul.msk.f32.gmra.mxu1 %vm197_vm1, %v109_v17  ;;  %9607 = vmatpush.msk.msra.mxu0 %vm441_vm0, %v5306_v13 }
 0x265   :  { %14184 = vst [vmem:[#allocation15_spill] sm:$0xff] %v11164_v39  ;;  %9192 = vmatmul.msk.f32.gmra.mxu2 %vm197_vm1, %v1954_v46  ;;  %v1957_v46 = vld [vmem:[%s14159_s0 + $0x27a] sm:$0xff] }
 0x266   :  { %9274 = vmatmul.msk.f32.gmra.mxu3 %vm197_vm1, %v1956_v41 }
 0x268   :  { %v1736_v26 = vpop.f32.mrf.mxu2  ;;  %v645_v6 = vpop.f32.mrf.mxu0 }
 0x269   :  { %v1859_v18 = vadd.f32 %v1736_v26, %v1149_v48  ;;  %v1151_v53 = vpop.f32.mrf.mxu1  ;;  %v2405_v36 = vpop.f32.mrf.mxu3 }
 0x26a   :  { %v1152_v12 = vadd.f32 %v1151_v53, %v645_v6  ;;  %v1958_v6 = vld [vmem:[%s14159_s0 + $0x282] sm:$0xff] }
 0x26b   :  { %v11179_v39 = vadd.f32 %v2405_v36, %v1859_v18  ;;  %9029 = vmatmul.msk.f32.gmra.mxu0 %vm197_vm1, %v192_v31  ;;  %v193_v18 = vld [vmem:[%s14159_s0 + $0x271] sm:$0xff] }
 0x26c   :  { %9111 = vmatmul.msk.f32.gmra.mxu1 %vm197_vm1, %v110_v61 }
 0x26d   :  { %14185 = vst [vmem:[#allocation16_spill] sm:$0xff] %v11179_v39  ;;  %9193 = vmatmul.msk.f32.gmra.mxu2 %vm197_vm1, %v1955_v2  ;;  %v111_v2 = vld [vmem:[%s14159_s0 + $0x270] sm:$0xff] }
 0x26e   :  { %9275 = vmatmul.msk.f32.gmra.mxu3 %vm197_vm1, %v1957_v46 }
 0x270   :  { %v1739_v17 = vpop.f32.mrf.mxu2  ;;  %v648_v26 = vpop.f32.mrf.mxu0 }
 0x271   :  { %v1860_v48 = vadd.f32 %v1739_v17, %v1152_v12  ;;  %v1154_v31 = vpop.f32.mrf.mxu1  ;;  %v2408_v36 = vpop.f32.mrf.mxu3 }
 0x272   :  { %v1155_v53 = vadd.f32 %v1154_v31, %v648_v26 }
 0x273   :  { %v11198_v61 = vadd.f32 %v2408_v36, %v1860_v48  ;;  %9030 = vmatmul.msk.f32.gmra.mxu0 %vm197_vm1, %v193_v18  ;;  %v194_v48 = vld [vmem:[%s14159_s0 + $0x279] sm:$0xff] }
 0x274   :  { %9112 = vmatmul.msk.f32.gmra.mxu1 %vm197_vm1, %v111_v2 }
 0x275   :  { %14186 = vst [vmem:[#allocation17_spill] sm:$0xff] %v11198_v61  ;;  %9194 = vmatmul.msk.f32.gmra.mxu2 %vm197_vm1, %v1956_v41  ;;  %v112_v61 = vld [vmem:[%s14159_s0 + $0x278] sm:$0xff]  ;;  %v1959_v41 = vld [vmem:[%s14159_s0 + $0x28a] sm:$0xff] }
 0x276   :  { %9276 = vmatmul.msk.f32.gmra.mxu3 %vm197_vm1, %v1958_v6 }
 0x278   :  { %v1742_v13 = vpop.f32.mrf.mxu2  ;;  %v651_v17 = vpop.f32.mrf.mxu0 }
 0x279   :  { %v1861_v12 = vadd.f32 %v1742_v13, %v1155_v53  ;;  %v1157_v36 = vpop.f32.mrf.mxu1  ;;  %v2411_v18 = vpop.f32.mrf.mxu3  ;;  %v195_v13 = vld [vmem:[%s14159_s0 + $0x281] sm:$0xff] }
 0x27a   :  { %v1158_v26 = vadd.f32 %v1157_v36, %v651_v17 }
 0x27b   :  { %v11213_v39 = vadd.f32 %v2411_v18, %v1861_v12  ;;  %9031 = vmatmul.msk.f32.gmra.mxu0 %vm197_vm1, %v194_v48  ;;  %v113_v18 = vld [vmem:[%s14159_s0 + $0x280] sm:$0xff] }
 0x27c   :  { %9113 = vmatmul.msk.f32.gmra.mxu1 %vm197_vm1, %v112_v61 }
 0x27d   :  { %14187 = vst [vmem:[#allocation18_spill] sm:$0xff] %v11213_v39  ;;  %9195 = vmatmul.msk.f32.gmra.mxu2 %vm197_vm1, %v1957_v46  ;;  %v1960_v46 = vld [vmem:[%s14159_s0 + $0x292] sm:$0xff] }
 0x27e   :  { %9277 = vmatmul.msk.f32.gmra.mxu3 %vm197_vm1, %v1959_v41 }
 0x280   :  { %v1745_v31 = vpop.f32.mrf.mxu2  ;;  %v654_v53 = vpop.f32.mrf.mxu0 }
 0x281   :  { %v1862_v2 = vadd.f32 %v1745_v31, %v1158_v26  ;;  %v1160_v12 = vpop.f32.mrf.mxu1  ;;  %v2414_v48 = vpop.f32.mrf.mxu3  ;;  %v2549_v26 = vld [vmem:[%s14159_s0 + $0x13] sm:$0xff] }
 0x282   :  { %v1161_v61 = vadd.f32 %v1160_v12, %v654_v53  ;;  %v4556_v12 = vld [vmem:[%s14159_s0 + $0x25] sm:$0xff] }
 0x283   :  { %v11228_v39 = vadd.f32 %v2414_v48, %v1862_v2  ;;  %9032 = vmatmul.msk.f32.gmra.mxu0 %vm197_vm1, %v195_v13  ;;  %v3887_v13 = vld [vmem:[%s14159_s0 + $0x24] sm:$0xff] }
 0x284   :  { %9114 = vmatmul.msk.f32.gmra.mxu1 %vm197_vm1, %v113_v18 }
 0x285   :  { %14188 = vst [vmem:[#allocation19_spill] sm:$0xff] %v11228_v39  ;;  %9196 = vmatmul.msk.f32.gmra.mxu2 %vm197_vm1, %v1958_v6  ;;  %v3218_v6 = vld [vmem:[%s14159_s0 + $0x14] sm:$0xff] }
 0x286   :  { %9278 = vmatmul.msk.f32.gmra.mxu3 %vm197_vm1, %v1960_v46 }
 0x288   :  { %v1748_v17 = vpop.f32.mrf.mxu2  ;;  %v657_v41 = vpop.f32.mrf.mxu0 }
 0x289   :  { %v1863_v36 = vadd.f32 %v1748_v17, %v1161_v61  ;;  %v1163_v31 = vpop.f32.mrf.mxu1  ;;  %v2417_v2 = vpop.f32.mrf.mxu3  ;;  %v2550_v17 = vld [vmem:[%s14159_s0 + $0x1b] sm:$0xff] }
 0x28a   :  { %v1164_v48 = vadd.f32 %v1163_v31, %v657_v41  ;;  %v4557_v31 = vld [vmem:[%s14159_s0 + $0x2d] sm:$0xff] }
 0x28b   :  { %v11246_v53 = vadd.f32 %v2417_v2, %v1863_v36  ;;  %9280 = vmatmul.msk.f32.vlgmr.msrb.gmra.mxu0 %vm197_vm1, %v2549_v26  ;;  %v3888_v2 = vld [vmem:[%s14159_s0 + $0x2c] sm:$0xff] }
 0x28c   :  { %9362 = vmatmul.msk.f32.vlgmr.msrb.gmra.mxu1 %vm197_vm1, %v3218_v6  ;;  %v3219_v6 = vld [vmem:[%s14159_s0 + $0x1c] sm:$0xff] }
 0x28d   :  { %14189 = vst [vmem:[#allocation20_spill] sm:$0xff] %v11246_v53  ;;  %9444 = vmatmul.msk.f32.vlgmr.msrb.gmra.mxu2 %vm197_vm1, %v3887_v13 }
 0x28e   :  { %9526 = vmatmul.msk.f32.vlgmr.msrb.gmra.mxu3 %vm197_vm1, %v4556_v12 }
 0x290   :  { %v1751_v18 = vpop.f32.mrf.mxu2  ;;  %v660_v61 = vpop.f32.mrf.mxu0 }
 0x291   :  { %v1864_v46 = vadd.f32 %v1751_v18, %v1164_v48  ;;  %v1166_v36 = vpop.f32.mrf.mxu1  ;;  %v2420_v26 = vpop.f32.mrf.mxu3 }
 0x292   :  { %v1167_v12 = vadd.f32 %v1166_v36, %v660_v61  ;;  %v4558_v61 = vld [vmem:[%s14159_s0 + $0x35] sm:$0xff] }
 0x293   :  { %v11264_v41 = vadd.f32 %v2420_v26, %v1864_v46  ;;  %9281 = vmatmul.msk.f32.gmra.mxu0 %vm197_vm1, %v2550_v17  ;;  %v2551_v46 = vld [vmem:[%s14159_s0 + $0x23] sm:$0xff] }
 0x294   :  { %9363 = vmatmul.msk.f32.gmra.mxu1 %vm197_vm1, %v3219_v6 }
 0x295   :  { %14190 = vst [vmem:[#allocation21_spill] sm:$0xff] %v11264_v41  ;;  %9445 = vmatmul.msk.f32.gmra.mxu2 %vm197_vm1, %v3888_v2  ;;  %v3889_v41 = vld [vmem:[%s14159_s0 + $0x34] sm:$0xff] }
 0x296   :  { %9527 = vmatmul.msk.f32.gmra.mxu3 %vm197_vm1, %v4557_v31 }
 0x298   :  { %v1754_v48 = vpop.f32.mrf.mxu2  ;;  %v663_v53 = vpop.f32.mrf.mxu0 }
 0x299   :  { %v1865_v18 = vadd.f32 %v1754_v48, %v1167_v12  ;;  %v1169_v26 = vpop.f32.mrf.mxu1  ;;  %v2423_v17 = vpop.f32.mrf.mxu3  ;;  %v2552_v48 = vld [vmem:[%s14159_s0 + $0x2b] sm:$0xff] }
 0x29a   :  { %v1170_v36 = vadd.f32 %v1169_v26, %v663_v53 }
 0x29b   :  { %v11279_v39 = vadd.f32 %v2423_v17, %v1865_v18  ;;  %9282 = vmatmul.msk.f32.gmra.mxu0 %vm197_vm1, %v2551_v46  ;;  %v3890_v17 = vld [vmem:[%s14159_s0 + $0x3c] sm:$0xff] }
 0x29c   :  { %9364 = vmatmul.msk.f32.gmra.mxu1 %vm197_vm1, %v3887_v13  ;;  %v4559_v13 = vld [vmem:[%s14159_s0 + $0x3d] sm:$0xff] }
 0x29d   :  { %14191 = vst [vmem:[#allocation22_spill] sm:$0xff] %v11279_v39  ;;  %9446 = vmatmul.msk.f32.gmra.mxu2 %vm197_vm1, %v3889_v41 }
 0x29e   :  { %9528 = vmatmul.msk.f32.gmra.mxu3 %vm197_vm1, %v4558_v61 }
 0x2a0   :  { %v1757_v6 = vpop.f32.mrf.mxu2  ;;  %v666_v12 = vpop.f32.mrf.mxu0 }
 0x2a1   :  { %v1866_v31 = vadd.f32 %v1757_v6, %v1170_v36  ;;  %v1172_v18 = vpop.f32.mrf.mxu1  ;;  %v2426_v46 = vpop.f32.mrf.mxu3  ;;  %v2553_v6 = vld [vmem:[%s14159_s0 + $0x33] sm:$0xff] }
 0x2a2   :  { %v1173_v53 = vadd.f32 %v1172_v18, %v666_v12 }
 0x2a3   :  { %v11294_v39 = vadd.f32 %v2426_v46, %v1866_v31  ;;  %9283 = vmatmul.msk.f32.gmra.mxu0 %vm197_vm1, %v2552_v48  ;;  %v3891_v46 = vld [vmem:[%s14159_s0 + $0x44] sm:$0xff] }
 0x2a4   :  { %9365 = vmatmul.msk.f32.gmra.mxu1 %vm197_vm1, %v3888_v2  ;;  %v4560_v2 = vld [vmem:[%s14159_s0 + $0x45] sm:$0xff] }
 0x2a5   :  { %14192 = vst [vmem:[#allocation23_spill] sm:$0xff] %v11294_v39  ;;  %9447 = vmatmul.msk.f32.gmra.mxu2 %vm197_vm1, %v3890_v17 }
 0x2a6   :  { %9529 = vmatmul.msk.f32.gmra.mxu3 %vm197_vm1, %v4559_v13 }
 0x2a8   :  { %v1760_v26 = vpop.f32.mrf.mxu2  ;;  %v669_v36 = vpop.f32.mrf.mxu0 }
 0x2a9   :  { %v1867_v61 = vadd.f32 %v1760_v26, %v1173_v53  ;;  %v1175_v31 = vpop.f32.mrf.mxu1  ;;  %v2429_v48 = vpop.f32.mrf.mxu3  ;;  %v2554_v26 = vld [vmem:[%s14159_s0 + $0x3b] sm:$0xff] }
 0x2aa   :  { %v1176_v12 = vadd.f32 %v1175_v31, %v669_v36 }
 0x2ab   :  { %v11309_v39 = vadd.f32 %v2429_v48, %v1867_v61  ;;  %9284 = vmatmul.msk.f32.gmra.mxu0 %vm197_vm1, %v2553_v6  ;;  %v3892_v48 = vld [vmem:[%s14159_s0 + $0x4c] sm:$0xff] }
 0x2ac   :  { %9366 = vmatmul.msk.f32.gmra.mxu1 %vm197_vm1, %v3889_v41  ;;  %v4561_v41 = vld [vmem:[%s14159_s0 + $0x4d] sm:$0xff] }
 0x2ad   :  { %14193 = vst [vmem:[#allocation24_spill] sm:$0xff] %v11309_v39  ;;  %9448 = vmatmul.msk.f32.gmra.mxu2 %vm197_vm1, %v3891_v46 }
 0x2ae   :  { %9530 = vmatmul.msk.f32.gmra.mxu3 %vm197_vm1, %v4560_v2 }
 0x2b0   :  { %v1763_v18 = vpop.f32.mrf.mxu2  ;;  %v672_v53 = vpop.f32.mrf.mxu0 }
 0x2b1   :  { %v1868_v13 = vadd.f32 %v1763_v18, %v1176_v12  ;;  %v1178_v61 = vpop.f32.mrf.mxu1  ;;  %v2432_v6 = vpop.f32.mrf.mxu3  ;;  %v2555_v18 = vld [vmem:[%s14159_s0 + $0x43] sm:$0xff] }
 0x2b2   :  { %v1179_v36 = vadd.f32 %v1178_v61, %v672_v53 }
 0x2b3   :  { %v11324_v39 = vadd.f32 %v2432_v6, %v1868_v13  ;;  %9285 = vmatmul.msk.f32.gmra.mxu0 %vm197_vm1, %v2554_v26  ;;  %v3893_v6 = vld [vmem:[%s14159_s0 + $0x54] sm:$0xff] }
 0x2b4   :  { %9367 = vmatmul.msk.f32.gmra.mxu1 %vm197_vm1, %v3890_v17  ;;  %v4562_v17 = vld [vmem:[%s14159_s0 + $0x55] sm:$0xff] }
 0x2b5   :  { %14194 = vst [vmem:[#allocation25_spill] sm:$0xff] %v11324_v39  ;;  %9449 = vmatmul.msk.f32.gmra.mxu2 %vm197_vm1, %v3892_v48 }
 0x2b6   :  { %9531 = vmatmul.msk.f32.gmra.mxu3 %vm197_vm1, %v4561_v41 }
 0x2b8   :  { %v1766_v31 = vpop.f32.mrf.mxu2  ;;  %v675_v12 = vpop.f32.mrf.mxu0 }
 0x2b9   :  { %v1869_v2 = vadd.f32 %v1766_v31, %v1179_v36  ;;  %v1181_v13 = vpop.f32.mrf.mxu1  ;;  %v2435_v26 = vpop.f32.mrf.mxu3  ;;  %v2556_v31 = vld [vmem:[%s14159_s0 + $0x4b] sm:$0xff] }
 0x2ba   :  { %v1182_v53 = vadd.f32 %v1181_v13, %v675_v12 }
 0x2bb   :  { %v11339_v39 = vadd.f32 %v2435_v26, %v1869_v2  ;;  %9286 = vmatmul.msk.f32.gmra.mxu0 %vm197_vm1, %v2555_v18  ;;  %v3894_v26 = vld [vmem:[%s14159_s0 + $0x5c] sm:$0xff] }
 0x2bc   :  { %9368 = vmatmul.msk.f32.gmra.mxu1 %vm197_vm1, %v3891_v46  ;;  %v4563_v46 = vld [vmem:[%s14159_s0 + $0x5d] sm:$0xff] }
 0x2bd   :  { %14195 = vst [vmem:[#allocation26_spill] sm:$0xff] %v11339_v39  ;;  %9450 = vmatmul.msk.f32.gmra.mxu2 %vm197_vm1, %v3893_v6 }
 0x2be   :  { %9532 = vmatmul.msk.f32.gmra.mxu3 %vm197_vm1, %v4562_v17 }
 0x2c0   :  { %v1769_v61 = vpop.f32.mrf.mxu2  ;;  %v678_v36 = vpop.f32.mrf.mxu0 }
 0x2c1   :  { %v1870_v41 = vadd.f32 %v1769_v61, %v1182_v53  ;;  %v1184_v2 = vpop.f32.mrf.mxu1  ;;  %v2438_v18 = vpop.f32.mrf.mxu3  ;;  %v2557_v61 = vld [vmem:[%s14159_s0 + $0x53] sm:$0xff] }
 0x2c2   :  { %v1185_v12 = vadd.f32 %v1184_v2, %v678_v36 }
 0x2c3   :  { %v11354_v39 = vadd.f32 %v2438_v18, %v1870_v41  ;;  %9287 = vmatmul.msk.f32.gmra.mxu0 %vm197_vm1, %v2556_v31  ;;  %v3895_v18 = vld [vmem:[%s14159_s0 + $0x64] sm:$0xff] }
 0x2c4   :  { %9369 = vmatmul.msk.f32.gmra.mxu1 %vm197_vm1, %v3892_v48  ;;  %v4564_v48 = vld [vmem:[%s14159_s0 + $0x65] sm:$0xff] }
 0x2c5   :  { %14196 = vst [vmem:[#allocation27_spill] sm:$0xff] %v11354_v39  ;;  %9451 = vmatmul.msk.f32.gmra.mxu2 %vm197_vm1, %v3894_v26 }
 0x2c6   :  { %9533 = vmatmul.msk.f32.gmra.mxu3 %vm197_vm1, %v4563_v46 }
 0x2c8   :  { %v1772_v13 = vpop.f32.mrf.mxu2  ;;  %v681_v53 = vpop.f32.mrf.mxu0 }
 0x2c9   :  { %v1871_v17 = vadd.f32 %v1772_v13, %v1185_v12  ;;  %v1187_v41 = vpop.f32.mrf.mxu1  ;;  %v2441_v31 = vpop.f32.mrf.mxu3  ;;  %v2558_v13 = vld [vmem:[%s14159_s0 + $0x5b] sm:$0xff] }
 0x2ca   :  { %v1188_v36 = vadd.f32 %v1187_v41, %v681_v53 }
 0x2cb   :  { %v11369_v39 = vadd.f32 %v2441_v31, %v1871_v17  ;;  %9288 = vmatmul.msk.f32.gmra.mxu0 %vm197_vm1, %v2557_v61  ;;  %v3896_v31 = vld [vmem:[%s14159_s0 + $0x6c] sm:$0xff] }
 0x2cc   :  { %9370 = vmatmul.msk.f32.gmra.mxu1 %vm197_vm1, %v3893_v6  ;;  %v4565_v6 = vld [vmem:[%s14159_s0 + $0x6d] sm:$0xff] }
 0x2cd   :  { %14197 = vst [vmem:[#allocation28_spill] sm:$0xff] %v11369_v39  ;;  %9452 = vmatmul.msk.f32.gmra.mxu2 %vm197_vm1, %v3895_v18 }
 0x2ce   :  { %9534 = vmatmul.msk.f32.gmra.mxu3 %vm197_vm1, %v4564_v48 }
 0x2d0   :  { %v1775_v2 = vpop.f32.mrf.mxu2  ;;  %v684_v12 = vpop.f32.mrf.mxu0 }
 0x2d1   :  { %v1872_v46 = vadd.f32 %v1775_v2, %v1188_v36  ;;  %v1190_v17 = vpop.f32.mrf.mxu1  ;;  %v2444_v61 = vpop.f32.mrf.mxu3  ;;  %v2559_v2 = vld [vmem:[%s14159_s0 + $0x63] sm:$0xff] }
 0x2d2   :  { %v1191_v53 = vadd.f32 %v1190_v17, %v684_v12 }
 0x2d3   :  { %v11384_v39 = vadd.f32 %v2444_v61, %v1872_v46  ;;  %9289 = vmatmul.msk.f32.gmra.mxu0 %vm197_vm1, %v2558_v13  ;;  %v3897_v61 = vld [vmem:[%s14159_s0 + $0x74] sm:$0xff] }
 0x2d4   :  { %9371 = vmatmul.msk.f32.gmra.mxu1 %vm197_vm1, %v3894_v26  ;;  %v4566_v26 = vld [vmem:[%s14159_s0 + $0x75] sm:$0xff] }
 0x2d5   :  { %14198 = vst [vmem:[#allocation29_spill] sm:$0xff] %v11384_v39  ;;  %9453 = vmatmul.msk.f32.gmra.mxu2 %vm197_vm1, %v3896_v31 }
 0x2d6   :  { %9535 = vmatmul.msk.f32.gmra.mxu3 %vm197_vm1, %v4565_v6 }
 0x2d8   :  { %v1778_v41 = vpop.f32.mrf.mxu2  ;;  %v687_v36 = vpop.f32.mrf.mxu0 }
 0x2d9   :  { %v1873_v48 = vadd.f32 %v1778_v41, %v1191_v53  ;;  %v1193_v46 = vpop.f32.mrf.mxu1  ;;  %v2447_v13 = vpop.f32.mrf.mxu3  ;;  %v2560_v41 = vld [vmem:[%s14159_s0 + $0x6b] sm:$0xff] }
 0x2da   :  { %v1194_v12 = vadd.f32 %v1193_v46, %v687_v36 }
 0x2db   :  { %v11399_v39 = vadd.f32 %v2447_v13, %v1873_v48  ;;  %9290 = vmatmul.msk.f32.gmra.mxu0 %vm197_vm1, %v2559_v2  ;;  %v3898_v13 = vld [vmem:[%s14159_s0 + $0x7c] sm:$0xff] }
 0x2dc   :  { %9372 = vmatmul.msk.f32.gmra.mxu1 %vm197_vm1, %v3895_v18  ;;  %v4567_v18 = vld [vmem:[%s14159_s0 + $0x7d] sm:$0xff] }
 0x2dd   :  { %14199 = vst [vmem:[#allocation30_spill] sm:$0xff] %v11399_v39  ;;  %9454 = vmatmul.msk.f32.gmra.mxu2 %vm197_vm1, %v3897_v61 }
 0x2de   :  { %9536 = vmatmul.msk.f32.gmra.mxu3 %vm197_vm1, %v4566_v26 }
 0x2e0   :  { %v1781_v17 = vpop.f32.mrf.mxu2  ;;  %v690_v53 = vpop.f32.mrf.mxu0 }
 0x2e1   :  { %v1874_v6 = vadd.f32 %v1781_v17, %v1194_v12  ;;  %v1196_v48 = vpop.f32.mrf.mxu1  ;;  %v2450_v2 = vpop.f32.mrf.mxu3  ;;  %v2561_v17 = vld [vmem:[%s14159_s0 + $0x73] sm:$0xff] }
 0x2e2   :  { %v1197_v36 = vadd.f32 %v1196_v48, %v690_v53 }
 0x2e3   :  { %v11414_v39 = vadd.f32 %v2450_v2, %v1874_v6  ;;  %9291 = vmatmul.msk.f32.gmra.mxu0 %vm197_vm1, %v2560_v41  ;;  %v3899_v2 = vld [vmem:[%s14159_s0 + $0x84] sm:$0xff] }
 0x2e4   :  { %9373 = vmatmul.msk.f32.gmra.mxu1 %vm197_vm1, %v3896_v31  ;;  %v4568_v31 = vld [vmem:[%s14159_s0 + $0x85] sm:$0xff] }
 0x2e5   :  { %14200 = vst [vmem:[#allocation31_spill] sm:$0xff] %v11414_v39  ;;  %9455 = vmatmul.msk.f32.gmra.mxu2 %vm197_vm1, %v3898_v13 }
 0x2e6   :  { %9537 = vmatmul.msk.f32.gmra.mxu3 %vm197_vm1, %v4567_v18  ;;  %v2562_v18 = vld [vmem:[%s14159_s0 + $0x7b] sm:$0xff] }
 0x2e8   :  { %v1784_v46 = vpop.f32.mrf.mxu2  ;;  %v693_v12 = vpop.f32.mrf.mxu0 }
 0x2e9   :  { %v1875_v26 = vadd.f32 %v1784_v46, %v1197_v36  ;;  %v1199_v6 = vpop.f32.mrf.mxu1  ;;  %v2453_v41 = vpop.f32.mrf.mxu3 }
 0x2ea   :  { %v2563_v6 = vld [vmem:[%s14159_s0 + $0x83] sm:$0xff] }
 0x2eb   :  { %v11429_v39 = vadd.f32 %v2453_v41, %v1875_v26  ;;  %9292 = vmatmul.msk.f32.gmra.mxu0 %vm197_vm1, %v2561_v17  ;;  %v3900_v26 = vld [vmem:[%s14159_s0 + $0x8c] sm:$0xff] }
 0x2ec   :  { %9374 = vmatmul.msk.f32.gmra.mxu1 %vm197_vm1, %v3897_v61  ;;  %v4569_v61 = vld [vmem:[%s14159_s0 + $0x8d] sm:$0xff] }
 0x2ed   :  { %14201 = vst [vmem:[#allocation32_spill] sm:$0xff] %v11429_v39  ;;  %9456 = vmatmul.msk.f32.gmra.mxu2 %vm197_vm1, %v3899_v2 }
 0x2ee   :  { %9538 = vmatmul.msk.f32.gmra.mxu3 %vm197_vm1, %v4568_v31 }
 0x2f0   :  { %v1787_v53 = vpop.f32.mrf.mxu2  ;;  %v696_v48 = vpop.f32.mrf.mxu0 }
 0x2f1   :  { %v1202_v36 = vpop.f32.mrf.mxu1  ;;  %v2456_v46 = vpop.f32.mrf.mxu3  ;;  %v3901_v53 = vld [vmem:[%s14159_s0 + $0x94] sm:$0xff] }
 0x2f2   :  { %v2564_v36 = vld [vmem:[%s14159_s0 + $0x8b] sm:$0xff] }
 0x2f3   :  { %9293 = vmatmul.msk.f32.gmra.mxu0 %vm197_vm1, %v2562_v18 }
 0x2f4   :  { %9375 = vmatmul.msk.f32.gmra.mxu1 %vm197_vm1, %v3898_v13  ;;  %v4570_v13 = vld [vmem:[%s14159_s0 + $0x95] sm:$0xff] }
 0x2f5   :  { %9457 = vmatmul.msk.f32.gmra.mxu2 %vm197_vm1, %v3900_v26 }
 0x2f6   :  { %9539 = vmatmul.msk.f32.gmra.mxu3 %vm197_vm1, %v4569_v61 }
 0x2f8   :  { %v1790_v12 = vpop.f32.mrf.mxu2  ;;  %v699_v17 = vpop.f32.mrf.mxu0 }
 0x2f9   :  { %v1205_v41 = vpop.f32.mrf.mxu1  ;;  %v2459_v31 = vpop.f32.mrf.mxu3  ;;  %v3902_v12 = vld [vmem:[%s14159_s0 + $0x9c] sm:$0xff] }
 0x2fa   :  { %v2565_v41 = vld [vmem:[%s14159_s0 + $0x93] sm:$0xff] }
 0x2fb   :  { %9294 = vmatmul.msk.f32.gmra.mxu0 %vm197_vm1, %v2563_v6 }
 0x2fc   :  { %9376 = vmatmul.msk.f32.gmra.mxu1 %vm197_vm1, %v3899_v2  ;;  %v4571_v2 = vld [vmem:[%s14159_s0 + $0x9d] sm:$0xff] }
 0x2fd   :  { %9458 = vmatmul.msk.f32.gmra.mxu2 %vm197_vm1, %v3901_v53 }
 0x2fe   :  { %9540 = vmatmul.msk.f32.gmra.mxu3 %vm197_vm1, %v4570_v13 }
 0x300   :  { %v1793_v48 = vpop.f32.mrf.mxu2  ;;  %v702_v18 = vpop.f32.mrf.mxu0 }
 0x301   :  { %v1208_v46 = vpop.f32.mrf.mxu1  ;;  %v2462_v61 = vpop.f32.mrf.mxu3  ;;  %v3903_v48 = vld [vmem:[%s14159_s0 + $0xa4] sm:$0xff] }
 0x303   :  { %9295 = vmatmul.msk.f32.gmra.mxu0 %vm197_vm1, %v2564_v36 }
 0x304   :  { %9377 = vmatmul.msk.f32.gmra.mxu1 %vm197_vm1, %v3900_v26  ;;  %v4572_v26 = vld [vmem:[%s14159_s0 + $0xa5] sm:$0xff] }
 0x305   :  { %9459 = vmatmul.msk.f32.gmra.mxu2 %vm197_vm1, %v3902_v12 }
 0x306   :  { %9541 = vmatmul.msk.f32.gmra.mxu3 %vm197_vm1, %v4571_v2 }
 0x308   :  { %v1796_v17 = vpop.f32.mrf.mxu2  ;;  %v2894_v6 = vpop.f32.mrf.mxu0 }
 0x309   :  { %v2465_v31 = vpop.f32.mrf.mxu3  ;;  %v3563_v13 = vpop.f32.mrf.mxu1  ;;  %v3137_v18 = vadd.f32 %v2894_v6, %v10275_v4  ;;  %v2566_v4 = vld [vmem:[%s14159_s0 + $0x9b] sm:$0xff] }
 0x30b   :  { %9296 = vmatmul.msk.f32.gmra.mxu0 %vm197_vm1, %v2565_v41  ;;  %v3806_v36 = vadd.f32 %v3563_v13, %v3137_v18  ;;  %v3904_v41 = vld [vmem:[%s14159_s0 + $0xac] sm:$0xff] }
 0x30c   :  { %9378 = vmatmul.msk.f32.gmra.mxu1 %vm197_vm1, %v3901_v53  ;;  %v4573_v53 = vld [vmem:[%s14159_s0 + $0xad] sm:$0xff] }
 0x30d   :  { %9460 = vmatmul.msk.f32.gmra.mxu2 %vm197_vm1, %v3903_v48 }
 0x30e   :  { %9542 = vmatmul.msk.f32.gmra.mxu3 %vm197_vm1, %v4572_v26 }
 0x310   :  { %v4232_v46 = vpop.f32.mrf.mxu2  ;;  %v2897_v2 = vpop.f32.mrf.mxu0 }
 0x311   :  { %v4475_v61 = vadd.f32 %v4232_v46, %v3806_v36  ;;  %v4901_v17 = vpop.f32.mrf.mxu3  ;;  %v3566_v6 = vpop.f32.mrf.mxu1  ;;  %v3138_v31 = vadd.f32 %v2897_v2, %v10290_v14  ;;  %v2567_v14 = vld [vmem:[%s14159_s0 + $0xa3] sm:$0xff]  ;;  %v3905_v2 = vld [vmem:[%s14159_s0 + $0xb4] sm:$0xff] }
 0x313   :  { %v11498_v39 = vadd.f32 %v4901_v17, %v4475_v61  ;;  %9297 = vmatmul.msk.f32.gmra.mxu0 %vm197_vm1, %v2566_v4  ;;  %v3807_v13 = vadd.f32 %v3566_v6, %v3138_v31 }
 0x314   :  { %9379 = vmatmul.msk.f32.gmra.mxu1 %vm197_vm1, %v3902_v12  ;;  %v4574_v12 = vld [vmem:[%s14159_s0 + $0xb5] sm:$0xff] }
 0x315   :  { %9461 = vmatmul.msk.f32.gmra.mxu2 %vm197_vm1, %v3904_v41 }
 0x316   :  { %9543 = vmatmul.msk.f32.gmra.mxu3 %vm197_vm1, %v4573_v53 }
 0x318   :  { %v4235_v18 = vpop.f32.mrf.mxu2  ;;  %v2900_v36 = vpop.f32.mrf.mxu0 }
 0x319   :  { %v4476_v26 = vadd.f32 %v4235_v18, %v3807_v13  ;;  %v4904_v46 = vpop.f32.mrf.mxu3  ;;  %v3569_v61 = vpop.f32.mrf.mxu1  ;;  %v3139_v4 = vadd.f32 %v2900_v36, %v10305_v24  ;;  %v2568_v24 = vld [vmem:[%s14159_s0 + $0xab] sm:$0xff]  ;;  %v3906_v36 = vld [vmem:[%s14159_s0 + $0xbc] sm:$0xff] }
 0x31b   :  { %v11514_v17 = vadd.f32 %v4904_v46, %v4476_v26  ;;  %9298 = vmatmul.msk.f32.gmra.mxu0 %vm197_vm1, %v2567_v14  ;;  %v3808_v6 = vadd.f32 %v3569_v61, %v3139_v4 }
 0x31c   :  { %9380 = vmatmul.msk.f32.gmra.mxu1 %vm197_vm1, %v3903_v48  ;;  %v4575_v48 = vld [vmem:[%s14159_s0 + $0xbd] sm:$0xff] }
 0x31d   :  { %9462 = vmatmul.msk.f32.gmra.mxu2 %vm197_vm1, %v3905_v2 }
 0x31e   :  { %9544 = vmatmul.msk.f32.gmra.mxu3 %vm197_vm1, %v4574_v12 }
 0x320   :  { %v4238_v31 = vpop.f32.mrf.mxu2  ;;  %v2903_v13 = vpop.f32.mrf.mxu0 }
 0x321   :  { %v4477_v53 = vadd.f32 %v4238_v31, %v3808_v6  ;;  %v4907_v18 = vpop.f32.mrf.mxu3  ;;  %v3572_v26 = vpop.f32.mrf.mxu1  ;;  %v3140_v14 = vadd.f32 %v2903_v13, %v10320_v34  ;;  %v2569_v34 = vld [vmem:[%s14159_s0 + $0xb3] sm:$0xff]  ;;  %v3907_v13 = vld [vmem:[%s14159_s0 + $0xc4] sm:$0xff] }
 0x323   :  { %v11530_v46 = vadd.f32 %v4907_v18, %v4477_v53  ;;  %9299 = vmatmul.msk.f32.gmra.mxu0 %vm197_vm1, %v2568_v24  ;;  %v3809_v61 = vadd.f32 %v3572_v26, %v3140_v14 }
 0x324   :  { %9381 = vmatmul.msk.f32.gmra.mxu1 %vm197_vm1, %v3904_v41  ;;  %v4576_v41 = vld [vmem:[%s14159_s0 + $0xc5] sm:$0xff] }
 0x325   :  { %9463 = vmatmul.msk.f32.gmra.mxu2 %vm197_vm1, %v3906_v36 }
 0x326   :  { %9545 = vmatmul.msk.f32.gmra.mxu3 %vm197_vm1, %v4575_v48 }
 0x328   :  { %v4241_v4 = vpop.f32.mrf.mxu2  ;;  %v2906_v6 = vpop.f32.mrf.mxu0 }
 0x329   :  { %v4478_v12 = vadd.f32 %v4241_v4, %v3809_v61  ;;  %v4910_v31 = vpop.f32.mrf.mxu3  ;;  %v3575_v53 = vpop.f32.mrf.mxu1  ;;  %v3141_v24 = vadd.f32 %v2906_v6, %v10335_v44  ;;  %v2570_v44 = vld [vmem:[%s14159_s0 + $0xbb] sm:$0xff]  ;;  %v3908_v6 = vld [vmem:[%s14159_s0 + $0xcc] sm:$0xff] }
 0x32b   :  { %v11546_v18 = vadd.f32 %v4910_v31, %v4478_v12  ;;  %9300 = vmatmul.msk.f32.gmra.mxu0 %vm197_vm1, %v2569_v34  ;;  %v3810_v26 = vadd.f32 %v3575_v53, %v3141_v24 }
 0x32c   :  { %9382 = vmatmul.msk.f32.gmra.mxu1 %vm197_vm1, %v3905_v2  ;;  %v4577_v2 = vld [vmem:[%s14159_s0 + $0xcd] sm:$0xff] }
 0x32d   :  { %9464 = vmatmul.msk.f32.gmra.mxu2 %vm197_vm1, %v3907_v13 }
 0x32e   :  { %9546 = vmatmul.msk.f32.gmra.mxu3 %vm197_vm1, %v4576_v41 }
 0x330   :  { %v4244_v14 = vpop.f32.mrf.mxu2  ;;  %v2909_v61 = vpop.f32.mrf.mxu0 }
 0x331   :  { %v4479_v48 = vadd.f32 %v4244_v14, %v3810_v26  ;;  %v4913_v4 = vpop.f32.mrf.mxu3  ;;  %v3578_v12 = vpop.f32.mrf.mxu1  ;;  %v3142_v34 = vadd.f32 %v2909_v61, %v10350_v54  ;;  %v2571_v54 = vld [vmem:[%s14159_s0 + $0xc3] sm:$0xff]  ;;  %v3909_v61 = vld [vmem:[%s14159_s0 + $0xd4] sm:$0xff] }
 0x333   :  { %v11562_v31 = vadd.f32 %v4913_v4, %v4479_v48  ;;  %9301 = vmatmul.msk.f32.gmra.mxu0 %vm197_vm1, %v2570_v44  ;;  %v3811_v53 = vadd.f32 %v3578_v12, %v3142_v34 }
 0x334   :  { %9383 = vmatmul.msk.f32.gmra.mxu1 %vm197_vm1, %v3906_v36  ;;  %v4578_v36 = vld [vmem:[%s14159_s0 + $0xd5] sm:$0xff] }
 0x335   :  { %9465 = vmatmul.msk.f32.gmra.mxu2 %vm197_vm1, %v3908_v6 }
 0x336   :  { %9547 = vmatmul.msk.f32.gmra.mxu3 %vm197_vm1, %v4577_v2 }
 0x338   :  { %v4247_v24 = vpop.f32.mrf.mxu2  ;;  %v2912_v26 = vpop.f32.mrf.mxu0 }
 0x339   :  { %v4480_v41 = vadd.f32 %v4247_v24, %v3811_v53  ;;  %v4916_v14 = vpop.f32.mrf.mxu3  ;;  %v3581_v48 = vpop.f32.mrf.mxu1  ;;  %v3143_v44 = vadd.f32 %v2912_v26, %v10365_v0  ;;  %v2572_v0 = vld [vmem:[%s14159_s0 + $0xcb] sm:$0xff]  ;;  %v3910_v26 = vld [vmem:[%s14159_s0 + $0xdc] sm:$0xff] }
 0x33b   :  { %v11578_v4 = vadd.f32 %v4916_v14, %v4480_v41  ;;  %9302 = vmatmul.msk.f32.gmra.mxu0 %vm197_vm1, %v2571_v54  ;;  %v3812_v12 = vadd.f32 %v3581_v48, %v3143_v44 }
 0x33c   :  { %9384 = vmatmul.msk.f32.gmra.mxu1 %vm197_vm1, %v3907_v13  ;;  %v4579_v13 = vld [vmem:[%s14159_s0 + $0xdd] sm:$0xff] }
 0x33d   :  { %9466 = vmatmul.msk.f32.gmra.mxu2 %vm197_vm1, %v3909_v61 }
 0x33e   :  { %9548 = vmatmul.msk.f32.gmra.mxu3 %vm197_vm1, %v4578_v36 }
 0x340   :  { %v4250_v34 = vpop.f32.mrf.mxu2  ;;  %v2915_v53 = vpop.f32.mrf.mxu0 }
 0x341   :  { %v4481_v2 = vadd.f32 %v4250_v34, %v3812_v12  ;;  %v4919_v24 = vpop.f32.mrf.mxu3  ;;  %v3584_v41 = vpop.f32.mrf.mxu1  ;;  %v3144_v54 = vadd.f32 %v2915_v53, %v10380_v11  ;;  %v2573_v11 = vld [vmem:[%s14159_s0 + $0xd3] sm:$0xff]  ;;  %v3911_v53 = vld [vmem:[%s14159_s0 + $0xe4] sm:$0xff] }
 0x343   :  { %v11594_v14 = vadd.f32 %v4919_v24, %v4481_v2  ;;  %9303 = vmatmul.msk.f32.gmra.mxu0 %vm197_vm1, %v2572_v0  ;;  %v3813_v48 = vadd.f32 %v3584_v41, %v3144_v54 }
 0x344   :  { %9385 = vmatmul.msk.f32.gmra.mxu1 %vm197_vm1, %v3908_v6  ;;  %v4580_v6 = vld [vmem:[%s14159_s0 + $0xe5] sm:$0xff] }
 0x345   :  { %9467 = vmatmul.msk.f32.gmra.mxu2 %vm197_vm1, %v3910_v26 }
 0x346   :  { %9549 = vmatmul.msk.f32.gmra.mxu3 %vm197_vm1, %v4579_v13 }
 0x348   :  { %v4253_v44 = vpop.f32.mrf.mxu2  ;;  %v2918_v12 = vpop.f32.mrf.mxu0 }
 0x349   :  { %v4482_v36 = vadd.f32 %v4253_v44, %v3813_v48  ;;  %v4922_v34 = vpop.f32.mrf.mxu3  ;;  %v3587_v2 = vpop.f32.mrf.mxu1  ;;  %v3145_v0 = vadd.f32 %v2918_v12, %v10395_v22  ;;  %v2574_v22 = vld [vmem:[%s14159_s0 + $0xdb] sm:$0xff]  ;;  %v3912_v12 = vld [vmem:[%s14159_s0 + $0xec] sm:$0xff] }
 0x34b   :  { %v11610_v24 = vadd.f32 %v4922_v34, %v4482_v36  ;;  %9304 = vmatmul.msk.f32.gmra.mxu0 %vm197_vm1, %v2573_v11  ;;  %v3814_v41 = vadd.f32 %v3587_v2, %v3145_v0 }
 0x34c   :  { %9386 = vmatmul.msk.f32.gmra.mxu1 %vm197_vm1, %v3909_v61  ;;  %v4581_v61 = vld [vmem:[%s14159_s0 + $0xed] sm:$0xff] }
 0x34d   :  { %9468 = vmatmul.msk.f32.gmra.mxu2 %vm197_vm1, %v3911_v53 }
 0x34e   :  { %9550 = vmatmul.msk.f32.gmra.mxu3 %vm197_vm1, %v4580_v6 }
 0x350   :  { %v4256_v54 = vpop.f32.mrf.mxu2  ;;  %v2921_v48 = vpop.f32.mrf.mxu0 }
 0x351   :  { %v4483_v13 = vadd.f32 %v4256_v54, %v3814_v41  ;;  %v4925_v44 = vpop.f32.mrf.mxu3  ;;  %v3590_v36 = vpop.f32.mrf.mxu1  ;;  %v3146_v11 = vadd.f32 %v2921_v48, %v10410_v33  ;;  %v2575_v33 = vld [vmem:[%s14159_s0 + $0xe3] sm:$0xff]  ;;  %v3913_v48 = vld [vmem:[%s14159_s0 + $0xf4] sm:$0xff] }
 0x353   :  { %v11626_v34 = vadd.f32 %v4925_v44, %v4483_v13  ;;  %9305 = vmatmul.msk.f32.gmra.mxu0 %vm197_vm1, %v2574_v22  ;;  %v3815_v2 = vadd.f32 %v3590_v36, %v3146_v11 }
 0x354   :  { %9387 = vmatmul.msk.f32.gmra.mxu1 %vm197_vm1, %v3910_v26  ;;  %v4582_v26 = vld [vmem:[%s14159_s0 + $0xf5] sm:$0xff] }
 0x355   :  { %9469 = vmatmul.msk.f32.gmra.mxu2 %vm197_vm1, %v3912_v12 }
 0x356   :  { %9551 = vmatmul.msk.f32.gmra.mxu3 %vm197_vm1, %v4581_v61 }
 0x358   :  { %v4259_v0 = vpop.f32.mrf.mxu2  ;;  %v2924_v41 = vpop.f32.mrf.mxu0 }
 0x359   :  { %v4484_v6 = vadd.f32 %v4259_v0, %v3815_v2  ;;  %v4928_v54 = vpop.f32.mrf.mxu3  ;;  %v3593_v13 = vpop.f32.mrf.mxu1  ;;  %v3147_v22 = vadd.f32 %v2924_v41, %v10425_v45  ;;  %v2576_v45 = vld [vmem:[%s14159_s0 + $0xeb] sm:$0xff]  ;;  %v3914_v41 = vld [vmem:[%s14159_s0 + $0xfc] sm:$0xff] }
 0x35b   :  { %v11642_v44 = vadd.f32 %v4928_v54, %v4484_v6  ;;  %9306 = vmatmul.msk.f32.gmra.mxu0 %vm197_vm1, %v2575_v33  ;;  %v3816_v36 = vadd.f32 %v3593_v13, %v3147_v22 }
 0x35c   :  { %9388 = vmatmul.msk.f32.gmra.mxu1 %vm197_vm1, %v3911_v53  ;;  %v4583_v53 = vld [vmem:[%s14159_s0 + $0xfd] sm:$0xff] }
 0x35d   :  { %9470 = vmatmul.msk.f32.gmra.mxu2 %vm197_vm1, %v3913_v48 }
 0x35e   :  { %9552 = vmatmul.msk.f32.gmra.mxu3 %vm197_vm1, %v4582_v26 }
 0x360   :  { %v4262_v11 = vpop.f32.mrf.mxu2  ;;  %v2927_v2 = vpop.f32.mrf.mxu0 }
 0x361   :  { %v4485_v61 = vadd.f32 %v4262_v11, %v3816_v36  ;;  %v4931_v0 = vpop.f32.mrf.mxu3  ;;  %v3596_v6 = vpop.f32.mrf.mxu1  ;;  %v3148_v33 = vadd.f32 %v2927_v2, %v10440_v56  ;;  %v2577_v56 = vld [vmem:[%s14159_s0 + $0xf3] sm:$0xff]  ;;  %v3915_v2 = vld [vmem:[%s14159_s0 + $0x104] sm:$0xff] }
 0x363   :  { %v11658_v54 = vadd.f32 %v4931_v0, %v4485_v61  ;;  %9307 = vmatmul.msk.f32.gmra.mxu0 %vm197_vm1, %v2576_v45  ;;  %v3817_v13 = vadd.f32 %v3596_v6, %v3148_v33 }
 0x364   :  { %9389 = vmatmul.msk.f32.gmra.mxu1 %vm197_vm1, %v3912_v12  ;;  %v4584_v12 = vld [vmem:[%s14159_s0 + $0x105] sm:$0xff] }
 0x365   :  { %9471 = vmatmul.msk.f32.gmra.mxu2 %vm197_vm1, %v3914_v41 }
 0x366   :  { %9553 = vmatmul.msk.f32.gmra.mxu3 %vm197_vm1, %v4583_v53 }
 0x368   :  { %v4265_v22 = vpop.f32.mrf.mxu2  ;;  %v2930_v36 = vpop.f32.mrf.mxu0 }
 0x369   :  { %v4486_v26 = vadd.f32 %v4265_v22, %v3817_v13  ;;  %v4934_v11 = vpop.f32.mrf.mxu3  ;;  %v3599_v61 = vpop.f32.mrf.mxu1  ;;  %v3149_v45 = vadd.f32 %v2930_v36, %v10455_v3  ;;  %v2578_v3 = vld [vmem:[%s14159_s0 + $0xfb] sm:$0xff]  ;;  %v3916_v36 = vld [vmem:[%s14159_s0 + $0x10c] sm:$0xff] }
 0x36b   :  { %v11674_v0 = vadd.f32 %v4934_v11, %v4486_v26  ;;  %9308 = vmatmul.msk.f32.gmra.mxu0 %vm197_vm1, %v2577_v56  ;;  %v3818_v6 = vadd.f32 %v3599_v61, %v3149_v45 }
 0x36c   :  { %9390 = vmatmul.msk.f32.gmra.mxu1 %vm197_vm1, %v3913_v48  ;;  %v4585_v48 = vld [vmem:[%s14159_s0 + $0x10d] sm:$0xff] }
 0x36d   :  { %9472 = vmatmul.msk.f32.gmra.mxu2 %vm197_vm1, %v3915_v2 }
 0x36e   :  { %9554 = vmatmul.msk.f32.gmra.mxu3 %vm197_vm1, %v4584_v12 }
 0x370   :  { %v4268_v33 = vpop.f32.mrf.mxu2  ;;  %v2933_v13 = vpop.f32.mrf.mxu0 }
 0x371   :  { %v4487_v53 = vadd.f32 %v4268_v33, %v3818_v6  ;;  %v4937_v22 = vpop.f32.mrf.mxu3  ;;  %v3602_v26 = vpop.f32.mrf.mxu1  ;;  %v3150_v56 = vadd.f32 %v2933_v13, %v10470_v16  ;;  %v2579_v16 = vld [vmem:[%s14159_s0 + $0x103] sm:$0xff]  ;;  %v3917_v13 = vld [vmem:[%s14159_s0 + $0x114] sm:$0xff] }
 0x373   :  { %v11690_v11 = vadd.f32 %v4937_v22, %v4487_v53  ;;  %9309 = vmatmul.msk.f32.gmra.mxu0 %vm197_vm1, %v2578_v3  ;;  %v3819_v61 = vadd.f32 %v3602_v26, %v3150_v56 }
 0x374   :  { %9391 = vmatmul.msk.f32.gmra.mxu1 %vm197_vm1, %v3914_v41  ;;  %v4586_v41 = vld [vmem:[%s14159_s0 + $0x115] sm:$0xff] }
 0x375   :  { %9473 = vmatmul.msk.f32.gmra.mxu2 %vm197_vm1, %v3916_v36 }
 0x376   :  { %9555 = vmatmul.msk.f32.gmra.mxu3 %vm197_vm1, %v4585_v48 }
 0x378   :  { %v4271_v45 = vpop.f32.mrf.mxu2  ;;  %v2936_v6 = vpop.f32.mrf.mxu0 }
 0x379   :  { %v4488_v12 = vadd.f32 %v4271_v45, %v3819_v61  ;;  %v4940_v33 = vpop.f32.mrf.mxu3  ;;  %v3605_v53 = vpop.f32.mrf.mxu1  ;;  %v3151_v3 = vadd.f32 %v2936_v6, %v10485_v28  ;;  %v2580_v28 = vld [vmem:[%s14159_s0 + $0x10b] sm:$0xff]  ;;  %v3918_v6 = vld [vmem:[%s14159_s0 + $0x11c] sm:$0xff] }
 0x37b   :  { %v11706_v22 = vadd.f32 %v4940_v33, %v4488_v12  ;;  %9310 = vmatmul.msk.f32.gmra.mxu0 %vm197_vm1, %v2579_v16  ;;  %v3820_v26 = vadd.f32 %v3605_v53, %v3151_v3 }
 0x37c   :  { %9392 = vmatmul.msk.f32.gmra.mxu1 %vm197_vm1, %v3915_v2  ;;  %v4587_v2 = vld [vmem:[%s14159_s0 + $0x11d] sm:$0xff] }
 0x37d   :  { %9474 = vmatmul.msk.f32.gmra.mxu2 %vm197_vm1, %v3917_v13 }
 0x37e   :  { %9556 = vmatmul.msk.f32.gmra.mxu3 %vm197_vm1, %v4586_v41 }
 0x380   :  { %v4274_v56 = vpop.f32.mrf.mxu2  ;;  %v2939_v61 = vpop.f32.mrf.mxu0 }
 0x381   :  { %v4489_v48 = vadd.f32 %v4274_v56, %v3820_v26  ;;  %v4943_v45 = vpop.f32.mrf.mxu3  ;;  %v3608_v12 = vpop.f32.mrf.mxu1  ;;  %v3152_v16 = vadd.f32 %v2939_v61, %v10500_v40  ;;  %v2581_v40 = vld [vmem:[%s14159_s0 + $0x113] sm:$0xff]  ;;  %v3919_v61 = vld [vmem:[%s14159_s0 + $0x124] sm:$0xff] }
 0x383   :  { %v11722_v33 = vadd.f32 %v4943_v45, %v4489_v48  ;;  %9311 = vmatmul.msk.f32.gmra.mxu0 %vm197_vm1, %v2580_v28  ;;  %v3821_v53 = vadd.f32 %v3608_v12, %v3152_v16 }
 0x384   :  { %9393 = vmatmul.msk.f32.gmra.mxu1 %vm197_vm1, %v3916_v36  ;;  %v4588_v36 = vld [vmem:[%s14159_s0 + $0x125] sm:$0xff] }
 0x385   :  { %9475 = vmatmul.msk.f32.gmra.mxu2 %vm197_vm1, %v3918_v6 }
 0x386   :  { %9557 = vmatmul.msk.f32.gmra.mxu3 %vm197_vm1, %v4587_v2 }
 0x388   :  { %v4277_v3 = vpop.f32.mrf.mxu2  ;;  %v2942_v26 = vpop.f32.mrf.mxu0 }
 0x389   :  { %v4490_v41 = vadd.f32 %v4277_v3, %v3821_v53  ;;  %v4946_v56 = vpop.f32.mrf.mxu3  ;;  %v3611_v48 = vpop.f32.mrf.mxu1  ;;  %v3153_v28 = vadd.f32 %v2942_v26, %v10515_v52  ;;  %v2582_v52 = vld [vmem:[%s14159_s0 + $0x11b] sm:$0xff]  ;;  %v3920_v26 = vld [vmem:[%s14159_s0 + $0x12c] sm:$0xff] }
 0x38b   :  { %v11738_v45 = vadd.f32 %v4946_v56, %v4490_v41  ;;  %9312 = vmatmul.msk.f32.gmra.mxu0 %vm197_vm1, %v2581_v40  ;;  %v3822_v12 = vadd.f32 %v3611_v48, %v3153_v28 }
 0x38c   :  { %9394 = vmatmul.msk.f32.gmra.mxu1 %vm197_vm1, %v3917_v13  ;;  %v4589_v13 = vld [vmem:[%s14159_s0 + $0x12d] sm:$0xff] }
 0x38d   :  { %9476 = vmatmul.msk.f32.gmra.mxu2 %vm197_vm1, %v3919_v61 }
 0x38e   :  { %9558 = vmatmul.msk.f32.gmra.mxu3 %vm197_vm1, %v4588_v36 }
 0x390   :  { %v4280_v16 = vpop.f32.mrf.mxu2  ;;  %v2945_v53 = vpop.f32.mrf.mxu0 }
 0x391   :  { %v4491_v2 = vadd.f32 %v4280_v16, %v3822_v12  ;;  %v4949_v3 = vpop.f32.mrf.mxu3  ;;  %v3614_v41 = vpop.f32.mrf.mxu1  ;;  %v3154_v40 = vadd.f32 %v2945_v53, %v10530_v1  ;;  %v2583_v1 = vld [vmem:[%s14159_s0 + $0x123] sm:$0xff]  ;;  %v3921_v53 = vld [vmem:[%s14159_s0 + $0x134] sm:$0xff] }
 0x393   :  { %v11754_v56 = vadd.f32 %v4949_v3, %v4491_v2  ;;  %9313 = vmatmul.msk.f32.gmra.mxu0 %vm197_vm1, %v2582_v52  ;;  %v3823_v48 = vadd.f32 %v3614_v41, %v3154_v40 }
 0x394   :  { %9395 = vmatmul.msk.f32.gmra.mxu1 %vm197_vm1, %v3918_v6  ;;  %v4590_v6 = vld [vmem:[%s14159_s0 + $0x135] sm:$0xff] }
 0x395   :  { %9477 = vmatmul.msk.f32.gmra.mxu2 %vm197_vm1, %v3920_v26 }
 0x396   :  { %9559 = vmatmul.msk.f32.gmra.mxu3 %vm197_vm1, %v4589_v13 }
 0x398   :  { %v4283_v28 = vpop.f32.mrf.mxu2  ;;  %v2948_v12 = vpop.f32.mrf.mxu0 }
 0x399   :  { %v4492_v36 = vadd.f32 %v4283_v28, %v3823_v48  ;;  %v4952_v16 = vpop.f32.mrf.mxu3  ;;  %v3617_v2 = vpop.f32.mrf.mxu1  ;;  %v3155_v52 = vadd.f32 %v2948_v12, %v10545_v15  ;;  %v2584_v15 = vld [vmem:[%s14159_s0 + $0x12b] sm:$0xff]  ;;  %v3922_v12 = vld [vmem:[%s14159_s0 + $0x13c] sm:$0xff] }
 0x39b   :  { %v11770_v3 = vadd.f32 %v4952_v16, %v4492_v36  ;;  %9314 = vmatmul.msk.f32.gmra.mxu0 %vm197_vm1, %v2583_v1  ;;  %v3824_v41 = vadd.f32 %v3617_v2, %v3155_v52 }
 0x39c   :  { %9396 = vmatmul.msk.f32.gmra.mxu1 %vm197_vm1, %v3919_v61  ;;  %v4591_v61 = vld [vmem:[%s14159_s0 + $0x13d] sm:$0xff] }
 0x39d   :  { %9478 = vmatmul.msk.f32.gmra.mxu2 %vm197_vm1, %v3921_v53 }
 0x39e   :  { %9560 = vmatmul.msk.f32.gmra.mxu3 %vm197_vm1, %v4590_v6 }
 0x3a0   :  { %v4286_v40 = vpop.f32.mrf.mxu2  ;;  %v2951_v48 = vpop.f32.mrf.mxu0 }
 0x3a1   :  { %v4493_v13 = vadd.f32 %v4286_v40, %v3824_v41  ;;  %v4955_v28 = vpop.f32.mrf.mxu3  ;;  %v3620_v36 = vpop.f32.mrf.mxu1  ;;  %v3156_v1 = vadd.f32 %v2951_v48, %v10560_v29  ;;  %v2585_v29 = vld [vmem:[%s14159_s0 + $0x133] sm:$0xff]  ;;  %v3923_v48 = vld [vmem:[%s14159_s0 + $0x144] sm:$0xff] }
 0x3a3   :  { %v11786_v16 = vadd.f32 %v4955_v28, %v4493_v13  ;;  %9315 = vmatmul.msk.f32.gmra.mxu0 %vm197_vm1, %v2584_v15  ;;  %v3825_v2 = vadd.f32 %v3620_v36, %v3156_v1 }
 0x3a4   :  { %9397 = vmatmul.msk.f32.gmra.mxu1 %vm197_vm1, %v3920_v26  ;;  %v4592_v26 = vld [vmem:[%s14159_s0 + $0x145] sm:$0xff] }
 0x3a5   :  { %9479 = vmatmul.msk.f32.gmra.mxu2 %vm197_vm1, %v3922_v12 }
 0x3a6   :  { %9561 = vmatmul.msk.f32.gmra.mxu3 %vm197_vm1, %v4591_v61 }
 0x3a8   :  { %v4289_v52 = vpop.f32.mrf.mxu2  ;;  %v2954_v41 = vpop.f32.mrf.mxu0 }
 0x3a9   :  { %v4494_v6 = vadd.f32 %v4289_v52, %v3825_v2  ;;  %v4958_v40 = vpop.f32.mrf.mxu3  ;;  %v3623_v13 = vpop.f32.mrf.mxu1  ;;  %v3157_v15 = vadd.f32 %v2954_v41, %v10575_v42  ;;  %v2586_v42 = vld [vmem:[%s14159_s0 + $0x13b] sm:$0xff]  ;;  %v3924_v41 = vld [vmem:[%s14159_s0 + $0x14c] sm:$0xff] }
 0x3ab   :  { %v11802_v28 = vadd.f32 %v4958_v40, %v4494_v6  ;;  %9316 = vmatmul.msk.f32.gmra.mxu0 %vm197_vm1, %v2585_v29  ;;  %v3826_v36 = vadd.f32 %v3623_v13, %v3157_v15 }
 0x3ac   :  { %9398 = vmatmul.msk.f32.gmra.mxu1 %vm197_vm1, %v3921_v53  ;;  %v4593_v53 = vld [vmem:[%s14159_s0 + $0x14d] sm:$0xff] }
 0x3ad   :  { %9480 = vmatmul.msk.f32.gmra.mxu2 %vm197_vm1, %v3923_v48 }
 0x3ae   :  { %9562 = vmatmul.msk.f32.gmra.mxu3 %vm197_vm1, %v4592_v26 }
 0x3b0   :  { %v4292_v1 = vpop.f32.mrf.mxu2  ;;  %v2957_v2 = vpop.f32.mrf.mxu0 }
 0x3b1   :  { %v4495_v61 = vadd.f32 %v4292_v1, %v3826_v36  ;;  %v4961_v52 = vpop.f32.mrf.mxu3  ;;  %v3626_v6 = vpop.f32.mrf.mxu1  ;;  %v3158_v29 = vadd.f32 %v2957_v2, %v10590_v57  ;;  %v2587_v57 = vld [vmem:[%s14159_s0 + $0x143] sm:$0xff]  ;;  %v3925_v2 = vld [vmem:[%s14159_s0 + $0x154] sm:$0xff] }
 0x3b3   :  { %v11818_v40 = vadd.f32 %v4961_v52, %v4495_v61  ;;  %9317 = vmatmul.msk.f32.gmra.mxu0 %vm197_vm1, %v2586_v42  ;;  %v3827_v13 = vadd.f32 %v3626_v6, %v3158_v29 }
 0x3b4   :  { %9399 = vmatmul.msk.f32.gmra.mxu1 %vm197_vm1, %v3922_v12  ;;  %v4594_v12 = vld [vmem:[%s14159_s0 + $0x155] sm:$0xff] }
 0x3b5   :  { %9481 = vmatmul.msk.f32.gmra.mxu2 %vm197_vm1, %v3924_v41 }
 0x3b6   :  { %9563 = vmatmul.msk.f32.gmra.mxu3 %vm197_vm1, %v4593_v53 }
 0x3b8   :  { %v4295_v15 = vpop.f32.mrf.mxu2  ;;  %v2960_v36 = vpop.f32.mrf.mxu0 }
 0x3b9   :  { %v4496_v26 = vadd.f32 %v4295_v15, %v3827_v13  ;;  %v4964_v1 = vpop.f32.mrf.mxu3  ;;  %v3629_v61 = vpop.f32.mrf.mxu1  ;;  %v3159_v42 = vadd.f32 %v2960_v36, %v10605_v7  ;;  %v2588_v7 = vld [vmem:[%s14159_s0 + $0x14b] sm:$0xff]  ;;  %v3926_v36 = vld [vmem:[%s14159_s0 + $0x15c] sm:$0xff] }
 0x3bb   :  { %v11834_v52 = vadd.f32 %v4964_v1, %v4496_v26  ;;  %9318 = vmatmul.msk.f32.gmra.mxu0 %vm197_vm1, %v2587_v57  ;;  %v3828_v6 = vadd.f32 %v3629_v61, %v3159_v42 }
 0x3bc   :  { %9400 = vmatmul.msk.f32.gmra.mxu1 %vm197_vm1, %v3923_v48  ;;  %v4595_v48 = vld [vmem:[%s14159_s0 + $0x15d] sm:$0xff] }
 0x3bd   :  { %9482 = vmatmul.msk.f32.gmra.mxu2 %vm197_vm1, %v3925_v2 }
 0x3be   :  { %9564 = vmatmul.msk.f32.gmra.mxu3 %vm197_vm1, %v4594_v12 }
 0x3c0   :  { %v4298_v29 = vpop.f32.mrf.mxu2  ;;  %v2963_v13 = vpop.f32.mrf.mxu0 }
 0x3c1   :  { %v4497_v53 = vadd.f32 %v4298_v29, %v3828_v6  ;;  %v4967_v15 = vpop.f32.mrf.mxu3  ;;  %v3632_v26 = vpop.f32.mrf.mxu1  ;;  %v3160_v57 = vadd.f32 %v2963_v13, %v10620_v21  ;;  %v2589_v21 = vld [vmem:[%s14159_s0 + $0x153] sm:$0xff]  ;;  %v3927_v13 = vld [vmem:[%s14159_s0 + $0x164] sm:$0xff] }
 0x3c3   :  { %v11850_v1 = vadd.f32 %v4967_v15, %v4497_v53  ;;  %9319 = vmatmul.msk.f32.gmra.mxu0 %vm197_vm1, %v2588_v7  ;;  %v3829_v61 = vadd.f32 %v3632_v26, %v3160_v57 }
 0x3c4   :  { %9401 = vmatmul.msk.f32.gmra.mxu1 %vm197_vm1, %v3924_v41  ;;  %v4596_v41 = vld [vmem:[%s14159_s0 + $0x165] sm:$0xff] }
 0x3c5   :  { %9483 = vmatmul.msk.f32.gmra.mxu2 %vm197_vm1, %v3926_v36 }
 0x3c6   :  { %9565 = vmatmul.msk.f32.gmra.mxu3 %vm197_vm1, %v4595_v48 }
 0x3c8   :  { %v4301_v42 = vpop.f32.mrf.mxu2  ;;  %v2966_v6 = vpop.f32.mrf.mxu0 }
 0x3c9   :  { %v4498_v12 = vadd.f32 %v4301_v42, %v3829_v61  ;;  %v4970_v29 = vpop.f32.mrf.mxu3  ;;  %v3635_v53 = vpop.f32.mrf.mxu1  ;;  %v3161_v7 = vadd.f32 %v2966_v6, %v10635_v37  ;;  %v2590_v37 = vld [vmem:[%s14159_s0 + $0x15b] sm:$0xff]  ;;  %v3928_v6 = vld [vmem:[%s14159_s0 + $0x16c] sm:$0xff] }
 0x3cb   :  { %v11866_v15 = vadd.f32 %v4970_v29, %v4498_v12  ;;  %9320 = vmatmul.msk.f32.gmra.mxu0 %vm197_vm1, %v2589_v21  ;;  %v3830_v26 = vadd.f32 %v3635_v53, %v3161_v7 }
 0x3cc   :  { %9402 = vmatmul.msk.f32.gmra.mxu1 %vm197_vm1, %v3925_v2  ;;  %v4597_v2 = vld [vmem:[%s14159_s0 + $0x16d] sm:$0xff] }
 0x3cd   :  { %9484 = vmatmul.msk.f32.gmra.mxu2 %vm197_vm1, %v3927_v13 }
 0x3ce   :  { %9566 = vmatmul.msk.f32.gmra.mxu3 %vm197_vm1, %v4596_v41 }
 0x3d0   :  { %v4304_v57 = vpop.f32.mrf.mxu2  ;;  %v2969_v61 = vpop.f32.mrf.mxu0 }
 0x3d1   :  { %v4499_v48 = vadd.f32 %v4304_v57, %v3830_v26  ;;  %v4973_v42 = vpop.f32.mrf.mxu3  ;;  %v3638_v12 = vpop.f32.mrf.mxu1  ;;  %v3162_v21 = vadd.f32 %v2969_v61, %v10650_v51  ;;  %v2591_v51 = vld [vmem:[%s14159_s0 + $0x163] sm:$0xff]  ;;  %v3929_v61 = vld [vmem:[%s14159_s0 + $0x174] sm:$0xff] }
 0x3d3   :  { %v11882_v29 = vadd.f32 %v4973_v42, %v4499_v48  ;;  %9321 = vmatmul.msk.f32.gmra.mxu0 %vm197_vm1, %v2590_v37  ;;  %v3831_v53 = vadd.f32 %v3638_v12, %v3162_v21 }
 0x3d4   :  { %9403 = vmatmul.msk.f32.gmra.mxu1 %vm197_vm1, %v3926_v36  ;;  %v4598_v36 = vld [vmem:[%s14159_s0 + $0x175] sm:$0xff] }
 0x3d5   :  { %9485 = vmatmul.msk.f32.gmra.mxu2 %vm197_vm1, %v3928_v6 }
 0x3d6   :  { %9567 = vmatmul.msk.f32.gmra.mxu3 %vm197_vm1, %v4597_v2 }
 0x3d8   :  { %v4307_v7 = vpop.f32.mrf.mxu2  ;;  %v2972_v26 = vpop.f32.mrf.mxu0 }
 0x3d9   :  { %v4500_v41 = vadd.f32 %v4307_v7, %v3831_v53  ;;  %v4976_v57 = vpop.f32.mrf.mxu3  ;;  %v3641_v48 = vpop.f32.mrf.mxu1  ;;  %v3163_v37 = vadd.f32 %v2972_v26, %v10665_v5  ;;  %v2592_v5 = vld [vmem:[%s14159_s0 + $0x16b] sm:$0xff]  ;;  %v3930_v26 = vld [vmem:[%s14159_s0 + $0x17c] sm:$0xff] }
 0x3db   :  { %v11898_v42 = vadd.f32 %v4976_v57, %v4500_v41  ;;  %9322 = vmatmul.msk.f32.gmra.mxu0 %vm197_vm1, %v2591_v51  ;;  %v3832_v12 = vadd.f32 %v3641_v48, %v3163_v37 }
 0x3dc   :  { %9404 = vmatmul.msk.f32.gmra.mxu1 %vm197_vm1, %v3927_v13  ;;  %v4599_v13 = vld [vmem:[%s14159_s0 + $0x17d] sm:$0xff] }
 0x3dd   :  { %9486 = vmatmul.msk.f32.gmra.mxu2 %vm197_vm1, %v3929_v61 }
 0x3de   :  { %9568 = vmatmul.msk.f32.gmra.mxu3 %vm197_vm1, %v4598_v36 }
 0x3e0   :  { %v4310_v21 = vpop.f32.mrf.mxu2  ;;  %v2975_v53 = vpop.f32.mrf.mxu0 }
 0x3e1   :  { %v4501_v2 = vadd.f32 %v4310_v21, %v3832_v12  ;;  %v4979_v7 = vpop.f32.mrf.mxu3  ;;  %v3644_v41 = vpop.f32.mrf.mxu1  ;;  %v3164_v51 = vadd.f32 %v2975_v53, %v10680_v20  ;;  %v2593_v20 = vld [vmem:[%s14159_s0 + $0x173] sm:$0xff]  ;;  %v3931_v53 = vld [vmem:[%s14159_s0 + $0x184] sm:$0xff] }
 0x3e3   :  { %v11914_v57 = vadd.f32 %v4979_v7, %v4501_v2  ;;  %9323 = vmatmul.msk.f32.gmra.mxu0 %vm197_vm1, %v2592_v5  ;;  %v3833_v48 = vadd.f32 %v3644_v41, %v3164_v51 }
 0x3e4   :  { %9405 = vmatmul.msk.f32.gmra.mxu1 %vm197_vm1, %v3928_v6  ;;  %v4600_v6 = vld [vmem:[%s14159_s0 + $0x185] sm:$0xff] }
 0x3e5   :  { %9487 = vmatmul.msk.f32.gmra.mxu2 %vm197_vm1, %v3930_v26 }
 0x3e6   :  { %9569 = vmatmul.msk.f32.gmra.mxu3 %vm197_vm1, %v4599_v13 }
 0x3e8   :  { %v4313_v37 = vpop.f32.mrf.mxu2  ;;  %v2978_v12 = vpop.f32.mrf.mxu0 }
 0x3e9   :  { %v4502_v36 = vadd.f32 %v4313_v37, %v3833_v48  ;;  %v4982_v21 = vpop.f32.mrf.mxu3  ;;  %v3647_v2 = vpop.f32.mrf.mxu1  ;;  %v3165_v5 = vadd.f32 %v2978_v12, %v10695_v38  ;;  %v2594_v38 = vld [vmem:[%s14159_s0 + $0x17b] sm:$0xff]  ;;  %v3932_v12 = vld [vmem:[%s14159_s0 + $0x18c] sm:$0xff] }
 0x3eb   :  { %v11930_v7 = vadd.f32 %v4982_v21, %v4502_v36  ;;  %9324 = vmatmul.msk.f32.gmra.mxu0 %vm197_vm1, %v2593_v20  ;;  %v3834_v41 = vadd.f32 %v3647_v2, %v3165_v5 }
 0x3ec   :  { %9406 = vmatmul.msk.f32.gmra.mxu1 %vm197_vm1, %v3929_v61  ;;  %v4601_v61 = vld [vmem:[%s14159_s0 + $0x18d] sm:$0xff] }
 0x3ed   :  { %9488 = vmatmul.msk.f32.gmra.mxu2 %vm197_vm1, %v3931_v53 }
 0x3ee   :  { %9570 = vmatmul.msk.f32.gmra.mxu3 %vm197_vm1, %v4600_v6 }
 0x3f0   :  { %v4316_v51 = vpop.f32.mrf.mxu2  ;;  %v2981_v48 = vpop.f32.mrf.mxu0 }
 0x3f1   :  { %v4503_v13 = vadd.f32 %v4316_v51, %v3834_v41  ;;  %v4985_v37 = vpop.f32.mrf.mxu3  ;;  %v3650_v36 = vpop.f32.mrf.mxu1  ;;  %v3166_v20 = vadd.f32 %v2981_v48, %v10710_v55  ;;  %v2595_v55 = vld [vmem:[%s14159_s0 + $0x183] sm:$0xff]  ;;  %v3933_v48 = vld [vmem:[%s14159_s0 + $0x194] sm:$0xff] }
 0x3f3   :  { %v11946_v21 = vadd.f32 %v4985_v37, %v4503_v13  ;;  %9325 = vmatmul.msk.f32.gmra.mxu0 %vm197_vm1, %v2594_v38  ;;  %v3835_v2 = vadd.f32 %v3650_v36, %v3166_v20 }
 0x3f4   :  { %9407 = vmatmul.msk.f32.gmra.mxu1 %vm197_vm1, %v3930_v26  ;;  %v4602_v26 = vld [vmem:[%s14159_s0 + $0x195] sm:$0xff] }
 0x3f5   :  { %9489 = vmatmul.msk.f32.gmra.mxu2 %vm197_vm1, %v3932_v12 }
 0x3f6   :  { %9571 = vmatmul.msk.f32.gmra.mxu3 %vm197_vm1, %v4601_v61 }
 0x3f8   :  { %v4319_v5 = vpop.f32.mrf.mxu2  ;;  %v2984_v41 = vpop.f32.mrf.mxu0 }
 0x3f9   :  { %v4504_v6 = vadd.f32 %v4319_v5, %v3835_v2  ;;  %v4988_v51 = vpop.f32.mrf.mxu3  ;;  %v3653_v13 = vpop.f32.mrf.mxu1  ;;  %v3167_v38 = vadd.f32 %v2984_v41, %v10725_v9  ;;  %v2596_v9 = vld [vmem:[%s14159_s0 + $0x18b] sm:$0xff]  ;;  %v3934_v41 = vld [vmem:[%s14159_s0 + $0x19c] sm:$0xff] }
 0x3fb   :  { %v11962_v37 = vadd.f32 %v4988_v51, %v4504_v6  ;;  %9326 = vmatmul.msk.f32.gmra.mxu0 %vm197_vm1, %v2595_v55  ;;  %v3836_v36 = vadd.f32 %v3653_v13, %v3167_v38 }
 0x3fc   :  { %9408 = vmatmul.msk.f32.gmra.mxu1 %vm197_vm1, %v3931_v53  ;;  %v4603_v53 = vld [vmem:[%s14159_s0 + $0x19d] sm:$0xff] }
 0x3fd   :  { %9490 = vmatmul.msk.f32.gmra.mxu2 %vm197_vm1, %v3933_v48 }
 0x3fe   :  { %9572 = vmatmul.msk.f32.gmra.mxu3 %vm197_vm1, %v4602_v26 }
 0x400   :  { %v4322_v20 = vpop.f32.mrf.mxu2  ;;  %v2987_v2 = vpop.f32.mrf.mxu0 }
 0x401   :  { %v4505_v61 = vadd.f32 %v4322_v20, %v3836_v36  ;;  %v4991_v5 = vpop.f32.mrf.mxu3  ;;  %v3656_v6 = vpop.f32.mrf.mxu1  ;;  %v3168_v55 = vadd.f32 %v2987_v2, %v10740_v27  ;;  %v2597_v27 = vld [vmem:[%s14159_s0 + $0x193] sm:$0xff]  ;;  %v3935_v2 = vld [vmem:[%s14159_s0 + $0x1a4] sm:$0xff] }
 0x403   :  { %v11978_v51 = vadd.f32 %v4991_v5, %v4505_v61  ;;  %9327 = vmatmul.msk.f32.gmra.mxu0 %vm197_vm1, %v2596_v9  ;;  %v3837_v13 = vadd.f32 %v3656_v6, %v3168_v55 }
 0x404   :  { %9409 = vmatmul.msk.f32.gmra.mxu1 %vm197_vm1, %v3932_v12  ;;  %v4604_v12 = vld [vmem:[%s14159_s0 + $0x1a5] sm:$0xff] }
 0x405   :  { %9491 = vmatmul.msk.f32.gmra.mxu2 %vm197_vm1, %v3934_v41 }
 0x406   :  { %9573 = vmatmul.msk.f32.gmra.mxu3 %vm197_vm1, %v4603_v53 }
 0x408   :  { %v4325_v38 = vpop.f32.mrf.mxu2  ;;  %v2990_v36 = vpop.f32.mrf.mxu0 }
 0x409   :  { %v4506_v26 = vadd.f32 %v4325_v38, %v3837_v13  ;;  %v4994_v20 = vpop.f32.mrf.mxu3  ;;  %v3659_v61 = vpop.f32.mrf.mxu1  ;;  %v3169_v9 = vadd.f32 %v2990_v36, %v10755_v47  ;;  %v2598_v47 = vld [vmem:[%s14159_s0 + $0x19b] sm:$0xff]  ;;  %v3936_v36 = vld [vmem:[%s14159_s0 + $0x1ac] sm:$0xff] }
 0x40b   :  { %v11994_v5 = vadd.f32 %v4994_v20, %v4506_v26  ;;  %9328 = vmatmul.msk.f32.gmra.mxu0 %vm197_vm1, %v2597_v27  ;;  %v3838_v6 = vadd.f32 %v3659_v61, %v3169_v9 }
 0x40c   :  { %9410 = vmatmul.msk.f32.gmra.mxu1 %vm197_vm1, %v3933_v48  ;;  %v4605_v48 = vld [vmem:[%s14159_s0 + $0x1ad] sm:$0xff] }
 0x40d   :  { %9492 = vmatmul.msk.f32.gmra.mxu2 %vm197_vm1, %v3935_v2 }
 0x40e   :  { %9574 = vmatmul.msk.f32.gmra.mxu3 %vm197_vm1, %v4604_v12 }
 0x410   :  { %v4328_v55 = vpop.f32.mrf.mxu2  ;;  %v2993_v13 = vpop.f32.mrf.mxu0 }
 0x411   :  { %v4507_v53 = vadd.f32 %v4328_v55, %v3838_v6  ;;  %v4997_v38 = vpop.f32.mrf.mxu3  ;;  %v3662_v26 = vpop.f32.mrf.mxu1  ;;  %v3170_v27 = vadd.f32 %v2993_v13, %v10770_v63  ;;  %v2599_v63 = vld [vmem:[%s14159_s0 + $0x1a3] sm:$0xff]  ;;  %v3937_v13 = vld [vmem:[%s14159_s0 + $0x1b4] sm:$0xff] }
 0x413   :  { %v12010_v20 = vadd.f32 %v4997_v38, %v4507_v53  ;;  %9329 = vmatmul.msk.f32.gmra.mxu0 %vm197_vm1, %v2598_v47  ;;  %v3839_v61 = vadd.f32 %v3662_v26, %v3170_v27 }
 0x414   :  { %9411 = vmatmul.msk.f32.gmra.mxu1 %vm197_vm1, %v3934_v41  ;;  %v4606_v41 = vld [vmem:[%s14159_s0 + $0x1b5] sm:$0xff] }
 0x415   :  { %9493 = vmatmul.msk.f32.gmra.mxu2 %vm197_vm1, %v3936_v36 }
 0x416   :  { %9575 = vmatmul.msk.f32.gmra.mxu3 %vm197_vm1, %v4605_v48 }
 0x418   :  { %v4331_v9 = vpop.f32.mrf.mxu2  ;;  %v2996_v6 = vpop.f32.mrf.mxu0 }
 0x419   :  { %v4508_v12 = vadd.f32 %v4331_v9, %v3839_v61  ;;  %v5000_v55 = vpop.f32.mrf.mxu3  ;;  %v3665_v53 = vpop.f32.mrf.mxu1  ;;  %v3171_v47 = vadd.f32 %v2996_v6, %v10785_v23  ;;  %v2600_v23 = vld [vmem:[%s14159_s0 + $0x1ab] sm:$0xff]  ;;  %v3938_v6 = vld [vmem:[%s14159_s0 + $0x1bc] sm:$0xff] }
 0x41b   :  { %v12026_v38 = vadd.f32 %v5000_v55, %v4508_v12  ;;  %9330 = vmatmul.msk.f32.gmra.mxu0 %vm197_vm1, %v2599_v63  ;;  %v3840_v26 = vadd.f32 %v3665_v53, %v3171_v47 }
 0x41c   :  { %9412 = vmatmul.msk.f32.gmra.mxu1 %vm197_vm1, %v3935_v2  ;;  %v4607_v2 = vld [vmem:[%s14159_s0 + $0x1bd] sm:$0xff] }
 0x41d   :  { %9494 = vmatmul.msk.f32.gmra.mxu2 %vm197_vm1, %v3937_v13 }
 0x41e   :  { %9576 = vmatmul.msk.f32.gmra.mxu3 %vm197_vm1, %v4606_v41 }
 0x420   :  { %v4334_v27 = vpop.f32.mrf.mxu2  ;;  %v2999_v61 = vpop.f32.mrf.mxu0 }
 0x421   :  { %v4509_v48 = vadd.f32 %v4334_v27, %v3840_v26  ;;  %v5003_v9 = vpop.f32.mrf.mxu3  ;;  %v3668_v12 = vpop.f32.mrf.mxu1  ;;  %v3172_v63 = vadd.f32 %v2999_v61, %v10800_v43  ;;  %v2601_v43 = vld [vmem:[%s14159_s0 + $0x1b3] sm:$0xff]  ;;  %v3939_v61 = vld [vmem:[%s14159_s0 + $0x1c4] sm:$0xff] }
 0x423   :  { %v12042_v55 = vadd.f32 %v5003_v9, %v4509_v48  ;;  %9331 = vmatmul.msk.f32.gmra.mxu0 %vm197_vm1, %v2600_v23  ;;  %v3841_v53 = vadd.f32 %v3668_v12, %v3172_v63  ;;  %v2602_v63 = vld [vmem:[%s14159_s0 + $0x1bb] sm:$0xff] }
 0x424   :  { %9413 = vmatmul.msk.f32.gmra.mxu1 %vm197_vm1, %v3936_v36  ;;  %v4608_v36 = vld [vmem:[%s14159_s0 + $0x1c5] sm:$0xff] }
 0x425   :  { %9495 = vmatmul.msk.f32.gmra.mxu2 %vm197_vm1, %v3938_v6 }
 0x426   :  { %9577 = vmatmul.msk.f32.gmra.mxu3 %vm197_vm1, %v4607_v2 }
 0x428   :  { %v4337_v47 = vpop.f32.mrf.mxu2  ;;  %v3002_v26 = vpop.f32.mrf.mxu0 }
 0x429   :  { %v4510_v41 = vadd.f32 %v4337_v47, %v3841_v53  ;;  %v5006_v27 = vpop.f32.mrf.mxu3  ;;  %v3671_v48 = vpop.f32.mrf.mxu1  ;;  %v3940_v47 = vld [vmem:[%s14159_s0 + $0x1cc] sm:$0xff] }
 0x42b   :  { %v12057_v23 = vadd.f32 %v5006_v27, %v4510_v41  ;;  %9332 = vmatmul.msk.f32.gmra.mxu0 %vm197_vm1, %v2601_v43  ;;  %v2603_v43 = vld [vmem:[%s14159_s0 + $0x1c3] sm:$0xff] }
 0x42c   :  { %9414 = vmatmul.msk.f32.gmra.mxu1 %vm197_vm1, %v3937_v13  ;;  %v4609_v13 = vld [vmem:[%s14159_s0 + $0x1cd] sm:$0xff] }
 0x42d   :  { %9496 = vmatmul.msk.f32.gmra.mxu2 %vm197_vm1, %v3939_v61 }
 0x42e   :  { %9578 = vmatmul.msk.f32.gmra.mxu3 %vm197_vm1, %v4608_v36  ;;  %v3941_v36 = vld [vmem:[%s14159_s0 + $0x1d4] sm:$0xff] }
 0x430   :  { %v4340_v9 = vpop.f32.mrf.mxu2  ;;  %v3005_v12 = vpop.f32.mrf.mxu0 }
 0x431   :  { %v5009_v2 = vpop.f32.mrf.mxu3  ;;  %v3674_v53 = vpop.f32.mrf.mxu1 }
 0x433   :  { %9333 = vmatmul.msk.f32.gmra.mxu0 %vm197_vm1, %v2602_v63  ;;  %v2604_v63 = vld [vmem:[%s14159_s0 + $0x1cb] sm:$0xff] }
 0x434   :  { %9415 = vmatmul.msk.f32.gmra.mxu1 %vm197_vm1, %v3938_v6  ;;  %v4610_v6 = vld [vmem:[%s14159_s0 + $0x1d5] sm:$0xff] }
 0x435   :  { %9497 = vmatmul.msk.f32.gmra.mxu2 %vm197_vm1, %v3940_v47 }
 0x436   :  { %9579 = vmatmul.msk.f32.gmra.mxu3 %vm197_vm1, %v4609_v13  ;;  %v3942_v13 = vld [vmem:[%s14159_s0 + $0x1dc] sm:$0xff] }
 0x438   :  { %v4343_v41 = vpop.f32.mrf.mxu2  ;;  %v3008_v26 = vpop.f32.mrf.mxu0 }
 0x439   :  { %v5012_v27 = vpop.f32.mrf.mxu3  ;;  %v3677_v48 = vpop.f32.mrf.mxu1 }
 0x43b   :  { %9334 = vmatmul.msk.f32.gmra.mxu0 %vm197_vm1, %v2603_v43  ;;  %v2605_v43 = vld [vmem:[%s14159_s0 + $0x1d3] sm:$0xff] }
 0x43c   :  { %9416 = vmatmul.msk.f32.gmra.mxu1 %vm197_vm1, %v3939_v61  ;;  %v4611_v61 = vld [vmem:[%s14159_s0 + $0x1dd] sm:$0xff] }
 0x43d   :  { %9498 = vmatmul.msk.f32.gmra.mxu2 %vm197_vm1, %v3941_v36 }
 0x43e   :  { %9580 = vmatmul.msk.f32.gmra.mxu3 %vm197_vm1, %v4610_v6  ;;  %v3943_v6 = vld [vmem:[%s14159_s0 + $0x1e4] sm:$0xff] }
 0x440   :  { %v4346_v9 = vpop.f32.mrf.mxu2  ;;  %v3011_v12 = vpop.f32.mrf.mxu0 }
 0x441   :  { %v5015_v2 = vpop.f32.mrf.mxu3  ;;  %v3680_v53 = vpop.f32.mrf.mxu1 }
 0x443   :  { %9335 = vmatmul.msk.f32.gmra.mxu0 %vm197_vm1, %v2604_v63 }
 0x444   :  { %9417 = vmatmul.msk.f32.gmra.mxu1 %vm197_vm1, %v3940_v47  ;;  %v4612_v47 = vld [vmem:[%s14159_s0 + $0x1e5] sm:$0xff] }
 0x445   :  { %9499 = vmatmul.msk.f32.gmra.mxu2 %vm197_vm1, %v3942_v13 }
 0x446   :  { %9581 = vmatmul.msk.f32.gmra.mxu3 %vm197_vm1, %v4611_v61 }
 0x448   :  { %v4349_v41 = vpop.f32.mrf.mxu2  ;;  %v3014_v26 = vpop.f32.mrf.mxu0 }
 0x449   :  { %v5018_v27 = vpop.f32.mrf.mxu3  ;;  %v3683_v48 = vpop.f32.mrf.mxu1  ;;  %v3177_v9 = vadd.f32 %v3014_v26, %v10867_v62  ;;  %v2606_v62 = vld [vmem:[%s14159_s0 + $0x1db] sm:$0xff]  ;;  %v3944_v26 = vld [vmem:[%s14159_s0 + $0x1ec] sm:$0xff] }
 0x44b   :  { %9336 = vmatmul.msk.f32.gmra.mxu0 %vm197_vm1, %v2605_v43  ;;  %v3846_v12 = vadd.f32 %v3683_v48, %v3177_v9 }
 0x44c   :  { %9418 = vmatmul.msk.f32.gmra.mxu1 %vm197_vm1, %v3941_v36  ;;  %v4613_v36 = vld [vmem:[%s14159_s0 + $0x1ed] sm:$0xff] }
 0x44d   :  { %9500 = vmatmul.msk.f32.gmra.mxu2 %vm197_vm1, %v3943_v6 }
 0x44e   :  { %9582 = vmatmul.msk.f32.gmra.mxu3 %vm197_vm1, %v4612_v47 }
 0x450   :  { %v4352_v63 = vpop.f32.mrf.mxu2  ;;  %v3017_v53 = vpop.f32.mrf.mxu0 }
 0x451   :  { %v4515_v2 = vadd.f32 %v4352_v63, %v3846_v12  ;;  %v5021_v61 = vpop.f32.mrf.mxu3  ;;  %v3686_v41 = vpop.f32.mrf.mxu1  ;;  %v3178_v43 = vadd.f32 %v3017_v53, %v10882_v25  ;;  %v2607_v25 = vld [vmem:[%s14159_s0 + $0x1e3] sm:$0xff]  ;;  %v3945_v53 = vld [vmem:[%s14159_s0 + $0x1f4] sm:$0xff] }
 0x453   :  { %v12126_v27 = vadd.f32 %v5021_v61, %v4515_v2  ;;  %9337 = vmatmul.msk.f32.gmra.mxu0 %vm197_vm1, %v2606_v62  ;;  %v3847_v48 = vadd.f32 %v3686_v41, %v3178_v43 }
 0x454   :  { %9419 = vmatmul.msk.f32.gmra.mxu1 %vm197_vm1, %v3942_v13  ;;  %v4614_v13 = vld [vmem:[%s14159_s0 + $0x1f5] sm:$0xff] }
 0x455   :  { %9501 = vmatmul.msk.f32.gmra.mxu2 %vm197_vm1, %v3944_v26 }
 0x456   :  { %9583 = vmatmul.msk.f32.gmra.mxu3 %vm197_vm1, %v4613_v36 }
 0x458   :  { %v4355_v9 = vpop.f32.mrf.mxu2  ;;  %v3020_v12 = vpop.f32.mrf.mxu0 }
 0x459   :  { %v4516_v47 = vadd.f32 %v4355_v9, %v3847_v48  ;;  %v5024_v63 = vpop.f32.mrf.mxu3  ;;  %v3689_v2 = vpop.f32.mrf.mxu1  ;;  %v3179_v62 = vadd.f32 %v3020_v12, %v10897_v49  ;;  %v2608_v49 = vld [vmem:[%s14159_s0 + $0x1eb] sm:$0xff]  ;;  %v3946_v12 = vld [vmem:[%s14159_s0 + $0x1fc] sm:$0xff] }
 0x45b   :  { %v12142_v61 = vadd.f32 %v5024_v63, %v4516_v47  ;;  %9338 = vmatmul.msk.f32.gmra.mxu0 %vm197_vm1, %v2607_v25  ;;  %v3848_v41 = vadd.f32 %v3689_v2, %v3179_v62 }
 0x45c   :  { %9420 = vmatmul.msk.f32.gmra.mxu1 %vm197_vm1, %v3943_v6  ;;  %v4615_v6 = vld [vmem:[%s14159_s0 + $0x1fd] sm:$0xff] }
 0x45d   :  { %9502 = vmatmul.msk.f32.gmra.mxu2 %vm197_vm1, %v3945_v53 }
 0x45e   :  { %9584 = vmatmul.msk.f32.gmra.mxu3 %vm197_vm1, %v4614_v13 }
 0x460   :  { %v4358_v43 = vpop.f32.mrf.mxu2  ;;  %v3023_v48 = vpop.f32.mrf.mxu0 }
 0x461   :  { %v4517_v36 = vadd.f32 %v4358_v43, %v3848_v41  ;;  %v5027_v9 = vpop.f32.mrf.mxu3  ;;  %v3692_v47 = vpop.f32.mrf.mxu1  ;;  %v3180_v25 = vadd.f32 %v3023_v48, %v10912_v10  ;;  %v2609_v10 = vld [vmem:[%s14159_s0 + $0x1f3] sm:$0xff]  ;;  %v3947_v48 = vld [vmem:[%s14159_s0 + $0x204] sm:$0xff] }
 0x463   :  { %v12158_v63 = vadd.f32 %v5027_v9, %v4517_v36  ;;  %9339 = vmatmul.msk.f32.gmra.mxu0 %vm197_vm1, %v2608_v49  ;;  %v3849_v2 = vadd.f32 %v3692_v47, %v3180_v25 }
 0x464   :  { %9421 = vmatmul.msk.f32.gmra.mxu1 %vm197_vm1, %v3944_v26  ;;  %v4616_v26 = vld [vmem:[%s14159_s0 + $0x205] sm:$0xff] }
 0x465   :  { %9503 = vmatmul.msk.f32.gmra.mxu2 %vm197_vm1, %v3946_v12 }
 0x466   :  { %9585 = vmatmul.msk.f32.gmra.mxu3 %vm197_vm1, %v4615_v6 }
 0x468   :  { %v4361_v62 = vpop.f32.mrf.mxu2  ;;  %v3026_v41 = vpop.f32.mrf.mxu0 }
 0x469   :  { %v4518_v13 = vadd.f32 %v4361_v62, %v3849_v2  ;;  %v5030_v43 = vpop.f32.mrf.mxu3  ;;  %v3695_v36 = vpop.f32.mrf.mxu1  ;;  %v3181_v49 = vadd.f32 %v3026_v41, %v10927_v35  ;;  %v2610_v35 = vld [vmem:[%s14159_s0 + $0x1fb] sm:$0xff]  ;;  %v3948_v41 = vld [vmem:[%s14159_s0 + $0x20c] sm:$0xff] }
 0x46b   :  { %v12174_v9 = vadd.f32 %v5030_v43, %v4518_v13  ;;  %9340 = vmatmul.msk.f32.gmra.mxu0 %vm197_vm1, %v2609_v10  ;;  %v3850_v47 = vadd.f32 %v3695_v36, %v3181_v49 }
 0x46c   :  { %9422 = vmatmul.msk.f32.gmra.mxu1 %vm197_vm1, %v3945_v53  ;;  %v4617_v53 = vld [vmem:[%s14159_s0 + $0x20d] sm:$0xff] }
 0x46d   :  { %9504 = vmatmul.msk.f32.gmra.mxu2 %vm197_vm1, %v3947_v48 }
 0x46e   :  { %9586 = vmatmul.msk.f32.gmra.mxu3 %vm197_vm1, %v4616_v26 }
 0x470   :  { %v4364_v25 = vpop.f32.mrf.mxu2  ;;  %v3029_v2 = vpop.f32.mrf.mxu0 }
 0x471   :  { %v4519_v6 = vadd.f32 %v4364_v25, %v3850_v47  ;;  %v5033_v62 = vpop.f32.mrf.mxu3  ;;  %v3698_v13 = vpop.f32.mrf.mxu1  ;;  %v3182_v10 = vadd.f32 %v3029_v2, %v10942_v60  ;;  %v2611_v60 = vld [vmem:[%s14159_s0 + $0x203] sm:$0xff]  ;;  %v3949_v2 = vld [vmem:[%s14159_s0 + $0x214] sm:$0xff] }
 0x473   :  { %v12190_v43 = vadd.f32 %v5033_v62, %v4519_v6  ;;  %9341 = vmatmul.msk.f32.gmra.mxu0 %vm197_vm1, %v2610_v35  ;;  %v3851_v36 = vadd.f32 %v3698_v13, %v3182_v10 }
 0x474   :  { %9423 = vmatmul.msk.f32.gmra.mxu1 %vm197_vm1, %v3946_v12  ;;  %v4618_v12 = vld [vmem:[%s14159_s0 + $0x215] sm:$0xff] }
 0x475   :  { %9505 = vmatmul.msk.f32.gmra.mxu2 %vm197_vm1, %v3948_v41 }
 0x476   :  { %9587 = vmatmul.msk.f32.gmra.mxu3 %vm197_vm1, %v4617_v53 }
 0x478   :  { %v4367_v49 = vpop.f32.mrf.mxu2  ;;  %v3032_v47 = vpop.f32.mrf.mxu0 }
 0x479   :  { %v4520_v26 = vadd.f32 %v4367_v49, %v3851_v36  ;;  %v5036_v25 = vpop.f32.mrf.mxu3  ;;  %v3701_v6 = vpop.f32.mrf.mxu1  ;;  %v3183_v35 = vadd.f32 %v3032_v47, %v10957_v30  ;;  %v2612_v30 = vld [vmem:[%s14159_s0 + $0x20b] sm:$0xff]  ;;  %v3950_v47 = vld [vmem:[%s14159_s0 + $0x21c] sm:$0xff] }
 0x47b   :  { %v12206_v62 = vadd.f32 %v5036_v25, %v4520_v26  ;;  %9342 = vmatmul.msk.f32.gmra.mxu0 %vm197_vm1, %v2611_v60  ;;  %v3852_v13 = vadd.f32 %v3701_v6, %v3183_v35 }
 0x47c   :  { %9424 = vmatmul.msk.f32.gmra.mxu1 %vm197_vm1, %v3947_v48  ;;  %v4619_v48 = vld [vmem:[%s14159_s0 + $0x21d] sm:$0xff] }
 0x47d   :  { %9506 = vmatmul.msk.f32.gmra.mxu2 %vm197_vm1, %v3949_v2 }
 0x47e   :  { %9588 = vmatmul.msk.f32.gmra.mxu3 %vm197_vm1, %v4618_v12 }
 0x480   :  { %v4370_v10 = vpop.f32.mrf.mxu2  ;;  %v3035_v36 = vpop.f32.mrf.mxu0 }
 0x481   :  { %v4521_v53 = vadd.f32 %v4370_v10, %v3852_v13  ;;  %v5039_v49 = vpop.f32.mrf.mxu3  ;;  %v3704_v26 = vpop.f32.mrf.mxu1  ;;  %v3184_v60 = vadd.f32 %v3035_v36, %v10972_v58  ;;  %v2613_v58 = vld [vmem:[%s14159_s0 + $0x213] sm:$0xff]  ;;  %v3951_v36 = vld [vmem:[%s14159_s0 + $0x224] sm:$0xff] }
 0x483   :  { %v12222_v25 = vadd.f32 %v5039_v49, %v4521_v53  ;;  %9343 = vmatmul.msk.f32.gmra.mxu0 %vm197_vm1, %v2612_v30  ;;  %v3853_v6 = vadd.f32 %v3704_v26, %v3184_v60 }
 0x484   :  { %9425 = vmatmul.msk.f32.gmra.mxu1 %vm197_vm1, %v3948_v41  ;;  %v4620_v41 = vld [vmem:[%s14159_s0 + $0x225] sm:$0xff] }
 0x485   :  { %9507 = vmatmul.msk.f32.gmra.mxu2 %vm197_vm1, %v3950_v47 }
 0x486   :  { %9589 = vmatmul.msk.f32.gmra.mxu3 %vm197_vm1, %v4619_v48 }
 0x488   :  { %v4373_v35 = vpop.f32.mrf.mxu2  ;;  %v3038_v13 = vpop.f32.mrf.mxu0 }
 0x489   :  { %v4522_v12 = vadd.f32 %v4373_v35, %v3853_v6  ;;  %v5042_v10 = vpop.f32.mrf.mxu3  ;;  %v3707_v53 = vpop.f32.mrf.mxu1  ;;  %v3185_v30 = vadd.f32 %v3038_v13, %v10987_v19  ;;  %v2614_v19 = vld [vmem:[%s14159_s0 + $0x21b] sm:$0xff]  ;;  %v3952_v13 = vld [vmem:[%s14159_s0 + $0x22c] sm:$0xff] }
 0x48b   :  { %v12238_v49 = vadd.f32 %v5042_v10, %v4522_v12  ;;  %9344 = vmatmul.msk.f32.gmra.mxu0 %vm197_vm1, %v2613_v58  ;;  %v3854_v26 = vadd.f32 %v3707_v53, %v3185_v30 }
 0x48c   :  { %9426 = vmatmul.msk.f32.gmra.mxu1 %vm197_vm1, %v3949_v2  ;;  %v4621_v2 = vld [vmem:[%s14159_s0 + $0x22d] sm:$0xff] }
 0x48d   :  { %9508 = vmatmul.msk.f32.gmra.mxu2 %vm197_vm1, %v3951_v36 }
 0x48e   :  { %9590 = vmatmul.msk.f32.gmra.mxu3 %vm197_vm1, %v4620_v41 }
 0x490   :  { %v4376_v60 = vpop.f32.mrf.mxu2  ;;  %v3041_v6 = vpop.f32.mrf.mxu0 }
 0x491   :  { %v4523_v48 = vadd.f32 %v4376_v60, %v3854_v26  ;;  %v5045_v35 = vpop.f32.mrf.mxu3  ;;  %v3710_v12 = vpop.f32.mrf.mxu1  ;;  %v3186_v58 = vadd.f32 %v3041_v6, %v11002_v59  ;;  %v2615_v59 = vld [vmem:[%s14159_s0 + $0x223] sm:$0xff]  ;;  %v3953_v6 = vld [vmem:[%s14159_s0 + $0x234] sm:$0xff] }
 0x493   :  { %v12254_v10 = vadd.f32 %v5045_v35, %v4523_v48  ;;  %9345 = vmatmul.msk.f32.gmra.mxu0 %vm197_vm1, %v2614_v19  ;;  %v3855_v53 = vadd.f32 %v3710_v12, %v3186_v58 }
 0x494   :  { %9427 = vmatmul.msk.f32.gmra.mxu1 %vm197_vm1, %v3950_v47  ;;  %v4622_v47 = vld [vmem:[%s14159_s0 + $0x235] sm:$0xff] }
 0x495   :  { %9509 = vmatmul.msk.f32.gmra.mxu2 %vm197_vm1, %v3952_v13 }
 0x496   :  { %9591 = vmatmul.msk.f32.gmra.mxu3 %vm197_vm1, %v4621_v2 }
 0x498   :  { %v4379_v30 = vpop.f32.mrf.mxu2  ;;  %v3044_v26 = vpop.f32.mrf.mxu0 }
 0x499   :  { %v4524_v41 = vadd.f32 %v4379_v30, %v3855_v53  ;;  %v5048_v60 = vpop.f32.mrf.mxu3  ;;  %v3713_v48 = vpop.f32.mrf.mxu1  ;;  %v3187_v19 = vadd.f32 %v3044_v26, %v11017_v32  ;;  %v2616_v32 = vld [vmem:[%s14159_s0 + $0x22b] sm:$0xff]  ;;  %v3954_v26 = vld [vmem:[%s14159_s0 + $0x23c] sm:$0xff] }
 0x49b   :  { %v12270_v35 = vadd.f32 %v5048_v60, %v4524_v41  ;;  %9346 = vmatmul.msk.f32.gmra.mxu0 %vm197_vm1, %v2615_v59  ;;  %v3856_v12 = vadd.f32 %v3713_v48, %v3187_v19 }
 0x49c   :  { %9428 = vmatmul.msk.f32.gmra.mxu1 %vm197_vm1, %v3951_v36  ;;  %v4623_v36 = vld [vmem:[%s14159_s0 + $0x23d] sm:$0xff] }
 0x49d   :  { %9510 = vmatmul.msk.f32.gmra.mxu2 %vm197_vm1, %v3953_v6 }
 0x49e   :  { %9592 = vmatmul.msk.f32.gmra.mxu3 %vm197_vm1, %v4622_v47 }
 0x4a0   :  { %v4382_v58 = vpop.f32.mrf.mxu2  ;;  %v3047_v53 = vpop.f32.mrf.mxu0 }
 0x4a1   :  { %v4525_v2 = vadd.f32 %v4382_v58, %v3856_v12  ;;  %v5051_v30 = vpop.f32.mrf.mxu3  ;;  %v3716_v41 = vpop.f32.mrf.mxu1  ;;  %v3188_v59 = vadd.f32 %v3047_v53, %v11032_v8  ;;  %v2617_v8 = vld [vmem:[%s14159_s0 + $0x233] sm:$0xff]  ;;  %v3955_v53 = vld [vmem:[%s14159_s0 + $0x244] sm:$0xff] }
 0x4a3   :  { %v12286_v60 = vadd.f32 %v5051_v30, %v4525_v2  ;;  %9347 = vmatmul.msk.f32.gmra.mxu0 %vm197_vm1, %v2616_v32  ;;  %v3857_v48 = vadd.f32 %v3716_v41, %v3188_v59 }
 0x4a4   :  { %9429 = vmatmul.msk.f32.gmra.mxu1 %vm197_vm1, %v3952_v13  ;;  %v4624_v13 = vld [vmem:[%s14159_s0 + $0x245] sm:$0xff] }
 0x4a5   :  { %9511 = vmatmul.msk.f32.gmra.mxu2 %vm197_vm1, %v3954_v26 }
 0x4a6   :  { %9593 = vmatmul.msk.f32.gmra.mxu3 %vm197_vm1, %v4623_v36 }
 0x4a8   :  { %v4385_v19 = vpop.f32.mrf.mxu2  ;;  %v3050_v12 = vpop.f32.mrf.mxu0 }
 0x4a9   :  { %v4526_v47 = vadd.f32 %v4385_v19, %v3857_v48  ;;  %v5054_v58 = vpop.f32.mrf.mxu3  ;;  %v3719_v2 = vpop.f32.mrf.mxu1  ;;  %v3189_v32 = vadd.f32 %v3050_v12, %v11047_v50  ;;  %v2618_v50 = vld [vmem:[%s14159_s0 + $0x23b] sm:$0xff]  ;;  %v3956_v12 = vld [vmem:[%s14159_s0 + $0x24c] sm:$0xff] }
 0x4ab   :  { %v12302_v30 = vadd.f32 %v5054_v58, %v4526_v47  ;;  %9348 = vmatmul.msk.f32.gmra.mxu0 %vm197_vm1, %v2617_v8  ;;  %v3858_v41 = vadd.f32 %v3719_v2, %v3189_v32  ;;  %v14203_v8 = vld [vmem:[#allocation9_spill] sm:$0xff]  ;;  %v6387_v2 = vld [vmem:[%s14162_s3] sm:$0xff] }
 0x4ac   :  { %9430 = vmatmul.msk.f32.gmra.mxu1 %vm197_vm1, %v3953_v6  ;;  %v4625_v6 = vld [vmem:[%s14159_s0 + $0x24d] sm:$0xff]  ;;  %6671 = vmatpush.msra.mxu2 %v6387_v2  ;;  %v4626_v2 = vld [vmem:[%s14159_s0 + $0x255] sm:$0xff] }
 0x4ad   :  { %14202 = vst [vmem:[#allocation33_spill] sm:$0xff] %v12302_v30  ;;  %9512 = vmatmul.msk.f32.gmra.mxu2 %vm197_vm1, %v3955_v53 }
 0x4ae   :  { %9594 = vmatmul.msk.f32.gmra.mxu3 %vm197_vm1, %v4624_v13  ;;  %v6773_v13 = vld [vmem:[%s14162_s3 + $0x10] sm:$0xff] }
 0x4af   :  { %6864 = vmatpush.msra.mxu3 %v6773_v13 }
 0x4b0   :  { %v4388_v59 = vpop.f32.mrf.mxu2  ;;  %v3053_v48 = vpop.f32.mrf.mxu0 }
 0x4b1   :  { %v4527_v36 = vadd.f32 %v4388_v59, %v3858_v41  ;;  %v5057_v19 = vpop.f32.mrf.mxu3  ;;  %v3722_v47 = vpop.f32.mrf.mxu1  ;;  %v3190_v58 = vadd.f32 %v3053_v48, %v14203_v8  ;;  %v6413_v48 = vld [vmem:[%s14162_s3 + $0x8] sm:$0xff]  ;;  %v14205_v8 = vld [vmem:[#allocation10_spill] sm:$0xff] }
 0x4b2   :  { %6504 = vmatpush.msra.mxu1 %v6413_v48 }
 0x4b3   :  { %v12318_v30 = vadd.f32 %v5057_v19, %v4527_v36  ;;  %9349 = vmatmul.msk.f32.gmra.mxu0 %vm197_vm1, %v2618_v50  ;;  %v3859_v32 = vadd.f32 %v3722_v47, %v3190_v58  ;;  %v3957_v47 = vld [vmem:[%s14159_s0 + $0x254] sm:$0xff] }
 0x4b4   :  { %9431 = vmatmul.msk.f32.gmra.mxu1 %vm197_vm1, %v3954_v26  ;;  %v2619_v26 = vld [vmem:[%s14159_s0 + $0x243] sm:$0xff] }
 0x4b5   :  { %14204 = vst [vmem:[#allocation9_spill] sm:$0xff] %v12318_v30  ;;  %9513 = vmatmul.msk.f32.gmra.mxu2 %vm197_vm1, %v3956_v12 }
 0x4b6   :  { %9595 = vmatmul.msk.f32.gmra.mxu3 %vm197_vm1, %v4625_v6 }
 0x4b8   :  { %v4391_v41 = vpop.f32.mrf.mxu2  ;;  %v3056_v36 = vpop.f32.mrf.mxu0 }
 0x4b9   :  { %v4528_v59 = vadd.f32 %v4391_v41, %v3859_v32  ;;  %v5060_v50 = vpop.f32.mrf.mxu3  ;;  %v3725_v19 = vpop.f32.mrf.mxu1  ;;  %v3191_v58 = vadd.f32 %v3056_v36, %v14205_v8  ;;  %v14207_v8 = vld [vmem:[#allocation11_spill] sm:$0xff] }
 0x4bb   :  { %v12343_v6 = vadd.f32 %v5060_v50, %v4528_v59  ;;  %9350 = vmatmul.msk.f32.gmra.mxu0 %vm197_vm1, %v2619_v26  ;;  %v3860_v32 = vadd.f32 %v3725_v19, %v3191_v58  ;;  %v2620_v59 = vld [vmem:[%s14159_s0 + $0x24b] sm:$0xff]  ;;  %v3958_v50 = vld [vmem:[%s14159_s0 + $0x25c] sm:$0xff] }
 0x4bc   :  { %9432 = vmatmul.msk.f32.gmra.mxu1 %vm197_vm1, %v3955_v53  ;;  %v4627_v53 = vld [vmem:[%s14159_s0 + $0x25d] sm:$0xff] }
 0x4bd   :  { %14206 = vst [vmem:[#allocation10_spill] sm:$0xff] %v12343_v6  ;;  %9514 = vmatmul.msk.f32.gmra.mxu2 %vm197_vm1, %v3957_v47 }
 0x4be   :  { %9596 = vmatmul.msk.f32.gmra.mxu3 %vm197_vm1, %v4626_v2 }
 0x4c0   :  { %v4394_v13 = vpop.f32.mrf.mxu2  ;;  %v3059_v48 = vpop.f32.mrf.mxu0 }
 0x4c1   :  { %v4529_v41 = vadd.f32 %v4394_v13, %v3860_v32  ;;  %v5063_v36 = vpop.f32.mrf.mxu3  ;;  %v3728_v26 = vpop.f32.mrf.mxu1  ;;  %v3192_v6 = vadd.f32 %v3059_v48, %v14207_v8  ;;  %v2621_v13 = vld [vmem:[%s14159_s0 + $0x253] sm:$0xff]  ;;  %v3959_v48 = vld [vmem:[%s14159_s0 + $0x264] sm:$0xff] }
 0x4c3   :  { %v12359_v30 = vadd.f32 %v5063_v36, %v4529_v41  ;;  %9351 = vmatmul.msk.f32.gmra.mxu0 %vm197_vm1, %v2620_v59  ;;  %v3861_v19 = vadd.f32 %v3728_v26, %v3192_v6  ;;  %v14208_v59 = vld [vmem:[#allocation12_spill] sm:$0xff] }
 0x4c4   :  { %9433 = vmatmul.msk.f32.gmra.mxu1 %vm197_vm1, %v3956_v12  ;;  %v4628_v6 = vld [vmem:[%s14159_s0 + $0x265] sm:$0xff] }
 0x4c5   :  { %9515 = vmatmul.msk.f32.gmra.mxu2 %vm197_vm1, %v3958_v50 }
 0x4c6   :  { %9597 = vmatmul.msk.f32.gmra.mxu3 %vm197_vm1, %v4627_v53 }
 0x4c8   :  { %v4397_v58 = vpop.f32.mrf.mxu2  ;;  %v3062_v32 = vpop.f32.mrf.mxu0 }
 0x4c9   :  { %v4530_v2 = vadd.f32 %v4397_v58, %v3861_v19  ;;  %v5066_v41 = vpop.f32.mrf.mxu3  ;;  %v3193_v36 = vadd.f32 %v3062_v32, %v14208_v59  ;;  %v3731_v12 = vpop.f32.mrf.mxu1 }
 0x4cb   :  { %v12375_v8 = vadd.f32 %v5066_v41, %v4530_v2  ;;  %9352 = vmatmul.msk.f32.gmra.mxu0 %vm197_vm1, %v2621_v13  ;;  %v3862_v26 = vadd.f32 %v3731_v12, %v3193_v36  ;;  %v2622_v2 = vld [vmem:[%s14159_s0 + $0x25b] sm:$0xff]  ;;  %v3960_v13 = vld [vmem:[%s14159_s0 + $0x26c] sm:$0xff]  ;;  %v2623_v36 = vld [vmem:[%s14159_s0 + $0x263] sm:$0xff] }
 0x4cc   :  { %9434 = vmatmul.msk.f32.gmra.mxu1 %vm197_vm1, %v3957_v47  ;;  %v4629_v47 = vld [vmem:[%s14159_s0 + $0x26d] sm:$0xff] }
 0x4cd   :  { %9516 = vmatmul.msk.f32.gmra.mxu2 %vm197_vm1, %v3959_v48  ;;  %v3961_v12 = vld [vmem:[%s14159_s0 + $0x274] sm:$0xff] }
 0x4ce   :  { %9598 = vmatmul.msk.f32.gmra.mxu3 %vm197_vm1, %v4628_v6  ;;  %v4630_v6 = vld [vmem:[%s14159_s0 + $0x275] sm:$0xff] }
 0x4d0   :  { %v4400_v53 = vpop.f32.mrf.mxu2  ;;  %v12384_v58 = vpop.f32.mrf.mxu0 }
 0x4d1   :  { %v4531_v19 = vadd.f32 %v4400_v53, %v3862_v26  ;;  %v5069_v32 = vpop.f32.mrf.mxu3  ;;  %v2624_v26 = vld [vmem:[%s14159_s0 + $0x26b] sm:$0xff]  ;;  %v3962_v53 = vld [vmem:[%s14159_s0 + $0x27c] sm:$0xff] }
 0x4d3   :  { %v12392_v41 = vadd.f32 %v5069_v32, %v4531_v19  ;;  %9353 = vmatmul.msk.f32.gmra.mxu0 %vm197_vm1, %v2622_v2  ;;  %v4631_v19 = vld [vmem:[%s14159_s0 + $0x27d] sm:$0xff]  ;;  %v2625_v2 = vld [vmem:[%s14159_s0 + $0x273] sm:$0xff] }
 0x4d4   :  { %9435 = vmatmul.msk.f32.gmra.mxu1 %vm197_vm1, %v3958_v50  ;;  %v3963_v32 = vld [vmem:[%s14159_s0 + $0x284] sm:$0xff] }
 0x4d5   :  { %9517 = vmatmul.msk.f32.gmra.mxu2 %vm197_vm1, %v3960_v13 }
 0x4d6   :  { %9599 = vmatmul.msk.f32.gmra.mxu3 %vm197_vm1, %v4629_v47  ;;  %v4632_v47 = vld [vmem:[%s14159_s0 + $0x285] sm:$0xff] }
 0x4d8   :  { %v12401_v59 = vpop.f32.mrf.mxu0 }
 0x4db   :  { %9354 = vmatmul.msk.f32.gmra.mxu0 %vm197_vm1, %v2623_v36  ;;  %v2626_v36 = vld [vmem:[%s14159_s0 + $0x27b] sm:$0xff] }
 0x4dc   :  { %9436 = vmatmul.msk.f32.gmra.mxu1 %vm197_vm1, %v3959_v48 }
 0x4dd   :  { %9518 = vmatmul.msk.f32.gmra.mxu2 %vm197_vm1, %v3961_v12 }
 0x4de   :  { %9600 = vmatmul.msk.f32.gmra.mxu3 %vm197_vm1, %v4630_v6  ;;  %v3964_v6 = vld [vmem:[%s14159_s0 + $0x28c] sm:$0xff] }
 0x4e0   :  { %v12416_v50 = vpop.f32.mrf.mxu0 }
 0x4e1   :  { %14209 = vst [vmem:[#allocation11_spill] sm:$0xff] %v12416_v50 }
 0x4e3   :  { %9355 = vmatmul.msk.f32.gmra.mxu0 %vm197_vm1, %v2624_v26  ;;  %v4633_v26 = vld [vmem:[%s14159_s0 + $0x28d] sm:$0xff] }
 0x4e4   :  { %9437 = vmatmul.msk.f32.gmra.mxu1 %vm197_vm1, %v3960_v13 }
 0x4e5   :  { %9519 = vmatmul.msk.f32.gmra.mxu2 %vm197_vm1, %v3962_v53 }
 0x4e6   :  { %9601 = vmatmul.msk.f32.gmra.mxu3 %vm197_vm1, %v4631_v19  ;;  %v2627_v19 = vld [vmem:[%s14159_s0 + $0x283] sm:$0xff] }
 0x4e8   :  { %v12431_v48 = vpop.f32.mrf.mxu0 }
 0x4e9   :  { %14210 = vst [vmem:[#allocation12_spill] sm:$0xff] %v12431_v48 }
 0x4eb   :  { %9356 = vmatmul.msk.f32.gmra.mxu0 %vm197_vm1, %v2625_v2  ;;  %v3965_v2 = vld [vmem:[%s14159_s0 + $0x294] sm:$0xff] }
 0x4ec   :  { %9438 = vmatmul.msk.f32.gmra.mxu1 %vm197_vm1, %v3961_v12 }
 0x4ed   :  { %9520 = vmatmul.msk.f32.gmra.mxu2 %vm197_vm1, %v3963_v32 }
 0x4ee   :  { %9602 = vmatmul.msk.f32.gmra.mxu3 %vm197_vm1, %v4632_v47  ;;  %v4634_v47 = vld [vmem:[%s14159_s0 + $0x295] sm:$0xff] }
 0x4f0   :  { %v12446_v13 = vpop.f32.mrf.mxu0 }
 0x4f1   :  { %14211 = vst [vmem:[#allocation34_spill] sm:$0xff] %v12446_v13 }
 0x4f3   :  { %9357 = vmatmul.msk.f32.gmra.mxu0 %vm197_vm1, %v2626_v36  ;;  %v2628_v36 = vld [vmem:[%s14159_s0 + $0x28b] sm:$0xff] }
 0x4f4   :  { %9439 = vmatmul.msk.f32.gmra.mxu1 %vm197_vm1, %v3962_v53 }
 0x4f5   :  { %9521 = vmatmul.msk.f32.gmra.mxu2 %vm197_vm1, %v3964_v6 }
 0x4f6   :  { %9603 = vmatmul.msk.f32.gmra.mxu3 %vm197_vm1, %v4633_v26  ;;  %v3966_v26 = vld [vmem:[%s14159_s0 + $0x29c] sm:$0xff] }
 0x4f8   :  { %v12461_v12 = vpop.f32.mrf.mxu0 }
 0x4f9   :  { %14212 = vst [vmem:[#allocation35_spill] sm:$0xff] %v12461_v12 }
 0x4fb   :  { %9358 = vmatmul.msk.f32.gmra.mxu0 %vm197_vm1, %v2627_v19  ;;  %v4635_v19 = vld [vmem:[%s14159_s0 + $0x29d] sm:$0xff] }
 0x4fc   :  { %9440 = vmatmul.msk.f32.gmra.mxu1 %vm197_vm1, %v3963_v32 }
 0x4fd   :  { %9522 = vmatmul.msk.f32.gmra.mxu2 %vm197_vm1, %v3965_v2 }
 0x4fe   :  { %9604 = vmatmul.msk.f32.gmra.mxu3 %vm197_vm1, %v4634_v47  ;;  %v2629_v47 = vld [vmem:[%s14159_s0 + $0x293] sm:$0xff] }
 0x500   :  { %v12476_v53 = vpop.f32.mrf.mxu0 }
 0x501   :  { %14213 = vst [vmem:[#allocation36_spill] sm:$0xff] %v12476_v53  ;;  %v5242_v53 = vld [vmem:[%s14159_s0 + $0xae] sm:$0xff] }
 0x503   :  { %9359 = vmatmul.msk.f32.gmra.mxu0 %vm197_vm1, %v2628_v36  ;;  %v3967_v36 = vld [vmem:[%s14159_s0 + $0x2a4] sm:$0xff] }
 0x504   :  { %9441 = vmatmul.msk.f32.gmra.mxu1 %vm197_vm1, %v3964_v6 }
 0x505   :  { %9523 = vmatmul.msk.f32.gmra.mxu2 %vm197_vm1, %v3966_v26  ;;  %v4636_v26 = vld [vmem:[%s14159_s0 + $0x2a5] sm:$0xff] }
 0x506   :  { %9605 = vmatmul.msk.f32.gmra.mxu3 %vm197_vm1, %v4635_v19  ;;  %v5225_v19 = vld [vmem:[%s14159_s0 + $0x26] sm:$0xff] }
 0x508   :  { %v12491_v32 = vpop.f32.mrf.mxu0 }
 0x509   :  { %14214 = vst [vmem:[#allocation37_spill] sm:$0xff] %v12491_v32 }
 0x50b   :  { %9360 = vmatmul.msk.f32.gmra.mxu0 %vm197_vm1, %v2629_v47  ;;  %v5226_v47 = vld [vmem:[%s14159_s0 + $0x2e] sm:$0xff] }
 0x50c   :  { %9442 = vmatmul.msk.f32.gmra.mxu1 %vm197_vm1, %v3965_v2  ;;  %v5227_v2 = vld [vmem:[%s14159_s0 + $0x36] sm:$0xff] }
 0x50d   :  { %9524 = vmatmul.msk.f32.gmra.mxu2 %vm197_vm1, %v3967_v36 }
 0x50e   :  { %9606 = vmatmul.msk.f32.gmra.mxu3 %vm197_vm1, %v4636_v26 }
 0x510   :  { %v12506_v6 = vpop.f32.mrf.mxu0 }
 0x511   :  { %14215 = vst [vmem:[#allocation38_spill] sm:$0xff] %v12506_v6  ;;  %v5239_v6 = vld [vmem:[%s14159_s0 + $0x96] sm:$0xff] }
 0x513   :  { %9608 = vmatmul.msk.f32.vlgmr.msra.gmra.mxu0 %vm197_vm1, %v5225_v19  ;;  %v5228_v19 = vld [vmem:[%s14159_s0 + $0x3e] sm:$0xff] }
 0x518   :  { %v12512_v32 = vpop.f32.mrf.mxu0 }
 0x519   :  { %14216 = vst [vmem:[#allocation39_spill] sm:$0xff] %v12512_v32 }
 0x51b   :  { %9609 = vmatmul.msk.f32.gmra.mxu0 %vm197_vm1, %v5226_v47  ;;  %v5229_v47 = vld [vmem:[%s14159_s0 + $0x46] sm:$0xff] }
 0x520   :  { %v12518_v36 = vpop.f32.mrf.mxu0 }
 0x521   :  { %14217 = vst [vmem:[#allocation40_spill] sm:$0xff] %v12518_v36 }
 0x523   :  { %9610 = vmatmul.msk.f32.gmra.mxu0 %vm197_vm1, %v5227_v2  ;;  %v5230_v2 = vld [vmem:[%s14159_s0 + $0x4e] sm:$0xff] }
 0x528   :  { %v12524_v26 = vpop.f32.mrf.mxu0 }
 0x529   :  { %14218 = vst [vmem:[#allocation41_spill] sm:$0xff] %v12524_v26 }
 0x52b   :  { %9611 = vmatmul.msk.f32.gmra.mxu0 %vm197_vm1, %v5228_v19  ;;  %v5231_v19 = vld [vmem:[%s14159_s0 + $0x56] sm:$0xff] }
 0x530   :  { %v12530_v32 = vpop.f32.mrf.mxu0 }
 0x531   :  { %14219 = vst [vmem:[#allocation42_spill] sm:$0xff] %v12530_v32 }
 0x533   :  { %9612 = vmatmul.msk.f32.gmra.mxu0 %vm197_vm1, %v5229_v47  ;;  %v5232_v47 = vld [vmem:[%s14159_s0 + $0x5e] sm:$0xff] }
 0x538   :  { %v12536_v36 = vpop.f32.mrf.mxu0 }
 0x539   :  { %14220 = vst [vmem:[#allocation43_spill] sm:$0xff] %v12536_v36 }
 0x53b   :  { %9613 = vmatmul.msk.f32.gmra.mxu0 %vm197_vm1, %v5230_v2  ;;  %v5233_v2 = vld [vmem:[%s14159_s0 + $0x66] sm:$0xff] }
 0x540   :  { %v12542_v26 = vpop.f32.mrf.mxu0 }
 0x541   :  { %14221 = vst [vmem:[#allocation44_spill] sm:$0xff] %v12542_v26 }
 0x543   :  { %9614 = vmatmul.msk.f32.gmra.mxu0 %vm197_vm1, %v5231_v19  ;;  %v5234_v19 = vld [vmem:[%s14159_s0 + $0x6e] sm:$0xff] }
 0x548   :  { %v12548_v32 = vpop.f32.mrf.mxu0 }
 0x549   :  { %14222 = vst [vmem:[#allocation45_spill] sm:$0xff] %v12548_v32 }
 0x54b   :  { %9615 = vmatmul.msk.f32.gmra.mxu0 %vm197_vm1, %v5232_v47  ;;  %v5235_v47 = vld [vmem:[%s14159_s0 + $0x76] sm:$0xff] }
 0x550   :  { %v12554_v36 = vpop.f32.mrf.mxu0 }
 0x551   :  { %14223 = vst [vmem:[#allocation46_spill] sm:$0xff] %v12554_v36 }
 0x553   :  { %9616 = vmatmul.msk.f32.gmra.mxu0 %vm197_vm1, %v5233_v2  ;;  %v5236_v2 = vld [vmem:[%s14159_s0 + $0x7e] sm:$0xff] }
 0x558   :  { %v12560_v26 = vpop.f32.mrf.mxu0 }
 0x559   :  { %14224 = vst [vmem:[#allocation47_spill] sm:$0xff] %v12560_v26 }
 0x55b   :  { %9617 = vmatmul.msk.f32.gmra.mxu0 %vm197_vm1, %v5234_v19  ;;  %v5237_v19 = vld [vmem:[%s14159_s0 + $0x86] sm:$0xff] }
 0x560   :  { %v12566_v32 = vpop.f32.mrf.mxu0 }
 0x561   :  { %14225 = vst [vmem:[#allocation48_spill] sm:$0xff] %v12566_v32 }
 0x563   :  { %9618 = vmatmul.msk.f32.gmra.mxu0 %vm197_vm1, %v5235_v47  ;;  %v5238_v47 = vld [vmem:[%s14159_s0 + $0x8e] sm:$0xff] }
 0x568   :  { %v12572_v36 = vpop.f32.mrf.mxu0 }
 0x569   :  { %14226 = vst [vmem:[#allocation49_spill] sm:$0xff] %v12572_v36 }
 0x56b   :  { %9619 = vmatmul.msk.f32.gmra.mxu0 %vm197_vm1, %v5236_v2  ;;  %v5240_v2 = vld [vmem:[%s14159_s0 + $0x9e] sm:$0xff] }
 0x570   :  { %v3125_v26 = vpop.f32.mrf.mxu0 }
 0x573   :  { %9620 = vmatmul.msk.f32.gmra.mxu0 %vm197_vm1, %v5237_v19 }
 0x578   :  { %v3128_v32 = vpop.f32.mrf.mxu0 }
 0x579   :  { %v12597_v32 = vld [vmem:[%s14161_s2] ss:$0 sm:$0xff] }
 0x57b   :  { %9621 = vmatmul.msk.f32.gmra.mxu0 %vm197_vm1, %v5238_v47 }
 0x580   :  { %v3131_v36 = vpop.f32.mrf.mxu0 }
 0x581   :  { %v5241_v36 = vld [vmem:[%s14159_s0 + $0xa6] sm:$0xff] }
 0x583   :  { %9622 = vmatmul.msk.f32.gmra.mxu0 %vm197_vm1, %v5239_v6 }
 0x588   :  { %v3134_v26 = vpop.f32.mrf.mxu0 }
 0x58b   :  { %9623 = vmatmul.msk.f32.gmra.mxu0 %vm197_vm1, %v5240_v2 }
 0x590   :  { %v5570_v19 = vpop.f32.mrf.mxu0 }
 0x591   :  { %v5813_v47 = vadd.f32 %v5570_v19, %v11498_v39  ;;  %v14169_v39 = vmov 0.0  }
 0x592   :  { %6142 = vst.msk [vmem:[#allocation3] sm:$0xff] %vm6060_vm2, %v14169_v39 }
 0x593   :  { %v5898_v6 = vadd.f32 %v12597_v32, %v5813_v47  ;;  %9624 = vmatmul.msk.f32.gmra.mxu0 %vm197_vm1, %v5241_v36  ;;  %6143 = vst.msk [vmem:[#allocation3 + $0x8] sm:$0xff] %vm6060_vm2, %v14169_v39  ;;  %v12633_v47 = vpop.f32.mrf.mxu2 }
 0x594   :  { %6144 = vst.msk [vmem:[#allocation3 + $0x10] sm:$0xff] %vm6060_vm2, %v14169_v39 }
 0x595   :  { %v5979_v26 = vmax.f32 %v5898_v6, 0.0  ;;  %6145 = vst.msk [vmem:[#allocation3 + $0x18] sm:$0xff] %vm6060_vm2, %v14169_v39 }
 0x596   :  { %6146 = vst.msk [vmem:[#allocation3 + $0x20] sm:$0xff] %vm6060_vm2, %v14169_v39 }
 0x597   :  { %6061 = vst.msk [vmem:[#allocation2] sm:$0xff] %vm6060_vm2, %v5979_v26  ;;  %v12638_v26 = vpop.f32.mrf.mxu1 }
 0x598   :  { %v5573_v2 = vpop.f32.mrf.mxu0  ;;  %6147 = vst.msk [vmem:[#allocation3 + $0x28] sm:$0xff] %vm6060_vm2, %v14169_v39 }
 0x599   :  { %v5814_v12 = vadd.f32 %v5573_v2, %v11514_v17  ;;  %v5243_v17 = vld [vmem:[%s14159_s0 + $0xb6] sm:$0xff]  ;;  %6148 = vst.msk [vmem:[#allocation3 + $0x30] sm:$0xff] %vm6060_vm2, %v14169_v39  ;;  %v12640_v2 = vpop.f32.mrf.mxu3 }
 0x59a   :  { %v6388_v6 = vld [vmem:[#allocation3 + $0x1] sm:$0xff]  ;;  %6149 = vst.msk [vmem:[#allocation3 + $0x38] sm:$0xff] %vm6060_vm2, %v14169_v39 }
 0x59b   :  { %v5899_v13 = vadd.f32 %v12597_v32, %v5814_v12  ;;  %9625 = vmatmul.msk.f32.gmra.mxu0 %vm197_vm1, %v5242_v53  ;;  %v6362_v53 = vld [vmem:[#allocation3] sm:$0xff]  ;;  %14227 = vst [vmem:[#allocation50_spill] sm:$0xff] %v12640_v2  ;;  %9689 = vmatmul.msk.f32.vlgmr.msra.gmra.mxu1 %vm6060_vm2, %v6388_v6 }
 0x59c   :  { %9714 = vmatmul.msk.f32.vlgmr.msra.gmra.mxu2 %vm6060_vm2, %v6362_v53  ;;  %6150 = vst.msk [vmem:[#allocation3 + $0x40] sm:$0xff] %vm6060_vm2, %v14169_v39  ;;  %v5245_v6 = vld [vmem:[%s14159_s0 + $0xc6] sm:$0xff] }
 0x59d   :  { %v5980_v19 = vmax.f32 %v5899_v13, 0.0  ;;  %6151 = vst.msk [vmem:[#allocation3 + $0x48] sm:$0xff] %vm6060_vm2, %v14169_v39 }
 0x59e   :  { %6152 = vst.msk [vmem:[#allocation3 + $0x50] sm:$0xff] %vm6060_vm2, %v14169_v39 }
 0x59f   :  { %6062 = vst.msk [vmem:[#allocation2 + $0x8] sm:$0xff] %vm6060_vm2, %v5980_v19 }
 0x5a0   :  { %v5576_v36 = vpop.f32.mrf.mxu0  ;;  %6153 = vst.msk [vmem:[#allocation3 + $0x58] sm:$0xff] %vm6060_vm2, %v14169_v39 }
 0x5a1   :  { %v5815_v12 = vadd.f32 %v5576_v36, %v11530_v46  ;;  %v6748_v46 = vld [vmem:[#allocation3 + $0x2] sm:$0xff]  ;;  %6154 = vst.msk [vmem:[#allocation3 + $0x60] sm:$0xff] %vm6060_vm2, %v14169_v39 }
 0x5a2   :  { %9739 = vmatmul.msk.f32.vlgmr.msra.gmra.mxu3 %vm6060_vm2, %v6748_v46  ;;  %6155 = vst.msk [vmem:[#allocation3 + $0x68] sm:$0xff] %vm6060_vm2, %v14169_v39 }
 0x5a3   :  { %v5900_v13 = vadd.f32 %v12597_v32, %v5815_v12  ;;  %9626 = vmatmul.msk.f32.gmra.mxu0 %vm197_vm1, %v5243_v17  ;;  %v5244_v17 = vld [vmem:[%s14159_s0 + $0xbe] sm:$0xff]  ;;  %6156 = vst.msk [vmem:[#allocation3 + $0x70] sm:$0xff] %vm6060_vm2, %v14169_v39 }
 0x5a4   :  { %6157 = vst.msk [vmem:[#allocation3 + $0x78] sm:$0xff] %vm6060_vm2, %v14169_v39 }
 0x5a5   :  { %v5981_v19 = vmax.f32 %v5900_v13, 0.0  ;;  %6158 = vst.msk [vmem:[#allocation3 + $0x80] sm:$0xff] %vm6060_vm2, %v14169_v39 }
 0x5a6   :  { %6159 = vst.msk [vmem:[#allocation3 + $0x88] sm:$0xff] %vm6060_vm2, %v14169_v39 }
 0x5a7   :  { %6063 = vst.msk [vmem:[#allocation2 + $0x10] sm:$0xff] %vm6060_vm2, %v5981_v19 }
 0x5a8   :  { %v5579_v36 = vpop.f32.mrf.mxu0  ;;  %6160 = vst.msk [vmem:[#allocation3 + $0x90] sm:$0xff] %vm6060_vm2, %v14169_v39 }
 0x5a9   :  { %v5816_v12 = vadd.f32 %v5579_v36, %v11546_v18  ;;  %6161 = vst.msk [vmem:[#allocation3 + $0x98] sm:$0xff] %vm6060_vm2, %v14169_v39 }
 0x5aa   :  { %6162 = vst.msk [vmem:[#allocation3 + $0xa0] sm:$0xff] %vm6060_vm2, %v14169_v39 }
 0x5ab   :  { %v5901_v13 = vadd.f32 %v12597_v32, %v5816_v12  ;;  %9627 = vmatmul.msk.f32.gmra.mxu0 %vm197_vm1, %v5244_v17  ;;  %6163 = vst.msk [vmem:[#allocation3 + $0xa8] sm:$0xff] %vm6060_vm2, %v14169_v39  ;;  %v5246_v17 = vld [vmem:[%s14159_s0 + $0xce] sm:$0xff] }
 0x5ac   :  { %6164 = vst.msk [vmem:[#allocation3 + $0xb0] sm:$0xff] %vm6060_vm2, %v14169_v39 }
 0x5ad   :  { %v5982_v53 = vmax.f32 %v5901_v13, 0.0  ;;  %6165 = vst.msk [vmem:[#allocation3 + $0xb8] sm:$0xff] %vm6060_vm2, %v14169_v39  ;;  %v6171_v13 = vld [vmem:[#allocation2] ss:$2 sm:$0xff] }
 0x5ae   :  { %6166 = vst.msk [vmem:[#allocation3 + $0xc0] sm:$0xff] %vm6060_vm2, %v14169_v39 }
 0x5af   :  { %6064 = vst.msk [vmem:[#allocation2 + $0x18] sm:$0xff] %vm6060_vm2, %v5982_v53  ;;  %v6173_v53 = vld [vmem:[#allocation2 + $0x1] ss:$2 sm:$0xff] }
 0x5b0   :  { %v5582_v18 = vpop.f32.mrf.mxu0  ;;  %6167 = vst.msk [vmem:[#allocation3 + $0xc8] sm:$0xff] %vm6060_vm2, %v14169_v39 }
 0x5b1   :  { %v5817_v46 = vadd.f32 %v5582_v18, %v11562_v31  ;;  %6168 = vst.msk [vmem:[#allocation3 + $0xd0] sm:$0xff] %vm6060_vm2, %v14169_v39 }
 0x5b3   :  { %v5902_v19 = vadd.f32 %v12597_v32, %v5817_v46  ;;  %9628 = vmatmul.msk.f32.gmra.mxu0 %vm197_vm1, %v5245_v6  ;;  %v6174_v6 = vmax.f32 %v6171_v13, %v6173_v53  ;;  %v5248_v13 = vld [vmem:[%s14159_s0 + $0xde] sm:$0xff] }
 0x5b5   :  { %v5983_v36 = vmax.f32 %v5902_v19, 0.0 }
 0x5b7   :  { %6065 = vst.msk [vmem:[#allocation2 + $0x20] sm:$0xff] %vm6060_vm2, %v5983_v36 }
 0x5b8   :  { %v5585_v31 = vpop.f32.mrf.mxu0 }
 0x5b9   :  { %v5818_v12 = vadd.f32 %v5585_v31, %v11578_v4  ;;  %v5247_v31 = vld [vmem:[%s14159_s0 + $0xd6] sm:$0xff] }
 0x5bb   :  { %v5903_v18 = vadd.f32 %v12597_v32, %v5818_v12  ;;  %9629 = vmatmul.msk.f32.gmra.mxu0 %vm197_vm1, %v5246_v17 }
 0x5bd   :  { %v5984_v46 = vmax.f32 %v5903_v18, 0.0 }
 0x5be   :  { %v6176_v19 = vld [vmem:[#allocation2 + $0x12] ss:$2 sm:$0xff]  ;;  %v6179_v48 = vld [vmem:[#allocation2 + $0x13] ss:$2 sm:$0xff] }
 0x5bf   :  { %v6177_v36 = vmax.f32 %v6174_v6, %v6176_v19  ;;  %6066 = vst.msk [vmem:[#allocation2 + $0x28] sm:$0xff] %vm6060_vm2, %v5984_v46  ;;  %v5249_v19 = vld [vmem:[%s14159_s0 + $0xe6] sm:$0xff] }
 0x5c0   :  { %v5588_v4 = vpop.f32.mrf.mxu0 }
 0x5c1   :  { %v6180_v50 = vmax.f32 %v6177_v36, %v6179_v48  ;;  %v5819_v2 = vadd.f32 %v5588_v4, %v11594_v14  ;;  %v12716_v14 = vpop.f32.mrf.mxu1 }
 0x5c3   :  { %v5904_v39 = vadd.f32 %v12597_v32, %v5819_v2  ;;  %9630 = vmatmul.msk.f32.gmra.mxu0 %vm197_vm1, %v5247_v31  ;;  %6181 = vst.msk [vmem:[#allocation3 + $0xb] sm:$0xff] %vm6060_vm2, %v6180_v50  ;;  %v12721_v50 = vpop.f32.mrf.mxu2 }
 0x5c5   :  { %v5985_v17 = vmax.f32 %v5904_v39, 0.0  ;;  %v12723_v39 = vpop.f32.mrf.mxu3 }
 0x5c7   :  { %6067 = vst.msk [vmem:[#allocation2 + $0x30] sm:$0xff] %vm6060_vm2, %v5985_v17 }
 0x5c8   :  { %v5591_v12 = vpop.f32.mrf.mxu0 }
 0x5c9   :  { %v5820_v53 = vadd.f32 %v5591_v12, %v11610_v24  ;;  %v5250_v12 = vld [vmem:[%s14159_s0 + $0xee] sm:$0xff] }
 0x5ca   :  { %v6389_v18 = vld [vmem:[#allocation3 + $0x9] sm:$0xff] }
 0x5cb   :  { %v6363_v48 = vld [vmem:[#allocation3 + $0x8] sm:$0xff]  ;;  %v5905_v2 = vadd.f32 %v12597_v32, %v5820_v53  ;;  %9631 = vmatmul.msk.f32.gmra.mxu0 %vm197_vm1, %v5248_v13  ;;  %9690 = vmatmul.msk.f32.gmra.mxu1 %vm6060_vm2, %v6389_v18 }
 0x5cc   :  { %v6749_v6 = vld [vmem:[#allocation3 + $0xa] sm:$0xff]  ;;  %9715 = vmatmul.msk.f32.gmra.mxu2 %vm6060_vm2, %v6363_v48 }
 0x5cd   :  { %9740 = vmatmul.msk.f32.gmra.mxu3 %vm6060_vm2, %v6749_v6  ;;  %v5986_v24 = vmax.f32 %v5905_v2, 0.0 }
 0x5ce   :  { %v6183_v53 = vld [vmem:[#allocation2 + $0x24] ss:$2 sm:$0xff]  ;;  %v6185_v18 = vld [vmem:[#allocation2 + $0x25] ss:$2 sm:$0xff] }
 0x5cf   :  { %6068 = vst.msk [vmem:[#allocation2 + $0x38] sm:$0xff] %vm6060_vm2, %v5986_v24 }
 0x5d0   :  { %v5594_v46 = vpop.f32.mrf.mxu0 }
 0x5d1   :  { %v5821_v36 = vadd.f32 %v5594_v46, %v11626_v34  ;;  %v6186_v34 = vmax.f32 %v6183_v53, %v6185_v18 }
 0x5d3   :  { %v5906_v4 = vadd.f32 %v12597_v32, %v5821_v36  ;;  %9632 = vmatmul.msk.f32.gmra.mxu0 %vm197_vm1, %v5249_v19  ;;  %v5251_v36 = vld [vmem:[%s14159_s0 + $0xf6] sm:$0xff] }
 0x5d5   :  { %v5987_v31 = vmax.f32 %v5906_v4, 0.0 }
 0x5d7   :  { %6069 = vst.msk [vmem:[#allocation2 + $0x40] sm:$0xff] %vm6060_vm2, %v5987_v31 }
 0x5d8   :  { %v5597_v17 = vpop.f32.mrf.mxu0 }
 0x5d9   :  { %v5822_v13 = vadd.f32 %v5597_v17, %v11642_v44 }
 0x5db   :  { %v5907_v48 = vadd.f32 %v12597_v32, %v5822_v13  ;;  %9633 = vmatmul.msk.f32.gmra.mxu0 %vm197_vm1, %v5250_v12  ;;  %v5252_v13 = vld [vmem:[%s14159_s0 + $0xfe] sm:$0xff] }
 0x5dd   :  { %v5988_v6 = vmax.f32 %v5907_v48, 0.0 }
 0x5de   :  { %v6188_v2 = vld [vmem:[#allocation2 + $0x36] ss:$2 sm:$0xff]  ;;  %v6191_v46 = vld [vmem:[#allocation2 + $0x37] ss:$2 sm:$0xff] }
 0x5df   :  { %v6189_v24 = vmax.f32 %v6186_v34, %v6188_v2  ;;  %6070 = vst.msk [vmem:[#allocation2 + $0x48] sm:$0xff] %vm6060_vm2, %v5988_v6  ;;  %v12759_v2 = vpop.f32.mrf.mxu2 }
 0x5e0   :  { %v5600_v19 = vpop.f32.mrf.mxu0 }
 0x5e1   :  { %v6192_v4 = vmax.f32 %v6189_v24, %v6191_v46  ;;  %v5823_v44 = vadd.f32 %v5600_v19, %v11658_v54  ;;  %v12754_v54 = vpop.f32.mrf.mxu1  ;;  %v12761_v24 = vpop.f32.mrf.mxu3  ;;  %v5253_v19 = vld [vmem:[%s14159_s0 + $0x106] sm:$0xff] }
 0x5e3   :  { %6193 = vst.msk [vmem:[#allocation3 + $0x15] sm:$0xff] %vm6060_vm2, %v6192_v4  ;;  %v5908_v31 = vadd.f32 %v12597_v32, %v5823_v44  ;;  %9634 = vmatmul.msk.f32.gmra.mxu0 %vm197_vm1, %v5251_v36 }
 0x5e5   :  { %v5989_v17 = vmax.f32 %v5908_v31, 0.0 }
 0x5e7   :  { %6071 = vst.msk [vmem:[#allocation2 + $0x50] sm:$0xff] %vm6060_vm2, %v5989_v17  ;;  %v5254_v17 = vld [vmem:[%s14159_s0 + $0x10e] sm:$0xff] }
 0x5e8   :  { %v5603_v12 = vpop.f32.mrf.mxu0 }
 0x5e9   :  { %v5824_v53 = vadd.f32 %v5603_v12, %v11674_v0 }
 0x5ea   :  { %v6390_v18 = vld [vmem:[#allocation3 + $0x11] sm:$0xff] }
 0x5eb   :  { %v6364_v48 = vld [vmem:[#allocation3 + $0x10] sm:$0xff]  ;;  %v5909_v6 = vadd.f32 %v12597_v32, %v5824_v53  ;;  %9635 = vmatmul.msk.f32.gmra.mxu0 %vm197_vm1, %v5252_v13  ;;  %9691 = vmatmul.msk.f32.gmra.mxu1 %vm6060_vm2, %v6390_v18 }
 0x5ec   :  { %v6750_v34 = vld [vmem:[#allocation3 + $0x12] sm:$0xff]  ;;  %9716 = vmatmul.msk.f32.gmra.mxu2 %vm6060_vm2, %v6364_v48 }
 0x5ed   :  { %9741 = vmatmul.msk.f32.gmra.mxu3 %vm6060_vm2, %v6750_v34  ;;  %v5990_v0 = vmax.f32 %v5909_v6, 0.0  ;;  %v5255_v18 = vld [vmem:[%s14159_s0 + $0x116] sm:$0xff] }
 0x5ee   :  { %v6195_v34 = vld [vmem:[#allocation2 + $0x48] ss:$2 sm:$0xff]  ;;  %v6197_v6 = vld [vmem:[#allocation2 + $0x49] ss:$2 sm:$0xff] }
 0x5ef   :  { %6072 = vst.msk [vmem:[#allocation2 + $0x58] sm:$0xff] %vm6060_vm2, %v5990_v0 }
 0x5f0   :  { %v5606_v46 = vpop.f32.mrf.mxu0 }
 0x5f1   :  { %v5825_v36 = vadd.f32 %v5606_v46, %v11690_v11 }
 0x5f3   :  { %v5910_v4 = vadd.f32 %v12597_v32, %v5825_v36  ;;  %9636 = vmatmul.msk.f32.gmra.mxu0 %vm197_vm1, %v5253_v19 }
 0x5f5   :  { %v5991_v44 = vmax.f32 %v5910_v4, 0.0 }
 0x5f7   :  { %6073 = vst.msk [vmem:[#allocation2 + $0x60] sm:$0xff] %vm6060_vm2, %v5991_v44 }
 0x5f8   :  { %v5609_v31 = vpop.f32.mrf.mxu0 }
 0x5f9   :  { %v5826_v12 = vadd.f32 %v5609_v31, %v11706_v22  ;;  %v6198_v22 = vmax.f32 %v6195_v34, %v6197_v6  ;;  %v5256_v31 = vld [vmem:[%s14159_s0 + $0x11e] sm:$0xff]  ;;  %v12801_v34 = vpop.f32.mrf.mxu2 }
 0x5fb   :  { %v5911_v13 = vadd.f32 %v12597_v32, %v5826_v12  ;;  %9637 = vmatmul.msk.f32.gmra.mxu0 %vm197_vm1, %v5254_v17 }
 0x5fd   :  { %v5992_v53 = vmax.f32 %v5911_v13, 0.0 }
 0x5ff   :  { %6074 = vst.msk [vmem:[#allocation2 + $0x68] sm:$0xff] %vm6060_vm2, %v5992_v53 }
 0x600   :  { %v5612_v11 = vpop.f32.mrf.mxu0 }
 0x601   :  { %v5827_v48 = vadd.f32 %v5612_v11, %v11722_v33  ;;  %v5257_v11 = vld [vmem:[%s14159_s0 + $0x126] sm:$0xff] }
 0x603   :  { %v5912_v0 = vadd.f32 %v12597_v32, %v5827_v48  ;;  %9638 = vmatmul.msk.f32.gmra.mxu0 %vm197_vm1, %v5255_v18  ;;  %v12798_v18 = vpop.f32.mrf.mxu1 }
 0x605   :  { %v5993_v46 = vmax.f32 %v5912_v0, 0.0 }
 0x606   :  { %v6200_v19 = vld [vmem:[#allocation2 + $0x5a] ss:$2 sm:$0xff]  ;;  %v6203_v4 = vld [vmem:[#allocation2 + $0x5b] ss:$2 sm:$0xff] }
 0x607   :  { %v6201_v36 = vmax.f32 %v6198_v22, %v6200_v19  ;;  %6075 = vst.msk [vmem:[#allocation2 + $0x70] sm:$0xff] %vm6060_vm2, %v5993_v46  ;;  %v12806_v46 = vpop.f32.mrf.mxu3 }
 0x608   :  { %v5615_v44 = vpop.f32.mrf.mxu0 }
 0x609   :  { %v6204_v17 = vmax.f32 %v6201_v36, %v6203_v4  ;;  %v5828_v33 = vadd.f32 %v5615_v44, %v11738_v45  ;;  %v5258_v36 = vld [vmem:[%s14159_s0 + $0x12e] sm:$0xff] }
 0x60b   :  { %6205 = vst.msk [vmem:[#allocation3 + $0x1f] sm:$0xff] %vm6060_vm2, %v6204_v17  ;;  %v5913_v12 = vadd.f32 %v12597_v32, %v5828_v33  ;;  %9639 = vmatmul.msk.f32.gmra.mxu0 %vm197_vm1, %v5256_v31  ;;  %v12815_v31 = vpop.f32.mrf.mxu1 }
 0x60d   :  { %v5994_v13 = vmax.f32 %v5913_v12, 0.0  ;;  %v12820_v12 = vpop.f32.mrf.mxu2 }
 0x60f   :  { %6076 = vst.msk [vmem:[#allocation2 + $0x78] sm:$0xff] %vm6060_vm2, %v5994_v13 }
 0x610   :  { %v5618_v53 = vpop.f32.mrf.mxu0 }
 0x611   :  { %v5829_v48 = vadd.f32 %v5618_v53, %v11754_v56 }
 0x612   :  { %v6391_v45 = vld [vmem:[#allocation3 + $0x19] sm:$0xff]  ;;  %v6392_v44 = vld [vmem:[#allocation3 + $0x21] sm:$0xff] }
 0x613   :  { %v6365_v6 = vld [vmem:[#allocation3 + $0x18] sm:$0xff]  ;;  %v5914_v22 = vadd.f32 %v12597_v32, %v5829_v48  ;;  %9640 = vmatmul.msk.f32.gmra.mxu0 %vm197_vm1, %v5257_v11  ;;  %9692 = vmatmul.msk.f32.gmra.mxu1 %vm6060_vm2, %v6391_v45  ;;  %v6366_v33 = vld [vmem:[#allocation3 + $0x20] sm:$0xff] }
 0x614   :  { %v6751_v0 = vld [vmem:[#allocation3 + $0x1a] sm:$0xff]  ;;  %9717 = vmatmul.msk.f32.gmra.mxu2 %vm6060_vm2, %v6365_v6 }
 0x615   :  { %9742 = vmatmul.msk.f32.gmra.mxu3 %vm6060_vm2, %v6751_v0  ;;  %v5995_v19 = vmax.f32 %v5914_v22, 0.0 }
 0x616   :  { %v6207_v48 = vld [vmem:[#allocation2 + $0x6c] ss:$2 sm:$0xff]  ;;  %v6209_v45 = vld [vmem:[#allocation2 + $0x6d] ss:$2 sm:$0xff] }
 0x617   :  { %6077 = vst.msk [vmem:[#allocation2 + $0x80] sm:$0xff] %vm6060_vm2, %v5995_v19  ;;  %v6210_v0 = vmax.f32 %v6207_v48, %v6209_v45  ;;  %v12843_v48 = vpop.f32.mrf.mxu3 }
 0x618   :  { %v5621_v56 = vpop.f32.mrf.mxu0 }
 0x619   :  { %v5830_v4 = vadd.f32 %v5621_v56, %v11770_v3  ;;  %v5259_v3 = vld [vmem:[%s14159_s0 + $0x136] sm:$0xff] }
 0x61b   :  { %v5915_v17 = vadd.f32 %v12597_v32, %v5830_v4  ;;  %9641 = vmatmul.msk.f32.gmra.mxu0 %vm197_vm1, %v5258_v36  ;;  %9693 = vmatmul.msk.f32.gmra.mxu1 %vm6060_vm2, %v6392_v44  ;;  %v5260_v44 = vld [vmem:[%s14159_s0 + $0x13e] sm:$0xff] }
 0x61c   :  { %9718 = vmatmul.msk.f32.gmra.mxu2 %vm6060_vm2, %v6366_v33 }
 0x61d   :  { %v5996_v13 = vmax.f32 %v5915_v17, 0.0 }
 0x61f   :  { %6078 = vst.msk [vmem:[#allocation2 + $0x88] sm:$0xff] %vm6060_vm2, %v5996_v13 }
 0x620   :  { %v5624_v53 = vpop.f32.mrf.mxu0 }
 0x621   :  { %v5831_v11 = vadd.f32 %v5624_v53, %v11786_v16 }
 0x623   :  { %v5916_v6 = vadd.f32 %v12597_v32, %v5831_v11  ;;  %9642 = vmatmul.msk.f32.gmra.mxu0 %vm197_vm1, %v5259_v3  ;;  %v5261_v3 = vld [vmem:[%s14159_s0 + $0x146] sm:$0xff] }
 0x625   :  { %v5997_v22 = vmax.f32 %v5916_v6, 0.0 }
 0x626   :  { %v6212_v19 = vld [vmem:[#allocation2 + $0x7e] ss:$2 sm:$0xff]  ;;  %v6215_v36 = vld [vmem:[#allocation2 + $0x7f] ss:$2 sm:$0xff] }
 0x627   :  { %v6213_v56 = vmax.f32 %v6210_v0, %v6212_v19  ;;  %6079 = vst.msk [vmem:[#allocation2 + $0x90] sm:$0xff] %vm6060_vm2, %v5997_v22  ;;  %v12845_v0 = vpop.f32.mrf.mxu1  ;;  %v12850_v19 = vpop.f32.mrf.mxu2 }
 0x628   :  { %v5627_v4 = vpop.f32.mrf.mxu0 }
 0x629   :  { %v6216_v17 = vmax.f32 %v6213_v56, %v6215_v36  ;;  %v5832_v16 = vadd.f32 %v5627_v4, %v11802_v28  ;;  %v5262_v36 = vld [vmem:[%s14159_s0 + $0x14e] sm:$0xff] }
 0x62b   :  { %6217 = vst.msk [vmem:[#allocation3 + $0x29] sm:$0xff] %vm6060_vm2, %v6216_v17  ;;  %v5917_v33 = vadd.f32 %v12597_v32, %v5832_v16  ;;  %9643 = vmatmul.msk.f32.gmra.mxu0 %vm197_vm1, %v5260_v44  ;;  %v12861_v16 = vpop.f32.mrf.mxu3 }
 0x62d   :  { %v5998_v13 = vmax.f32 %v5917_v33, 0.0 }
 0x62f   :  { %6080 = vst.msk [vmem:[#allocation2 + $0x98] sm:$0xff] %vm6060_vm2, %v5998_v13 }
 0x630   :  { %v5630_v53 = vpop.f32.mrf.mxu0 }
 0x631   :  { %v5833_v11 = vadd.f32 %v5630_v53, %v11818_v40  ;;  %v5263_v53 = vld [vmem:[%s14159_s0 + $0x156] sm:$0xff] }
 0x632   :  { %v6393_v45 = vld [vmem:[#allocation3 + $0x29] sm:$0xff] }
 0x633   :  { %v6367_v28 = vld [vmem:[#allocation3 + $0x28] sm:$0xff]  ;;  %v5918_v22 = vadd.f32 %v12597_v32, %v5833_v11  ;;  %9644 = vmatmul.msk.f32.gmra.mxu0 %vm197_vm1, %v5261_v3  ;;  %9694 = vmatmul.msk.f32.gmra.mxu1 %vm6060_vm2, %v6393_v45 }
 0x634   :  { %v6752_v6 = vld [vmem:[#allocation3 + $0x22] sm:$0xff]  ;;  %9719 = vmatmul.msk.f32.gmra.mxu2 %vm6060_vm2, %v6367_v28  ;;  %v6753_v17 = vld [vmem:[#allocation3 + $0x2a] sm:$0xff]  ;;  %v5264_v28 = vld [vmem:[%s14159_s0 + $0x15e] sm:$0xff] }
 0x635   :  { %9743 = vmatmul.msk.f32.gmra.mxu3 %vm6060_vm2, %v6752_v6  ;;  %v5999_v40 = vmax.f32 %v5918_v22, 0.0 }
 0x636   :  { %v6219_v22 = vld [vmem:[#allocation2 + $0x90] ss:$2 sm:$0xff] }
 0x637   :  { %6081 = vst.msk [vmem:[#allocation2 + $0xa0] sm:$0xff] %vm6060_vm2, %v5999_v40  ;;  %v6221_v40 = vld [vmem:[#allocation2 + $0x91] ss:$2 sm:$0xff] }
 0x638   :  { %v5633_v56 = vpop.f32.mrf.mxu0 }
 0x639   :  { %v5834_v4 = vadd.f32 %v5633_v56, %v11834_v52 }
 0x63b   :  { %v5919_v44 = vadd.f32 %v12597_v32, %v5834_v4  ;;  %9645 = vmatmul.msk.f32.gmra.mxu0 %vm197_vm1, %v5262_v36 }
 0x63d   :  { %9744 = vmatmul.msk.f32.gmra.mxu3 %vm6060_vm2, %v6753_v17  ;;  %v6000_v33 = vmax.f32 %v5919_v44, 0.0 }
 0x63f   :  { %6082 = vst.msk [vmem:[#allocation2 + $0xa8] sm:$0xff] %vm6060_vm2, %v6000_v33 }
 0x640   :  { %v5636_v13 = vpop.f32.mrf.mxu0 }
 0x641   :  { %v5835_v3 = vadd.f32 %v5636_v13, %v11850_v1  ;;  %v6222_v1 = vmax.f32 %v6219_v22, %v6221_v40  ;;  %v5265_v13 = vld [vmem:[%s14159_s0 + $0x166] sm:$0xff] }
 0x643   :  { %v5920_v52 = vadd.f32 %v12597_v32, %v5835_v3  ;;  %9646 = vmatmul.msk.f32.gmra.mxu0 %vm197_vm1, %v5263_v53 }
 0x645   :  { %v6001_v11 = vmax.f32 %v5920_v52, 0.0 }
 0x647   :  { %6083 = vst.msk [vmem:[#allocation2 + $0xb0] sm:$0xff] %vm6060_vm2, %v6001_v11 }
 0x648   :  { %v5639_v45 = vpop.f32.mrf.mxu0 }
 0x649   :  { %v5836_v6 = vadd.f32 %v5639_v45, %v11866_v15  ;;  %v5266_v45 = vld [vmem:[%s14159_s0 + $0x16e] sm:$0xff] }
 0x64b   :  { %v5921_v56 = vadd.f32 %v12597_v32, %v5836_v6  ;;  %9647 = vmatmul.msk.f32.gmra.mxu0 %vm197_vm1, %v5264_v28 }
 0x64d   :  { %v6002_v36 = vmax.f32 %v5921_v56, 0.0 }
 0x64e   :  { %v6224_v4 = vld [vmem:[#allocation2 + $0xa2] ss:$2 sm:$0xff]  ;;  %v6227_v17 = vld [vmem:[#allocation2 + $0xa3] ss:$2 sm:$0xff] }
 0x64f   :  { %v6225_v44 = vmax.f32 %v6222_v1, %v6224_v4  ;;  %6084 = vst.msk [vmem:[#allocation2 + $0xb8] sm:$0xff] %vm6060_vm2, %v6002_v36  ;;  %v12896_v1 = vpop.f32.mrf.mxu2  ;;  %v12898_v36 = vpop.f32.mrf.mxu3 }
 0x650   :  { %v5642_v33 = vpop.f32.mrf.mxu0 }
 0x651   :  { %v6228_v53 = vmax.f32 %v6225_v44, %v6227_v17  ;;  %v5837_v15 = vadd.f32 %v5642_v33, %v11882_v29  ;;  %v12891_v29 = vpop.f32.mrf.mxu1  ;;  %v5267_v44 = vld [vmem:[%s14159_s0 + $0x176] sm:$0xff] }
 0x653   :  { %6229 = vst.msk [vmem:[#allocation3 + $0x33] sm:$0xff] %vm6060_vm2, %v6228_v53  ;;  %v5922_v3 = vadd.f32 %v12597_v32, %v5837_v15  ;;  %9648 = vmatmul.msk.f32.gmra.mxu0 %vm197_vm1, %v5265_v13  ;;  %v5268_v15 = vld [vmem:[%s14159_s0 + $0x17e] sm:$0xff] }
 0x655   :  { %v6003_v52 = vmax.f32 %v5922_v3, 0.0 }
 0x657   :  { %6085 = vst.msk [vmem:[#allocation2 + $0xc0] sm:$0xff] %vm6060_vm2, %v6003_v52 }
 0x658   :  { %v5645_v11 = vpop.f32.mrf.mxu0 }
 0x659   :  { %v5838_v28 = vadd.f32 %v5645_v11, %v11898_v42 }
 0x65a   :  { %v6394_v6 = vld [vmem:[#allocation3 + $0x31] sm:$0xff] }
 0x65b   :  { %v6368_v22 = vld [vmem:[#allocation3 + $0x30] sm:$0xff]  ;;  %v5923_v56 = vadd.f32 %v12597_v32, %v5838_v28  ;;  %9649 = vmatmul.msk.f32.gmra.mxu0 %vm197_vm1, %v5266_v45  ;;  %9695 = vmatmul.msk.f32.gmra.mxu1 %vm6060_vm2, %v6394_v6 }
 0x65c   :  { %v6754_v40 = vld [vmem:[#allocation3 + $0x32] sm:$0xff]  ;;  %9720 = vmatmul.msk.f32.gmra.mxu2 %vm6060_vm2, %v6368_v22 }
 0x65d   :  { %9745 = vmatmul.msk.f32.gmra.mxu3 %vm6060_vm2, %v6754_v40  ;;  %v6004_v42 = vmax.f32 %v5923_v56, 0.0 }
 0x65e   :  { %v6231_v52 = vld [vmem:[#allocation2 + $0xb4] ss:$2 sm:$0xff]  ;;  %v6233_v11 = vld [vmem:[#allocation2 + $0xb5] ss:$2 sm:$0xff] }
 0x65f   :  { %6086 = vst.msk [vmem:[#allocation2 + $0xc8] sm:$0xff] %vm6060_vm2, %v6004_v42  ;;  %v5269_v42 = vld [vmem:[%s14159_s0 + $0x186] sm:$0xff] }
 0x660   :  { %v5648_v4 = vpop.f32.mrf.mxu0 }
 0x661   :  { %v5839_v17 = vadd.f32 %v5648_v4, %v11914_v57  ;;  %v6234_v57 = vmax.f32 %v6231_v52, %v6233_v11 }
 0x663   :  { %v5924_v33 = vadd.f32 %v12597_v32, %v5839_v17  ;;  %9650 = vmatmul.msk.f32.gmra.mxu0 %vm197_vm1, %v5267_v44 }
 0x665   :  { %v6005_v13 = vmax.f32 %v5924_v33, 0.0 }
 0x667   :  { %6087 = vst.msk [vmem:[#allocation2 + $0xd0] sm:$0xff] %vm6060_vm2, %v6005_v13  ;;  %v5270_v13 = vld [vmem:[%s14159_s0 + $0x18e] sm:$0xff] }
 0x668   :  { %v5651_v53 = vpop.f32.mrf.mxu0 }
 0x669   :  { %v5840_v3 = vadd.f32 %v5651_v53, %v11930_v7 }
 0x66b   :  { %v5925_v45 = vadd.f32 %v12597_v32, %v5840_v3  ;;  %9651 = vmatmul.msk.f32.gmra.mxu0 %vm197_vm1, %v5268_v15 }
 0x66d   :  { %v6006_v28 = vmax.f32 %v5925_v45, 0.0  ;;  %v12934_v45 = vpop.f32.mrf.mxu2 }
 0x66e   :  { %v6236_v6 = vld [vmem:[#allocation2 + $0xc6] ss:$2 sm:$0xff]  ;;  %v6239_v40 = vld [vmem:[#allocation2 + $0xc7] ss:$2 sm:$0xff] }
 0x66f   :  { %v6237_v22 = vmax.f32 %v6234_v57, %v6236_v6  ;;  %6088 = vst.msk [vmem:[#allocation2 + $0xd8] sm:$0xff] %vm6060_vm2, %v6006_v28  ;;  %v12936_v57 = vpop.f32.mrf.mxu3  ;;  %v5271_v6 = vld [vmem:[%s14159_s0 + $0x196] sm:$0xff] }
 0x670   :  { %v5654_v56 = vpop.f32.mrf.mxu0 }
 0x671   :  { %v6240_v4 = vmax.f32 %v6237_v22, %v6239_v40  ;;  %v5841_v7 = vadd.f32 %v5654_v56, %v11946_v21  ;;  %v12929_v21 = vpop.f32.mrf.mxu1 }
 0x673   :  { %6241 = vst.msk [vmem:[#allocation3 + $0x3d] sm:$0xff] %vm6060_vm2, %v6240_v4  ;;  %v5926_v44 = vadd.f32 %v12597_v32, %v5841_v7  ;;  %9652 = vmatmul.msk.f32.gmra.mxu0 %vm197_vm1, %v5269_v42  ;;  %v5272_v4 = vld [vmem:[%s14159_s0 + $0x19e] sm:$0xff] }
 0x675   :  { %v6007_v17 = vmax.f32 %v5926_v44, 0.0 }
 0x677   :  { %6089 = vst.msk [vmem:[#allocation2 + $0xe0] sm:$0xff] %vm6060_vm2, %v6007_v17 }
 0x678   :  { %v5657_v33 = vpop.f32.mrf.mxu0 }
 0x679   :  { %v5842_v53 = vadd.f32 %v5657_v33, %v11962_v37  ;;  %v5273_v33 = vld [vmem:[%s14159_s0 + $0x1a6] sm:$0xff] }
 0x67a   :  { %v6395_v15 = vld [vmem:[#allocation3 + $0x39] sm:$0xff] }
 0x67b   :  { %v6369_v3 = vld [vmem:[#allocation3 + $0x38] sm:$0xff]  ;;  %v5927_v11 = vadd.f32 %v12597_v32, %v5842_v53  ;;  %9653 = vmatmul.msk.f32.gmra.mxu0 %vm197_vm1, %v5270_v13  ;;  %9696 = vmatmul.msk.f32.gmra.mxu1 %vm6060_vm2, %v6395_v15 }
 0x67c   :  { %v6755_v52 = vld [vmem:[#allocation3 + $0x3a] sm:$0xff]  ;;  %9721 = vmatmul.msk.f32.gmra.mxu2 %vm6060_vm2, %v6369_v3 }
 0x67d   :  { %9746 = vmatmul.msk.f32.gmra.mxu3 %vm6060_vm2, %v6755_v52  ;;  %v6008_v37 = vmax.f32 %v5927_v11, 0.0 }
 0x67e   :  { %v6243_v53 = vld [vmem:[#allocation2 + $0xd8] ss:$2 sm:$0xff]  ;;  %v6245_v15 = vld [vmem:[#allocation2 + $0xd9] ss:$2 sm:$0xff] }
 0x67f   :  { %6090 = vst.msk [vmem:[#allocation2 + $0xe8] sm:$0xff] %vm6060_vm2, %v6008_v37 }
 0x680   :  { %v5660_v28 = vpop.f32.mrf.mxu0 }
 0x681   :  { %v5843_v22 = vadd.f32 %v5660_v28, %v11978_v51 }
 0x683   :  { %v5928_v40 = vadd.f32 %v12597_v32, %v5843_v22  ;;  %9654 = vmatmul.msk.f32.gmra.mxu0 %vm197_vm1, %v5271_v6  ;;  %v5274_v22 = vld [vmem:[%s14159_s0 + $0x1ae] sm:$0xff] }
 0x685   :  { %v6009_v56 = vmax.f32 %v5928_v40, 0.0 }
 0x687   :  { %6091 = vst.msk [vmem:[#allocation2 + $0xf0] sm:$0xff] %vm6060_vm2, %v6009_v56 }
 0x688   :  { %v5663_v42 = vpop.f32.mrf.mxu0 }
 0x689   :  { %v5844_v7 = vadd.f32 %v5663_v42, %v11994_v5  ;;  %v6246_v5 = vmax.f32 %v6243_v53, %v6245_v15  ;;  %v12981_v15 = vpop.f32.mrf.mxu3 }
 0x68b   :  { %v5929_v44 = vadd.f32 %v12597_v32, %v5844_v7  ;;  %9655 = vmatmul.msk.f32.gmra.mxu0 %vm197_vm1, %v5272_v4  ;;  %v5275_v7 = vld [vmem:[%s14159_s0 + $0x1b6] sm:$0xff] }
 0x68d   :  { %v6010_v17 = vmax.f32 %v5929_v44, 0.0  ;;  %v12973_v44 = vpop.f32.mrf.mxu1 }
 0x68f   :  { %6092 = vst.msk [vmem:[#allocation2 + $0xf8] sm:$0xff] %vm6060_vm2, %v6010_v17 }
 0x690   :  { %v5666_v51 = vpop.f32.mrf.mxu0 }
 0x691   :  { %v5845_v13 = vadd.f32 %v5666_v51, %v12010_v20  ;;  %v12976_v51 = vpop.f32.mrf.mxu2 }
 0x693   :  { %v5930_v3 = vadd.f32 %v12597_v32, %v5845_v13  ;;  %9656 = vmatmul.msk.f32.gmra.mxu0 %vm197_vm1, %v5273_v33 }
 0x695   :  { %v6011_v52 = vmax.f32 %v5930_v3, 0.0 }
 0x696   :  { %v6248_v11 = vld [vmem:[#allocation2 + $0xea] ss:$2 sm:$0xff]  ;;  %v6251_v28 = vld [vmem:[#allocation2 + $0xeb] ss:$2 sm:$0xff] }
 0x697   :  { %v6249_v37 = vmax.f32 %v6246_v5, %v6248_v11  ;;  %6093 = vst.msk [vmem:[#allocation2 + $0x100] sm:$0xff] %vm6060_vm2, %v6011_v52  ;;  %v5276_v5 = vld [vmem:[%s14159_s0 + $0x1be] sm:$0xff] }
 0x698   :  { %v5669_v6 = vpop.f32.mrf.mxu0 }
 0x699   :  { %v6252_v40 = vmax.f32 %v6249_v37, %v6251_v28  ;;  %v5846_v20 = vadd.f32 %v5669_v6, %v12026_v38  ;;  %v12990_v37 = vpop.f32.mrf.mxu1 }
 0x69b   :  { %6253 = vst.msk [vmem:[#allocation3 + $0x47] sm:$0xff] %vm6060_vm2, %v6252_v40  ;;  %v5931_v56 = vadd.f32 %v12597_v32, %v5846_v20  ;;  %9657 = vmatmul.msk.f32.gmra.mxu0 %vm197_vm1, %v5274_v22  ;;  %v12995_v22 = vpop.f32.mrf.mxu2 }
 0x69d   :  { %v6012_v42 = vmax.f32 %v5931_v56, 0.0 }
 0x69f   :  { %6094 = vst.msk [vmem:[#allocation2 + $0x108] sm:$0xff] %vm6060_vm2, %v6012_v42 }
 0x6a0   :  { %v5672_v4 = vpop.f32.mrf.mxu0 }
 0x6a1   :  { %v5847_v17 = vadd.f32 %v5672_v4, %v12042_v55 }
 0x6a2   :  { %v6396_v38 = vld [vmem:[#allocation3 + $0x41] sm:$0xff]  ;;  %v6397_v11 = vld [vmem:[#allocation3 + $0x49] sm:$0xff] }
 0x6a3   :  { %v6370_v33 = vld [vmem:[#allocation3 + $0x40] sm:$0xff]  ;;  %v5932_v53 = vadd.f32 %v12597_v32, %v5847_v17  ;;  %9658 = vmatmul.msk.f32.gmra.mxu0 %vm197_vm1, %v5275_v7  ;;  %9697 = vmatmul.msk.f32.gmra.mxu1 %vm6060_vm2, %v6396_v38  ;;  %v6371_v6 = vld [vmem:[#allocation3 + $0x48] sm:$0xff] }
 0x6a4   :  { %v6756_v13 = vld [vmem:[#allocation3 + $0x42] sm:$0xff]  ;;  %9722 = vmatmul.msk.f32.gmra.mxu2 %vm6060_vm2, %v6370_v33 }
 0x6a5   :  { %9747 = vmatmul.msk.f32.gmra.mxu3 %vm6060_vm2, %v6756_v13  ;;  %v6013_v3 = vmax.f32 %v5932_v53, 0.0  ;;  %v5278_v13 = vld [vmem:[%s14159_s0 + $0x1ce] sm:$0xff] }
 0x6a6   :  { %v6255_v56 = vld [vmem:[#allocation2 + $0xfc] ss:$2 sm:$0xff]  ;;  %v6257_v42 = vld [vmem:[#allocation2 + $0xfd] ss:$2 sm:$0xff] }
 0x6a7   :  { %6095 = vst.msk [vmem:[#allocation2 + $0x110] sm:$0xff] %vm6060_vm2, %v6013_v3  ;;  %v6258_v4 = vmax.f32 %v6255_v56, %v6257_v42  ;;  %v13008_v3 = vpop.f32.mrf.mxu3  ;;  %v6399_v56 = vld [vmem:[#allocation3 + $0x59] sm:$0xff] }
 0x6a8   :  { %v5675_v55 = vpop.f32.mrf.mxu0 }
 0x6a9   :  { %v5848_v52 = vadd.f32 %v5675_v55, %v12057_v23  ;;  %v5277_v23 = vld [vmem:[%s14159_s0 + $0x1c6] sm:$0xff] }
 0x6ab   :  { %v5933_v28 = vadd.f32 %v12597_v32, %v5848_v52  ;;  %9659 = vmatmul.msk.f32.gmra.mxu0 %vm197_vm1, %v5276_v5  ;;  %9698 = vmatmul.msk.f32.gmra.mxu1 %vm6060_vm2, %v6397_v11  ;;  %v5279_v5 = vld [vmem:[%s14159_s0 + $0x1d6] sm:$0xff]  ;;  %v13013_v52 = vpop.f32.mrf.mxu1  ;;  %v13015_v11 = vpop.f32.mrf.mxu2 }
 0x6ac   :  { %9723 = vmatmul.msk.f32.gmra.mxu2 %vm6060_vm2, %v6371_v6 }
 0x6ad   :  { %v6014_v40 = vmax.f32 %v5933_v28, 0.0 }
 0x6af   :  { %6096 = vst.msk [vmem:[#allocation2 + $0x118] sm:$0xff] %vm6060_vm2, %v6014_v40  ;;  %v13024_v42 = vpop.f32.mrf.mxu3 }
 0x6b0   :  { %v5678_v20 = vpop.f32.mrf.mxu0 }
 0x6b3   :  { %9660 = vmatmul.msk.f32.gmra.mxu0 %vm197_vm1, %v5277_v23  ;;  %v5280_v23 = vld [vmem:[%s14159_s0 + $0x1de] sm:$0xff] }
 0x6b6   :  { %v6260_v7 = vld [vmem:[#allocation2 + $0x10e] ss:$2 sm:$0xff]  ;;  %v6263_v38 = vld [vmem:[#allocation2 + $0x10f] ss:$2 sm:$0xff] }
 0x6b7   :  { %v6261_v17 = vmax.f32 %v6258_v4, %v6260_v7  ;;  %v13026_v4 = vpop.f32.mrf.mxu1 }
 0x6b8   :  { %v5681_v33 = vpop.f32.mrf.mxu0 }
 0x6b9   :  { %v6264_v53 = vmax.f32 %v6261_v17, %v6263_v38  ;;  %v13030_v38 = vpop.f32.mrf.mxu2 }
 0x6bb   :  { %6265 = vst.msk [vmem:[#allocation3 + $0x51] sm:$0xff] %vm6060_vm2, %v6264_v53  ;;  %9661 = vmatmul.msk.f32.gmra.mxu0 %vm197_vm1, %v5278_v13  ;;  %v5281_v13 = vld [vmem:[%s14159_s0 + $0x1e6] sm:$0xff] }
 0x6c0   :  { %v5684_v55 = vpop.f32.mrf.mxu0 }
 0x6c1   :  { %v6759_v55 = vld [vmem:[#allocation3 + $0x5a] sm:$0xff] }
 0x6c2   :  { %v6398_v28 = vld [vmem:[#allocation3 + $0x51] sm:$0xff] }
 0x6c3   :  { %v6372_v6 = vld [vmem:[#allocation3 + $0x50] sm:$0xff]  ;;  %9662 = vmatmul.msk.f32.gmra.mxu0 %vm197_vm1, %v5279_v5  ;;  %9699 = vmatmul.msk.f32.gmra.mxu1 %vm6060_vm2, %v6398_v28  ;;  %v6373_v7 = vld [vmem:[#allocation3 + $0x58] sm:$0xff]  ;;  %v13040_v28 = vpop.f32.mrf.mxu3 }
 0x6c4   :  { %v6757_v40 = vld [vmem:[#allocation3 + $0x4a] sm:$0xff]  ;;  %9724 = vmatmul.msk.f32.gmra.mxu2 %vm6060_vm2, %v6372_v6  ;;  %v6758_v17 = vld [vmem:[#allocation3 + $0x52] sm:$0xff] }
 0x6c5   :  { %9748 = vmatmul.msk.f32.gmra.mxu3 %vm6060_vm2, %v6757_v40 }
 0x6c8   :  { %v5687_v20 = vpop.f32.mrf.mxu0 }
 0x6c9   :  { %v5282_v20 = vld [vmem:[%s14159_s0 + $0x1ee] sm:$0xff] }
 0x6cb   :  { %9663 = vmatmul.msk.f32.gmra.mxu0 %vm197_vm1, %v5280_v23  ;;  %9700 = vmatmul.msk.f32.gmra.mxu1 %vm6060_vm2, %v6399_v56 }
 0x6cc   :  { %9725 = vmatmul.msk.f32.gmra.mxu2 %vm6060_vm2, %v6373_v7 }
 0x6cd   :  { %9749 = vmatmul.msk.f32.gmra.mxu3 %vm6060_vm2, %v6758_v17  ;;  %v5283_v17 = vld [vmem:[%s14159_s0 + $0x1f6] sm:$0xff] }
 0x6d0   :  { %v5690_v33 = vpop.f32.mrf.mxu0 }
 0x6d1   :  { %v5853_v53 = vadd.f32 %v5690_v33, %v12126_v27 }
 0x6d3   :  { %v5938_v5 = vadd.f32 %v12597_v32, %v5853_v53  ;;  %9664 = vmatmul.msk.f32.gmra.mxu0 %vm197_vm1, %v5281_v13  ;;  %v6400_v53 = vld [vmem:[#allocation3 + $0x61] sm:$0xff] }
 0x6d5   :  { %9750 = vmatmul.msk.f32.gmra.mxu3 %vm6060_vm2, %v6759_v55  ;;  %v6019_v6 = vmax.f32 %v5938_v5, 0.0  ;;  %v13057_v55 = vpop.f32.mrf.mxu1  ;;  %v13059_v5 = vpop.f32.mrf.mxu2  ;;  %9701 = vmatmul.msk.f32.gmra.mxu1 %vm6060_vm2, %v6400_v53 }
 0x6d7   :  { %6101 = vst.msk [vmem:[#allocation2 + $0x140] sm:$0xff] %vm6060_vm2, %v6019_v6  ;;  %v6760_v6 = vld [vmem:[#allocation3 + $0x62] sm:$0xff] }
 0x6d8   :  { %v5693_v40 = vpop.f32.mrf.mxu0 }
 0x6d9   :  { %v5854_v23 = vadd.f32 %v5693_v40, %v12142_v61  ;;  %v6374_v61 = vld [vmem:[#allocation3 + $0x60] sm:$0xff]  ;;  %v13063_v40 = vpop.f32.mrf.mxu3 }
 0x6da   :  { %9726 = vmatmul.msk.f32.gmra.mxu2 %vm6060_vm2, %v6374_v61 }
 0x6db   :  { %v5939_v27 = vadd.f32 %v12597_v32, %v5854_v23  ;;  %9665 = vmatmul.msk.f32.gmra.mxu0 %vm197_vm1, %v5282_v20 }
 0x6dd   :  { %v6020_v56 = vmax.f32 %v5939_v27, 0.0  ;;  %9751 = vmatmul.msk.f32.gmra.mxu3 %vm6060_vm2, %v6760_v6  ;;  %v13074_v27 = vld [vmem:[%s14161_s2] ss:$0 sm:$0xff]  ;;  %v5286_v6 = vld [vmem:[%s14159_s0 + $0x20e] sm:$0xff] }
 0x6df   :  { %6102 = vst.msk [vmem:[#allocation2 + $0x148] sm:$0xff] %vm6060_vm2, %v6020_v56 }
 0x6e0   :  { %v5696_v7 = vpop.f32.mrf.mxu0 }
 0x6e1   :  { %v5855_v33 = vadd.f32 %v5696_v7, %v12158_v63 }
 0x6e3   :  { %v5940_v13 = vadd.f32 %v12597_v32, %v5855_v33  ;;  %9666 = vmatmul.msk.f32.gmra.mxu0 %vm197_vm1, %v5283_v17  ;;  %v5284_v32 = vld [vmem:[%s14159_s0 + $0x1fe] sm:$0xff]  ;;  %v5285_v33 = vld [vmem:[%s14159_s0 + $0x206] sm:$0xff] }
 0x6e5   :  { %v6021_v20 = vmax.f32 %v5940_v13, 0.0 }
 0x6e7   :  { %6103 = vst.msk [vmem:[#allocation2 + $0x150] sm:$0xff] %vm6060_vm2, %v6021_v20 }
 0x6e8   :  { %v5699_v63 = vpop.f32.mrf.mxu0 }
 0x6e9   :  { %v5856_v23 = vadd.f32 %v5699_v63, %v12174_v9 }
 0x6eb   :  { %v5941_v56 = vadd.f32 %v13074_v27, %v5856_v23  ;;  %9667 = vmatmul.msk.f32.gmra.mxu0 %vm197_vm1, %v5284_v32 }
 0x6ed   :  { %v6022_v7 = vmax.f32 %v5941_v56, 0.0 }
 0x6ee   :  { %v6267_v63 = vld [vmem:[#allocation2 + $0x144] ss:$2 sm:$0xff]  ;;  %v6269_v32 = vld [vmem:[#allocation2 + $0x145] ss:$2 sm:$0xff] }
 0x6ef   :  { %6104 = vst.msk [vmem:[#allocation2 + $0x158] sm:$0xff] %vm6060_vm2, %v6022_v7 }
 0x6f0   :  { %v5702_v17 = vpop.f32.mrf.mxu0 }
 0x6f1   :  { %v5857_v13 = vadd.f32 %v5702_v17, %v12190_v43  ;;  %v6270_v43 = vmax.f32 %v6267_v63, %v6269_v32  ;;  %v5288_v63 = vld [vmem:[%s14159_s0 + $0x21e] sm:$0xff]  ;;  %v13104_v32 = vpop.f32.mrf.mxu1 }
 0x6f3   :  { %v5942_v9 = vadd.f32 %v13074_v27, %v5857_v13  ;;  %9668 = vmatmul.msk.f32.gmra.mxu0 %vm197_vm1, %v5285_v33 }
 0x6f5   :  { %v6023_v53 = vmax.f32 %v5942_v9, 0.0  ;;  %v5287_v9 = vld [vmem:[%s14159_s0 + $0x216] sm:$0xff] }
 0x6f7   :  { %6105 = vst.msk [vmem:[#allocation2 + $0x160] sm:$0xff] %vm6060_vm2, %v6023_v53 }
 0x6f8   :  { %v5705_v61 = vpop.f32.mrf.mxu0 }
 0x6f9   :  { %v5858_v20 = vadd.f32 %v5705_v61, %v12206_v62 }
 0x6fb   :  { %v5943_v23 = vadd.f32 %v13074_v27, %v5858_v20  ;;  %9669 = vmatmul.msk.f32.gmra.mxu0 %vm197_vm1, %v5286_v6 }
 0x6fd   :  { %v6024_v56 = vmax.f32 %v5943_v23, 0.0 }
 0x6fe   :  { %v6272_v7 = vld [vmem:[#allocation2 + $0x156] ss:$2 sm:$0xff]  ;;  %v6275_v33 = vld [vmem:[#allocation2 + $0x157] ss:$2 sm:$0xff] }
 0x6ff   :  { %v6273_v17 = vmax.f32 %v6270_v43, %v6272_v7  ;;  %6106 = vst.msk [vmem:[#allocation2 + $0x168] sm:$0xff] %vm6060_vm2, %v6024_v56  ;;  %v13107_v43 = vpop.f32.mrf.mxu2 }
 0x700   :  { %v5708_v13 = vpop.f32.mrf.mxu0 }
 0x701   :  { %v6276_v53 = vmax.f32 %v6273_v17, %v6275_v33  ;;  %v5859_v62 = vadd.f32 %v5708_v13, %v12222_v25  ;;  %v13112_v33 = vpop.f32.mrf.mxu3 }
 0x703   :  { %6277 = vst.msk [vmem:[#allocation3 + $0x6f] sm:$0xff] %vm6060_vm2, %v6276_v53  ;;  %v5944_v61 = vadd.f32 %v13074_v27, %v5859_v62  ;;  %9670 = vmatmul.msk.f32.gmra.mxu0 %vm197_vm1, %v5287_v9  ;;  %v5289_v9 = vld [vmem:[%s14159_s0 + $0x226] sm:$0xff] }
 0x705   :  { %v6025_v6 = vmax.f32 %v5944_v61, 0.0  ;;  %v13121_v61 = vpop.f32.mrf.mxu1 }
 0x707   :  { %6107 = vst.msk [vmem:[#allocation2 + $0x170] sm:$0xff] %vm6060_vm2, %v6025_v6 }
 0x708   :  { %v5711_v20 = vpop.f32.mrf.mxu0 }
 0x709   :  { %v5860_v23 = vadd.f32 %v5711_v20, %v12238_v49 }
 0x70a   :  { %v6401_v25 = vld [vmem:[#allocation3 + $0x69] sm:$0xff]  ;;  %v6402_v62 = vld [vmem:[#allocation3 + $0x71] sm:$0xff] }
 0x70b   :  { %v6375_v56 = vld [vmem:[#allocation3 + $0x68] sm:$0xff]  ;;  %v5945_v17 = vadd.f32 %v13074_v27, %v5860_v23  ;;  %9671 = vmatmul.msk.f32.gmra.mxu0 %vm197_vm1, %v5288_v63  ;;  %9702 = vmatmul.msk.f32.gmra.mxu1 %vm6060_vm2, %v6401_v25  ;;  %v6376_v20 = vld [vmem:[#allocation3 + $0x70] sm:$0xff]  ;;  %v13126_v63 = vpop.f32.mrf.mxu2 }
 0x70c   :  { %v6761_v7 = vld [vmem:[#allocation3 + $0x6a] sm:$0xff]  ;;  %9727 = vmatmul.msk.f32.gmra.mxu2 %vm6060_vm2, %v6375_v56 }
 0x70d   :  { %9752 = vmatmul.msk.f32.gmra.mxu3 %vm6060_vm2, %v6761_v7  ;;  %v6026_v13 = vmax.f32 %v5945_v17, 0.0 }
 0x70f   :  { %6108 = vst.msk [vmem:[#allocation2 + $0x178] sm:$0xff] %vm6060_vm2, %v6026_v13 }
 0x710   :  { %v5714_v49 = vpop.f32.mrf.mxu0 }
 0x711   :  { %v5861_v53 = vadd.f32 %v5714_v49, %v12254_v10  ;;  %v5290_v10 = vld [vmem:[%s14159_s0 + $0x22e] sm:$0xff]  ;;  %v5291_v49 = vld [vmem:[%s14159_s0 + $0x236] sm:$0xff] }
 0x713   :  { %v5946_v6 = vadd.f32 %v13074_v27, %v5861_v53  ;;  %9672 = vmatmul.msk.f32.gmra.mxu0 %vm197_vm1, %v5289_v9  ;;  %9703 = vmatmul.msk.f32.gmra.mxu1 %vm6060_vm2, %v6402_v62  ;;  %v6279_v53 = vld [vmem:[#allocation2 + $0x168] ss:$2 sm:$0xff]  ;;  %v6281_v62 = vld [vmem:[#allocation2 + $0x169] ss:$2 sm:$0xff] }
 0x714   :  { %9728 = vmatmul.msk.f32.gmra.mxu2 %vm6060_vm2, %v6376_v20 }
 0x715   :  { %v6027_v23 = vmax.f32 %v5946_v6, 0.0 }
 0x717   :  { %6109 = vst.msk [vmem:[#allocation2 + $0x180] sm:$0xff] %vm6060_vm2, %v6027_v23 }
 0x718   :  { %v5717_v25 = vpop.f32.mrf.mxu0 }
 0x719   :  { %v5862_v56 = vadd.f32 %v5717_v25, %v12270_v35  ;;  %v6282_v35 = vmax.f32 %v6279_v53, %v6281_v62  ;;  %v5293_v62 = vld [vmem:[%s14159_s0 + $0x246] sm:$0xff] }
 0x71b   :  { %v5947_v7 = vadd.f32 %v13074_v27, %v5862_v56  ;;  %9673 = vmatmul.msk.f32.gmra.mxu0 %vm197_vm1, %v5290_v10 }
 0x71d   :  { %v6028_v17 = vmax.f32 %v5947_v7, 0.0  ;;  %v5292_v7 = vld [vmem:[%s14159_s0 + $0x23e] sm:$0xff] }
 0x71f   :  { %6110 = vst.msk [vmem:[#allocation2 + $0x188] sm:$0xff] %vm6060_vm2, %v6028_v17 }
 0x720   :  { %v5720_v13 = vpop.f32.mrf.mxu0 }
 0x721   :  { %v5863_v9 = vadd.f32 %v5720_v13, %v12286_v60  ;;  %v14228_v60 = vld [vmem:[#allocation33_spill] sm:$0xff] }
 0x723   :  { %v5948_v6 = vadd.f32 %v13074_v27, %v5863_v9  ;;  %9674 = vmatmul.msk.f32.gmra.mxu0 %vm197_vm1, %v5291_v49 }
 0x725   :  { %v6029_v20 = vmax.f32 %v5948_v6, 0.0  ;;  %v14229_v6 = vld [vmem:[#allocation9_spill] sm:$0xff] }
 0x726   :  { %v6284_v23 = vld [vmem:[#allocation2 + $0x17a] ss:$2 sm:$0xff]  ;;  %v6287_v10 = vld [vmem:[#allocation2 + $0x17b] ss:$2 sm:$0xff] }
 0x727   :  { %v6285_v25 = vmax.f32 %v6282_v35, %v6284_v23  ;;  %6111 = vst.msk [vmem:[#allocation2 + $0x190] sm:$0xff] %vm6060_vm2, %v6029_v20  ;;  %v13156_v20 = vpop.f32.mrf.mxu3 }
 0x728   :  { %v5723_v56 = vpop.f32.mrf.mxu0  ;;  %14230 = vst [vmem:[#allocation33_spill] sm:$0xff] %v13156_v20 }
 0x729   :  { %v6288_v17 = vmax.f32 %v6285_v25, %v6287_v10  ;;  %v5864_v13 = vadd.f32 %v5723_v56, %v14228_v60  ;;  %v13158_v56 = vpop.f32.mrf.mxu1 }
 0x72a   :  { %14231 = vst [vmem:[#allocation9_spill] sm:$0xff] %v13158_v56 }
 0x72b   :  { %6289 = vst.msk [vmem:[#allocation3 + $0x79] sm:$0xff] %vm6060_vm2, %v6288_v17  ;;  %v5949_v9 = vadd.f32 %v13074_v27, %v5864_v13  ;;  %9675 = vmatmul.msk.f32.gmra.mxu0 %vm197_vm1, %v5292_v7  ;;  %v13163_v7 = vpop.f32.mrf.mxu2 }
 0x72c   :  { %14232 = vst [vmem:[#allocation51_spill] sm:$0xff] %v13163_v7 }
 0x72d   :  { %v6030_v49 = vmax.f32 %v5949_v9, 0.0  ;;  %v5294_v9 = vld [vmem:[%s14159_s0 + $0x24e] sm:$0xff] }
 0x72f   :  { %6112 = vst.msk [vmem:[#allocation2 + $0x198] sm:$0xff] %vm6060_vm2, %v6030_v49  ;;  %v14233_v49 = vld [vmem:[#allocation10_spill] sm:$0xff] }
 0x730   :  { %v5726_v53 = vpop.f32.mrf.mxu0 }
 0x731   :  { %v5865_v35 = vadd.f32 %v5726_v53, %v14229_v6 }
 0x732   :  { %v6403_v23 = vld [vmem:[#allocation3 + $0x79] sm:$0xff] }
 0x733   :  { %v6377_v25 = vld [vmem:[#allocation3 + $0x78] sm:$0xff]  ;;  %v5950_v17 = vadd.f32 %v13074_v27, %v5865_v35  ;;  %9676 = vmatmul.msk.f32.gmra.mxu0 %vm197_vm1, %v5293_v62  ;;  %9704 = vmatmul.msk.f32.gmra.mxu1 %vm6060_vm2, %v6403_v23  ;;  %v13174_v35 = vpop.f32.mrf.mxu3 }
 0x734   :  { %v6762_v10 = vld [vmem:[#allocation3 + $0x72] sm:$0xff]  ;;  %9729 = vmatmul.msk.f32.gmra.mxu2 %vm6060_vm2, %v6377_v25  ;;  %v6763_v6 = vld [vmem:[#allocation3 + $0x7a] sm:$0xff]  ;;  %14234 = vst [vmem:[#allocation10_spill] sm:$0xff] %v13174_v35 }
 0x735   :  { %9753 = vmatmul.msk.f32.gmra.mxu3 %vm6060_vm2, %v6762_v10  ;;  %v6031_v60 = vmax.f32 %v5950_v17, 0.0  ;;  %v7209_v25 = vld [vmem:[%s14162_s3 + $0x20] sm:$0xff]  ;;  %v7427_v10 = vld [vmem:[%s14162_s3 + $0x28] sm:$0xff]  ;;  %v6991_v17 = vld [vmem:[%s14162_s3 + $0x18] sm:$0xff] }
 0x736   :  { %7300 = vmatpush.msrb.mxu2 %v7209_v25  ;;  %7518 = vmatpush.msrb.mxu3 %v7427_v10  ;;  %v5296_v25 = vld [vmem:[%s14159_s0 + $0x25e] sm:$0xff] }
 0x737   :  { %6113 = vst.msk [vmem:[#allocation2 + $0x1a0] sm:$0xff] %vm6060_vm2, %v6031_v60  ;;  %7082 = vmatpush.msrb.mxu1 %v6991_v17 }
 0x738   :  { %v5729_v13 = vpop.f32.mrf.mxu0 }
 0x739   :  { %v5866_v53 = vadd.f32 %v5729_v13, %v14233_v49  ;;  %v5295_v13 = vld [vmem:[%s14159_s0 + $0x256] sm:$0xff] }
 0x73a   :  { %v6291_v49 = vld [vmem:[#allocation2 + $0x18c] ss:$2 sm:$0xff] }
 0x73b   :  { %v5951_v62 = vadd.f32 %v13074_v27, %v5866_v53  ;;  %9677 = vmatmul.msk.f32.gmra.mxu0 %vm197_vm1, %v5294_v9  ;;  %v6293_v53 = vld [vmem:[#allocation2 + $0x18d] ss:$2 sm:$0xff] }
 0x73d   :  { %9754 = vmatmul.msk.f32.gmra.mxu3 %vm6060_vm2, %v6763_v6  ;;  %v6032_v23 = vmax.f32 %v5951_v62, 0.0  ;;  %v6294_v6 = vmax.f32 %v6291_v49, %v6293_v53  ;;  %v5297_v49 = vld [vmem:[%s14159_s0 + $0x266] sm:$0xff] }
 0x73f   :  { %6114 = vst.msk [vmem:[#allocation2 + $0x1a8] sm:$0xff] %vm6060_vm2, %v6032_v23 }
 0x740   :  { %v5732_v60 = vpop.f32.mrf.mxu0 }
 0x741   :  { %v5867_v9 = vadd.f32 %v5732_v60, %v12359_v30  ;;  %v14235_v60 = vld [vmem:[#allocation13_spill] sm:$0xff] }
 0x743   :  { %v5952_v62 = vadd.f32 %v13074_v27, %v5867_v9  ;;  %9678 = vmatmul.msk.f32.gmra.mxu0 %vm197_vm1, %v5295_v13 }
 0x745   :  { %v6033_v23 = vmax.f32 %v5952_v62, 0.0 }
 0x746   :  { %v6296_v35 = vld [vmem:[#allocation2 + $0x19e] ss:$2 sm:$0xff]  ;;  %v6299_v56 = vld [vmem:[#allocation2 + $0x19f] ss:$2 sm:$0xff] }
 0x747   :  { %v6297_v7 = vmax.f32 %v6294_v6, %v6296_v35  ;;  %6115 = vst.msk [vmem:[#allocation2 + $0x1b0] sm:$0xff] %vm6060_vm2, %v6033_v23  ;;  %v3194_v35 = vadd.f32 %v12384_v58, %v14235_v60  ;;  %v13210_v6 = vpop.f32.mrf.mxu1  ;;  %v13215_v23 = vpop.f32.mrf.mxu2  ;;  %v5298_v60 = vld [vmem:[%s14159_s0 + $0x26e] sm:$0xff] }
 0x748   :  { %v5735_v20 = vpop.f32.mrf.mxu0 }
 0x749   :  { %v6300_v30 = vmax.f32 %v6297_v7, %v6299_v56  ;;  %v5868_v10 = vadd.f32 %v5735_v20, %v12375_v8  ;;  %v3863_v56 = vadd.f32 %v12638_v26, %v3194_v35 }
 0x74b   :  { %6301 = vst.msk [vmem:[#allocation3 + $0x83] sm:$0xff] %vm6060_vm2, %v6300_v30  ;;  %v5953_v17 = vadd.f32 %v13074_v27, %v5868_v10  ;;  %9679 = vmatmul.msk.f32.gmra.mxu0 %vm197_vm1, %v5296_v25  ;;  %v4532_v62 = vadd.f32 %v12633_v47, %v3863_v56  ;;  %v13217_v25 = vpop.f32.mrf.mxu3  ;;  %v14237_v30 = vld [vmem:[#allocation50_spill] sm:$0xff]  ;;  %v14239_v56 = vld [vmem:[#allocation11_spill] sm:$0xff] }
 0x74d   :  { %v6034_v13 = vmax.f32 %v5953_v17, 0.0  ;;  %v5201_v10 = vadd.f32 %v14237_v30, %v4532_v62 }
 0x74f   :  { %6116 = vst.msk [vmem:[#allocation2 + $0x1b8] sm:$0xff] %vm6060_vm2, %v6034_v13 }
 0x750   :  { %v5738_v9 = vpop.f32.mrf.mxu0 }
 0x751   :  { %v5869_v8 = vadd.f32 %v5738_v9, %v12392_v41  ;;  %v14236_v41 = vld [vmem:[#allocation14_spill] sm:$0xff] }
 0x752   :  { %v6404_v20 = vld [vmem:[#allocation3 + $0x81] sm:$0xff]  ;;  %v3195_v26 = vadd.f32 %v12401_v59, %v14236_v41 }
 0x753   :  { %v6378_v7 = vld [vmem:[#allocation3 + $0x80] sm:$0xff]  ;;  %v5954_v58 = vadd.f32 %v13074_v27, %v5869_v8  ;;  %9680 = vmatmul.msk.f32.gmra.mxu0 %vm197_vm1, %v5297_v49  ;;  %9705 = vmatmul.msk.f32.gmra.mxu1 %vm6060_vm2, %v6404_v20 }
 0x754   :  { %v6764_v53 = vld [vmem:[#allocation3 + $0x82] sm:$0xff]  ;;  %9730 = vmatmul.msk.f32.gmra.mxu2 %vm6060_vm2, %v6378_v7  ;;  %v3864_v35 = vadd.f32 %v12716_v14, %v3195_v26  ;;  %v14238_v59 = vld [vmem:[#allocation15_spill] sm:$0xff]  ;;  %v5299_v14 = vld [vmem:[%s14159_s0 + $0x276] sm:$0xff] }
 0x755   :  { %9755 = vmatmul.msk.f32.gmra.mxu3 %vm6060_vm2, %v6764_v53  ;;  %v6035_v47 = vmax.f32 %v5954_v58, 0.0  ;;  %v3196_v8 = vadd.f32 %v14239_v56, %v14238_v59  ;;  %v14240_v26 = vld [vmem:[#allocation16_spill] sm:$0xff]  ;;  %v14242_v59 = vld [vmem:[#allocation17_spill] sm:$0xff] }
 0x756   :  { %v4533_v9 = vadd.f32 %v12721_v50, %v3864_v35  ;;  %v6303_v35 = vld [vmem:[#allocation2 + $0x1b0] ss:$2 sm:$0xff] }
 0x757   :  { %6117 = vst.msk [vmem:[#allocation2 + $0x1c0] sm:$0xff] %vm6060_vm2, %v6035_v47  ;;  %v3865_v62 = vadd.f32 %v12754_v54, %v3196_v8  ;;  %v14241_v47 = vld [vmem:[#allocation12_spill] sm:$0xff]  ;;  %v5300_v54 = vld [vmem:[%s14159_s0 + $0x27e] sm:$0xff] }
 0x758   :  { %v5741_v17 = vpop.f32.mrf.mxu0  ;;  %v5202_v7 = vadd.f32 %v12723_v39, %v4533_v9  ;;  %v3197_v30 = vadd.f32 %v14241_v47, %v14240_v26 }
 0x759   :  { %v5870_v13 = vadd.f32 %v5741_v17, %v5201_v10  ;;  %v4534_v58 = vadd.f32 %v12759_v2, %v3865_v62 }
 0x75b   :  { %v5955_v49 = vadd.f32 %v13074_v27, %v5870_v13  ;;  %9681 = vmatmul.msk.f32.gmra.mxu0 %vm197_vm1, %v5298_v60  ;;  %v5203_v10 = vadd.f32 %v12761_v24, %v4534_v58  ;;  %v3866_v60 = vadd.f32 %v12798_v18, %v3197_v30  ;;  %v6305_v13 = vld [vmem:[#allocation2 + $0x1b1] ss:$2 sm:$0xff]  ;;  %v14245_v30 = vld [vmem:[#allocation35_spill] sm:$0xff] }
 0x75c   :  { %v14243_v24 = vld [vmem:[#allocation34_spill] sm:$0xff]  ;;  %v6306_v8 = vmax.f32 %v6303_v35, %v6305_v13 }
 0x75d   :  { %v6036_v20 = vmax.f32 %v5955_v49, 0.0  ;;  %v4535_v9 = vadd.f32 %v12801_v34, %v3866_v60  ;;  %v3198_v56 = vadd.f32 %v14243_v24, %v14242_v59  ;;  %v5301_v34 = vld [vmem:[%s14159_s0 + $0x286] sm:$0xff]  ;;  %v13282_v59 = vpop.f32.mrf.mxu2  ;;  %v13284_v24 = vpop.f32.mrf.mxu3 }
 0x75f   :  { %6118 = vst.msk [vmem:[#allocation2 + $0x1c8] sm:$0xff] %vm6060_vm2, %v6036_v20 }
 0x760   :  { %v5744_v53 = vpop.f32.mrf.mxu0 }
 0x761   :  { %v5871_v50 = vadd.f32 %v5744_v53, %v5202_v7  ;;  %v5204_v53 = vadd.f32 %v12806_v46, %v4535_v9  ;;  %v14244_v46 = vld [vmem:[#allocation18_spill] sm:$0xff] }
 0x763   :  { %v5956_v41 = vadd.f32 %v13074_v27, %v5871_v50  ;;  %9682 = vmatmul.msk.f32.gmra.mxu0 %vm197_vm1, %v5299_v14  ;;  %v3867_v50 = vadd.f32 %v12815_v31, %v3198_v56  ;;  %v5302_v31 = vld [vmem:[%s14159_s0 + $0x28e] sm:$0xff] }
 0x764   :  { %v14247_v56 = vld [vmem:[#allocation36_spill] sm:$0xff] }
 0x765   :  { %v6037_v39 = vmax.f32 %v5956_v41, 0.0  ;;  %v4536_v26 = vadd.f32 %v12820_v12, %v3867_v50  ;;  %v14248_v50 = vld [vmem:[#allocation20_spill] sm:$0xff] }
 0x767   :  { %6119 = vst.msk [vmem:[#allocation2 + $0x1d0] sm:$0xff] %vm6060_vm2, %v6037_v39  ;;  %v3199_v39 = vadd.f32 %v14245_v30, %v14244_v46 }
 0x768   :  { %v5747_v17 = vpop.f32.mrf.mxu0 }
 0x769   :  { %v5872_v2 = vadd.f32 %v5747_v17, %v5203_v10  ;;  %v5205_v17 = vadd.f32 %v12843_v48, %v4536_v26  ;;  %v3868_v12 = vadd.f32 %v12845_v0, %v3199_v39  ;;  %v14246_v0 = vld [vmem:[#allocation19_spill] sm:$0xff] }
 0x76b   :  { %v5957_v49 = vadd.f32 %v13074_v27, %v5872_v2  ;;  %9683 = vmatmul.msk.f32.gmra.mxu0 %vm197_vm1, %v5300_v54  ;;  %v4537_v9 = vadd.f32 %v12850_v19, %v3868_v12  ;;  %v3200_v19 = vadd.f32 %v14247_v56, %v14246_v0 }
 0x76d   :  { %v6038_v20 = vmax.f32 %v5957_v49, 0.0  ;;  %v13277_v49 = vpop.f32.mrf.mxu1 }
 0x76e   :  { %v6308_v7 = vld [vmem:[#allocation2 + $0x1c2] ss:$2 sm:$0xff]  ;;  %v6311_v18 = vld [vmem:[#allocation2 + $0x1c3] ss:$2 sm:$0xff] }
 0x76f   :  { %v6309_v14 = vmax.f32 %v6306_v8, %v6308_v7  ;;  %6120 = vst.msk [vmem:[#allocation2 + $0x1d8] sm:$0xff] %vm6060_vm2, %v6038_v20  ;;  %v5206_v20 = vadd.f32 %v12861_v16, %v4537_v9 }
 0x770   :  { %v5750_v62 = vpop.f32.mrf.mxu0 }
 0x771   :  { %v6312_v58 = vmax.f32 %v6309_v14, %v6311_v18  ;;  %v5873_v41 = vadd.f32 %v5750_v62, %v5204_v53  ;;  %v5303_v53 = vld [vmem:[%s14159_s0 + $0x296] sm:$0xff]  ;;  %v3869_v14 = vadd.f32 %v12891_v29, %v3200_v19  ;;  %v5304_v29 = vld [vmem:[%s14159_s0 + $0x29e] sm:$0xff] }
 0x773   :  { %6313 = vst.msk [vmem:[#allocation3 + $0x8d] sm:$0xff] %vm6060_vm2, %v6312_v58  ;;  %v5958_v47 = vadd.f32 %v13074_v27, %v5873_v41  ;;  %9684 = vmatmul.msk.f32.gmra.mxu0 %vm197_vm1, %v5301_v34  ;;  %v4538_v62 = vadd.f32 %v12896_v1, %v3869_v14  ;;  %v14249_v58 = vld [vmem:[#allocation37_spill] sm:$0xff] }
 0x774   :  { %v3201_v41 = vadd.f32 %v14249_v58, %v14248_v50 }
 0x775   :  { %v6039_v10 = vmax.f32 %v5958_v47, 0.0  ;;  %v5207_v26 = vadd.f32 %v12898_v36, %v4538_v62  ;;  %v14251_v36 = vld [vmem:[#allocation38_spill] sm:$0xff]  ;;  %v13327_v62 = vpop.f32.mrf.mxu2 }
 0x776   :  { %v3870_v46 = vadd.f32 %v12929_v21, %v3201_v41 }
 0x777   :  { %6121 = vst.msk [vmem:[#allocation2 + $0x1e0] sm:$0xff] %vm6060_vm2, %v6039_v10 }
 0x778   :  { %v5753_v54 = vpop.f32.mrf.mxu0  ;;  %v4539_v10 = vadd.f32 %v12934_v45, %v3870_v46  ;;  %v5305_v45 = vld [vmem:[%s14159_s0 + $0x2a6] sm:$0xff] }
 0x779   :  { %v5874_v60 = vadd.f32 %v5753_v54, %v5205_v17  ;;  %v14250_v54 = vld [vmem:[#allocation21_spill] sm:$0xff]  ;;  %v14254_v46 = vld [vmem:[#allocation23_spill] sm:$0xff] }
 0x77a   :  { %v6405_v2 = vld [vmem:[#allocation3 + $0x89] sm:$0xff] }
 0x77b   :  { %v6379_v35 = vld [vmem:[#allocation3 + $0x88] sm:$0xff]  ;;  %v5959_v48 = vadd.f32 %v13074_v27, %v5874_v60  ;;  %9685 = vmatmul.msk.f32.gmra.mxu0 %vm197_vm1, %v5302_v31  ;;  %9706 = vmatmul.msk.f32.gmra.mxu1 %vm6060_vm2, %v6405_v2  ;;  %v3202_v31 = vadd.f32 %v14251_v36, %v14250_v54 }
 0x77c   :  { %v13274_v13 = vld [vmem:[#allocation3 + $0x8a] sm:$0xff]  ;;  %9731 = vmatmul.msk.f32.gmra.mxu2 %vm6060_vm2, %v6379_v35  ;;  %v5208_v35 = vadd.f32 %v12936_v57, %v4539_v10 }
 0x77d   :  { %9756 = vmatmul.msk.f32.gmra.mxu3 %vm6060_vm2, %v13274_v13  ;;  %v6040_v8 = vmax.f32 %v5959_v48, 0.0  ;;  %v3871_v0 = vadd.f32 %v12973_v44, %v3202_v31 }
 0x77e   :  { %v6315_v30 = vld [vmem:[#allocation2 + $0x1d4] ss:$2 sm:$0xff]  ;;  %v6317_v39 = vld [vmem:[#allocation2 + $0x1d5] ss:$2 sm:$0xff] }
 0x77f   :  { %6122 = vst.msk [vmem:[#allocation2 + $0x1e8] sm:$0xff] %vm6060_vm2, %v6040_v8  ;;  %v6318_v12 = vmax.f32 %v6315_v30, %v6317_v39  ;;  %v13319_v8 = vpop.f32.mrf.mxu1 }
 0x780   :  { %v5756_v7 = vpop.f32.mrf.mxu0 }
 0x781   :  { %v5875_v18 = vadd.f32 %v5756_v7, %v5206_v20  ;;  %v4540_v20 = vadd.f32 %v12976_v51, %v3871_v0  ;;  %v14252_v7 = vld [vmem:[#allocation22_spill] sm:$0xff] }
 0x783   :  { %v5960_v34 = vadd.f32 %v13074_v27, %v5875_v18  ;;  %9686 = vmatmul.msk.f32.gmra.mxu0 %vm197_vm1, %v5303_v53  ;;  %v14253_v53 = vld [vmem:[#allocation39_spill] sm:$0xff]  ;;  %v5209_v44 = vadd.f32 %v12981_v15, %v4540_v20 }
 0x784   :  { %v3203_v14 = vadd.f32 %v14253_v53, %v14252_v7  ;;  %v14258_v7 = vld [vmem:[#allocation25_spill] sm:$0xff]  ;;  %v14259_v53 = vld [vmem:[#allocation42_spill] sm:$0xff] }
 0x785   :  { %v6041_v16 = vmax.f32 %v5960_v34, 0.0  ;;  %v13330_v34 = vpop.f32.mrf.mxu3 }
 0x786   :  { %v3872_v51 = vadd.f32 %v12990_v37, %v3203_v14  ;;  %v14255_v37 = vld [vmem:[#allocation40_spill] sm:$0xff]  ;;  %v3206_v14 = vadd.f32 %v14259_v53, %v14258_v7  ;;  %v14265_v53 = vld [vmem:[#allocation45_spill] sm:$0xff] }
 0x787   :  { %6123 = vst.msk [vmem:[#allocation2 + $0x1f0] sm:$0xff] %vm6060_vm2, %v6041_v16  ;;  %v13340_v15 = vpop.f32.mrf.mxu1  ;;  %v14264_v7 = vld [vmem:[#allocation28_spill] sm:$0xff] }
 0x788   :  { %v5759_v47 = vpop.f32.mrf.mxu0 }
 0x789   :  { %v5876_v1 = vadd.f32 %v5759_v47, %v5207_v26  ;;  %v4541_v47 = vadd.f32 %v12995_v22, %v3872_v51  ;;  %v13348_v22 = vpop.f32.mrf.mxu2  ;;  %v3875_v51 = vadd.f32 %v13057_v55, %v3206_v14 }
 0x78b   :  { %v5961_v17 = vadd.f32 %v13074_v27, %v5876_v1  ;;  %9687 = vmatmul.msk.f32.gmra.mxu0 %vm197_vm1, %v5304_v29  ;;  %v3204_v1 = vadd.f32 %v14255_v37, %v14254_v46  ;;  %v5210_v39 = vadd.f32 %v13008_v3, %v4541_v47  ;;  %v14256_v3 = vld [vmem:[#allocation24_spill] sm:$0xff]  ;;  %v14261_v46 = vld [vmem:[#allocation43_spill] sm:$0xff] }
 0x78d   :  { %v6042_v60 = vmax.f32 %v5961_v17, 0.0  ;;  %v3873_v17 = vadd.f32 %v13013_v52, %v3204_v1  ;;  %v13351_v54 = vpop.f32.mrf.mxu3 }
 0x78e   :  { %v6320_v2 = vld [vmem:[#allocation2 + $0x1e6] ss:$2 sm:$0xff]  ;;  %v6323_v21 = vld [vmem:[#allocation2 + $0x1e7] ss:$2 sm:$0xff] }
 0x78f   :  { %v6321_v9 = vmax.f32 %v6318_v12, %v6320_v2  ;;  %6124 = vst.msk [vmem:[#allocation2 + $0x1f8] sm:$0xff] %vm6060_vm2, %v6042_v60  ;;  %v4542_v60 = vadd.f32 %v13015_v11, %v3873_v17 }
 0x790   :  { %v5762_v48 = vpop.f32.mrf.mxu0 }
 0x791   :  { %v6324_v56 = vmax.f32 %v6321_v9, %v6323_v21  ;;  %v5877_v19 = vadd.f32 %v5762_v48, %v5208_v35  ;;  %v14257_v35 = vld [vmem:[#allocation41_spill] sm:$0xff]  ;;  %v3794_v48 = vpop.f32.mrf.mxu1  ;;  %v5211_v52 = vadd.f32 %v13024_v42, %v4542_v60  ;;  %v4463_v11 = vpop.f32.mrf.mxu2 }
 0x792   :  { %v3205_v9 = vadd.f32 %v14257_v35, %v14256_v3  ;;  %v14262_v35 = vld [vmem:[#allocation27_spill] sm:$0xff] }
 0x793   :  { %6325 = vst.msk [vmem:[#allocation3 + $0x97] sm:$0xff] %vm6060_vm2, %v6324_v56  ;;  %v5962_v57 = vadd.f32 %v13074_v27, %v5877_v19  ;;  %9688 = vmatmul.msk.f32.gmra.mxu0 %vm197_vm1, %v5305_v45 }
 0x794   :  { %v3874_v0 = vadd.f32 %v13026_v4, %v3205_v9  ;;  %v14263_v9 = vld [vmem:[#allocation44_spill] sm:$0xff] }
 0x795   :  { %v6043_v18 = vmax.f32 %v5962_v57, 0.0  ;;  %v5132_v20 = vpop.f32.mrf.mxu3 }
 0x796   :  { %v4543_v19 = vadd.f32 %v13030_v38, %v3874_v0  ;;  %v4544_v38 = vadd.f32 %v13059_v5, %v3875_v51 }
 0x797   :  { %6125 = vst.msk [vmem:[#allocation2 + $0x200] sm:$0xff] %vm6060_vm2, %v6043_v18 }
 0x798   :  { %v5765_v50 = vpop.f32.mrf.mxu0 }
 0x799   :  { %v5878_v58 = vadd.f32 %v5765_v50, %v5209_v44  ;;  %v5212_v44 = vadd.f32 %v13040_v28, %v4543_v19  ;;  %v3797_v42 = vpop.f32.mrf.mxu1  ;;  %v4466_v47 = vpop.f32.mrf.mxu2 }
 0x79a   :  { %v6406_v41 = vld [vmem:[#allocation3 + $0x91] sm:$0xff]  ;;  %v6407_v31 = vld [vmem:[#allocation3 + $0x99] sm:$0xff] }
 0x79b   :  { %v6380_v16 = vld [vmem:[#allocation3 + $0x90] sm:$0xff]  ;;  %v5963_v29 = vadd.f32 %v13074_v27, %v5878_v58  ;;  %9707 = vmatmul.msk.f32.gmra.mxu1 %vm6060_vm2, %v6406_v41  ;;  %v6381_v12 = vld [vmem:[#allocation3 + $0x98] sm:$0xff] }
 0x79c   :  { %v13334_v26 = vld [vmem:[#allocation3 + $0x92] sm:$0xff]  ;;  %9732 = vmatmul.msk.f32.gmra.mxu2 %vm6060_vm2, %v6380_v16 }
 0x79d   :  { %9757 = vmatmul.msk.f32.gmra.mxu3 %vm6060_vm2, %v13334_v26  ;;  %v6044_v30 = vmax.f32 %v5963_v29, 0.0  ;;  %v14260_v29 = vld [vmem:[#allocation26_spill] sm:$0xff]  ;;  %v5135_v1 = vpop.f32.mrf.mxu3 }
 0x79e   :  { %v6327_v58 = vld [vmem:[#allocation2 + $0x1f8] ss:$2 sm:$0xff]  ;;  %v6329_v41 = vld [vmem:[#allocation2 + $0x1f9] ss:$2 sm:$0xff]  ;;  %v3207_v37 = vadd.f32 %v14261_v46, %v14260_v29 }
 0x79f   :  { %6126 = vst.msk [vmem:[#allocation2 + $0x208] sm:$0xff] %vm6060_vm2, %v6044_v30  ;;  %v6330_v30 = vmax.f32 %v6327_v58, %v6329_v41  ;;  %v14268_v41 = vld [vmem:[#allocation51_spill] sm:$0xff]  ;;  %v14269_v46 = vld [vmem:[#allocation29_spill] sm:$0xff] }
 0x7a0   :  { %v5768_v10 = vpop.f32.mrf.mxu0 }
 0x7a1   :  { %v5879_v36 = vadd.f32 %v5768_v10, %v5210_v39  ;;  %v5213_v10 = vadd.f32 %v13063_v40, %v4544_v38  ;;  %v3800_v60 = vpop.f32.mrf.mxu1  ;;  %v4469_v48 = vpop.f32.mrf.mxu2 }
 0x7a3   :  { %v5964_v2 = vadd.f32 %v13074_v27, %v5879_v36  ;;  %9708 = vmatmul.msk.f32.gmra.mxu1 %vm6060_vm2, %v6407_v31  ;;  %v3876_v31 = vadd.f32 %v13104_v32, %v3207_v37  ;;  %v14270_v37 = vld [vmem:[#allocation46_spill] sm:$0xff] }
 0x7a4   :  { %9733 = vmatmul.msk.f32.gmra.mxu2 %vm6060_vm2, %v6381_v12  ;;  %v3210_v1 = vadd.f32 %v14270_v37, %v14269_v46 }
 0x7a5   :  { %v6045_v21 = vmax.f32 %v5964_v2, 0.0  ;;  %v4545_v2 = vadd.f32 %v13107_v43, %v3876_v31 }
 0x7a7   :  { %6127 = vst.msk [vmem:[#allocation2 + $0x210] sm:$0xff] %vm6060_vm2, %v6045_v21  ;;  %v3208_v21 = vadd.f32 %v14263_v9, %v14262_v35  ;;  %v14273_v35 = vld [vmem:[#allocation47_spill] sm:$0xff] }
 0x7a8   :  { %v5771_v45 = vpop.f32.mrf.mxu0 }
 0x7a9   :  { %v5880_v56 = vadd.f32 %v5771_v45, %v5211_v52  ;;  %v5214_v52 = vadd.f32 %v13112_v33, %v4545_v2  ;;  %v5138_v45 = vpop.f32.mrf.mxu3  ;;  %v3877_v0 = vadd.f32 %v13121_v61, %v3208_v21  ;;  %v3803_v33 = vpop.f32.mrf.mxu1  ;;  %v3209_v61 = vadd.f32 %v14265_v53, %v14264_v7  ;;  %v14275_v7 = vld [vmem:[#allocation48_spill] sm:$0xff] }
 0x7aa   :  { %v4472_v42 = vpop.f32.mrf.mxu2 }
 0x7ab   :  { %v5965_v57 = vadd.f32 %v13074_v27, %v5880_v56  ;;  %v4546_v20 = vadd.f32 %v13126_v63, %v3877_v0 }
 0x7ad   :  { %v6046_v18 = vmax.f32 %v5965_v57, 0.0 }
 0x7af   :  { %6128 = vst.msk [vmem:[#allocation2 + $0x218] sm:$0xff] %vm6060_vm2, %v6046_v18  ;;  %v14266_v18 = vld [vmem:[#allocation33_spill] sm:$0xff] }
 0x7b0   :  { %v5774_v50 = vpop.f32.mrf.mxu0 }
 0x7b1   :  { %v5881_v4 = vadd.f32 %v5774_v50, %v5212_v44  ;;  %v5215_v44 = vadd.f32 %v14266_v18, %v4546_v20  ;;  %v14267_v50 = vld [vmem:[#allocation9_spill] sm:$0xff]  ;;  %v13401_v29 = vpop.f32.mrf.mxu1 }
 0x7b2   :  { %v3878_v51 = vadd.f32 %v14267_v50, %v3209_v61 }
 0x7b3   :  { %v5966_v16 = vadd.f32 %v13074_v27, %v5881_v4  ;;  %v5141_v4 = vpop.f32.mrf.mxu3 }
 0x7b4   :  { %v4547_v38 = vadd.f32 %v14268_v41, %v3878_v51 }
 0x7b5   :  { %v6047_v28 = vmax.f32 %v5966_v16, 0.0 }
 0x7b6   :  { %v6332_v39 = vld [vmem:[#allocation2 + $0x20a] ss:$2 sm:$0xff]  ;;  %v6335_v55 = vld [vmem:[#allocation2 + $0x20b] ss:$2 sm:$0xff] }
 0x7b7   :  { %v6333_v17 = vmax.f32 %v6330_v30, %v6332_v39  ;;  %6129 = vst.msk [vmem:[#allocation2 + $0x220] sm:$0xff] %vm6060_vm2, %v6047_v28  ;;  %v14271_v28 = vld [vmem:[#allocation10_spill] sm:$0xff] }
 0x7b8   :  { %v5777_v36 = vpop.f32.mrf.mxu0  ;;  %v5216_v39 = vadd.f32 %v14271_v28, %v4547_v38 }
 0x7b9   :  { %v6336_v5 = vmax.f32 %v6333_v17, %v6335_v55  ;;  %v5882_v12 = vadd.f32 %v5777_v36, %v5213_v10  ;;  %v13409_v10 = vpop.f32.mrf.mxu2  ;;  %v3879_v55 = vadd.f32 %v13210_v6, %v3210_v1  ;;  %v13418_v48 = vpop.f32.mrf.mxu1 }
 0x7bb   :  { %6337 = vst.msk [vmem:[#allocation3 + $0xa1] sm:$0xff] %vm6060_vm2, %v6336_v5  ;;  %v5967_v3 = vadd.f32 %v13074_v27, %v5882_v12  ;;  %v13412_v36 = vpop.f32.mrf.mxu3  ;;  %v4548_v60 = vadd.f32 %v13215_v23, %v3879_v55 }
 0x7bd   :  { %v6048_v40 = vmax.f32 %v5967_v3, 0.0  ;;  %v14272_v3 = vld [vmem:[#allocation30_spill] sm:$0xff]  ;;  %v5217_v45 = vadd.f32 %v13217_v25, %v4548_v60  ;;  %v14274_v25 = vld [vmem:[#allocation31_spill] sm:$0xff] }
 0x7be   :  { %v3211_v9 = vadd.f32 %v14273_v35, %v14272_v3  ;;  %v3212_v53 = vadd.f32 %v14275_v7, %v14274_v25  ;;  %v7645_v7 = vld [vmem:[%s14162_s3 + $0x30] sm:$0xff] }
 0x7bf   :  { %6130 = vst.msk [vmem:[#allocation2 + $0x228] sm:$0xff] %vm6060_vm2, %v6048_v40  ;;  %7736 = vmatpush.msra.mxu1 %v7645_v7 }
 0x7c0   :  { %v5780_v32 = vpop.f32.mrf.mxu0 }
 0x7c1   :  { %v5883_v56 = vadd.f32 %v5780_v32, %v5214_v52 }
 0x7c2   :  { %v6408_v11 = vld [vmem:[#allocation3 + $0xa1] sm:$0xff] }
 0x7c3   :  { %v6382_v43 = vld [vmem:[#allocation3 + $0xa0] sm:$0xff]  ;;  %v5968_v57 = vadd.f32 %v13074_v27, %v5883_v56  ;;  %9709 = vmatmul.msk.f32.gmra.mxu1 %vm6060_vm2, %v6408_v11  ;;  %v3880_v56 = vadd.f32 %v13277_v49, %v3211_v9 }
 0x7c4   :  { %v13384_v19 = vld [vmem:[#allocation3 + $0x9a] sm:$0xff]  ;;  %9734 = vmatmul.msk.f32.gmra.mxu2 %vm6060_vm2, %v6382_v43  ;;  %v13399_v47 = vld [vmem:[#allocation3 + $0xa2] sm:$0xff]  ;;  %v13423_v43 = vpop.f32.mrf.mxu2 }
 0x7c5   :  { %9758 = vmatmul.msk.f32.gmra.mxu3 %vm6060_vm2, %v13384_v19  ;;  %v6049_v14 = vmax.f32 %v5968_v57, 0.0  ;;  %v4549_v20 = vadd.f32 %v13282_v59, %v3880_v56  ;;  %v13426_v57 = vpop.f32.mrf.mxu3 }
 0x7c6   :  { %v6339_v5 = vld [vmem:[#allocation2 + $0x21c] ss:$2 sm:$0xff]  ;;  %v6341_v12 = vld [vmem:[#allocation2 + $0x21d] ss:$2 sm:$0xff] }
 0x7c7   :  { %6131 = vst.msk [vmem:[#allocation2 + $0x230] sm:$0xff] %vm6060_vm2, %v6049_v14  ;;  %v6342_v21 = vmax.f32 %v6339_v5, %v6341_v12  ;;  %v13432_v14 = vpop.f32.mrf.mxu1  ;;  %v5218_v49 = vadd.f32 %v13284_v24, %v4549_v20  ;;  %v14276_v24 = vld [vmem:[#allocation32_spill] sm:$0xff]  ;;  %v7863_v20 = vld [vmem:[%s14162_s3 + $0x38] sm:$0xff] }
 0x7c8   :  { %v5783_v63 = vpop.f32.mrf.mxu0  ;;  %7954 = vmatpush.msra.mxu2 %v7863_v20  ;;  %v13543_v20 = vld [vmem:[#allocation3 + $0x1c] sm:$0xff] }
 0x7c9   :  { %v5884_v58 = vadd.f32 %v5783_v63, %v5215_v44  ;;  %v3881_v44 = vadd.f32 %v13319_v8, %v3212_v53  ;;  %v14277_v8 = vld [vmem:[#allocation49_spill] sm:$0xff] }
 0x7ca   :  { %v3213_v38 = vadd.f32 %v14277_v8, %v14276_v24 }
 0x7cb   :  { %v5969_v16 = vadd.f32 %v13074_v27, %v5884_v58  ;;  %v4550_v4 = vadd.f32 %v13327_v62, %v3881_v44 }
 0x7cc   :  { %v13437_v42 = vpop.f32.mrf.mxu2  ;;  %v3882_v1 = vadd.f32 %v13340_v15, %v3213_v38 }
 0x7cd   :  { %9759 = vmatmul.msk.f32.gmra.mxu3 %vm6060_vm2, %v13399_v47  ;;  %v6050_v30 = vmax.f32 %v5969_v16, 0.0  ;;  %v13442_v58 = vpop.f32.mrf.mxu3  ;;  %v5219_v37 = vadd.f32 %v13330_v34, %v4550_v4 }
 0x7cf   :  { %6132 = vst.msk [vmem:[#allocation2 + $0x238] sm:$0xff] %vm6060_vm2, %v6050_v30  ;;  %v13451_v46 = vpop.f32.mrf.mxu1 }
 0x7d0   :  { %v5786_v17 = vpop.f32.mrf.mxu0 }
 0x7d1   :  { %v5885_v31 = vadd.f32 %v5786_v17, %v5216_v39  ;;  %v4551_v39 = vadd.f32 %v13348_v22, %v3882_v1  ;;  %v13518_v1 = vld [vmem:[#allocation3 + $0xc2] sm:$0xff] }
 0x7d3   :  { %v5970_v2 = vadd.f32 %v13074_v27, %v5885_v31  ;;  %v5220_v5 = vadd.f32 %v13351_v54, %v4551_v39 }
 0x7d4   :  { %v13456_v28 = vpop.f32.mrf.mxu2 }
 0x7d5   :  { %v6051_v40 = vmax.f32 %v5970_v2, 0.0  ;;  %v13459_v17 = vpop.f32.mrf.mxu3 }
 0x7d6   :  { %v6344_v52 = vld [vmem:[#allocation2 + $0x22e] ss:$2 sm:$0xff]  ;;  %v6347_v32 = vld [vmem:[#allocation2 + $0x22f] ss:$2 sm:$0xff] }
 0x7d7   :  { %v6345_v6 = vmax.f32 %v6342_v21, %v6344_v52  ;;  %6133 = vst.msk [vmem:[#allocation2 + $0x240] sm:$0xff] %vm6060_vm2, %v6051_v40  ;;  %v13464_v34 = vpop.f32.mrf.mxu1 }
 0x7d8   :  { %v5789_v0 = vpop.f32.mrf.mxu0 }
 0x7d9   :  { %v6348_v23 = vmax.f32 %v6345_v6, %v6347_v32  ;;  %v5886_v11 = vadd.f32 %v5789_v0, %v5217_v45 }
 0x7db   :  { %6349 = vst.msk [vmem:[#allocation3 + $0xab] sm:$0xff] %vm6060_vm2, %v6348_v23  ;;  %v5971_v33 = vadd.f32 %v13074_v27, %v5886_v11 }
 0x7dc   :  { %v13469_v3 = vpop.f32.mrf.mxu2 }
 0x7dd   :  { %v6052_v61 = vmax.f32 %v5971_v33, 0.0  ;;  %v13466_v2 = vpop.f32.mrf.mxu3  ;;  %v8081_v33 = vld [vmem:[%s14162_s3 + $0x40] sm:$0xff] }
 0x7de   :  { %8172 = vmatpush.msra.mxu3 %v8081_v33 }
 0x7df   :  { %6134 = vst.msk [vmem:[#allocation2 + $0x248] sm:$0xff] %vm6060_vm2, %v6052_v61  ;;  %v13472_v35 = vpop.f32.mrf.mxu1 }
 0x7e0   :  { %v5792_v18 = vpop.f32.mrf.mxu0 }
 0x7e1   :  { %v5887_v59 = vadd.f32 %v5792_v18, %v5218_v49 }
 0x7e2   :  { %v6409_v63 = vld [vmem:[#allocation3 + $0xa9] sm:$0xff] }
 0x7e3   :  { %v6383_v50 = vld [vmem:[#allocation3 + $0xa8] sm:$0xff]  ;;  %v5972_v41 = vadd.f32 %v13074_v27, %v5887_v59  ;;  %9710 = vmatmul.msk.f32.gmra.mxu1 %vm6060_vm2, %v6409_v63 }
 0x7e4   :  { %v13439_v51 = vld [vmem:[#allocation3 + $0xaa] sm:$0xff]  ;;  %9735 = vmatmul.msk.f32.gmra.mxu2 %vm6060_vm2, %v6383_v50  ;;  %v13474_v40 = vpop.f32.mrf.mxu2 }
 0x7e5   :  { %9760 = vmatmul.msk.f32.gmra.mxu3 %vm6060_vm2, %v13439_v51  ;;  %v6053_v16 = vmax.f32 %v5972_v41, 0.0  ;;  %v13476_v52 = vpop.f32.mrf.mxu3 }
 0x7e6   :  { %v6351_v21 = vld [vmem:[#allocation2 + $0x240] ss:$2 sm:$0xff]  ;;  %v6353_v54 = vld [vmem:[#allocation2 + $0x241] ss:$2 sm:$0xff] }
 0x7e7   :  { %6135 = vst.msk [vmem:[#allocation2 + $0x250] sm:$0xff] %vm6060_vm2, %v6053_v16  ;;  %v6354_v45 = vmax.f32 %v6351_v21, %v6353_v54  ;;  %v13478_v0 = vpop.f32.mrf.mxu1  ;;  %v6967_v21 = vld [vmem:[#allocation3 + $0x12] sm:$0xff] }
 0x7e8   :  { %v5795_v62 = vpop.f32.mrf.mxu0  ;;  %v7185_v54 = vld [vmem:[#allocation3 + $0x13] sm:$0xff] }
 0x7e9   :  { %v5888_v30 = vadd.f32 %v5795_v62, %v5219_v37  ;;  %v6412_v37 = vld [vmem:[#allocation3 + $0xc1] sm:$0xff] }
 0x7ea   :  { %v6386_v62 = vld [vmem:[#allocation3 + $0xc0] sm:$0xff] }
 0x7eb   :  { %v5973_v55 = vadd.f32 %v13074_v27, %v5888_v30 }
 0x7ec   :  { %v13481_v11 = vpop.f32.mrf.mxu2 }
 0x7ed   :  { %v6054_v31 = vmax.f32 %v5973_v55, 0.0  ;;  %v13489_v25 = vpop.f32.mrf.mxu3 }
 0x7ef   :  { %6136 = vst.msk [vmem:[#allocation2 + $0x258] sm:$0xff] %vm6060_vm2, %v6054_v31  ;;  %v13494_v53 = vpop.f32.mrf.mxu1 }
 0x7f0   :  { %v5798_v12 = vpop.f32.mrf.mxu0 }
 0x7f1   :  { %v5889_v60 = vadd.f32 %v5798_v12, %v5220_v5  ;;  %v6966_v5 = vld [vmem:[#allocation3 + $0xa] sm:$0xff] }
 0x7f2   :  { %v7184_v12 = vld [vmem:[#allocation3 + $0xb] sm:$0xff] }
 0x7f3   :  { %v5974_v15 = vadd.f32 %v13074_v27, %v5889_v60  ;;  %v7402_v60 = vld [vmem:[#allocation3 + $0xc] sm:$0xff] }
 0x7f4   :  { %v13500_v59 = vpop.f32.mrf.mxu2 }
 0x7f5   :  { %v6055_v22 = vmax.f32 %v5974_v15, 0.0  ;;  %v13504_v63 = vpop.f32.mrf.mxu3 }
 0x7f7   :  { %6137 = vst.msk [vmem:[#allocation2 + $0x260] sm:$0xff] %vm6060_vm2, %v6055_v22  ;;  %v13506_v50 = vpop.f32.mrf.mxu1 }
 0x7f8   :  { %v5801_v9 = vpop.f32.mrf.mxu0 }
 0x7fc   :  { %v13512_v38 = vpop.f32.mrf.mxu2 }
 0x7fd   :  { %v13516_v16 = vpop.f32.mrf.mxu3 }
 0x7fe   :  { %v6356_v6 = vld [vmem:[#allocation2 + $0x252] ss:$2 sm:$0xff]  ;;  %v6359_v27 = vld [vmem:[#allocation2 + $0x253] ss:$2 sm:$0xff] }
 0x7ff   :  { %v6357_v32 = vmax.f32 %v6354_v45, %v6356_v6  ;;  %v13520_v30 = vpop.f32.mrf.mxu1  ;;  %v13535_v45 = vld [vmem:[#allocation3 + $0x14] sm:$0xff] }
 0x800   :  { %v5804_v56 = vpop.f32.mrf.mxu0 }
 0x801   :  { %v6360_v23 = vmax.f32 %v6357_v32, %v6359_v27  ;;  %v6968_v56 = vld [vmem:[#allocation3 + $0x1a] sm:$0xff] }
 0x803   :  { %6361 = vst.msk [vmem:[#allocation3 + $0xb5] sm:$0xff] %vm6060_vm2, %v6360_v23  ;;  %v7186_v23 = vld [vmem:[#allocation3 + $0x1b] sm:$0xff] }
 0x804   :  { %v13528_v55 = vpop.f32.mrf.mxu2 }
 0x805   :  { %v13526_v39 = vpop.f32.mrf.mxu3 }
 0x807   :  { %v6536_v31 = vpop.f32.mrf.mxu1 }
 0x808   :  { %v5807_v61 = vpop.f32.mrf.mxu0  ;;  %v13565_v31 = vld [vmem:[#allocation3 + $0x2c] sm:$0xff] }
 0x809   :  { %v6969_v61 = vld [vmem:[#allocation3 + $0x22] sm:$0xff] }
 0x80a   :  { %v6410_v49 = vld [vmem:[#allocation3 + $0xb1] sm:$0xff]  ;;  %v6411_v41 = vld [vmem:[#allocation3 + $0xb9] sm:$0xff] }
 0x80b   :  { %v6384_v18 = vld [vmem:[#allocation3 + $0xb0] sm:$0xff]  ;;  %9711 = vmatmul.msk.f32.gmra.mxu1 %vm6060_vm2, %v6410_v49  ;;  %v6385_v24 = vld [vmem:[#allocation3 + $0xb8] sm:$0xff]  ;;  %v7187_v49 = vld [vmem:[#allocation3 + $0x23] sm:$0xff] }
 0x80c   :  { %v13496_v44 = vld [vmem:[#allocation3 + $0xb2] sm:$0xff]  ;;  %9736 = vmatmul.msk.f32.gmra.mxu2 %vm6060_vm2, %v6384_v18  ;;  %v13510_v8 = vld [vmem:[#allocation3 + $0xba] sm:$0xff]  ;;  %v6703_v15 = vpop.f32.mrf.mxu2  ;;  %v13553_v18 = vld [vmem:[#allocation3 + $0x24] sm:$0xff] }
 0x80d   :  { %9761 = vmatmul.msk.f32.gmra.mxu3 %vm6060_vm2, %v13496_v44  ;;  %v6896_v22 = vpop.f32.mrf.mxu3 }
 0x80e   :  { %v13575_v22 = vld [vmem:[#allocation3 + $0x34] sm:$0xff] }
 0x80f   :  { %v6539_v9 = vpop.f32.mrf.mxu1 }
 0x810   :  { %v5810_v4 = vpop.f32.mrf.mxu0 }
 0x813   :  { %9712 = vmatmul.msk.f32.gmra.mxu1 %vm6060_vm2, %v6411_v41 }
 0x814   :  { %9737 = vmatmul.msk.f32.gmra.mxu2 %vm6060_vm2, %v6385_v24  ;;  %v6706_v6 = vpop.f32.mrf.mxu2  ;;  %v6970_v24 = vld [vmem:[#allocation3 + $0x2a] sm:$0xff] }
 0x815   :  { %9762 = vmatmul.msk.f32.gmra.mxu3 %vm6060_vm2, %v13510_v8  ;;  %v6899_v32 = vpop.f32.mrf.mxu3  ;;  %v7190_v6 = vld [vmem:[#allocation3 + $0x3b] sm:$0xff] }
 0x816   :  { %v13585_v32 = vld [vmem:[#allocation3 + $0x3c] sm:$0xff] }
 0x817   :  { %v13539_v27 = vpop.f32.mrf.mxu1  ;;  %14280 = vst [vmem:[#allocation50_spill] sm:$0xff] %v13585_v32 }
 0x81b   :  { %9713 = vmatmul.msk.f32.gmra.mxu1 %vm6060_vm2, %v6412_v37  ;;  %v7188_v37 = vld [vmem:[#allocation3 + $0x2b] sm:$0xff] }
 0x81c   :  { %9738 = vmatmul.msk.f32.gmra.mxu2 %vm6060_vm2, %v6386_v62  ;;  %v13547_v33 = vpop.f32.mrf.mxu2 }
 0x81d   :  { %9763 = vmatmul.msk.f32.gmra.mxu3 %vm6060_vm2, %v13518_v1  ;;  %v13549_v7 = vpop.f32.mrf.mxu3 }
 0x81f   :  { %v13555_v4 = vpop.f32.mrf.mxu1 }
 0x823   :  { %9764 = vmatmul.msk.f32.vlgmr.msrb.gmra.mxu1 %vm6060_vm2, %v6966_v5 }
 0x824   :  { %9789 = vmatmul.msk.f32.vlgmr.msrb.gmra.mxu2 %vm6060_vm2, %v7184_v12  ;;  %v13559_v41 = vpop.f32.mrf.mxu2  ;;  %v6971_v12 = vld [vmem:[#allocation3 + $0x32] sm:$0xff] }
 0x825   :  { %9814 = vmatmul.msk.f32.vlgmr.msrb.gmra.mxu3 %vm6060_vm2, %v7402_v60  ;;  %v13561_v62 = vpop.f32.mrf.mxu3  ;;  %v7189_v60 = vld [vmem:[#allocation3 + $0x33] sm:$0xff] }
 0x827   :  { %v13569_v5 = vpop.f32.mrf.mxu1 }
 0x82b   :  { %9765 = vmatmul.msk.f32.gmra.mxu1 %vm6060_vm2, %v6967_v21 }
 0x82c   :  { %9790 = vmatmul.msk.f32.gmra.mxu2 %vm6060_vm2, %v7185_v54  ;;  %v13577_v9 = vpop.f32.mrf.mxu2  ;;  %v6972_v54 = vld [vmem:[#allocation3 + $0x3a] sm:$0xff] }
 0x82d   :  { %9815 = vmatmul.msk.f32.gmra.mxu3 %vm6060_vm2, %v13535_v45  ;;  %v13571_v15 = vpop.f32.mrf.mxu3 }
 0x82e   :  { %14278 = vst [vmem:[#allocation13_spill] sm:$0xff] %v13571_v15  ;;  %v7199_v15 = vld [vmem:[#allocation3 + $0x83] sm:$0xff] }
 0x82f   :  { %v13581_v21 = vpop.f32.mrf.mxu1 }
 0x830   :  { %14279 = vst [vmem:[#allocation14_spill] sm:$0xff] %v13581_v21 }
 0x833   :  { %9766 = vmatmul.msk.f32.gmra.mxu1 %vm6060_vm2, %v6968_v56 }
 0x834   :  { %9791 = vmatmul.msk.f32.gmra.mxu2 %vm6060_vm2, %v7186_v23  ;;  %v13587_v56 = vpop.f32.mrf.mxu2 }
 0x835   :  { %9816 = vmatmul.msk.f32.gmra.mxu3 %vm6060_vm2, %v13543_v20  ;;  %14281 = vst [vmem:[#allocation15_spill] sm:$0xff] %v13587_v56  ;;  %v13591_v23 = vpop.f32.mrf.mxu3 }
 0x836   :  { %14282 = vst [vmem:[#allocation11_spill] sm:$0xff] %v13591_v23  ;;  %v7192_v23 = vld [vmem:[#allocation3 + $0x4b] sm:$0xff] }
 0x83b   :  { %9767 = vmatmul.msk.f32.gmra.mxu1 %vm6060_vm2, %v6969_v61  ;;  %v13593_v61 = vpop.f32.mrf.mxu1 }
 0x83c   :  { %9792 = vmatmul.msk.f32.gmra.mxu2 %vm6060_vm2, %v7187_v49  ;;  %14283 = vst [vmem:[#allocation16_spill] sm:$0xff] %v13593_v61  ;;  %v6973_v49 = vld [vmem:[#allocation3 + $0x42] sm:$0xff] }
 0x83d   :  { %9817 = vmatmul.msk.f32.gmra.mxu3 %vm6060_vm2, %v13553_v18 }
 0x843   :  { %9768 = vmatmul.msk.f32.gmra.mxu1 %vm6060_vm2, %v6970_v24  ;;  %v7191_v24 = vld [vmem:[#allocation3 + $0x43] sm:$0xff] }
 0x844   :  { %9793 = vmatmul.msk.f32.gmra.mxu2 %vm6060_vm2, %v7188_v37  ;;  %v13597_v37 = vld [vmem:[#allocation3 + $0x44] sm:$0xff] }
 0x845   :  { %9818 = vmatmul.msk.f32.gmra.mxu3 %vm6060_vm2, %v13565_v31  ;;  %14284 = vst [vmem:[#allocation12_spill] sm:$0xff] %v13597_v37 }
 0x84b   :  { %9769 = vmatmul.msk.f32.gmra.mxu1 %vm6060_vm2, %v6971_v12  ;;  %v13599_v12 = vpop.f32.mrf.mxu2 }
 0x84c   :  { %9794 = vmatmul.msk.f32.gmra.mxu2 %vm6060_vm2, %v7189_v60  ;;  %14285 = vst [vmem:[#allocation17_spill] sm:$0xff] %v13599_v12  ;;  %v13603_v60 = vpop.f32.mrf.mxu3 }
 0x84d   :  { %9819 = vmatmul.msk.f32.gmra.mxu3 %vm6060_vm2, %v13575_v22  ;;  %14286 = vst [vmem:[#allocation34_spill] sm:$0xff] %v13603_v60  ;;  %v6975_v60 = vld [vmem:[#allocation3 + $0x52] sm:$0xff] }
 0x853   :  { %9770 = vmatmul.msk.f32.gmra.mxu1 %vm6060_vm2, %v6972_v54  ;;  %v13605_v54 = vpop.f32.mrf.mxu1 }
 0x854   :  { %9795 = vmatmul.msk.f32.gmra.mxu2 %vm6060_vm2, %v7190_v6  ;;  %14287 = vst [vmem:[#allocation18_spill] sm:$0xff] %v13605_v54  ;;  %v6974_v6 = vld [vmem:[#allocation3 + $0x4a] sm:$0xff]  ;;  %v13615_v12 = vpop.f32.mrf.mxu3 }
 0x855   :  { %9820 = vmatmul.msk.f32.gmra.mxu3 %vm6060_vm2, %v13585_v32  ;;  %14290 = vst [vmem:[#allocation36_spill] sm:$0xff] %v13615_v12  ;;  %v6976_v12 = vld [vmem:[#allocation3 + $0x5a] sm:$0xff] }
 0x85b   :  { %9771 = vmatmul.msk.f32.gmra.mxu1 %vm6060_vm2, %v6973_v49  ;;  %v13609_v49 = vld [vmem:[#allocation3 + $0x4c] sm:$0xff]  ;;  %v13617_v61 = vpop.f32.mrf.mxu1 }
 0x85c   :  { %9796 = vmatmul.msk.f32.gmra.mxu2 %vm6060_vm2, %v7191_v24  ;;  %14288 = vst [vmem:[#allocation35_spill] sm:$0xff] %v13609_v49  ;;  %v13611_v24 = vpop.f32.mrf.mxu2 }
 0x85d   :  { %9821 = vmatmul.msk.f32.gmra.mxu3 %vm6060_vm2, %v13597_v37  ;;  %14289 = vst [vmem:[#allocation19_spill] sm:$0xff] %v13611_v24  ;;  %v7193_v37 = vld [vmem:[#allocation3 + $0x53] sm:$0xff]  ;;  %v13627_v24 = vpop.f32.mrf.mxu3 }
 0x85e   :  { %14291 = vst [vmem:[#allocation20_spill] sm:$0xff] %v13617_v61  ;;  %v13631_v61 = vld [vmem:[#allocation3 + $0x5c] sm:$0xff] }
 0x85f   :  { %14294 = vst [vmem:[#allocation38_spill] sm:$0xff] %v13627_v24  ;;  %v7195_v24 = vld [vmem:[#allocation3 + $0x63] sm:$0xff] }
 0x860   :  { %14296 = vst [vmem:[#allocation39_spill] sm:$0xff] %v13631_v61 }
 0x863   :  { %9772 = vmatmul.msk.f32.gmra.mxu1 %vm6060_vm2, %v6974_v6  ;;  %v13621_v6 = vld [vmem:[#allocation3 + $0x54] sm:$0xff]  ;;  %v13629_v54 = vpop.f32.mrf.mxu1 }
 0x864   :  { %9797 = vmatmul.msk.f32.gmra.mxu2 %vm6060_vm2, %v7192_v23  ;;  %14292 = vst [vmem:[#allocation37_spill] sm:$0xff] %v13621_v6  ;;  %v13623_v23 = vpop.f32.mrf.mxu2 }
 0x865   :  { %9822 = vmatmul.msk.f32.gmra.mxu3 %vm6060_vm2, %v13609_v49  ;;  %14293 = vst [vmem:[#allocation21_spill] sm:$0xff] %v13623_v23  ;;  %v7194_v49 = vld [vmem:[#allocation3 + $0x5b] sm:$0xff] }
 0x866   :  { %14295 = vst [vmem:[#allocation22_spill] sm:$0xff] %v13629_v54  ;;  %v9939_v54 = vld [vmem:[#allocation3 + $0x62] sm:$0xff] }
 0x86b   :  { %9773 = vmatmul.msk.f32.gmra.mxu1 %vm6060_vm2, %v6975_v60  ;;  %v13641_v23 = vpop.f32.mrf.mxu1 }
 0x86c   :  { %9798 = vmatmul.msk.f32.gmra.mxu2 %vm6060_vm2, %v7193_v37  ;;  %v13637_v37 = vpop.f32.mrf.mxu3  ;;  %v13639_v60 = vpop.f32.mrf.mxu2  ;;  %14299 = vst [vmem:[#allocation24_spill] sm:$0xff] %v13641_v23  ;;  %v13657_v23 = vld [vmem:[#allocation3 + $0x6c] sm:$0xff] }
 0x86d   :  { %9823 = vmatmul.msk.f32.gmra.mxu3 %vm6060_vm2, %v13621_v6  ;;  %14297 = vst [vmem:[#allocation23_spill] sm:$0xff] %v13637_v37  ;;  %v13643_v6 = vld [vmem:[#allocation3 + $0x64] sm:$0xff] }
 0x86e   :  { %14298 = vst [vmem:[#allocation40_spill] sm:$0xff] %v13639_v60  ;;  %v7196_v60 = vld [vmem:[#allocation3 + $0x6b] sm:$0xff] }
 0x86f   :  { %14300 = vst [vmem:[#allocation41_spill] sm:$0xff] %v13643_v6 }
 0x870   :  { %14304 = vst [vmem:[#allocation43_spill] sm:$0xff] %v13657_v23 }
 0x873   :  { %9774 = vmatmul.msk.f32.gmra.mxu1 %vm6060_vm2, %v6976_v12  ;;  %v13653_v37 = vpop.f32.mrf.mxu1 }
 0x874   :  { %9799 = vmatmul.msk.f32.gmra.mxu2 %vm6060_vm2, %v7194_v49  ;;  %v13649_v12 = vpop.f32.mrf.mxu2  ;;  %v13651_v49 = vpop.f32.mrf.mxu3  ;;  %14303 = vst [vmem:[#allocation26_spill] sm:$0xff] %v13653_v37  ;;  %v13667_v37 = vld [vmem:[#allocation3 + $0x74] sm:$0xff] }
 0x875   :  { %9824 = vmatmul.msk.f32.gmra.mxu3 %vm6060_vm2, %v13631_v61  ;;  %14301 = vst [vmem:[#allocation25_spill] sm:$0xff] %v13649_v12  ;;  %v9940_v61 = vld [vmem:[#allocation3 + $0x6a] sm:$0xff] }
 0x876   :  { %14302 = vst [vmem:[#allocation42_spill] sm:$0xff] %v13651_v49  ;;  %v9941_v49 = vld [vmem:[#allocation3 + $0x72] sm:$0xff] }
 0x877   :  { %14307 = vst [vmem:[#allocation28_spill] sm:$0xff] %v13667_v37 }
 0x87b   :  { %9775 = vmatmul.msk.f32.gmra.mxu1 %vm6060_vm2, %v9939_v54 }
 0x87c   :  { %9800 = vmatmul.msk.f32.gmra.mxu2 %vm6060_vm2, %v7195_v24  ;;  %v13661_v54 = vpop.f32.mrf.mxu2  ;;  %v13663_v24 = vpop.f32.mrf.mxu3 }
 0x87d   :  { %9825 = vmatmul.msk.f32.gmra.mxu3 %vm6060_vm2, %v13643_v6  ;;  %14305 = vst [vmem:[#allocation27_spill] sm:$0xff] %v13661_v54  ;;  %v7197_v6 = vld [vmem:[#allocation3 + $0x73] sm:$0xff]  ;;  %v7198_v54 = vld [vmem:[#allocation3 + $0x7b] sm:$0xff] }
 0x87e   :  { %14306 = vst [vmem:[#allocation44_spill] sm:$0xff] %v13663_v24  ;;  %v9942_v24 = vld [vmem:[#allocation3 + $0x7a] sm:$0xff] }
 0x883   :  { %9776 = vmatmul.msk.f32.gmra.mxu1 %vm6060_vm2, %v9940_v61 }
 0x884   :  { %9801 = vmatmul.msk.f32.gmra.mxu2 %vm6060_vm2, %v7196_v60 }
 0x885   :  { %9826 = vmatmul.msk.f32.gmra.mxu3 %vm6060_vm2, %v13657_v23 }
 0x888   :  { %v6572_v12 = vpop.f32.mrf.mxu1 }
 0x88b   :  { %9777 = vmatmul.msk.f32.gmra.mxu1 %vm6060_vm2, %v9941_v49  ;;  %v13675_v49 = vld [vmem:[#allocation3 + $0x7c] sm:$0xff] }
 0x88c   :  { %9802 = vmatmul.msk.f32.gmra.mxu2 %vm6060_vm2, %v7197_v6 }
 0x88d   :  { %9827 = vmatmul.msk.f32.gmra.mxu3 %vm6060_vm2, %v13667_v37 }
 0x88f   :  { %v6739_v61 = vpop.f32.mrf.mxu2 }
 0x890   :  { %v6740_v60 = vadd.f32 %v6739_v61, %v6572_v12  ;;  %v6932_v56 = vpop.f32.mrf.mxu3  ;;  %v6575_v23 = vpop.f32.mrf.mxu1  ;;  %v9943_v12 = vld [vmem:[#allocation3 + $0x82] sm:$0xff] }
 0x892   :  { %v13671_v21 = vadd.f32 %v6932_v56, %v6740_v60  ;;  %v13681_v56 = vld [vmem:[#allocation3 + $0x84] sm:$0xff] }
 0x893   :  { %9778 = vmatmul.msk.f32.gmra.mxu1 %vm6060_vm2, %v9942_v24  ;;  %v7200_v60 = vld [vmem:[#allocation3 + $0x8b] sm:$0xff] }
 0x894   :  { %9803 = vmatmul.msk.f32.gmra.mxu2 %vm6060_vm2, %v7198_v54  ;;  %v6674_v54 = vadd.f32 %v13409_v10, %v13401_v29  ;;  %v6677_v29 = vadd.f32 %v13423_v43, %v13418_v48  ;;  %v6680_v43 = vadd.f32 %v13437_v42, %v13432_v14  ;;  %v6683_v42 = vadd.f32 %v13456_v28, %v13451_v46 }
 0x895   :  { %9828 = vmatmul.msk.f32.gmra.mxu3 %vm6060_vm2, %v13675_v49 }
 0x897   :  { %v6742_v6 = vpop.f32.mrf.mxu2 }
 0x898   :  { %v6935_v32 = vpop.f32.mrf.mxu3  ;;  %v6578_v37 = vpop.f32.mrf.mxu1 }
 0x899   :  { %v6941_v32 = vadd.f32 %v13412_v36, %v6674_v54  ;;  %v7201_v36 = vld [vmem:[#allocation3 + $0x93] sm:$0xff] }
 0x89a   :  { %v13703_v54 = vld [vmem:[#allocation3 + $0x94] sm:$0xff] }
 0x89b   :  { %9779 = vmatmul.msk.f32.gmra.mxu1 %vm6060_vm2, %v9943_v12 }
 0x89c   :  { %9804 = vmatmul.msk.f32.gmra.mxu2 %vm6060_vm2, %v7199_v15  ;;  %v13691_v15 = vld [vmem:[#allocation3 + $0x8c] sm:$0xff] }
 0x89d   :  { %9829 = vmatmul.msk.f32.gmra.mxu3 %vm6060_vm2, %v13681_v56 }
 0x89f   :  { %v6745_v23 = vpop.f32.mrf.mxu2 }
 0x8a0   :  { %v6938_v24 = vpop.f32.mrf.mxu3  ;;  %v7084_v61 = vpop.f32.mrf.mxu1 }
 0x8a1   :  { %v7159_v37 = vadd.f32 %v7084_v61, %v6941_v32 }
 0x8a3   :  { %9780 = vmatmul.msk.f32.gmra.mxu1 %vm6060_vm2, %v13274_v13  ;;  %v6942_v13 = vadd.f32 %v13426_v57, %v6677_v29  ;;  %v7202_v57 = vld [vmem:[#allocation3 + $0x9b] sm:$0xff] }
 0x8a4   :  { %9805 = vmatmul.msk.f32.gmra.mxu2 %vm6060_vm2, %v7200_v60  ;;  %v13715_v29 = vld [vmem:[#allocation3 + $0x9c] sm:$0xff] }
 0x8a5   :  { %9830 = vmatmul.msk.f32.gmra.mxu3 %vm6060_vm2, %v13691_v15 }
 0x8a7   :  { %v7302_v6 = vpop.f32.mrf.mxu2 }
 0x8a8   :  { %v7377_v10 = vadd.f32 %v7302_v6, %v7159_v37  ;;  %v7520_v12 = vpop.f32.mrf.mxu3  ;;  %v7087_v23 = vpop.f32.mrf.mxu1 }
 0x8a9   :  { %v7160_v61 = vadd.f32 %v7087_v23, %v6942_v13 }
 0x8aa   :  { %v13697_v24 = vadd.f32 %v7520_v12, %v7377_v10 }
 0x8ab   :  { %9781 = vmatmul.msk.f32.gmra.mxu1 %vm6060_vm2, %v13334_v26  ;;  %v6943_v26 = vadd.f32 %v13442_v58, %v6680_v43  ;;  %v7203_v58 = vld [vmem:[#allocation3 + $0xa3] sm:$0xff] }
 0x8ac   :  { %9806 = vmatmul.msk.f32.gmra.mxu2 %vm6060_vm2, %v7201_v36 }
 0x8ad   :  { %9831 = vmatmul.msk.f32.gmra.mxu3 %vm6060_vm2, %v13703_v54 }
 0x8af   :  { %v7305_v48 = vpop.f32.mrf.mxu2 }
 0x8b0   :  { %v7378_v60 = vadd.f32 %v7305_v48, %v7160_v61  ;;  %v7523_v32 = vpop.f32.mrf.mxu3  ;;  %v7090_v37 = vpop.f32.mrf.mxu1  ;;  %v13727_v61 = vld [vmem:[#allocation3 + $0xa4] sm:$0xff] }
 0x8b1   :  { %v7161_v10 = vadd.f32 %v7090_v37, %v6943_v26 }
 0x8b2   :  { %v13709_v6 = vadd.f32 %v7523_v32, %v7378_v60  ;;  %v6686_v32 = vadd.f32 %v13469_v3, %v13464_v34  ;;  %v6689_v3 = vadd.f32 %v13474_v40, %v13472_v35  ;;  %v6692_v35 = vadd.f32 %v13481_v11, %v13478_v0 }
 0x8b3   :  { %9782 = vmatmul.msk.f32.gmra.mxu1 %vm6060_vm2, %v13384_v19  ;;  %v6944_v19 = vadd.f32 %v13459_v17, %v6683_v42  ;;  %v7204_v17 = vld [vmem:[#allocation3 + $0xab] sm:$0xff]  ;;  %v6695_v11 = vadd.f32 %v13500_v59, %v13494_v53  ;;  %v6698_v59 = vadd.f32 %v13512_v38, %v13506_v50 }
 0x8b4   :  { %9807 = vmatmul.msk.f32.gmra.mxu2 %vm6060_vm2, %v7202_v57  ;;  %v13739_v57 = vld [vmem:[#allocation3 + $0xac] sm:$0xff] }
 0x8b5   :  { %9832 = vmatmul.msk.f32.gmra.mxu3 %vm6060_vm2, %v13715_v29 }
 0x8b7   :  { %v7308_v14 = vpop.f32.mrf.mxu2 }
 0x8b8   :  { %v7379_v12 = vadd.f32 %v7308_v14, %v7161_v10  ;;  %v7526_v23 = vpop.f32.mrf.mxu3  ;;  %v7093_v36 = vpop.f32.mrf.mxu1 }
 0x8b9   :  { %v7162_v48 = vadd.f32 %v7093_v36, %v6944_v19 }
 0x8ba   :  { %v13721_v13 = vadd.f32 %v7526_v23, %v7379_v12  ;;  %v13751_v23 = vld [vmem:[#allocation3 + $0xb4] sm:$0xff] }
 0x8bb   :  { %9783 = vmatmul.msk.f32.gmra.mxu1 %vm6060_vm2, %v13399_v47  ;;  %v6945_v47 = vadd.f32 %v13466_v2, %v6686_v32  ;;  %v7205_v2 = vld [vmem:[#allocation3 + $0xb3] sm:$0xff] }
 0x8bc   :  { %9808 = vmatmul.msk.f32.gmra.mxu2 %vm6060_vm2, %v7203_v58 }
 0x8bd   :  { %9833 = vmatmul.msk.f32.gmra.mxu3 %vm6060_vm2, %v13727_v61 }
 0x8bf   :  { %v7311_v46 = vpop.f32.mrf.mxu2 }
 0x8c0   :  { %v7380_v28 = vadd.f32 %v7311_v46, %v7162_v48  ;;  %v7529_v43 = vpop.f32.mrf.mxu3  ;;  %v7096_v60 = vpop.f32.mrf.mxu1 }
 0x8c1   :  { %v7163_v26 = vadd.f32 %v7096_v60, %v6945_v47  ;;  %v7207_v47 = vld [vmem:[#allocation3 + $0xc3] sm:$0xff] }
 0x8c2   :  { %v13733_v37 = vadd.f32 %v7529_v43, %v7380_v28  ;;  %v13763_v28 = vld [vmem:[#allocation3 + $0xbc] sm:$0xff] }
 0x8c3   :  { %9784 = vmatmul.msk.f32.gmra.mxu1 %vm6060_vm2, %v13439_v51  ;;  %v6946_v51 = vadd.f32 %v13476_v52, %v6689_v3  ;;  %v7206_v52 = vld [vmem:[#allocation3 + $0xbb] sm:$0xff]  ;;  %v6990_v3 = vld [vmem:[#allocation3 + $0xca] sm:$0xff] }
 0x8c4   :  { %9809 = vmatmul.msk.f32.gmra.mxu2 %vm6060_vm2, %v7204_v17 }
 0x8c5   :  { %9834 = vmatmul.msk.f32.gmra.mxu3 %vm6060_vm2, %v13739_v57 }
 0x8c7   :  { %v7314_v10 = vpop.f32.mrf.mxu2 }
 0x8c8   :  { %v7381_v14 = vadd.f32 %v7314_v10, %v7163_v26  ;;  %v7532_v42 = vpop.f32.mrf.mxu3  ;;  %v7099_v34 = vpop.f32.mrf.mxu1  ;;  %v13771_v26 = vld [vmem:[#allocation3 + $0xc4] sm:$0xff] }
 0x8c9   :  { %v7164_v36 = vadd.f32 %v7099_v34, %v6946_v51 }
 0x8ca   :  { %v13745_v12 = vadd.f32 %v7532_v42, %v7381_v14 }
 0x8cb   :  { %9785 = vmatmul.msk.f32.gmra.mxu1 %vm6060_vm2, %v13496_v44  ;;  %v6947_v44 = vadd.f32 %v13489_v25, %v6692_v35 }
 0x8cc   :  { %9810 = vmatmul.msk.f32.gmra.mxu2 %vm6060_vm2, %v7205_v2  ;;  %v7208_v2 = vld [vmem:[#allocation3 + $0xcb] sm:$0xff] }
 0x8cd   :  { %9835 = vmatmul.msk.f32.gmra.mxu3 %vm6060_vm2, %v13751_v23 }
 0x8cf   :  { %v7317_v58 = vpop.f32.mrf.mxu2 }
 0x8d0   :  { %v7382_v40 = vadd.f32 %v7317_v58, %v7164_v36  ;;  %v7535_v19 = vpop.f32.mrf.mxu3  ;;  %v7102_v48 = vpop.f32.mrf.mxu1 }
 0x8d1   :  { %v7165_v43 = vadd.f32 %v7102_v48, %v6947_v44  ;;  %v7838_v48 = vld [vmem:[#allocation3 + $0x15] sm:$0xff] }
 0x8d2   :  { %v13757_v46 = vadd.f32 %v7535_v19, %v7382_v40  ;;  %v6701_v40 = vadd.f32 %v13528_v55, %v13520_v30  ;;  %v7839_v30 = vld [vmem:[#allocation3 + $0x1d] sm:$0xff] }
 0x8d3   :  { %9786 = vmatmul.msk.f32.gmra.mxu1 %vm6060_vm2, %v13510_v8  ;;  %v6948_v8 = vadd.f32 %v13504_v63, %v6695_v11  ;;  %v13783_v63 = vld [vmem:[#allocation3 + $0xcc] sm:$0xff] }
 0x8d4   :  { %9811 = vmatmul.msk.f32.gmra.mxu2 %vm6060_vm2, %v7206_v52  ;;  %v8056_v52 = vld [vmem:[#allocation3 + $0x16] sm:$0xff] }
 0x8d5   :  { %9836 = vmatmul.msk.f32.gmra.mxu3 %vm6060_vm2, %v13763_v28 }
 0x8d7   :  { %v7320_v0 = vpop.f32.mrf.mxu2 }
 0x8d8   :  { %v7383_v60 = vadd.f32 %v7320_v0, %v7165_v43  ;;  %v7538_v32 = vpop.f32.mrf.mxu3  ;;  %v7105_v17 = vpop.f32.mrf.mxu1 }
 0x8d9   :  { %v7166_v10 = vadd.f32 %v7105_v17, %v6948_v8  ;;  %v8058_v8 = vld [vmem:[#allocation3 + $0x26] sm:$0xff] }
 0x8da   :  { %v13769_v25 = vadd.f32 %v7538_v32, %v7383_v60 }
 0x8db   :  { %9787 = vmatmul.msk.f32.gmra.mxu1 %vm6060_vm2, %v13518_v1  ;;  %v6949_v1 = vadd.f32 %v13516_v16, %v6698_v59  ;;  %v6950_v16 = vadd.f32 %v13526_v39, %v6701_v40  ;;  %v8057_v39 = vld [vmem:[#allocation3 + $0x1e] sm:$0xff]  ;;  %v6716_v40 = vadd.f32 %v13577_v9, %v13569_v5 }
 0x8dc   :  { %9812 = vmatmul.msk.f32.gmra.mxu2 %vm6060_vm2, %v7207_v47  ;;  %v7840_v47 = vld [vmem:[#allocation3 + $0x25] sm:$0xff]  ;;  %v14311_v5 = vld [vmem:[#allocation15_spill] sm:$0xff] }
 0x8dd   :  { %9837 = vmatmul.msk.f32.gmra.mxu3 %vm6060_vm2, %v13771_v26 }
 0x8df   :  { %v7323_v53 = vpop.f32.mrf.mxu2 }
 0x8e0   :  { %v7384_v14 = vadd.f32 %v7323_v53, %v7166_v10  ;;  %v7541_v42 = vpop.f32.mrf.mxu3  ;;  %v7108_v34 = vpop.f32.mrf.mxu1 }
 0x8e1   :  { %v7167_v36 = vadd.f32 %v7108_v34, %v6949_v1 }
 0x8e2   :  { %v13781_v51 = vadd.f32 %v7541_v42, %v7384_v14  ;;  %v7841_v14 = vld [vmem:[#allocation3 + $0x2d] sm:$0xff] }
 0x8e3   :  { %9788 = vmatmul.msk.f32.gmra.mxu1 %vm6060_vm2, %v6990_v3 }
 0x8e4   :  { %9813 = vmatmul.msk.f32.gmra.mxu2 %vm6060_vm2, %v7208_v2  ;;  %v6713_v2 = vadd.f32 %v13559_v41, %v13555_v4 }
 0x8e5   :  { %9838 = vmatmul.msk.f32.gmra.mxu3 %vm6060_vm2, %v13783_v63 }
 0x8e7   :  { %v7326_v50 = vpop.f32.mrf.mxu2 }
 0x8e8   :  { %v7385_v38 = vadd.f32 %v7326_v50, %v7167_v36  ;;  %v7544_v58 = vpop.f32.mrf.mxu3  ;;  %v7111_v35 = vpop.f32.mrf.mxu1  ;;  %v7842_v50 = vld [vmem:[#allocation3 + $0x35] sm:$0xff] }
 0x8e9   :  { %v7168_v44 = vadd.f32 %v7111_v35, %v6950_v16  ;;  %v7843_v16 = vld [vmem:[#allocation3 + $0x3d] sm:$0xff] }
 0x8ea   :  { %v13792_v19 = vadd.f32 %v7544_v58, %v7385_v38 }
 0x8eb   :  { %9839 = vmatmul.msk.f32.vlgmr.msra.gmra.mxu1 %vm6060_vm2, %v13535_v45 }
 0x8ec   :  { %9864 = vmatmul.msk.f32.vlgmr.msra.gmra.mxu2 %vm6060_vm2, %v7838_v48 }
 0x8ed   :  { %9889 = vmatmul.msk.f32.vlgmr.msra.gmra.mxu3 %vm6060_vm2, %v8056_v52 }
 0x8ef   :  { %v7329_v43 = vpop.f32.mrf.mxu2 }
 0x8f0   :  { %v7386_v0 = vadd.f32 %v7329_v43, %v7168_v44  ;;  %v7547_v11 = vpop.f32.mrf.mxu3  ;;  %v7114_v60 = vpop.f32.mrf.mxu1  ;;  %v14309_v44 = vld [vmem:[#allocation50_spill] sm:$0xff] }
 0x8f2   :  { %v13799_v32 = vadd.f32 %v7547_v11, %v7386_v0 }
 0x8f3   :  { %9840 = vmatmul.msk.f32.gmra.mxu1 %vm6060_vm2, %v13543_v20  ;;  %v6710_v20 = vadd.f32 %v13547_v33, %v13539_v27 }
 0x8f4   :  { %9865 = vmatmul.msk.f32.gmra.mxu2 %vm6060_vm2, %v7839_v30 }
 0x8f5   :  { %9890 = vmatmul.msk.f32.gmra.mxu3 %vm6060_vm2, %v8057_v39  ;;  %v6953_v42 = vadd.f32 %v13549_v7, %v6710_v20  ;;  %v6954_v7 = vadd.f32 %v13561_v62, %v6713_v2  ;;  %v14308_v62 = vld [vmem:[#allocation13_spill] sm:$0xff]  ;;  %v14310_v39 = vld [vmem:[#allocation14_spill] sm:$0xff] }
 0x8f6   :  { %v6955_v52 = vadd.f32 %v14308_v62, %v6716_v40  ;;  %v6719_v9 = vadd.f32 %v14311_v5, %v14310_v39  ;;  %v14323_v39 = vld [vmem:[#allocation21_spill] sm:$0xff] }
 0x8f7   :  { %v7332_v55 = vpop.f32.mrf.mxu2 }
 0x8f8   :  { %v7550_v45 = vpop.f32.mrf.mxu3  ;;  %v7117_v17 = vpop.f32.mrf.mxu1 }
 0x8f9   :  { %v7844_v45 = vld [vmem:[#allocation3 + $0x45] sm:$0xff]  ;;  %v14312_v17 = vld [vmem:[#allocation11_spill] sm:$0xff] }
 0x8fb   :  { %9841 = vmatmul.msk.f32.gmra.mxu1 %vm6060_vm2, %v13553_v18  ;;  %v8059_v18 = vld [vmem:[#allocation3 + $0x2e] sm:$0xff] }
 0x8fc   :  { %9866 = vmatmul.msk.f32.gmra.mxu2 %vm6060_vm2, %v7840_v47  ;;  %v6956_v47 = vadd.f32 %v14312_v17, %v6719_v9 }
 0x8fd   :  { %9891 = vmatmul.msk.f32.gmra.mxu3 %vm6060_vm2, %v8058_v8  ;;  %v14313_v8 = vld [vmem:[#allocation12_spill] sm:$0xff] }
 0x8ff   :  { %v7335_v10 = vpop.f32.mrf.mxu2 }
 0x900   :  { %v7553_v53 = vpop.f32.mrf.mxu3  ;;  %v7120_v59 = vpop.f32.mrf.mxu1  ;;  %v8062_v10 = vld [vmem:[#allocation3 + $0x46] sm:$0xff] }
 0x901   :  { %v7171_v34 = vadd.f32 %v7120_v59, %v6953_v42  ;;  %v14314_v59 = vld [vmem:[#allocation16_spill] sm:$0xff] }
 0x903   :  { %9842 = vmatmul.msk.f32.gmra.mxu1 %vm6060_vm2, %v13565_v31  ;;  %v8060_v31 = vld [vmem:[#allocation3 + $0x36] sm:$0xff] }
 0x904   :  { %9867 = vmatmul.msk.f32.gmra.mxu2 %vm6060_vm2, %v7841_v14  ;;  %v14315_v14 = vld [vmem:[#allocation17_spill] sm:$0xff] }
 0x905   :  { %9892 = vmatmul.msk.f32.gmra.mxu3 %vm6060_vm2, %v8059_v18  ;;  %v6722_v42 = vadd.f32 %v14315_v14, %v14314_v59  ;;  %v14325_v59 = vld [vmem:[#allocation39_spill] sm:$0xff] }
 0x906   :  { %v8452_v14 = vld [vmem:[%s14164_s5 + $0x8] sm:$0xff] }
 0x907   :  { %v7338_v3 = vpop.f32.mrf.mxu2  ;;  %8497 = vmatpush.msrb.mxu2 %v8452_v14 }
 0x908   :  { %v7389_v1 = vadd.f32 %v7338_v3, %v7171_v34  ;;  %v7556_v27 = vpop.f32.mrf.mxu3  ;;  %v7123_v33 = vpop.f32.mrf.mxu1 }
 0x909   :  { %v7172_v38 = vadd.f32 %v7123_v33, %v6954_v7  ;;  %v8063_v7 = vld [vmem:[#allocation3 + $0x4e] sm:$0xff] }
 0x90a   :  { %v13818_v36 = vadd.f32 %v7556_v27, %v7389_v1  ;;  %v7845_v1 = vld [vmem:[#allocation3 + $0x4d] sm:$0xff] }
 0x90b   :  { %9843 = vmatmul.msk.f32.gmra.mxu1 %vm6060_vm2, %v13575_v22  ;;  %v8061_v22 = vld [vmem:[#allocation3 + $0x3e] sm:$0xff]  ;;  %v14316_v27 = vld [vmem:[#allocation34_spill] sm:$0xff] }
 0x90c   :  { %9868 = vmatmul.msk.f32.gmra.mxu2 %vm6060_vm2, %v7842_v50  ;;  %v6957_v33 = vadd.f32 %v14316_v27, %v6722_v42  ;;  %v14317_v50 = vld [vmem:[#allocation35_spill] sm:$0xff]  ;;  %v8456_v42 = vld [vmem:[%s14164_s5 + $0x18] sm:$0xff] }
 0x90d   :  { %9893 = vmatmul.msk.f32.gmra.mxu3 %vm6060_vm2, %v8060_v31  ;;  %8474 = vmatpush.msrb.mxu1 %v8456_v42 }
 0x90f   :  { %v7341_v58 = vpop.f32.mrf.mxu2 }
 0x910   :  { %v7390_v35 = vadd.f32 %v7341_v58, %v7172_v38  ;;  %v7559_v4 = vpop.f32.mrf.mxu3  ;;  %v7126_v41 = vpop.f32.mrf.mxu1  ;;  %v14318_v58 = vld [vmem:[#allocation18_spill] sm:$0xff] }
 0x911   :  { %v7173_v43 = vadd.f32 %v7126_v41, %v6955_v52  ;;  %v7846_v52 = vld [vmem:[#allocation3 + $0x55] sm:$0xff] }
 0x912   :  { %v13827_v48 = vadd.f32 %v7559_v4, %v7390_v35  ;;  %v14319_v35 = vld [vmem:[#allocation19_spill] sm:$0xff] }
 0x913   :  { %9844 = vmatmul.msk.f32.gmra.mxu1 %vm6060_vm2, %v14309_v44  ;;  %v6725_v4 = vadd.f32 %v14319_v35, %v14318_v58  ;;  %v14320_v44 = vld [vmem:[#allocation36_spill] sm:$0xff] }
 0x914   :  { %9869 = vmatmul.msk.f32.gmra.mxu2 %vm6060_vm2, %v7843_v16  ;;  %v8066_v35 = vld [vmem:[#allocation3 + $0x66] sm:$0xff] }
 0x915   :  { %9894 = vmatmul.msk.f32.gmra.mxu3 %vm6060_vm2, %v8061_v22  ;;  %v6958_v22 = vadd.f32 %v14320_v44, %v6725_v4  ;;  %v14328_v4 = vld [vmem:[#allocation23_spill] sm:$0xff] }
 0x917   :  { %v7344_v0 = vpop.f32.mrf.mxu2 }
 0x918   :  { %v7391_v11 = vadd.f32 %v7344_v0, %v7173_v43  ;;  %v7562_v60 = vpop.f32.mrf.mxu3  ;;  %v7129_v30 = vpop.f32.mrf.mxu1  ;;  %v14321_v43 = vld [vmem:[#allocation37_spill] sm:$0xff]  ;;  %v8064_v0 = vld [vmem:[#allocation3 + $0x56] sm:$0xff] }
 0x919   :  { %v7174_v20 = vadd.f32 %v7129_v30, %v6956_v47  ;;  %v14322_v30 = vld [vmem:[#allocation20_spill] sm:$0xff] }
 0x91a   :  { %v13836_v55 = vadd.f32 %v7562_v60, %v7391_v11  ;;  %v6728_v5 = vadd.f32 %v14323_v39, %v14322_v30  ;;  %v7847_v47 = vld [vmem:[#allocation3 + $0x5d] sm:$0xff]  ;;  %v7849_v39 = vld [vmem:[#allocation3 + $0x6d] sm:$0xff] }
 0x91b   :  { %9845 = vmatmul.msk.f32.gmra.mxu1 %vm6060_vm2, %v14313_v8 }
 0x91c   :  { %9870 = vmatmul.msk.f32.gmra.mxu2 %vm6060_vm2, %v7844_v45 }
 0x91d   :  { %9895 = vmatmul.msk.f32.gmra.mxu3 %vm6060_vm2, %v8062_v10  ;;  %v8065_v10 = vld [vmem:[#allocation3 + $0x5e] sm:$0xff] }
 0x91f   :  { %v7347_v53 = vpop.f32.mrf.mxu2 }
 0x920   :  { %v7392_v18 = vadd.f32 %v7347_v53, %v7174_v20  ;;  %v7565_v34 = vpop.f32.mrf.mxu3  ;;  %v7132_v3 = vpop.f32.mrf.mxu1  ;;  %v14324_v20 = vld [vmem:[#allocation38_spill] sm:$0xff] }
 0x921   :  { %v7175_v31 = vadd.f32 %v7132_v3, %v6957_v33  ;;  %v6959_v53 = vadd.f32 %v14324_v20, %v6728_v5  ;;  %v14332_v5 = vld [vmem:[#allocation42_spill] sm:$0xff] }
 0x922   :  { %v13845_v2 = vadd.f32 %v7565_v34, %v7392_v18  ;;  %v8506_v18 = vld [vmem:[%s14164_s5 + $0x28] sm:$0xff]  ;;  %v14334_v20 = vld [vmem:[#allocation26_spill] sm:$0xff] }
 0x923   :  { %9846 = vmatmul.msk.f32.gmra.mxu1 %vm6060_vm2, %v14317_v50  ;;  %8524 = vmatpush.msrb.mxu3 %v8506_v18  ;;  %v7848_v50 = vld [vmem:[#allocation3 + $0x65] sm:$0xff] }
 0x924   :  { %9871 = vmatmul.msk.f32.gmra.mxu2 %vm6060_vm2, %v7845_v1 }
 0x925   :  { %9896 = vmatmul.msk.f32.gmra.mxu3 %vm6060_vm2, %v8063_v7  ;;  %v14326_v7 = vld [vmem:[#allocation22_spill] sm:$0xff] }
 0x927   :  { %v7350_v38 = vpop.f32.mrf.mxu2 }
 0x928   :  { %v7393_v41 = vadd.f32 %v7350_v38, %v7175_v31  ;;  %v7568_v40 = vpop.f32.mrf.mxu3  ;;  %v7135_v16 = vpop.f32.mrf.mxu1  ;;  %v14327_v31 = vld [vmem:[#allocation40_spill] sm:$0xff] }
 0x929   :  { %v7176_v11 = vadd.f32 %v7135_v16, %v6958_v22  ;;  %v6731_v38 = vadd.f32 %v14327_v31, %v14326_v7 }
 0x92a   :  { %v13854_v62 = vadd.f32 %v7568_v40, %v7393_v41  ;;  %v14329_v40 = vld [vmem:[#allocation41_spill] sm:$0xff] }
 0x92b   :  { %9847 = vmatmul.msk.f32.gmra.mxu1 %vm6060_vm2, %v14321_v43  ;;  %v6960_v41 = vadd.f32 %v14328_v4, %v6731_v38 }
 0x92c   :  { %9872 = vmatmul.msk.f32.gmra.mxu2 %vm6060_vm2, %v7846_v52 }
 0x92d   :  { %9897 = vmatmul.msk.f32.gmra.mxu3 %vm6060_vm2, %v8064_v0  ;;  %v14330_v0 = vld [vmem:[#allocation24_spill] sm:$0xff] }
 0x92f   :  { %v7353_v60 = vpop.f32.mrf.mxu2 }
 0x930   :  { %v7394_v9 = vadd.f32 %v7353_v60, %v7176_v11  ;;  %v7571_v45 = vpop.f32.mrf.mxu3  ;;  %v7138_v17 = vpop.f32.mrf.mxu1  ;;  %v14331_v11 = vld [vmem:[#allocation25_spill] sm:$0xff] }
 0x931   :  { %v7177_v34 = vadd.f32 %v7138_v17, %v6959_v53  ;;  %v6734_v60 = vadd.f32 %v14331_v11, %v14330_v0  ;;  %v8067_v17 = vld [vmem:[#allocation3 + $0x6e] sm:$0xff]  ;;  %v14335_v53 = vld [vmem:[#allocation27_spill] sm:$0xff] }
 0x932   :  { %v13863_v8 = vadd.f32 %v7571_v45, %v7394_v9  ;;  %v14333_v45 = vld [vmem:[#allocation43_spill] sm:$0xff] }
 0x933   :  { %9848 = vmatmul.msk.f32.gmra.mxu1 %vm6060_vm2, %v14325_v59  ;;  %v6961_v9 = vadd.f32 %v14332_v5, %v6734_v60  ;;  %v6737_v59 = vadd.f32 %v14335_v53, %v14334_v20  ;;  %v7852_v60 = vld [vmem:[#allocation3 + $0x85] sm:$0xff]  ;;  %v8072_v20 = vld [vmem:[#allocation3 + $0x96] sm:$0xff] }
 0x934   :  { %9873 = vmatmul.msk.f32.gmra.mxu2 %vm6060_vm2, %v7847_v47 }
 0x935   :  { %9898 = vmatmul.msk.f32.gmra.mxu3 %vm6060_vm2, %v8065_v10 }
 0x937   :  { %v7356_v3 = vpop.f32.mrf.mxu2 }
 0x938   :  { %v7395_v1 = vadd.f32 %v7356_v3, %v7177_v34  ;;  %v7574_v27 = vpop.f32.mrf.mxu3  ;;  %v7141_v33 = vpop.f32.mrf.mxu1  ;;  %v7850_v3 = vld [vmem:[#allocation3 + $0x75] sm:$0xff] }
 0x939   :  { %v7178_v16 = vadd.f32 %v7141_v33, %v6960_v41  ;;  %v14337_v33 = vld [vmem:[#allocation28_spill] sm:$0xff] }
 0x93a   :  { %v13881_v58 = vadd.f32 %v7574_v27, %v7395_v1  ;;  %v14336_v1 = vld [vmem:[#allocation44_spill] sm:$0xff] }
 0x93b   :  { %9849 = vmatmul.msk.f32.gmra.mxu1 %vm6060_vm2, %v14329_v40  ;;  %v6962_v27 = vadd.f32 %v14336_v1, %v6737_v59  ;;  %v7851_v40 = vld [vmem:[#allocation3 + $0x7d] sm:$0xff] }
 0x93c   :  { %9874 = vmatmul.msk.f32.gmra.mxu2 %vm6060_vm2, %v7848_v50  ;;  %v8068_v50 = vld [vmem:[#allocation3 + $0x76] sm:$0xff] }
 0x93d   :  { %9899 = vmatmul.msk.f32.gmra.mxu3 %vm6060_vm2, %v8066_v35  ;;  %v7855_v1 = vld [vmem:[#allocation3 + $0x9d] sm:$0xff] }
 0x93f   :  { %v7359_v52 = vpop.f32.mrf.mxu2 }
 0x940   :  { %v7396_v44 = vadd.f32 %v7359_v52, %v7178_v16  ;;  %v7577_v22 = vpop.f32.mrf.mxu3  ;;  %v7144_v43 = vpop.f32.mrf.mxu1  ;;  %v8069_v16 = vld [vmem:[#allocation3 + $0x7e] sm:$0xff] }
 0x941   :  { %v7179_v47 = vadd.f32 %v7144_v43, %v6961_v9 }
 0x942   :  { %v13890_v30 = vadd.f32 %v7577_v22, %v7396_v44 }
 0x943   :  { %9850 = vmatmul.msk.f32.gmra.mxu1 %vm6060_vm2, %v14333_v45  ;;  %v7853_v45 = vld [vmem:[#allocation3 + $0x8d] sm:$0xff] }
 0x944   :  { %9875 = vmatmul.msk.f32.gmra.mxu2 %vm6060_vm2, %v7849_v39 }
 0x945   :  { %9900 = vmatmul.msk.f32.gmra.mxu3 %vm6060_vm2, %v8067_v17 }
 0x947   :  { %v7362_v10 = vpop.f32.mrf.mxu2 }
 0x948   :  { %v7397_v14 = vadd.f32 %v7362_v10, %v7179_v47  ;;  %v7580_v42 = vpop.f32.mrf.mxu3  ;;  %v7147_v18 = vpop.f32.mrf.mxu1  ;;  %v7854_v10 = vld [vmem:[#allocation3 + $0x95] sm:$0xff] }
 0x949   :  { %v7180_v7 = vadd.f32 %v7147_v18, %v6962_v27  ;;  %v8073_v27 = vld [vmem:[#allocation3 + $0x9e] sm:$0xff] }
 0x94a   :  { %v13899_v34 = vadd.f32 %v7580_v42, %v7397_v14  ;;  %v13931_v42 = vld [vmem:[%s14163_s4] ss:$0 sm:$0xff] }
 0x94b   :  { %9851 = vmatmul.msk.f32.gmra.mxu1 %vm6060_vm2, %v14337_v33 }
 0x94c   :  { %9876 = vmatmul.msk.f32.gmra.mxu2 %vm6060_vm2, %v7850_v3 }
 0x94d   :  { %9901 = vmatmul.msk.f32.gmra.mxu3 %vm6060_vm2, %v8068_v50 }
 0x94f   :  { %v7365_v31 = vpop.f32.mrf.mxu2 }
 0x950   :  { %v7398_v38 = vadd.f32 %v7365_v31, %v7180_v7  ;;  %v7583_v35 = vpop.f32.mrf.mxu3  ;;  %v7150_v4 = vpop.f32.mrf.mxu1 }
 0x951   :  { %v7181_v52 = vadd.f32 %v7150_v4, %v13671_v21  ;;  %v8071_v21 = vld [vmem:[#allocation3 + $0x8e] sm:$0xff]  ;;  %v7856_v4 = vld [vmem:[#allocation3 + $0xa5] sm:$0xff] }
 0x952   :  { %v13906_v41 = vadd.f32 %v7583_v35, %v7398_v38 }
 0x953   :  { %9852 = vmatmul.msk.f32.gmra.mxu1 %vm6060_vm2, %v13675_v49  ;;  %v8070_v49 = vld [vmem:[#allocation3 + $0x86] sm:$0xff] }
 0x954   :  { %9877 = vmatmul.msk.f32.gmra.mxu2 %vm6060_vm2, %v7851_v40 }
 0x955   :  { %9902 = vmatmul.msk.f32.gmra.mxu3 %vm6060_vm2, %v8069_v16 }
 0x957   :  { %v7368_v44 = vpop.f32.mrf.mxu2 }
 0x958   :  { %v7399_v22 = vadd.f32 %v7368_v44, %v7181_v52  ;;  %v7586_v43 = vpop.f32.mrf.mxu3  ;;  %v7153_v0 = vpop.f32.mrf.mxu1 }
 0x95a   :  { %v13913_v11 = vadd.f32 %v7586_v43, %v7399_v22 }
 0x95b   :  { %9853 = vmatmul.msk.f32.gmra.mxu1 %vm6060_vm2, %v13681_v56 }
 0x95c   :  { %9878 = vmatmul.msk.f32.gmra.mxu2 %vm6060_vm2, %v7852_v60  ;;  %v7857_v60 = vld [vmem:[#allocation3 + $0xad] sm:$0xff] }
 0x95d   :  { %9903 = vmatmul.msk.f32.gmra.mxu3 %vm6060_vm2, %v8070_v49 }
 0x95f   :  { %v7371_v39 = vpop.f32.mrf.mxu2 }
 0x960   :  { %v7589_v5 = vpop.f32.mrf.mxu3  ;;  %v7156_v9 = vpop.f32.mrf.mxu1 }
 0x963   :  { %9854 = vmatmul.msk.f32.gmra.mxu1 %vm6060_vm2, %v13691_v15 }
 0x964   :  { %9879 = vmatmul.msk.f32.gmra.mxu2 %vm6060_vm2, %v7853_v45 }
 0x965   :  { %9904 = vmatmul.msk.f32.gmra.mxu3 %vm6060_vm2, %v8071_v21 }
 0x967   :  { %v7374_v17 = vpop.f32.mrf.mxu2 }
 0x968   :  { %v7592_v47 = vpop.f32.mrf.mxu3  ;;  %v7738_v56 = vpop.f32.mrf.mxu1  ;;  %v14338_v17 = vmov 0.0  }
 0x969   :  { %v7813_v53 = vadd.f32 %v7738_v56, %v13697_v24  ;;  %6170 = vst.msk [vmem:[#allocation3 + $0xd8] sm:$0x3f] %vm6169_vm4, %v14338_v17  ;;  %v7858_v56 = vld [vmem:[#allocation3 + $0xb5] sm:$0xff] }
 0x96a   :  { %v8079_v17 = vld [vmem:[#allocation3 + $0xce] sm:$0xff] }
 0x96b   :  { %9855 = vmatmul.msk.f32.gmra.mxu1 %vm6060_vm2, %v13703_v54 }
 0x96c   :  { %9880 = vmatmul.msk.f32.gmra.mxu2 %vm6060_vm2, %v7854_v10 }
 0x96d   :  { %9905 = vmatmul.msk.f32.gmra.mxu3 %vm6060_vm2, %v8072_v20 }
 0x96f   :  { %v7956_v15 = vpop.f32.mrf.mxu2 }
 0x970   :  { %v8031_v59 = vadd.f32 %v7956_v15, %v7813_v53  ;;  %v8174_v14 = vpop.f32.mrf.mxu3  ;;  %v7741_v18 = vpop.f32.mrf.mxu1 }
 0x971   :  { %v7814_v33 = vadd.f32 %v7741_v18, %v13709_v6 }
 0x972   :  { %v8249_v3 = vadd.f32 %v8174_v14, %v8031_v59 }
 0x973   :  { %9856 = vmatmul.msk.f32.gmra.mxu1 %vm6060_vm2, %v13715_v29  ;;  %v8074_v29 = vld [vmem:[#allocation3 + $0xa6] sm:$0xff] }
 0x974   :  { %v8278_v54 = vadd.f32 %v13931_v42, %v8249_v3  ;;  %9881 = vmatmul.msk.f32.gmra.mxu2 %vm6060_vm2, %v7855_v1 }
 0x975   :  { %9906 = vmatmul.msk.f32.gmra.mxu3 %vm6060_vm2, %v8073_v27 }
 0x976   :  { %v8303_v24 = vmax.f32 %v8278_v54, 0.0 }
 0x977   :  { %v7959_v50 = vpop.f32.mrf.mxu2 }
 0x978   :  { %8329 = vst.msk [vmem:[#allocation4] sm:$0xff] %vm8328_vm3, %v8303_v24  ;;  %v8032_v7 = vadd.f32 %v7959_v50, %v7814_v33  ;;  %v8177_v31 = vpop.f32.mrf.mxu3  ;;  %v7744_v38 = vpop.f32.mrf.mxu1  ;;  %v7859_v33 = vld [vmem:[#allocation3 + $0xbd] sm:$0xff] }
 0x979   :  { %v7815_v6 = vadd.f32 %v7744_v38, %v13721_v13 }
 0x97a   :  { %v8250_v35 = vadd.f32 %v8177_v31, %v8032_v7  ;;  %v8077_v7 = vld [vmem:[#allocation3 + $0xbe] sm:$0xff] }
 0x97b   :  { %9857 = vmatmul.msk.f32.gmra.mxu1 %vm6060_vm2, %v13727_v61  ;;  %v8075_v61 = vld [vmem:[#allocation3 + $0xae] sm:$0xff] }
 0x97c   :  { %v8279_v40 = vadd.f32 %v13931_v42, %v8250_v35  ;;  %9882 = vmatmul.msk.f32.gmra.mxu2 %vm6060_vm2, %v7856_v4 }
 0x97d   :  { %9907 = vmatmul.msk.f32.gmra.mxu3 %vm6060_vm2, %v8074_v29 }
 0x97e   :  { %v8304_v16 = vmax.f32 %v8279_v40, 0.0 }
 0x97f   :  { %v7962_v52 = vpop.f32.mrf.mxu2  ;;  %v8356_v10 = vld [vmem:[#allocation4 + $0x1] ss:$2 sm:$0xf] }
 0x980   :  { %8330 = vst.msk [vmem:[#allocation4 + $0x8] sm:$0xff] %vm8328_vm3, %v8304_v16  ;;  %v8033_v44 = vadd.f32 %v7962_v52, %v7815_v6  ;;  %v8180_v22 = vpop.f32.mrf.mxu3  ;;  %v7747_v43 = vpop.f32.mrf.mxu1  ;;  %v7860_v16 = vld [vmem:[#allocation3 + $0xc5] sm:$0xff] }
 0x981   :  { %v7816_v13 = vadd.f32 %v7747_v43, %v13733_v37  ;;  %v8076_v37 = vld [vmem:[#allocation3 + $0xb6] sm:$0xff]  ;;  %v8078_v52 = vld [vmem:[#allocation3 + $0xc6] sm:$0xff] }
 0x982   :  { %v8251_v0 = vadd.f32 %v8180_v22, %v8033_v44 }
 0x983   :  { %9858 = vmatmul.msk.f32.gmra.mxu1 %vm6060_vm2, %v13739_v57  ;;  %v8354_v57 = vld [vmem:[#allocation4] ss:$2 sm:$0xf] }
 0x984   :  { %v8280_v49 = vadd.f32 %v13931_v42, %v8251_v0  ;;  %9883 = vmatmul.msk.f32.gmra.mxu2 %vm6060_vm2, %v7857_v60  ;;  %v8357_v53 = vmax.f32 %v8354_v57, %v8356_v10 }
 0x985   :  { %9908 = vmatmul.msk.f32.gmra.mxu3 %vm6060_vm2, %v8075_v61 }
 0x986   :  { %v8305_v39 = vmax.f32 %v8280_v49, 0.0 }
 0x987   :  { %v7965_v5 = vpop.f32.mrf.mxu2 }
 0x988   :  { %8331 = vst.msk [vmem:[#allocation4 + $0x10] sm:$0xff] %vm8328_vm3, %v8305_v39  ;;  %v8034_v9 = vadd.f32 %v7965_v5, %v7816_v13  ;;  %v8183_v45 = vpop.f32.mrf.mxu3  ;;  %v7750_v21 = vpop.f32.mrf.mxu1 }
 0x989   :  { %v7817_v59 = vadd.f32 %v7750_v21, %v13745_v12 }
 0x98a   :  { %v8252_v47 = vadd.f32 %v8183_v45, %v8034_v9  ;;  %v7861_v45 = vld [vmem:[#allocation3 + $0xcd] sm:$0xff] }
 0x98b   :  { %9859 = vmatmul.msk.f32.gmra.mxu1 %vm6060_vm2, %v13751_v23 }
 0x98c   :  { %v8281_v20 = vadd.f32 %v13931_v42, %v8252_v47  ;;  %9884 = vmatmul.msk.f32.gmra.mxu2 %vm6060_vm2, %v7858_v56 }
 0x98d   :  { %9909 = vmatmul.msk.f32.gmra.mxu3 %vm6060_vm2, %v8076_v37 }
 0x98e   :  { %v8306_v15 = vmax.f32 %v8281_v20, 0.0 }
 0x98f   :  { %v8359_v14 = vld [vmem:[#allocation4 + $0xa] ss:$2 sm:$0xf]  ;;  %v7968_v18 = vpop.f32.mrf.mxu2  ;;  %v8362_v27 = vld [vmem:[#allocation4 + $0xb] ss:$2 sm:$0xf] }
 0x990   :  { %v8360_v3 = vmax.f32 %v8357_v53, %v8359_v14  ;;  %8332 = vst.msk [vmem:[#allocation4 + $0x18] sm:$0xff] %vm8328_vm3, %v8306_v15  ;;  %v8035_v1 = vadd.f32 %v7968_v18, %v7817_v59  ;;  %v8186_v54 = vpop.f32.mrf.mxu3  ;;  %v7753_v24 = vpop.f32.mrf.mxu1  ;;  %v7644_v53 = vld [vmem:[#allocation3 + $0xd4] sm:$0xff]  ;;  %v8455_v18 = vld [vmem:[%s14164_s5 + $0x10] sm:$0xff] }
 0x991   :  { %v7818_v38 = vadd.f32 %v7753_v24, %v13757_v46  ;;  %v7862_v15 = vld [vmem:[#allocation3 + $0xd5] sm:$0xff]  ;;  %8475 = vmatpush.msrb.mxu1 %v8455_v18 }
 0x992   :  { %v8363_v23 = vmax.f32 %v8360_v3, %v8362_v27  ;;  %v8253_v50 = vadd.f32 %v8186_v54, %v8035_v1  ;;  %v8080_v14 = vld [vmem:[#allocation3 + $0xd6] sm:$0xff] }
 0x993   :  { %9860 = vmatmul.msk.f32.gmra.mxu1 %vm6060_vm2, %v13763_v28  ;;  %v8505_v3 = vld [vmem:[%s14164_s5 + $0x20] sm:$0xff] }
 0x994   :  { %v8282_v31 = vadd.f32 %v13931_v42, %v8253_v50  ;;  %9885 = vmatmul.msk.f32.gmra.mxu2 %vm6060_vm2, %v7859_v33  ;;  %8365 = vst.msk [vmem:[#allocation5] sm:$0xf] %vm8364_vm5, %v8363_v23  ;;  %8525 = vmatpush.msrb.mxu3 %v8505_v3 }
 0x995   :  { %9910 = vmatmul.msk.f32.gmra.mxu3 %vm6060_vm2, %v8077_v7 }
 0x996   :  { %v8307_v12 = vmax.f32 %v8282_v31, 0.0 }
 0x997   :  { %v7971_v35 = vpop.f32.mrf.mxu2  ;;  %v8367_v44 = vld [vmem:[#allocation4 + $0x14] ss:$2 sm:$0xf]  ;;  %v8369_v28 = vld [vmem:[#allocation4 + $0x15] ss:$2 sm:$0xf] }
 0x998   :  { %8333 = vst.msk [vmem:[#allocation4 + $0x20] sm:$0xff] %vm8328_vm3, %v8307_v12  ;;  %v8036_v4 = vadd.f32 %v7971_v35, %v7818_v38  ;;  %v8189_v40 = vpop.f32.mrf.mxu3  ;;  %v7756_v29 = vpop.f32.mrf.mxu1  ;;  %v8370_v46 = vmax.f32 %v8367_v44, %v8369_v28 }
 0x999   :  { %v7819_v0 = vadd.f32 %v7756_v29, %v13769_v25 }
 0x99a   :  { %v8254_v6 = vadd.f32 %v8189_v40, %v8036_v4 }
 0x99b   :  { %9861 = vmatmul.msk.f32.gmra.mxu1 %vm6060_vm2, %v13771_v26 }
 0x99c   :  { %v8283_v22 = vadd.f32 %v13931_v42, %v8254_v6  ;;  %9886 = vmatmul.msk.f32.gmra.mxu2 %vm6060_vm2, %v7860_v16 }
 0x99d   :  { %9911 = vmatmul.msk.f32.gmra.mxu3 %vm6060_vm2, %v8078_v52 }
 0x99e   :  { %v8308_v43 = vmax.f32 %v8283_v22, 0.0 }
 0x99f   :  { %v8372_v60 = vld [vmem:[#allocation4 + $0x1e] ss:$2 sm:$0xf]  ;;  %v7974_v49 = vpop.f32.mrf.mxu2  ;;  %v8375_v5 = vld [vmem:[#allocation4 + $0x1f] ss:$2 sm:$0xf] }
 0x9a0   :  { %v8373_v61 = vmax.f32 %v8370_v46, %v8372_v60  ;;  %8334 = vst.msk [vmem:[#allocation4 + $0x28] sm:$0xff] %vm8328_vm3, %v8308_v43  ;;  %v8037_v39 = vadd.f32 %v7974_v49, %v7819_v0  ;;  %v8192_v13 = vpop.f32.mrf.mxu3  ;;  %v7759_v9 = vpop.f32.mrf.mxu1 }
 0x9a1   :  { %v7820_v56 = vadd.f32 %v7759_v9, %v13781_v51  ;;  %v8451_v51 = vld [vmem:[%s14164_s5] sm:$0xff] }
 0x9a2   :  { %v8376_v21 = vmax.f32 %v8373_v61, %v8375_v5  ;;  %v8255_v26 = vadd.f32 %v8192_v13, %v8037_v39  ;;  %8498 = vmatpush.msrb.mxu2 %v8451_v51 }
 0x9a3   :  { %9862 = vmatmul.msk.f32.gmra.mxu1 %vm6060_vm2, %v13783_v63 }
 0x9a4   :  { %v8284_v47 = vadd.f32 %v13931_v42, %v8255_v26  ;;  %9887 = vmatmul.msk.f32.gmra.mxu2 %vm6060_vm2, %v7861_v45  ;;  %8377 = vst.msk [vmem:[#allocation5 + $0x4] sm:$0xf] %vm8364_vm5, %v8376_v21 }
 0x9a5   :  { %9912 = vmatmul.msk.f32.gmra.mxu3 %vm6060_vm2, %v8079_v17 }
 0x9a6   :  { %v8309_v25 = vmax.f32 %v8284_v47, 0.0 }
 0x9a7   :  { %v7977_v57 = vpop.f32.mrf.mxu2  ;;  %v8379_v7 = vld [vmem:[#allocation4 + $0x28] ss:$2 sm:$0xf]  ;;  %v8381_v31 = vld [vmem:[#allocation4 + $0x29] ss:$2 sm:$0xf] }
 0x9a8   :  { %8335 = vst.msk [vmem:[#allocation4 + $0x30] sm:$0xff] %vm8328_vm3, %v8309_v25  ;;  %v8038_v10 = vadd.f32 %v7977_v57, %v7820_v56  ;;  %v8195_v20 = vpop.f32.mrf.mxu3  ;;  %v7762_v37 = vpop.f32.mrf.mxu1  ;;  %v8382_v38 = vmax.f32 %v8379_v7, %v8381_v31 }
 0x9a9   :  { %v7821_v54 = vadd.f32 %v7762_v37, %v13792_v19 }
 0x9aa   :  { %v8256_v59 = vadd.f32 %v8195_v20, %v8038_v10 }
 0x9ab   :  { %9863 = vmatmul.msk.f32.gmra.mxu1 %vm6060_vm2, %v7644_v53 }
 0x9ac   :  { %v8285_v63 = vadd.f32 %v13931_v42, %v8256_v59  ;;  %9888 = vmatmul.msk.f32.gmra.mxu2 %vm6060_vm2, %v7862_v15 }
 0x9ad   :  { %9913 = vmatmul.msk.f32.gmra.mxu3 %vm6060_vm2, %v8080_v14 }
 0x9ae   :  { %v8310_v1 = vmax.f32 %v8285_v63, 0.0 }
 0x9af   :  { %v7980_v27 = vpop.f32.mrf.mxu2 }
 0x9b0   :  { %8336 = vst.msk [vmem:[#allocation4 + $0x38] sm:$0xff] %vm8328_vm3, %v8310_v1  ;;  %v8039_v24 = vadd.f32 %v7980_v27, %v7821_v54  ;;  %v8198_v33 = vpop.f32.mrf.mxu3  ;;  %v7765_v23 = vpop.f32.mrf.mxu1 }
 0x9b1   :  { %v7822_v4 = vadd.f32 %v7765_v23, %v13799_v32 }
 0x9b2   :  { %v8257_v50 = vadd.f32 %v8198_v33, %v8039_v24 }
 0x9b4   :  { %v8286_v12 = vadd.f32 %v13931_v42, %v8257_v50  ;;  %v8534_v50 = vld [vmem:[%s14164_s5 + $0x38] sm:$0xff] }
 0x9b5   :  { %8552 = vmatpush.msra.mxu1 %v8534_v50 }
 0x9b6   :  { %v8311_v35 = vmax.f32 %v8286_v12, 0.0 }
 0x9b7   :  { %v8384_v40 = vld [vmem:[#allocation4 + $0x32] ss:$2 sm:$0xf]  ;;  %v7983_v29 = vpop.f32.mrf.mxu2  ;;  %v8387_v52 = vld [vmem:[#allocation4 + $0x33] ss:$2 sm:$0xf] }
 0x9b8   :  { %v8385_v19 = vmax.f32 %v8382_v38, %v8384_v40  ;;  %8337 = vst.msk [vmem:[#allocation4 + $0x40] sm:$0xff] %vm8328_vm3, %v8311_v35  ;;  %v8040_v16 = vadd.f32 %v7983_v29, %v7822_v4  ;;  %v8201_v6 = vpop.f32.mrf.mxu3  ;;  %v7768_v44 = vpop.f32.mrf.mxu1  ;;  %v8533_v35 = vld [vmem:[%s14164_s5 + $0x30] sm:$0xff] }
 0x9b9   :  { %8553 = vmatpush.msra.mxu1 %v8533_v35  ;;  %v8673_v35 = vld [vmem:[%s14164_s5 + $0x80] sm:$0xff] }
 0x9ba   :  { %v8388_v28 = vmax.f32 %v8385_v19, %v8387_v52  ;;  %v8258_v22 = vadd.f32 %v8201_v6, %v8040_v16 }
 0x9bc   :  { %8389 = vst.msk [vmem:[#allocation5 + $0x8] sm:$0xf] %vm8364_vm5, %v8388_v28  ;;  %v8287_v46 = vadd.f32 %v13931_v42, %v8258_v22 }
 0x9be   :  { %v8312_v43 = vmax.f32 %v8287_v46, 0.0 }
 0x9bf   :  { %v7986_v0 = vpop.f32.mrf.mxu2  ;;  %v8391_v49 = vld [vmem:[#allocation4 + $0x3c] ss:$2 sm:$0xf]  ;;  %v8393_v61 = vld [vmem:[#allocation4 + $0x3d] ss:$2 sm:$0xf] }
 0x9c0   :  { %8338 = vst.msk [vmem:[#allocation4 + $0x48] sm:$0xff] %vm8328_vm3, %v8312_v43  ;;  %v8204_v32 = vpop.f32.mrf.mxu3  ;;  %v7771_v60 = vpop.f32.mrf.mxu1  ;;  %v8394_v39 = vmax.f32 %v8391_v49, %v8393_v61 }
 0x9c7   :  { %v8396_v13 = vld [vmem:[#allocation4 + $0x46] ss:$2 sm:$0xf]  ;;  %v7989_v5 = vpop.f32.mrf.mxu2  ;;  %v8399_v21 = vld [vmem:[#allocation4 + $0x47] ss:$2 sm:$0xf] }
 0x9c8   :  { %v8397_v9 = vmax.f32 %v8394_v39, %v8396_v13  ;;  %v8207_v45 = vpop.f32.mrf.mxu3  ;;  %v7774_v26 = vpop.f32.mrf.mxu1  ;;  %v8562_v39 = vld [vmem:[%s14164_s5 + $0x48] sm:$0xff] }
 0x9c9   :  { %v7825_v47 = vadd.f32 %v7774_v26, %v13818_v36  ;;  %8580 = vmatpush.msra.mxu2 %v8562_v39  ;;  %v8561_v26 = vld [vmem:[%s14164_s5 + $0x40] sm:$0xff] }
 0x9ca   :  { %v8400_v17 = vmax.f32 %v8397_v9, %v8399_v21 }
 0x9cb   :  { %8581 = vmatpush.msra.mxu2 %v8561_v26 }
 0x9cc   :  { %8401 = vst.msk [vmem:[#allocation5 + $0xc] sm:$0xf] %vm8364_vm5, %v8400_v17  ;;  %v8589_v17 = vld [vmem:[%s14164_s5 + $0x50] sm:$0xff] }
 0x9cf   :  { %v7992_v25 = vpop.f32.mrf.mxu2 }
 0x9d0   :  { %v8043_v56 = vadd.f32 %v7992_v25, %v7825_v47  ;;  %v8210_v57 = vpop.f32.mrf.mxu3  ;;  %v7777_v10 = vpop.f32.mrf.mxu1 }
 0x9d1   :  { %v7826_v15 = vadd.f32 %v7777_v10, %v13827_v48 }
 0x9d2   :  { %v8261_v20 = vadd.f32 %v8210_v57, %v8043_v56 }
 0x9d4   :  { %v8290_v37 = vadd.f32 %v13931_v42, %v8261_v20 }
 0x9d6   :  { %v8315_v53 = vmax.f32 %v8290_v37, 0.0  ;;  %v8617_v37 = vld [vmem:[%s14164_s5 + $0x60] sm:$0xff] }
 0x9d7   :  { %v7995_v59 = vpop.f32.mrf.mxu2 }
 0x9d8   :  { %8341 = vst.msk [vmem:[#allocation4 + $0x60] sm:$0xff] %vm8328_vm3, %v8315_v53  ;;  %v8044_v14 = vadd.f32 %v7995_v59, %v7826_v15  ;;  %v8213_v63 = vpop.f32.mrf.mxu3  ;;  %v7780_v51 = vpop.f32.mrf.mxu1  ;;  %v8646_v53 = vld [vmem:[%s14164_s5 + $0x78] sm:$0xff] }
 0x9d9   :  { %v7827_v1 = vadd.f32 %v7780_v51, %v13836_v55 }
 0x9da   :  { %v8262_v18 = vadd.f32 %v8213_v63, %v8044_v14  ;;  %v8645_v63 = vld [vmem:[%s14164_s5 + $0x70] sm:$0xff] }
 0x9dc   :  { %v8291_v3 = vadd.f32 %v13931_v42, %v8262_v18 }
 0x9de   :  { %v8316_v36 = vmax.f32 %v8291_v3, 0.0 }
 0x9df   :  { %v7998_v54 = vpop.f32.mrf.mxu2 }
 0x9e0   :  { %8342 = vst.msk [vmem:[#allocation4 + $0x68] sm:$0xff] %vm8328_vm3, %v8316_v36  ;;  %v8045_v27 = vadd.f32 %v7998_v54, %v7827_v1  ;;  %v8216_v24 = vpop.f32.mrf.mxu3  ;;  %v7783_v33 = vpop.f32.mrf.mxu1 }
 0x9e1   :  { %v7828_v31 = vadd.f32 %v7783_v33, %v13845_v2  ;;  %v8702_v33 = vld [vmem:[%s14164_s5 + $0x98] sm:$0xff] }
 0x9e2   :  { %v8263_v23 = vadd.f32 %v8216_v24, %v8045_v27 }
 0x9e4   :  { %v8292_v48 = vadd.f32 %v13931_v42, %v8263_v23 }
 0x9e6   :  { %v8317_v7 = vmax.f32 %v8292_v48, 0.0 }
 0x9e7   :  { %v8001_v12 = vpop.f32.mrf.mxu2  ;;  %v8403_v29 = vld [vmem:[#allocation4 + $0x64] ss:$2 sm:$0xf]  ;;  %v8405_v19 = vld [vmem:[#allocation4 + $0x65] ss:$2 sm:$0xf] }
 0x9e8   :  { %8343 = vst.msk [vmem:[#allocation4 + $0x70] sm:$0xff] %vm8328_vm3, %v8317_v7  ;;  %v8046_v55 = vadd.f32 %v8001_v12, %v7828_v31  ;;  %v8219_v38 = vpop.f32.mrf.mxu3  ;;  %v7786_v4 = vpop.f32.mrf.mxu1  ;;  %v8406_v6 = vmax.f32 %v8403_v29, %v8405_v19 }
 0x9e9   :  { %v7829_v2 = vadd.f32 %v7786_v4, %v13854_v62  ;;  %v8590_v62 = vld [vmem:[%s14164_s5 + $0x58] sm:$0xff]  ;;  %v8701_v4 = vld [vmem:[%s14164_s5 + $0x90] sm:$0xff] }
 0x9ea   :  { %v8264_v40 = vadd.f32 %v8219_v38, %v8046_v55  ;;  %8608 = vmatpush.msra.mxu3 %v8590_v62  ;;  %v8729_v62 = vld [vmem:[%s14164_s5 + $0xa0] sm:$0xff] }
 0x9ec   :  { %v8293_v16 = vadd.f32 %v13931_v42, %v8264_v40  ;;  %8609 = vmatpush.msra.mxu3 %v8589_v17 }
 0x9ee   :  { %v8318_v52 = vmax.f32 %v8293_v16, 0.0 }
 0x9ef   :  { %v8408_v44 = vld [vmem:[#allocation4 + $0x6e] ss:$2 sm:$0xf]  ;;  %v8004_v28 = vpop.f32.mrf.mxu2  ;;  %v8411_v0 = vld [vmem:[#allocation4 + $0x6f] ss:$2 sm:$0xf] }
 0x9f0   :  { %v8409_v22 = vmax.f32 %v8406_v6, %v8408_v44  ;;  %8344 = vst.msk [vmem:[#allocation4 + $0x78] sm:$0xff] %vm8328_vm3, %v8318_v52  ;;  %v8047_v46 = vadd.f32 %v8004_v28, %v7829_v2  ;;  %v8222_v43 = vpop.f32.mrf.mxu3  ;;  %v7789_v32 = vpop.f32.mrf.mxu1 }
 0x9f1   :  { %v7830_v5 = vadd.f32 %v7789_v32, %v13863_v8  ;;  %v8618_v8 = vld [vmem:[%s14164_s5 + $0x68] sm:$0xff] }
 0x9f2   :  { %v8412_v60 = vmax.f32 %v8409_v22, %v8411_v0  ;;  %v8265_v49 = vadd.f32 %v8222_v43, %v8047_v46  ;;  %v8730_v46 = vld [vmem:[%s14164_s5 + $0xa8] sm:$0xff]  ;;  %v8758_v43 = vld [vmem:[%s14164_s5 + $0xb8] sm:$0xff] }
 0x9f4   :  { %8413 = vst.msk [vmem:[#allocation5 + $0x10] sm:$0xf] %vm8364_vm5, %v8412_v60  ;;  %v8294_v61 = vadd.f32 %v13931_v42, %v8265_v49 }
 0x9f6   :  { %v8319_v13 = vmax.f32 %v8294_v61, 0.0 }
 0x9f7   :  { %v8007_v9 = vpop.f32.mrf.mxu2  ;;  %v8415_v36 = vld [vmem:[#allocation4 + $0x78] ss:$2 sm:$0xf]  ;;  %v8417_v54 = vld [vmem:[#allocation4 + $0x79] ss:$2 sm:$0xf] }
 0x9f8   :  { %8345 = vst.msk [vmem:[#allocation4 + $0x80] sm:$0xff] %vm8328_vm3, %v8319_v13  ;;  %v8048_v45 = vadd.f32 %v8007_v9, %v7830_v5  ;;  %v8225_v21 = vpop.f32.mrf.mxu3  ;;  %v7792_v47 = vpop.f32.mrf.mxu1  ;;  %v8418_v23 = vmax.f32 %v8415_v36, %v8417_v54  ;;  %v8757_v13 = vld [vmem:[%s14164_s5 + $0xb0] sm:$0xff]  ;;  %v8842_v54 = vld [vmem:[%s14164_s5 + $0xe8] sm:$0xff] }
 0x9f9   :  { %v7831_v59 = vadd.f32 %v7792_v47, %v13881_v58  ;;  %v8674_v58 = vld [vmem:[%s14164_s5 + $0x88] sm:$0xff] }
 0x9fa   :  { %v8266_v25 = vadd.f32 %v8225_v21, %v8048_v45 }
 0x9fb   :  { %v8454_v56 = vld [vmem:[#allocation5 + $0x1] ss:$16 sm:$0x3]  ;;  %v8450_v57 = vld [vmem:[#allocation5] ss:$16 sm:$0x3] }
 0x9fc   :  { %v8295_v10 = vadd.f32 %v13931_v42, %v8266_v25  ;;  %9914 = vmatmul.msk.f32.vlgmr.msrb.gmra.mxu1 %vm8328_vm3, %v8454_v56  ;;  %9915 = vmatmul.msk.f32.vlgmr.msrb.gmra.mxu2 %vm8328_vm3, %v8450_v57  ;;  %v8504_v20 = vld [vmem:[#allocation5 + $0x2] ss:$16 sm:$0x3]  ;;  %v8532_v27 = vld [vmem:[#allocation5 + $0x3] ss:$16 sm:$0x3] }
 0x9fd   :  { %9916 = vmatmul.msk.f32.vlgmr.msrb.gmra.mxu3 %vm8328_vm3, %v8504_v20  ;;  %8636 = vmatpush.msrb.mxu1 %v8618_v8  ;;  %v8786_v8 = vld [vmem:[%s14164_s5 + $0xc8] sm:$0xff] }
 0x9fe   :  { %v8320_v15 = vmax.f32 %v8295_v10, 0.0  ;;  %8664 = vmatpush.msrb.mxu2 %v8646_v53  ;;  %8692 = vmatpush.msrb.mxu3 %v8674_v58 }
 0x9ff   :  { %v8010_v14 = vpop.f32.mrf.mxu2  ;;  %8637 = vmatpush.msrb.mxu1 %v8617_v37  ;;  %v8814_v37 = vld [vmem:[%s14164_s5 + $0xd8] sm:$0xff] }
 0xa00   :  { %8346 = vst.msk [vmem:[#allocation4 + $0x88] sm:$0xff] %vm8328_vm3, %v8320_v15  ;;  %v8049_v51 = vadd.f32 %v8010_v14, %v7831_v59  ;;  %v8228_v18 = vpop.f32.mrf.mxu3  ;;  %8665 = vmatpush.msrb.mxu2 %v8645_v63  ;;  %v7795_v3 = vpop.f32.mrf.mxu1  ;;  %8693 = vmatpush.msrb.mxu3 %v8673_v35  ;;  %v8813_v59 = vld [vmem:[%s14164_s5 + $0xd0] sm:$0xff] }
 0xa01   :  { %v7832_v50 = vadd.f32 %v7795_v3, %v13890_v30 }
 0xa02   :  { %v8267_v1 = vadd.f32 %v8228_v18, %v8049_v51 }
 0xa04   :  { %v8296_v24 = vadd.f32 %v13931_v42, %v8267_v1  ;;  %9917 = vmatmul.msk.f32.vlgmr.msra.gmra.mxu1 %vm8328_vm3, %v8532_v27  ;;  %v8870_v27 = vld [vmem:[%s14164_s5 + $0xf8] sm:$0xff] }
 0xa05   :  { %8720 = vmatpush.msra.mxu1 %v8702_v33 }
 0xa06   :  { %v8321_v48 = vmax.f32 %v8296_v24, 0.0 }
 0xa07   :  { %v8420_v7 = vld [vmem:[#allocation4 + $0x82] ss:$2 sm:$0xf]  ;;  %v8013_v31 = vpop.f32.mrf.mxu2  ;;  %v8423_v40 = vld [vmem:[#allocation4 + $0x83] ss:$2 sm:$0xf]  ;;  %8721 = vmatpush.msra.mxu1 %v8701_v4 }
 0xa08   :  { %v8421_v12 = vmax.f32 %v8418_v23, %v8420_v7  ;;  %8347 = vst.msk [vmem:[#allocation4 + $0x90] sm:$0xff] %vm8328_vm3, %v8321_v48  ;;  %v8050_v55 = vadd.f32 %v8013_v31, %v7832_v50  ;;  %v8231_v38 = vpop.f32.mrf.mxu3  ;;  %v7798_v29 = vpop.f32.mrf.mxu1  ;;  %v8841_v23 = vld [vmem:[%s14164_s5 + $0xe0] sm:$0xff]  ;;  %v8869_v48 = vld [vmem:[%s14164_s5 + $0xf0] sm:$0xff] }
 0xa09   :  { %v7833_v52 = vadd.f32 %v7798_v29, %v13899_v34 }
 0xa0a   :  { %v8424_v30 = vmax.f32 %v8421_v12, %v8423_v40  ;;  %v8268_v19 = vadd.f32 %v8231_v38, %v8050_v55 }
 0xa0c   :  { %8425 = vst.msk [vmem:[#allocation5 + $0x14] sm:$0xf] %vm8364_vm5, %v8424_v30  ;;  %v8297_v16 = vadd.f32 %v13931_v42, %v8268_v19 }
 0xa0e   :  { %v8322_v6 = vmax.f32 %v8297_v16, 0.0 }
 0xa0f   :  { %v8016_v2 = vpop.f32.mrf.mxu2  ;;  %v8427_v0 = vld [vmem:[#allocation4 + $0x8c] ss:$2 sm:$0xf]  ;;  %v8429_v32 = vld [vmem:[#allocation4 + $0x8d] ss:$2 sm:$0xf] }
 0xa10   :  { %8348 = vst.msk [vmem:[#allocation4 + $0x98] sm:$0xff] %vm8328_vm3, %v8322_v6  ;;  %v8051_v44 = vadd.f32 %v8016_v2, %v7833_v52  ;;  %v8234_v28 = vpop.f32.mrf.mxu3  ;;  %v7801_v22 = vpop.f32.mrf.mxu1  ;;  %v8430_v5 = vmax.f32 %v8427_v0, %v8429_v32 }
 0xa11   :  { %v7834_v45 = vadd.f32 %v7801_v22, %v13906_v41  ;;  %v8785_v41 = vld [vmem:[%s14164_s5 + $0xc0] sm:$0xff] }
 0xa12   :  { %v8269_v60 = vadd.f32 %v8234_v28, %v8051_v44 }
 0xa13   :  { %v8560_v49 = vld [vmem:[#allocation5 + $0x4] ss:$16 sm:$0x3]  ;;  %v8588_v61 = vld [vmem:[#allocation5 + $0x5] ss:$16 sm:$0x3] }
 0xa14   :  { %v8298_v34 = vadd.f32 %v13931_v42, %v8269_v60  ;;  %9918 = vmatmul.msk.f32.vlgmr.msra.gmra.mxu2 %vm8328_vm3, %v8560_v49  ;;  %9919 = vmatmul.msk.f32.vlgmr.msra.gmra.mxu3 %vm8328_vm3, %v8588_v61  ;;  %v8616_v39 = vld [vmem:[#allocation5 + $0x6] ss:$16 sm:$0x3]  ;;  %v8644_v53 = vld [vmem:[#allocation5 + $0x7] ss:$16 sm:$0x3] }
 0xa15   :  { %9920 = vmatmul.msk.f32.vlgmr.msrb.gmra.mxu1 %vm8328_vm3, %v8616_v39  ;;  %8748 = vmatpush.msra.mxu2 %v8730_v46  ;;  %v8904_v39 = vld [vmem:[%s14166_s7 + $0x18] sm:$0xff] }
 0xa16   :  { %v8323_v9 = vmax.f32 %v8298_v34, 0.0  ;;  %8776 = vmatpush.msra.mxu3 %v8758_v43  ;;  %8804 = vmatpush.msrb.mxu1 %v8786_v8 }
 0xa17   :  { %v8432_v21 = vld [vmem:[#allocation4 + $0x96] ss:$2 sm:$0xf]  ;;  %v8019_v26 = vpop.f32.mrf.mxu2  ;;  %8749 = vmatpush.msra.mxu2 %v8729_v62  ;;  %v8435_v56 = vld [vmem:[#allocation4 + $0x97] ss:$2 sm:$0xf] }
 0xa18   :  { %v8433_v17 = vmax.f32 %v8430_v5, %v8432_v21  ;;  %8349 = vst.msk [vmem:[#allocation4 + $0xa0] sm:$0xff] %vm8328_vm3, %v8323_v9  ;;  %v8052_v47 = vadd.f32 %v8019_v26, %v7834_v45  ;;  %v8237_v25 = vpop.f32.mrf.mxu3  ;;  %8777 = vmatpush.msra.mxu3 %v8757_v13  ;;  %v7804_v57 = vpop.f32.mrf.mxu1  ;;  %8805 = vmatpush.msrb.mxu1 %v8785_v41  ;;  %v8903_v62 = vld [vmem:[%s14166_s7 + $0x10] sm:$0xff]  ;;  %v8902_v5 = vld [vmem:[%s14166_s7 + $0x8] sm:$0xff]  ;;  %v8901_v45 = vld [vmem:[%s14166_s7] sm:$0xff] }
 0xa19   :  { %v7835_v14 = vadd.f32 %v7804_v57, %v13913_v11 }
 0xa1a   :  { %v8436_v10 = vmax.f32 %v8433_v17, %v8435_v56  ;;  %v8270_v20 = vadd.f32 %v8237_v25, %v8052_v47 }
 0xa1c   :  { %8437 = vst.msk [vmem:[#allocation5 + $0x18] sm:$0xf] %vm8364_vm5, %v8436_v10  ;;  %v8299_v15 = vadd.f32 %v13931_v42, %v8270_v20  ;;  %9921 = vmatmul.msk.f32.vlgmr.msrb.gmra.mxu2 %vm8328_vm3, %v8644_v53 }
 0xa1d   :  { %8832 = vmatpush.msrb.mxu2 %v8814_v37 }
 0xa1e   :  { %v8324_v63 = vmax.f32 %v8299_v15, 0.0 }
 0xa1f   :  { %v8022_v51 = vpop.f32.mrf.mxu2  ;;  %8833 = vmatpush.msrb.mxu2 %v8813_v59  ;;  %v8439_v31 = vld [vmem:[#allocation4 + $0xa0] ss:$2 sm:$0xf]  ;;  %v8441_v12 = vld [vmem:[#allocation4 + $0xa1] ss:$2 sm:$0xf] }
 0xa20   :  { %8350 = vst.msk [vmem:[#allocation4 + $0xa8] sm:$0xff] %vm8328_vm3, %v8324_v63  ;;  %v8053_v18 = vadd.f32 %v8022_v51, %v7835_v14  ;;  %v8240_v3 = vpop.f32.mrf.mxu3  ;;  %v7807_v36 = vpop.f32.mrf.mxu1  ;;  %v8442_v35 = vmax.f32 %v8439_v31, %v8441_v12  ;;  %v9935_v51 = vld [vmem:[%s14165_s6] ss:$0 sm:$0xff] }
 0xa22   :  { %v8271_v1 = vadd.f32 %v8240_v3, %v8053_v18 }
 0xa23   :  { %v8672_v24 = vld [vmem:[#allocation5 + $0x8] ss:$16 sm:$0x3]  ;;  %v8700_v58 = vld [vmem:[#allocation5 + $0x9] ss:$16 sm:$0x3] }
 0xa24   :  { %v8300_v11 = vadd.f32 %v13931_v42, %v8271_v1  ;;  %9922 = vmatmul.msk.f32.vlgmr.msrb.gmra.mxu3 %vm8328_vm3, %v8672_v24  ;;  %9923 = vmatmul.msk.f32.vlgmr.msra.gmra.mxu1 %vm8328_vm3, %v8700_v58  ;;  %v8728_v33 = vld [vmem:[#allocation5 + $0xa] ss:$16 sm:$0x3]  ;;  %v8756_v38 = vld [vmem:[#allocation5 + $0xb] ss:$16 sm:$0x3] }
 0xa25   :  { %9924 = vmatmul.msk.f32.vlgmr.msra.gmra.mxu2 %vm8328_vm3, %v8728_v33  ;;  %8860 = vmatpush.msrb.mxu3 %v8842_v54  ;;  %v9936_v54 = vld [vmem:[%s14167_s8] ss:$0 sm:$0xff] }
 0xa26   :  { %v8325_v50 = vmax.f32 %v8300_v11, 0.0  ;;  %8888 = vmatpush.msra.mxu1 %v8870_v27  ;;  %8925 = vmatpush.msra.mxu2 %v8904_v39 }
 0xa27   :  { %v8025_v7 = vpop.f32.mrf.mxu2  ;;  %8861 = vmatpush.msrb.mxu3 %v8841_v23 }
 0xa28   :  { %8351 = vst.msk [vmem:[#allocation4 + $0xb0] sm:$0xff] %vm8328_vm3, %v8325_v50  ;;  %v8243_v42 = vpop.f32.mrf.mxu3  ;;  %8889 = vmatpush.msra.mxu1 %v8869_v48  ;;  %v7810_v55 = vpop.f32.mrf.mxu1  ;;  %8926 = vmatpush.msra.mxu2 %v8903_v62 }
 0xa2a   :  { %8927 = vmatpush.msra.mxu2 %v8902_v5 }
 0xa2c   :  { %9925 = vmatmul.msk.f32.vlgmr.msra.gmra.mxu3 %vm8328_vm3, %v8756_v38  ;;  %8928 = vmatpush.msra.mxu2 %v8901_v45 }
 0xa2f   :  { %v8444_v4 = vld [vmem:[#allocation4 + $0xaa] ss:$2 sm:$0xf]  ;;  %v8028_v40 = vpop.f32.mrf.mxu2  ;;  %v8447_v19 = vld [vmem:[#allocation4 + $0xab] ss:$2 sm:$0xf] }
 0xa30   :  { %v8445_v29 = vmax.f32 %v8442_v35, %v8444_v4  ;;  %v8246_v30 = vpop.f32.mrf.mxu3 }
 0xa32   :  { %v8448_v16 = vmax.f32 %v8445_v29, %v8447_v19 }
 0xa34   :  { %8449 = vst.msk [vmem:[#allocation5 + $0x1c] sm:$0xf] %vm8364_vm5, %v8448_v16 }
 0xa3b   :  { %v8784_v6 = vld [vmem:[#allocation5 + $0xc] ss:$16 sm:$0x3]  ;;  %v8812_v52 = vld [vmem:[#allocation5 + $0xd] ss:$16 sm:$0x3] }
 0xa3c   :  { %9926 = vmatmul.msk.f32.vlgmr.msrb.gmra.mxu1 %vm8328_vm3, %v8784_v6  ;;  %9927 = vmatmul.msk.f32.vlgmr.msrb.gmra.mxu2 %vm8328_vm3, %v8812_v52  ;;  %v8840_v2 = vld [vmem:[#allocation5 + $0xe] ss:$16 sm:$0x3]  ;;  %v8868_v44 = vld [vmem:[#allocation5 + $0xf] ss:$16 sm:$0x3] }
 0xa3d   :  { %9928 = vmatmul.msk.f32.vlgmr.msrb.gmra.mxu3 %vm8328_vm3, %v8840_v2 }
 0xa44   :  { %9929 = vmatmul.msk.f32.vlgmr.msra.gmra.mxu1 %vm8328_vm3, %v8868_v44 }
 0xa79   :  { %v8477_v28 = vpop.f32.mrf.mxu1 }
 0xa7f   :  { %v8500_v22 = vpop.f32.mrf.mxu2 }
 0xa80   :  { %v8501_v46 = vadd.f32 %v8500_v22, %v8477_v28  ;;  %v8527_v43 = vpop.f32.mrf.mxu3 }
 0xa81   :  { %v8555_v32 = vpop.f32.mrf.mxu1 }
 0xa82   :  { %v8530_v0 = vadd.f32 %v8527_v43, %v8501_v46 }
 0xa84   :  { %v8558_v49 = vadd.f32 %v8555_v32, %v8530_v0 }
 0xa92   :  { %v8639_v13 = vpop.f32.mrf.mxu1 }
 0xa97   :  { %v8583_v60 = vpop.f32.mrf.mxu2  ;;  %v8611_v34 = vpop.f32.mrf.mxu3 }
 0xa98   :  { %v8586_v61 = vadd.f32 %v8583_v60, %v8558_v49 }
 0xa9a   :  { %v8614_v9 = vadd.f32 %v8611_v34, %v8586_v61 }
 0xa9c   :  { %v8642_v26 = vadd.f32 %v8639_v13, %v8614_v9 }
 0xa9f   :  { %v8667_v21 = vpop.f32.mrf.mxu2 }
 0xaa0   :  { %v8670_v47 = vadd.f32 %v8667_v21, %v8642_v26 }
 0xaa1   :  { %v8723_v25 = vpop.f32.mrf.mxu1 }
 0xaa7   :  { %v8695_v17 = vpop.f32.mrf.mxu3 }
 0xaa8   :  { %v8698_v8 = vadd.f32 %v8695_v17, %v8670_v47  ;;  %v8751_v57 = vpop.f32.mrf.mxu2 }
 0xaaa   :  { %v8726_v56 = vadd.f32 %v8723_v25, %v8698_v8 }
 0xaac   :  { %v8754_v20 = vadd.f32 %v8751_v57, %v8726_v56 }
 0xaaf   :  { %v8779_v41 = vpop.f32.mrf.mxu3 }
 0xab0   :  { %v8782_v37 = vadd.f32 %v8779_v41, %v8754_v20 }
 0xab9   :  { %v8807_v10 = vpop.f32.mrf.mxu1 }
 0xaba   :  { %v8810_v53 = vadd.f32 %v8807_v10, %v8782_v37 }
 0xabf   :  { %v8835_v15 = vpop.f32.mrf.mxu2 }
 0xac0   :  { %v8838_v59 = vadd.f32 %v8835_v15, %v8810_v53  ;;  %v8863_v14 = vpop.f32.mrf.mxu3 }
 0xac1   :  { %v8891_v18 = vpop.f32.mrf.mxu1 }
 0xac2   :  { %v8866_v63 = vadd.f32 %v8863_v14, %v8838_v59 }
 0xac4   :  { %v8894_v3 = vadd.f32 %v8891_v18, %v8866_v63 }
 0xac6   :  { %v8899_v36 = vadd.f32 %v9935_v51, %v8894_v3 }
 0xac8   :  { %v8900_v1 = vmax.f32 %v8899_v36, 0.0 }
 0xaca   :  { %9930 = vmatmul.msk.f32.vlgmr.msra.gmra.mxu2 %vm8909_vm6, %v8900_v1 }
 0xb4d   :  { %v8930_v27 = vpop.f32.mrf.mxu2 }
 0xb4e   :  { %v8931_v24 = vadd.f32 %v9936_v54, %v8930_v27 }
 0xb50   :  { %8934 = vst.msk [vmem:[#allocation6] sm:$0x3] %vm8933_vm7, %v8931_v24 }
 0xb51   :  { %8945 = dma.vmem_to_hbm [thread:$0]  %s8941_s20, 32, %s8943_s22, [#allocation7]  }
 0xb52   :  { %9968 = dma.done.wait [#allocation7], 32  }
 0xb53   :  { %9969 = vsyncadd [#allocation7], 4294967264 }
 0xb54   :  { %8950 = vsyncpa [#allocation7], 1 }

</bundles_post_ra>
